<compile_context>
chip_gen: v6e
topology: v6e:2x2x1
jax: 0.10.0
libtpu: 0.0.40
codegen_flags: <defaults>
</compile_context>

<pallas_src>
import functools

import jax
import jax.numpy as jnp
from jax import lax
from jax.experimental import pallas as pl
from jax.experimental.pallas import tpu as pltpu


# ---------------------------------------------------------------------------
# Kernel
# ---------------------------------------------------------------------------
def _attention_kernel(xq_ref, xkv_ref, wq_ref, wk_ref, wv_ref, wo_ref, bo_ref,
                      o_ref,
                      q_scr, m_scr, l_scr, acc_scr,
                      *, heads):
    """Flash-style attention for one (batch, query-tile), streaming KV tiles.

    xq_ref : (1, TQ,  C)    bf16  pixels for the query tile
    xkv_ref: (1, TKV, C)    bf16  pixels for the current KV tile
    wq_ref : (heads, C, d)  bf16  Q projection (softmax scale folded in)
    wk_ref : (heads, C, d)  bf16  K projection
    wv_ref : (heads, C, d)  bf16  V projection
    wo_ref : (heads, d, C)  bf16  output 1x1-conv weight, head-major
    bo_ref : (1, C)         f32   output 1x1-conv bias
    o_ref  : (1, TQ, C)     f32   output (resident across the kv grid axis)

    scratch (persists across the kv axis for one (b, q) tile):
    q_scr  : (heads, TQ, d) bf16  projected queries
    m_scr  : (heads, TQ, 1) f32   running row max
    l_scr  : (heads, TQ, 1) f32   running denominator
    acc_scr: (heads, TQ, d) f32   running numerator
    """
    kv_i = pl.program_id(2)
    last_kv = pl.num_programs(2) - 1

    # ---- init for this (batch, query-tile): project Q once, reset softmax state.
    @pl.when(kv_i == 0)
    def _init():
        m_scr[...] = jnp.full(m_scr.shape, -jnp.inf, dtype=m_scr.dtype)
        l_scr[...] = jnp.zeros(l_scr.shape, dtype=l_scr.dtype)
        acc_scr[...] = jnp.zeros(acc_scr.shape, dtype=acc_scr.dtype)
        xq = xq_ref[0]                                    # (TQ, C) bf16
        for h in range(heads):                            # heads is small & static
            q_h = jnp.dot(xq, wq_ref[h], preferred_element_type=jnp.float32)
            q_scr[h] = q_h.astype(jnp.bfloat16)           # (TQ, d)

    # ---- one KV tile: project K/V and do the online-softmax update per head.
    xkv = xkv_ref[0]                                      # (TKV, C) bf16
    for h in range(heads):
        k_h = jnp.dot(xkv, wk_ref[h],
                      preferred_element_type=jnp.float32).astype(jnp.bfloat16)
        v_h = jnp.dot(xkv, wv_ref[h],
                      preferred_element_type=jnp.float32).astype(jnp.bfloat16)

        # sim = q @ k^T, contracting the last dims -> no materialized transpose.
        s = lax.dot_general(q_scr[h], k_h,
                            dimension_numbers=(((1,), (1,)), ((), ())),
                            preferred_element_type=jnp.float32)   # (TQ, TKV) f32

        m_prev = m_scr[h]                                         # (TQ, 1) f32
        m_new = jnp.maximum(m_prev, jnp.max(s, axis=-1, keepdims=True))
        alpha = jnp.exp(m_prev - m_new)                           # rescale factor
        p = jnp.exp(s - m_new)                                    # (TQ, TKV) f32

        l_scr[h] = alpha * l_scr[h] + jnp.sum(p, axis=-1, keepdims=True)
        acc_scr[h] = alpha * acc_scr[h] + jnp.dot(
            p.astype(jnp.bfloat16), v_h, preferred_element_type=jnp.float32)
        m_scr[h] = m_new

    # ---- finalize: normalize, output 1x1 conv, bias.  Once per query tile.
    @pl.when(kv_i == last_kv)
    def _finalize():
        tq, c_out = o_ref.shape[1], o_ref.shape[2]
        y = jnp.zeros((tq, c_out), jnp.float32)
        for h in range(heads):
            inv_l = pl.reciprocal(l_scr[h], approx=True)          # EUP, ~free
            o_h = (acc_scr[h] * inv_l).astype(jnp.bfloat16)       # (TQ, d)
            # per-head projection in the epilogue (runs once per query tile)
            y = y + jnp.dot(o_h, wo_ref[h], preferred_element_type=jnp.float32)
        o_ref[0] = (y + bo_ref[...]).astype(o_ref.dtype)


# ---------------------------------------------------------------------------
# Wrapper helpers
# ---------------------------------------------------------------------------
def _prep_params(w_qkv, w_out, b_out, *, heads, dim_head):
    """PyTorch Conv2d 1x1 weights -> head-major bf16 matmul weights + f32 bias."""
    c_in = w_qkv.shape[1]
    c_out = w_out.shape[0]
    scale = dim_head ** (-0.5)

    wqkv = w_qkv.reshape(3, heads, dim_head, c_in)          # [qkv, head, d, Cin]
    wq = jnp.transpose(wqkv[0], (0, 2, 1)) * scale          # (heads, Cin, d); scale folded
    wk = jnp.transpose(wqkv[1], (0, 2, 1))
    wv = jnp.transpose(wqkv[2], (0, 2, 1))
    wo = jnp.transpose(w_out.reshape(c_out, heads, dim_head), (1, 2, 0))  # (heads, d, Cout)

    return (wq.astype(jnp.bfloat16), wk.astype(jnp.bfloat16),
            wv.astype(jnp.bfloat16), wo.astype(jnp.bfloat16),
            b_out.reshape(1, c_out).astype(jnp.float32))


def _pick_tile(n, preferred):
    """Largest tile <= preferred that divides n and is a multiple of 8 (else n)."""
    if n <= preferred:
        return n
    t = (preferred // 8) * 8
    while t >= 8:
        if n % t == 0:
            return t
        t -= 8
    return n


def _vmem_limit_bytes(tq, tkv, c, heads, d):
    """Explicit scoped-VMEM budget from the chosen tiles, with generous headroom."""
    bf16, f32, dbl = 2, 4, 2
    x_blocks = dbl * (tq + tkv) * c * bf16                       # pipelined x tiles
    weights = dbl * heads * (3 * c * d + d * c) * bf16 + dbl * c * f32
    out_blk = dbl * tq * c * f32
    scratch = heads * tq * d * (bf16 + f32) + 2 * heads * tq * 128 * f32
    live = 4 * tq * tkv * f32 + 4 * tq * max(c, 128) * f32       # s/p + epilogue temps
    total = x_blocks + weights + out_blk + scratch + live
    return int(min(total * 1.5 + (16 << 20), 110 << 20))


# ---------------------------------------------------------------------------
# Forward
# ---------------------------------------------------------------------------
def attention_forward(x_nchw, w_qkv, w_out, b_out, *, heads, dim_head,
                      q_tile=256, kv_tile=256):
    """x_nchw: (B, C, H, W) f32.  Weights in PyTorch Conv2d layout:
       w_qkv: (3*hidden, C, 1, 1)  (bias=False),  w_out: (C, hidden, 1, 1),  b_out: (C,)."""
    b, c, h, w = x_nchw.shape
    n = h * w
    tq = _pick_tile(n, q_tile)
    tkv = _pick_tile(n, kv_tile)
    n_q, n_kv = n // tq, n // tkv

    # NCHW -> (B, N, C) channel-last (lane-dense); bf16 MXU operands.
    x_flat = jnp.transpose(x_nchw.reshape(b, c, n), (0, 2, 1)).astype(jnp.bfloat16)
    wq, wk, wv, wo, bo = _prep_params(w_qkv, w_out, b_out, heads=heads, dim_head=dim_head)

    kernel = functools.partial(_attention_kernel, heads=heads)

    out_flat = pl.pallas_call(
        kernel,
        out_shape=jax.ShapeDtypeStruct((b, n, c), jnp.float32),
        grid_spec=pltpu.PrefetchScalarGridSpec(
            num_scalar_prefetch=0,
            grid=(b, n_q, n_kv),
            in_specs=[
                pl.BlockSpec((1, tq, c), lambda bi, qi, ki: (bi, qi, 0)),      # x (queries)
                pl.BlockSpec((1, tkv, c), lambda bi, qi, ki: (bi, ki, 0)),     # x (keys/vals)
                pl.BlockSpec((heads, c, dim_head), lambda bi, qi, ki: (0, 0, 0)),  # Wq
                pl.BlockSpec((heads, c, dim_head), lambda bi, qi, ki: (0, 0, 0)),  # Wk
                pl.BlockSpec((heads, c, dim_head), lambda bi, qi, ki: (0, 0, 0)),  # Wv
                pl.BlockSpec((heads, dim_head, c), lambda bi, qi, ki: (0, 0, 0)),  # Wout
                pl.BlockSpec((1, c), lambda bi, qi, ki: (0, 0)),                   # bias
            ],
            out_specs=pl.BlockSpec((1, tq, c), lambda bi, qi, ki: (bi, qi, 0)),
            scratch_shapes=[
                pltpu.VMEM((heads, tq, dim_head), jnp.bfloat16),   # q
                pltpu.VMEM((heads, tq, 1), jnp.float32),           # running max
                pltpu.VMEM((heads, tq, 1), jnp.float32),           # running denom
                pltpu.VMEM((heads, tq, dim_head), jnp.float32),    # running numerator
            ]),
        compiler_params=pltpu.CompilerParams(
            dimension_semantics=("parallel", "parallel", "arbitrary"),
            vmem_limit_bytes=_vmem_limit_bytes(tq, tkv, c, heads, dim_head)),
    )(x_flat, x_flat, wq, wk, wv, wo, bo)

    return jnp.transpose(out_flat, (0, 2, 1)).reshape(b, c, h, w)


# ---------------------------------------------------------------------------
# References
# ---------------------------------------------------------------------------
def attention_reference(x_nchw, w_qkv, w_out, b_out, *, heads, dim_head):
    """Pure-f32 jnp mirror of the PyTorch forward (exact module semantics)."""
    b, c, h, w = x_nchw.shape
    n = h * w
    hidden = heads * dim_head
    scale = dim_head ** (-0.5)

    x_flat = x_nchw.reshape(b, c, n)                                  # (B, C, N)
    qkv = jnp.einsum('oc,bcn->bon', w_qkv.reshape(3 * hidden, c), x_flat)
    q, k, v = jnp.split(qkv, 3, axis=1)
    q = q.reshape(b, heads, dim_head, n) * scale
    k = k.reshape(b, heads, dim_head, n)
    v = v.reshape(b, heads, dim_head, n)
    sim = jnp.einsum('bhdi,bhdj->bhij', q, k)
    sim = sim - jnp.max(sim, axis=-1, keepdims=True)
    attn = jax.nn.softmax(sim, axis=-1)
    out = jnp.einsum('bhij,bhdj->bhid', attn, v)
    out = jnp.transpose(out, (0, 1, 3, 2)).reshape(b, hidden, n)
    y = jnp.einsum('oc,bcn->bon', w_out.reshape(c, hidden), out) + b_out[None, :, None]
    return y.reshape(b, c, h, w)


def attention_reference_mixed(x_nchw, w_qkv, w_out, b_out, *, heads, dim_head):
    """Reference mirroring the kernel's precision policy (bf16 matmul operands,
    f32 accumulation and f32 softmax) — used for a tight structural check."""
    b, c, h, w = x_nchw.shape
    n = h * w
    f32, bf16 = jnp.float32, jnp.bfloat16
    wq, wk, wv, wo, bo = _prep_params(w_qkv, w_out, b_out, heads=heads, dim_head=dim_head)
    x = jnp.transpose(x_nchw.reshape(b, c, n), (0, 2, 1)).astype(bf16)    # (B, N, C)

    q = jnp.einsum('bnc,hcd->bhnd', x, wq, preferred_element_type=f32).astype(bf16)
    k = jnp.einsum('bnc,hcd->bhnd', x, wk, preferred_element_type=f32).astype(bf16)
    v = jnp.einsum('bnc,hcd->bhnd', x, wv, preferred_element_type=f32).astype(bf16)
    s = jnp.einsum('bhqd,bhkd->bhqk', q, k, preferred_element_type=f32)
    p = jax.nn.softmax(s, axis=-1).astype(bf16)
    o = jnp.einsum('bhqk,bhkd->bhqd', p, v, preferred_element_type=f32).astype(bf16)
    y = jnp.einsum('bhqd,hdc->bqc', o, wo, preferred_element_type=f32) + bo
    return jnp.transpose(y, (0, 2, 1)).reshape(b, c, h, w)


# ---------------------------------------------------------------------------
# Demo / correctness check
# ---------------------------------------------------------------------------
if __name__ == "__main__":
    # Small-but-realistic DDPM mid-block shapes: 16x16 feature map, 128 channels,
    # module-default heads=4, dim_head=32 (hidden=128, lane-dense output).
    B, DIM, H, W = 2, 128, 16, 16
    HEADS, DIM_HEAD = 4, 32
    HIDDEN = HEADS * DIM_HEAD

    key = jax.random.PRNGKey(0)
    kx, kq, kw, kb = jax.random.split(key, 4)

    x = jax.random.normal(kx, (B, DIM, H, W), jnp.float32)
    # deterministic synthetic parameters in PyTorch Conv2d weight layouts
    w_qkv = jax.random.normal(kq, (3 * HIDDEN, DIM, 1, 1), jnp.float32) * 0.1
    w_out = jax.random.normal(kw, (DIM, HIDDEN, 1, 1), jnp.float32) * 0.1
    b_out = jax.random.normal(kb, (DIM,), jnp.float32) * 0.1

    # 128-wide tiles so the 256-pixel map exercises multiple query and KV tiles
    # (online softmax across KV steps); use the 256 defaults for larger maps.
    out = attention_forward(x, w_qkv, w_out, b_out,
                            heads=HEADS, dim_head=DIM_HEAD, q_tile=128, kv_tile=128)
    out = jax.block_until_ready(out)
    assert out.shape == (B, DIM, H, W)

    # Tight check vs the mixed-precision reference (same bf16-operand policy):
    # catches tiling / online-softmax / projection bugs.
    ref_mp = attention_reference_mixed(x, w_qkv, w_out, b_out,
                                       heads=HEADS, dim_head=DIM_HEAD)
    assert jnp.allclose(out, ref_mp, atol=4e-2, rtol=4e-2), \
        "mismatch vs mixed-precision reference"

    # Looser sanity check vs exact f32 module semantics (bf16 MXU operands
    # introduce ~percent-level differences).
    ref_f32 = attention_reference(x, w_qkv, w_out, b_out,
                                  heads=HEADS, dim_head=DIM_HEAD)
    assert jnp.allclose(out, ref_f32, atol=2e-1, rtol=1e-1), \
        "mismatch vs f32 reference"

    print("KERNEL_OK")
</pallas_src>

<mosaic_0001>
module attributes {stable_mosaic.version = 11 : i64} {
  func.func @_attention_kernel(%arg0: i32, %arg1: i32, %arg2: i32, %arg3: memref<1x128x128xbf16, #tpu.memory_space<vmem>>, %arg4: memref<1x128x128xbf16, #tpu.memory_space<vmem>>, %arg5: memref<4x128x32xbf16, #tpu.memory_space<vmem>>, %arg6: memref<4x128x32xbf16, #tpu.memory_space<vmem>>, %arg7: memref<4x128x32xbf16, #tpu.memory_space<vmem>>, %arg8: memref<4x32x128xbf16, #tpu.memory_space<vmem>>, %arg9: memref<1x128xf32, #tpu.memory_space<vmem>>, %arg10: memref<1x128x128xf32, #tpu.memory_space<vmem>>, %arg11: memref<4x128x32xbf16, #tpu.memory_space<vmem>>, %arg12: memref<4x128x1xf32, #tpu.memory_space<vmem>>, %arg13: memref<4x128x1xf32, #tpu.memory_space<vmem>>, %arg14: memref<4x128x32xf32, #tpu.memory_space<vmem>>) attributes {dimension_semantics = [#tpu.dimension_semantics<parallel>, #tpu.dimension_semantics<parallel>, #tpu.dimension_semantics<arbitrary>], iteration_bounds = array<i64: 2, 2, 2>, scalar_prefetch = 0 : i64, scratch_operands = 4 : i64, tpu.core_type = #tpu.core_type<tc>, window_params = [{transform_indices = @transform_0, window_bounds = array<i64: 1, 128, 128>}, {transform_indices = @transform_1, window_bounds = array<i64: 1, 128, 128>}, {pipeline_mode = #tpu.pipeline_mode<synchronous>, transform_indices = @transform_2, window_bounds = array<i64: 4, 128, 32>}, {pipeline_mode = #tpu.pipeline_mode<synchronous>, transform_indices = @transform_3, window_bounds = array<i64: 4, 128, 32>}, {pipeline_mode = #tpu.pipeline_mode<synchronous>, transform_indices = @transform_4, window_bounds = array<i64: 4, 128, 32>}, {pipeline_mode = #tpu.pipeline_mode<synchronous>, transform_indices = @transform_5, window_bounds = array<i64: 4, 32, 128>}, {pipeline_mode = #tpu.pipeline_mode<synchronous>, transform_indices = @transform_6, window_bounds = array<i64: 1, 128>}, {transform_indices = @transform_7, window_bounds = array<i64: 1, 128, 128>}]} {
    %c0_i32 = arith.constant 0 : i32
    %0 = arith.cmpi eq, %arg2, %c0_i32 : i32
    %1 = arith.extui %0 : i1 to i32
    %c0_i32_0 = arith.constant 0 : i32
    %2 = arith.cmpi ne, %1, %c0_i32_0 : i32
    scf.if %2 {
      %cst_132 = arith.constant 0xFF800000 : f32
      %180 = vector.broadcast %cst_132 : f32 to vector<4x128x1xf32>
      %c0_133 = arith.constant 0 : index
      %c0_134 = arith.constant 0 : index
      %c0_135 = arith.constant 0 : index
      %181 = vector.load %arg12[%c0_133, %c0_134, %c0_135] : memref<4x128x1xf32, #tpu.memory_space<vmem>>, vector<4x128x1xf32>
      tpu.vector_store %arg12[%c0_133, %c0_134, %c0_135], %180 {strides = array<i32>} : memref<4x128x1xf32, #tpu.memory_space<vmem>>, vector<4x128x1xf32>,
      %cst_136 = arith.constant 0.000000e+00 : f32
      %182 = vector.broadcast %cst_136 : f32 to vector<4x128x1xf32>
      %c0_137 = arith.constant 0 : index
      %c0_138 = arith.constant 0 : index
      %c0_139 = arith.constant 0 : index
      %183 = vector.load %arg13[%c0_137, %c0_138, %c0_139] : memref<4x128x1xf32, #tpu.memory_space<vmem>>, vector<4x128x1xf32>
      tpu.vector_store %arg13[%c0_137, %c0_138, %c0_139], %182 {strides = array<i32>} : memref<4x128x1xf32, #tpu.memory_space<vmem>>, vector<4x128x1xf32>,
      %cst_140 = arith.constant 0.000000e+00 : f32
      %184 = vector.broadcast %cst_140 : f32 to vector<4x128x32xf32>
      %c0_141 = arith.constant 0 : index
      %c0_142 = arith.constant 0 : index
      %c0_143 = arith.constant 0 : index
      %185 = vector.load %arg14[%c0_141, %c0_142, %c0_143] : memref<4x128x32xf32, #tpu.memory_space<vmem>>, vector<4x128x32xf32>
      tpu.vector_store %arg14[%c0_141, %c0_142, %c0_143], %184 {strides = array<i32>} : memref<4x128x32xf32, #tpu.memory_space<vmem>>, vector<4x128x32xf32>,
      %c0_144 = arith.constant 0 : index
      %c0_145 = arith.constant 0 : index
      %c0_146 = arith.constant 0 : index
      %186 = vector.load %arg3[%c0_144, %c0_145, %c0_146] : memref<1x128x128xbf16, #tpu.memory_space<vmem>>, vector<1x128x128xbf16>
      %187 = vector.shape_cast %186 : vector<1x128x128xbf16> to vector<128x128xbf16>
      %c0_147 = arith.constant 0 : index
      %c0_148 = arith.constant 0 : index
      %c0_149 = arith.constant 0 : index
      %188 = vector.load %arg5[%c0_147, %c0_148, %c0_149] : memref<4x128x32xbf16, #tpu.memory_space<vmem>>, vector<1x128x32xbf16>
      %189 = vector.shape_cast %188 : vector<1x128x32xbf16> to vector<128x32xbf16>
      %cst_150 = arith.constant dense<0.000000e+00> : vector<128x32xf32>
      %190 = tpu.matmul %187, %189, %cst_150 {dimension_numbers = #tpu.dot_dimension_numbers<[1], [0], [0], [1], [0, 0, 1, 1], [], []>} : vector<128x128xbf16>, vector<128x32xbf16>, vector<128x32xf32> -> vector<128x32xf32>
      %191 = arith.truncf %190 : vector<128x32xf32> to vector<128x32xbf16>
      %c0_151 = arith.constant 0 : index
      %c0_152 = arith.constant 0 : index
      %c0_153 = arith.constant 0 : index
      %192 = vector.load %arg11[%c0_151, %c0_152, %c0_153] : memref<4x128x32xbf16, #tpu.memory_space<vmem>>, vector<1x128x32xbf16>
      %193 = vector.shape_cast %192 : vector<1x128x32xbf16> to vector<128x32xbf16>
      %194 = vector.shape_cast %191 : vector<128x32xbf16> to vector<1x128x32xbf16>
      tpu.vector_store %arg11[%c0_151, %c0_152, %c0_153], %194 {strides = array<i32>} : memref<4x128x32xbf16, #tpu.memory_space<vmem>>, vector<1x128x32xbf16>,
      %c1_154 = arith.constant 1 : index
      %c0_155 = arith.constant 0 : index
      %c0_156 = arith.constant 0 : index
      %195 = vector.load %arg5[%c1_154, %c0_155, %c0_156] : memref<4x128x32xbf16, #tpu.memory_space<vmem>>, vector<1x128x32xbf16>
      %196 = vector.shape_cast %195 : vector<1x128x32xbf16> to vector<128x32xbf16>
      %cst_157 = arith.constant dense<0.000000e+00> : vector<128x32xf32>
      %197 = tpu.matmul %187, %196, %cst_157 {dimension_numbers = #tpu.dot_dimension_numbers<[1], [0], [0], [1], [0, 0, 1, 1], [], []>} : vector<128x128xbf16>, vector<128x32xbf16>, vector<128x32xf32> -> vector<128x32xf32>
      %198 = arith.truncf %197 : vector<128x32xf32> to vector<128x32xbf16>
      %c1_158 = arith.constant 1 : index
      %c0_159 = arith.constant 0 : index
      %c0_160 = arith.constant 0 : index
      %199 = vector.load %arg11[%c1_158, %c0_159, %c0_160] : memref<4x128x32xbf16, #tpu.memory_space<vmem>>, vector<1x128x32xbf16>
      %200 = vector.shape_cast %199 : vector<1x128x32xbf16> to vector<128x32xbf16>
      %201 = vector.shape_cast %198 : vector<128x32xbf16> to vector<1x128x32xbf16>
      tpu.vector_store %arg11[%c1_158, %c0_159, %c0_160], %201 {strides = array<i32>} : memref<4x128x32xbf16, #tpu.memory_space<vmem>>, vector<1x128x32xbf16>,
      %c2_161 = arith.constant 2 : index
      %c0_162 = arith.constant 0 : index
      %c0_163 = arith.constant 0 : index
      %202 = vector.load %arg5[%c2_161, %c0_162, %c0_163] : memref<4x128x32xbf16, #tpu.memory_space<vmem>>, vector<1x128x32xbf16>
      %203 = vector.shape_cast %202 : vector<1x128x32xbf16> to vector<128x32xbf16>
      %cst_164 = arith.constant dense<0.000000e+00> : vector<128x32xf32>
      %204 = tpu.matmul %187, %203, %cst_164 {dimension_numbers = #tpu.dot_dimension_numbers<[1], [0], [0], [1], [0, 0, 1, 1], [], []>} : vector<128x128xbf16>, vector<128x32xbf16>, vector<128x32xf32> -> vector<128x32xf32>
      %205 = arith.truncf %204 : vector<128x32xf32> to vector<128x32xbf16>
      %c2_165 = arith.constant 2 : index
      %c0_166 = arith.constant 0 : index
      %c0_167 = arith.constant 0 : index
      %206 = vector.load %arg11[%c2_165, %c0_166, %c0_167] : memref<4x128x32xbf16, #tpu.memory_space<vmem>>, vector<1x128x32xbf16>
      %207 = vector.shape_cast %206 : vector<1x128x32xbf16> to vector<128x32xbf16>
      %208 = vector.shape_cast %205 : vector<128x32xbf16> to vector<1x128x32xbf16>
      tpu.vector_store %arg11[%c2_165, %c0_166, %c0_167], %208 {strides = array<i32>} : memref<4x128x32xbf16, #tpu.memory_space<vmem>>, vector<1x128x32xbf16>,
      %c3_168 = arith.constant 3 : index
      %c0_169 = arith.constant 0 : index
      %c0_170 = arith.constant 0 : index
      %209 = vector.load %arg5[%c3_168, %c0_169, %c0_170] : memref<4x128x32xbf16, #tpu.memory_space<vmem>>, vector<1x128x32xbf16>
      %210 = vector.shape_cast %209 : vector<1x128x32xbf16> to vector<128x32xbf16>
      %cst_171 = arith.constant dense<0.000000e+00> : vector<128x32xf32>
      %211 = tpu.matmul %187, %210, %cst_171 {dimension_numbers = #tpu.dot_dimension_numbers<[1], [0], [0], [1], [0, 0, 1, 1], [], []>} : vector<128x128xbf16>, vector<128x32xbf16>, vector<128x32xf32> -> vector<128x32xf32>
      %212 = arith.truncf %211 : vector<128x32xf32> to vector<128x32xbf16>
      %c3_172 = arith.constant 3 : index
      %c0_173 = arith.constant 0 : index
      %c0_174 = arith.constant 0 : index
      %213 = vector.load %arg11[%c3_172, %c0_173, %c0_174] : memref<4x128x32xbf16, #tpu.memory_space<vmem>>, vector<1x128x32xbf16>
      %214 = vector.shape_cast %213 : vector<1x128x32xbf16> to vector<128x32xbf16>
      %215 = vector.shape_cast %212 : vector<128x32xbf16> to vector<1x128x32xbf16>
      tpu.vector_store %arg11[%c3_172, %c0_173, %c0_174], %215 {strides = array<i32>} : memref<4x128x32xbf16, #tpu.memory_space<vmem>>, vector<1x128x32xbf16>,
    } else {
    }
    %c0 = arith.constant 0 : index
    %c0_1 = arith.constant 0 : index
    %c0_2 = arith.constant 0 : index
    %3 = vector.load %arg4[%c0, %c0_1, %c0_2] : memref<1x128x128xbf16, #tpu.memory_space<vmem>>, vector<1x128x128xbf16>
    %4 = vector.shape_cast %3 : vector<1x128x128xbf16> to vector<128x128xbf16>
    %c0_3 = arith.constant 0 : index
    %c0_4 = arith.constant 0 : index
    %c0_5 = arith.constant 0 : index
    %5 = vector.load %arg6[%c0_3, %c0_4, %c0_5] : memref<4x128x32xbf16, #tpu.memory_space<vmem>>, vector<1x128x32xbf16>
    %6 = vector.shape_cast %5 : vector<1x128x32xbf16> to vector<128x32xbf16>
    %cst = arith.constant dense<0.000000e+00> : vector<128x32xf32>
    %7 = tpu.matmul %4, %6, %cst {dimension_numbers = #tpu.dot_dimension_numbers<[1], [0], [0], [1], [0, 0, 1, 1], [], []>} : vector<128x128xbf16>, vector<128x32xbf16>, vector<128x32xf32> -> vector<128x32xf32>
    %8 = arith.truncf %7 : vector<128x32xf32> to vector<128x32xbf16>
    %c0_6 = arith.constant 0 : index
    %c0_7 = arith.constant 0 : index
    %c0_8 = arith.constant 0 : index
    %9 = vector.load %arg7[%c0_6, %c0_7, %c0_8] : memref<4x128x32xbf16, #tpu.memory_space<vmem>>, vector<1x128x32xbf16>
    %10 = vector.shape_cast %9 : vector<1x128x32xbf16> to vector<128x32xbf16>
    %cst_9 = arith.constant dense<0.000000e+00> : vector<128x32xf32>
    %11 = tpu.matmul %4, %10, %cst_9 {dimension_numbers = #tpu.dot_dimension_numbers<[1], [0], [0], [1], [0, 0, 1, 1], [], []>} : vector<128x128xbf16>, vector<128x32xbf16>, vector<128x32xf32> -> vector<128x32xf32>
    %12 = arith.truncf %11 : vector<128x32xf32> to vector<128x32xbf16>
    %c0_10 = arith.constant 0 : index
    %c0_11 = arith.constant 0 : index
    %c0_12 = arith.constant 0 : index
    %13 = vector.load %arg11[%c0_10, %c0_11, %c0_12] : memref<4x128x32xbf16, #tpu.memory_space<vmem>>, vector<1x128x32xbf16>
    %14 = vector.shape_cast %13 : vector<1x128x32xbf16> to vector<128x32xbf16>
    %cst_13 = arith.constant dense<0.000000e+00> : vector<128x128xf32>
    %15 = tpu.matmul %14, %8, %cst_13 {dimension_numbers = #tpu.dot_dimension_numbers<[1], [1], [0], [0], [0, 0, 1, 0], [], []>} : vector<128x32xbf16>, vector<128x32xbf16>, vector<128x128xf32> -> vector<128x128xf32>
    %c0_14 = arith.constant 0 : index
    %c0_15 = arith.constant 0 : index
    %c0_16 = arith.constant 0 : index
    %16 = vector.load %arg12[%c0_14, %c0_15, %c0_16] : memref<4x128x1xf32, #tpu.memory_space<vmem>>, vector<1x128x1xf32>
    %17 = vector.shape_cast %16 : vector<1x128x1xf32> to vector<128x1xf32>
    %cst_17 = arith.constant dense<0xFF800000> : vector<128xf32>
    %18 = vector.multi_reduction <maximumf>, %15, %cst_17 [1] : vector<128x128xf32> to vector<128xf32>
    %19 = vector.shape_cast %18 : vector<128xf32> to vector<128x1xf32>
    %20 = arith.maximumf %17, %19 : vector<128x1xf32>
    %21 = arith.subf %17, %20 : vector<128x1xf32>
    %22 = math.exp %21 : vector<128x1xf32>
    %23 = vector.broadcast %20 : vector<128x1xf32> to vector<128x128xf32>
    %24 = arith.subf %15, %23 : vector<128x128xf32>
    %25 = math.exp %24 : vector<128x128xf32>
    %c0_18 = arith.constant 0 : index
    %c0_19 = arith.constant 0 : index
    %c0_20 = arith.constant 0 : index
    %26 = vector.load %arg13[%c0_18, %c0_19, %c0_20] : memref<4x128x1xf32, #tpu.memory_space<vmem>>, vector<1x128x1xf32>
    %27 = vector.shape_cast %26 : vector<1x128x1xf32> to vector<128x1xf32>
    %28 = arith.mulf %22, %27 : vector<128x1xf32>
    %cst_21 = arith.constant dense<0.000000e+00> : vector<128xf32>
    %29 = vector.multi_reduction <add>, %25, %cst_21 [1] : vector<128x128xf32> to vector<128xf32>
    %30 = vector.shape_cast %29 : vector<128xf32> to vector<128x1xf32>
    %31 = arith.addf %28, %30 : vector<128x1xf32>
    %c0_22 = arith.constant 0 : index
    %c0_23 = arith.constant 0 : index
    %c0_24 = arith.constant 0 : index
    %32 = vector.load %arg13[%c0_22, %c0_23, %c0_24] : memref<4x128x1xf32, #tpu.memory_space<vmem>>, vector<1x128x1xf32>
    %33 = vector.shape_cast %32 : vector<1x128x1xf32> to vector<128x1xf32>
    %34 = vector.shape_cast %31 : vector<128x1xf32> to vector<1x128x1xf32>
    tpu.vector_store %arg13[%c0_22, %c0_23, %c0_24], %34 {strides = array<i32>} : memref<4x128x1xf32, #tpu.memory_space<vmem>>, vector<1x128x1xf32>,
    %c0_25 = arith.constant 0 : index
    %c0_26 = arith.constant 0 : index
    %c0_27 = arith.constant 0 : index
    %35 = vector.load %arg14[%c0_25, %c0_26, %c0_27] : memref<4x128x32xf32, #tpu.memory_space<vmem>>, vector<1x128x32xf32>
    %36 = vector.shape_cast %35 : vector<1x128x32xf32> to vector<128x32xf32>
    %37 = vector.broadcast %22 : vector<128x1xf32> to vector<128x32xf32>
    %38 = arith.mulf %37, %36 : vector<128x32xf32>
    %39 = arith.truncf %25 : vector<128x128xf32> to vector<128x128xbf16>
    %cst_28 = arith.constant dense<0.000000e+00> : vector<128x32xf32>
    %40 = tpu.matmul %39, %12, %cst_28 {dimension_numbers = #tpu.dot_dimension_numbers<[1], [0], [0], [1], [0, 0, 1, 1], [], []>} : vector<128x128xbf16>, vector<128x32xbf16>, vector<128x32xf32> -> vector<128x32xf32>
    %41 = arith.addf %38, %40 : vector<128x32xf32>
    %c0_29 = arith.constant 0 : index
    %c0_30 = arith.constant 0 : index
    %c0_31 = arith.constant 0 : index
    %42 = vector.load %arg14[%c0_29, %c0_30, %c0_31] : memref<4x128x32xf32, #tpu.memory_space<vmem>>, vector<1x128x32xf32>
    %43 = vector.shape_cast %42 : vector<1x128x32xf32> to vector<128x32xf32>
    %44 = vector.shape_cast %41 : vector<128x32xf32> to vector<1x128x32xf32>
    tpu.vector_store %arg14[%c0_29, %c0_30, %c0_31], %44 {strides = array<i32>} : memref<4x128x32xf32, #tpu.memory_space<vmem>>, vector<1x128x32xf32>,
    %c0_32 = arith.constant 0 : index
    %c0_33 = arith.constant 0 : index
    %c0_34 = arith.constant 0 : index
    %45 = vector.load %arg12[%c0_32, %c0_33, %c0_34] : memref<4x128x1xf32, #tpu.memory_space<vmem>>, vector<1x128x1xf32>
    %46 = vector.shape_cast %45 : vector<1x128x1xf32> to vector<128x1xf32>
    %47 = vector.shape_cast %20 : vector<128x1xf32> to vector<1x128x1xf32>
    tpu.vector_store %arg12[%c0_32, %c0_33, %c0_34], %47 {strides = array<i32>} : memref<4x128x1xf32, #tpu.memory_space<vmem>>, vector<1x128x1xf32>,
    %c1 = arith.constant 1 : index
    %c0_35 = arith.constant 0 : index
    %c0_36 = arith.constant 0 : index
    %48 = vector.load %arg6[%c1, %c0_35, %c0_36] : memref<4x128x32xbf16, #tpu.memory_space<vmem>>, vector<1x128x32xbf16>
    %49 = vector.shape_cast %48 : vector<1x128x32xbf16> to vector<128x32xbf16>
    %cst_37 = arith.constant dense<0.000000e+00> : vector<128x32xf32>
    %50 = tpu.matmul %4, %49, %cst_37 {dimension_numbers = #tpu.dot_dimension_numbers<[1], [0], [0], [1], [0, 0, 1, 1], [], []>} : vector<128x128xbf16>, vector<128x32xbf16>, vector<128x32xf32> -> vector<128x32xf32>
    %51 = arith.truncf %50 : vector<128x32xf32> to vector<128x32xbf16>
    %c1_38 = arith.constant 1 : index
    %c0_39 = arith.constant 0 : index
    %c0_40 = arith.constant 0 : index
    %52 = vector.load %arg7[%c1_38, %c0_39, %c0_40] : memref<4x128x32xbf16, #tpu.memory_space<vmem>>, vector<1x128x32xbf16>
    %53 = vector.shape_cast %52 : vector<1x128x32xbf16> to vector<128x32xbf16>
    %cst_41 = arith.constant dense<0.000000e+00> : vector<128x32xf32>
    %54 = tpu.matmul %4, %53, %cst_41 {dimension_numbers = #tpu.dot_dimension_numbers<[1], [0], [0], [1], [0, 0, 1, 1], [], []>} : vector<128x128xbf16>, vector<128x32xbf16>, vector<128x32xf32> -> vector<128x32xf32>
    %55 = arith.truncf %54 : vector<128x32xf32> to vector<128x32xbf16>
    %c1_42 = arith.constant 1 : index
    %c0_43 = arith.constant 0 : index
    %c0_44 = arith.constant 0 : index
    %56 = vector.load %arg11[%c1_42, %c0_43, %c0_44] : memref<4x128x32xbf16, #tpu.memory_space<vmem>>, vector<1x128x32xbf16>
    %57 = vector.shape_cast %56 : vector<1x128x32xbf16> to vector<128x32xbf16>
    %cst_45 = arith.constant dense<0.000000e+00> : vector<128x128xf32>
    %58 = tpu.matmul %57, %51, %cst_45 {dimension_numbers = #tpu.dot_dimension_numbers<[1], [1], [0], [0], [0, 0, 1, 0], [], []>} : vector<128x32xbf16>, vector<128x32xbf16>, vector<128x128xf32> -> vector<128x128xf32>
    %c1_46 = arith.constant 1 : index
    %c0_47 = arith.constant 0 : index
    %c0_48 = arith.constant 0 : index
    %59 = vector.load %arg12[%c1_46, %c0_47, %c0_48] : memref<4x128x1xf32, #tpu.memory_space<vmem>>, vector<1x128x1xf32>
    %60 = vector.shape_cast %59 : vector<1x128x1xf32> to vector<128x1xf32>
    %cst_49 = arith.constant dense<0xFF800000> : vector<128xf32>
    %61 = vector.multi_reduction <maximumf>, %58, %cst_49 [1] : vector<128x128xf32> to vector<128xf32>
    %62 = vector.shape_cast %61 : vector<128xf32> to vector<128x1xf32>
    %63 = arith.maximumf %60, %62 : vector<128x1xf32>
    %64 = arith.subf %60, %63 : vector<128x1xf32>
    %65 = math.exp %64 : vector<128x1xf32>
    %66 = vector.broadcast %63 : vector<128x1xf32> to vector<128x128xf32>
    %67 = arith.subf %58, %66 : vector<128x128xf32>
    %68 = math.exp %67 : vector<128x128xf32>
    %c1_50 = arith.constant 1 : index
    %c0_51 = arith.constant 0 : index
    %c0_52 = arith.constant 0 : index
    %69 = vector.load %arg13[%c1_50, %c0_51, %c0_52] : memref<4x128x1xf32, #tpu.memory_space<vmem>>, vector<1x128x1xf32>
    %70 = vector.shape_cast %69 : vector<1x128x1xf32> to vector<128x1xf32>
    %71 = arith.mulf %65, %70 : vector<128x1xf32>
    %cst_53 = arith.constant dense<0.000000e+00> : vector<128xf32>
    %72 = vector.multi_reduction <add>, %68, %cst_53 [1] : vector<128x128xf32> to vector<128xf32>
    %73 = vector.shape_cast %72 : vector<128xf32> to vector<128x1xf32>
    %74 = arith.addf %71, %73 : vector<128x1xf32>
    %c1_54 = arith.constant 1 : index
    %c0_55 = arith.constant 0 : index
    %c0_56 = arith.constant 0 : index
    %75 = vector.load %arg13[%c1_54, %c0_55, %c0_56] : memref<4x128x1xf32, #tpu.memory_space<vmem>>, vector<1x128x1xf32>
    %76 = vector.shape_cast %75 : vector<1x128x1xf32> to vector<128x1xf32>
    %77 = vector.shape_cast %74 : vector<128x1xf32> to vector<1x128x1xf32>
    tpu.vector_store %arg13[%c1_54, %c0_55, %c0_56], %77 {strides = array<i32>} : memref<4x128x1xf32, #tpu.memory_space<vmem>>, vector<1x128x1xf32>,
    %c1_57 = arith.constant 1 : index
    %c0_58 = arith.constant 0 : index
    %c0_59 = arith.constant 0 : index
    %78 = vector.load %arg14[%c1_57, %c0_58, %c0_59] : memref<4x128x32xf32, #tpu.memory_space<vmem>>, vector<1x128x32xf32>
    %79 = vector.shape_cast %78 : vector<1x128x32xf32> to vector<128x32xf32>
    %80 = vector.broadcast %65 : vector<128x1xf32> to vector<128x32xf32>
    %81 = arith.mulf %80, %79 : vector<128x32xf32>
    %82 = arith.truncf %68 : vector<128x128xf32> to vector<128x128xbf16>
    %cst_60 = arith.constant dense<0.000000e+00> : vector<128x32xf32>
    %83 = tpu.matmul %82, %55, %cst_60 {dimension_numbers = #tpu.dot_dimension_numbers<[1], [0], [0], [1], [0, 0, 1, 1], [], []>} : vector<128x128xbf16>, vector<128x32xbf16>, vector<128x32xf32> -> vector<128x32xf32>
    %84 = arith.addf %81, %83 : vector<128x32xf32>
    %c1_61 = arith.constant 1 : index
    %c0_62 = arith.constant 0 : index
    %c0_63 = arith.constant 0 : index
    %85 = vector.load %arg14[%c1_61, %c0_62, %c0_63] : memref<4x128x32xf32, #tpu.memory_space<vmem>>, vector<1x128x32xf32>
    %86 = vector.shape_cast %85 : vector<1x128x32xf32> to vector<128x32xf32>
    %87 = vector.shape_cast %84 : vector<128x32xf32> to vector<1x128x32xf32>
    tpu.vector_store %arg14[%c1_61, %c0_62, %c0_63], %87 {strides = array<i32>} : memref<4x128x32xf32, #tpu.memory_space<vmem>>, vector<1x128x32xf32>,
    %c1_64 = arith.constant 1 : index
    %c0_65 = arith.constant 0 : index
    %c0_66 = arith.constant 0 : index
    %88 = vector.load %arg12[%c1_64, %c0_65, %c0_66] : memref<4x128x1xf32, #tpu.memory_space<vmem>>, vector<1x128x1xf32>
    %89 = vector.shape_cast %88 : vector<1x128x1xf32> to vector<128x1xf32>
    %90 = vector.shape_cast %63 : vector<128x1xf32> to vector<1x128x1xf32>
    tpu.vector_store %arg12[%c1_64, %c0_65, %c0_66], %90 {strides = array<i32>} : memref<4x128x1xf32, #tpu.memory_space<vmem>>, vector<1x128x1xf32>,
    %c2 = arith.constant 2 : index
    %c0_67 = arith.constant 0 : index
    %c0_68 = arith.constant 0 : index
    %91 = vector.load %arg6[%c2, %c0_67, %c0_68] : memref<4x128x32xbf16, #tpu.memory_space<vmem>>, vector<1x128x32xbf16>
    %92 = vector.shape_cast %91 : vector<1x128x32xbf16> to vector<128x32xbf16>
    %cst_69 = arith.constant dense<0.000000e+00> : vector<128x32xf32>
    %93 = tpu.matmul %4, %92, %cst_69 {dimension_numbers = #tpu.dot_dimension_numbers<[1], [0], [0], [1], [0, 0, 1, 1], [], []>} : vector<128x128xbf16>, vector<128x32xbf16>, vector<128x32xf32> -> vector<128x32xf32>
    %94 = arith.truncf %93 : vector<128x32xf32> to vector<128x32xbf16>
    %c2_70 = arith.constant 2 : index
    %c0_71 = arith.constant 0 : index
    %c0_72 = arith.constant 0 : index
    %95 = vector.load %arg7[%c2_70, %c0_71, %c0_72] : memref<4x128x32xbf16, #tpu.memory_space<vmem>>, vector<1x128x32xbf16>
    %96 = vector.shape_cast %95 : vector<1x128x32xbf16> to vector<128x32xbf16>
    %cst_73 = arith.constant dense<0.000000e+00> : vector<128x32xf32>
    %97 = tpu.matmul %4, %96, %cst_73 {dimension_numbers = #tpu.dot_dimension_numbers<[1], [0], [0], [1], [0, 0, 1, 1], [], []>} : vector<128x128xbf16>, vector<128x32xbf16>, vector<128x32xf32> -> vector<128x32xf32>
    %98 = arith.truncf %97 : vector<128x32xf32> to vector<128x32xbf16>
    %c2_74 = arith.constant 2 : index
    %c0_75 = arith.constant 0 : index
    %c0_76 = arith.constant 0 : index
    %99 = vector.load %arg11[%c2_74, %c0_75, %c0_76] : memref<4x128x32xbf16, #tpu.memory_space<vmem>>, vector<1x128x32xbf16>
    %100 = vector.shape_cast %99 : vector<1x128x32xbf16> to vector<128x32xbf16>
    %cst_77 = arith.constant dense<0.000000e+00> : vector<128x128xf32>
    %101 = tpu.matmul %100, %94, %cst_77 {dimension_numbers = #tpu.dot_dimension_numbers<[1], [1], [0], [0], [0, 0, 1, 0], [], []>} : vector<128x32xbf16>, vector<128x32xbf16>, vector<128x128xf32> -> vector<128x128xf32>
    %c2_78 = arith.constant 2 : index
    %c0_79 = arith.constant 0 : index
    %c0_80 = arith.constant 0 : index
    %102 = vector.load %arg12[%c2_78, %c0_79, %c0_80] : memref<4x128x1xf32, #tpu.memory_space<vmem>>, vector<1x128x1xf32>
    %103 = vector.shape_cast %102 : vector<1x128x1xf32> to vector<128x1xf32>
    %cst_81 = arith.constant dense<0xFF800000> : vector<128xf32>
    %104 = vector.multi_reduction <maximumf>, %101, %cst_81 [1] : vector<128x128xf32> to vector<128xf32>
    %105 = vector.shape_cast %104 : vector<128xf32> to vector<128x1xf32>
    %106 = arith.maximumf %103, %105 : vector<128x1xf32>
    %107 = arith.subf %103, %106 : vector<128x1xf32>
    %108 = math.exp %107 : vector<128x1xf32>
    %109 = vector.broadcast %106 : vector<128x1xf32> to vector<128x128xf32>
    %110 = arith.subf %101, %109 : vector<128x128xf32>
    %111 = math.exp %110 : vector<128x128xf32>
    %c2_82 = arith.constant 2 : index
    %c0_83 = arith.constant 0 : index
    %c0_84 = arith.constant 0 : index
    %112 = vector.load %arg13[%c2_82, %c0_83, %c0_84] : memref<4x128x1xf32, #tpu.memory_space<vmem>>, vector<1x128x1xf32>
    %113 = vector.shape_cast %112 : vector<1x128x1xf32> to vector<128x1xf32>
    %114 = arith.mulf %108, %113 : vector<128x1xf32>
    %cst_85 = arith.constant dense<0.000000e+00> : vector<128xf32>
    %115 = vector.multi_reduction <add>, %111, %cst_85 [1] : vector<128x128xf32> to vector<128xf32>
    %116 = vector.shape_cast %115 : vector<128xf32> to vector<128x1xf32>
    %117 = arith.addf %114, %116 : vector<128x1xf32>
    %c2_86 = arith.constant 2 : index
    %c0_87 = arith.constant 0 : index
    %c0_88 = arith.constant 0 : index
    %118 = vector.load %arg13[%c2_86, %c0_87, %c0_88] : memref<4x128x1xf32, #tpu.memory_space<vmem>>, vector<1x128x1xf32>
    %119 = vector.shape_cast %118 : vector<1x128x1xf32> to vector<128x1xf32>
    %120 = vector.shape_cast %117 : vector<128x1xf32> to vector<1x128x1xf32>
    tpu.vector_store %arg13[%c2_86, %c0_87, %c0_88], %120 {strides = array<i32>} : memref<4x128x1xf32, #tpu.memory_space<vmem>>, vector<1x128x1xf32>,
    %c2_89 = arith.constant 2 : index
    %c0_90 = arith.constant 0 : index
    %c0_91 = arith.constant 0 : index
    %121 = vector.load %arg14[%c2_89, %c0_90, %c0_91] : memref<4x128x32xf32, #tpu.memory_space<vmem>>, vector<1x128x32xf32>
    %122 = vector.shape_cast %121 : vector<1x128x32xf32> to vector<128x32xf32>
    %123 = vector.broadcast %108 : vector<128x1xf32> to vector<128x32xf32>
    %124 = arith.mulf %123, %122 : vector<128x32xf32>
    %125 = arith.truncf %111 : vector<128x128xf32> to vector<128x128xbf16>
    %cst_92 = arith.constant dense<0.000000e+00> : vector<128x32xf32>
    %126 = tpu.matmul %125, %98, %cst_92 {dimension_numbers = #tpu.dot_dimension_numbers<[1], [0], [0], [1], [0, 0, 1, 1], [], []>} : vector<128x128xbf16>, vector<128x32xbf16>, vector<128x32xf32> -> vector<128x32xf32>
    %127 = arith.addf %124, %126 : vector<128x32xf32>
    %c2_93 = arith.constant 2 : index
    %c0_94 = arith.constant 0 : index
    %c0_95 = arith.constant 0 : index
    %128 = vector.load %arg14[%c2_93, %c0_94, %c0_95] : memref<4x128x32xf32, #tpu.memory_space<vmem>>, vector<1x128x32xf32>
    %129 = vector.shape_cast %128 : vector<1x128x32xf32> to vector<128x32xf32>
    %130 = vector.shape_cast %127 : vector<128x32xf32> to vector<1x128x32xf32>
    tpu.vector_store %arg14[%c2_93, %c0_94, %c0_95], %130 {strides = array<i32>} : memref<4x128x32xf32, #tpu.memory_space<vmem>>, vector<1x128x32xf32>,
    %c2_96 = arith.constant 2 : index
    %c0_97 = arith.constant 0 : index
    %c0_98 = arith.constant 0 : index
    %131 = vector.load %arg12[%c2_96, %c0_97, %c0_98] : memref<4x128x1xf32, #tpu.memory_space<vmem>>, vector<1x128x1xf32>
    %132 = vector.shape_cast %131 : vector<1x128x1xf32> to vector<128x1xf32>
    %133 = vector.shape_cast %106 : vector<128x1xf32> to vector<1x128x1xf32>
    tpu.vector_store %arg12[%c2_96, %c0_97, %c0_98], %133 {strides = array<i32>} : memref<4x128x1xf32, #tpu.memory_space<vmem>>, vector<1x128x1xf32>,
    %c3 = arith.constant 3 : index
    %c0_99 = arith.constant 0 : index
    %c0_100 = arith.constant 0 : index
    %134 = vector.load %arg6[%c3, %c0_99, %c0_100] : memref<4x128x32xbf16, #tpu.memory_space<vmem>>, vector<1x128x32xbf16>
    %135 = vector.shape_cast %134 : vector<1x128x32xbf16> to vector<128x32xbf16>
    %cst_101 = arith.constant dense<0.000000e+00> : vector<128x32xf32>
    %136 = tpu.matmul %4, %135, %cst_101 {dimension_numbers = #tpu.dot_dimension_numbers<[1], [0], [0], [1], [0, 0, 1, 1], [], []>} : vector<128x128xbf16>, vector<128x32xbf16>, vector<128x32xf32> -> vector<128x32xf32>
    %137 = arith.truncf %136 : vector<128x32xf32> to vector<128x32xbf16>
    %c3_102 = arith.constant 3 : index
    %c0_103 = arith.constant 0 : index
    %c0_104 = arith.constant 0 : index
    %138 = vector.load %arg7[%c3_102, %c0_103, %c0_104] : memref<4x128x32xbf16, #tpu.memory_space<vmem>>, vector<1x128x32xbf16>
    %139 = vector.shape_cast %138 : vector<1x128x32xbf16> to vector<128x32xbf16>
    %cst_105 = arith.constant dense<0.000000e+00> : vector<128x32xf32>
    %140 = tpu.matmul %4, %139, %cst_105 {dimension_numbers = #tpu.dot_dimension_numbers<[1], [0], [0], [1], [0, 0, 1, 1], [], []>} : vector<128x128xbf16>, vector<128x32xbf16>, vector<128x32xf32> -> vector<128x32xf32>
    %141 = arith.truncf %140 : vector<128x32xf32> to vector<128x32xbf16>
    %c3_106 = arith.constant 3 : index
    %c0_107 = arith.constant 0 : index
    %c0_108 = arith.constant 0 : index
    %142 = vector.load %arg11[%c3_106, %c0_107, %c0_108] : memref<4x128x32xbf16, #tpu.memory_space<vmem>>, vector<1x128x32xbf16>
    %143 = vector.shape_cast %142 : vector<1x128x32xbf16> to vector<128x32xbf16>
    %cst_109 = arith.constant dense<0.000000e+00> : vector<128x128xf32>
    %144 = tpu.matmul %143, %137, %cst_109 {dimension_numbers = #tpu.dot_dimension_numbers<[1], [1], [0], [0], [0, 0, 1, 0], [], []>} : vector<128x32xbf16>, vector<128x32xbf16>, vector<128x128xf32> -> vector<128x128xf32>
    %c3_110 = arith.constant 3 : index
    %c0_111 = arith.constant 0 : index
    %c0_112 = arith.constant 0 : index
    %145 = vector.load %arg12[%c3_110, %c0_111, %c0_112] : memref<4x128x1xf32, #tpu.memory_space<vmem>>, vector<1x128x1xf32>
    %146 = vector.shape_cast %145 : vector<1x128x1xf32> to vector<128x1xf32>
    %cst_113 = arith.constant dense<0xFF800000> : vector<128xf32>
    %147 = vector.multi_reduction <maximumf>, %144, %cst_113 [1] : vector<128x128xf32> to vector<128xf32>
    %148 = vector.shape_cast %147 : vector<128xf32> to vector<128x1xf32>
    %149 = arith.maximumf %146, %148 : vector<128x1xf32>
    %150 = arith.subf %146, %149 : vector<128x1xf32>
    %151 = math.exp %150 : vector<128x1xf32>
    %152 = vector.broadcast %149 : vector<128x1xf32> to vector<128x128xf32>
    %153 = arith.subf %144, %152 : vector<128x128xf32>
    %154 = math.exp %153 : vector<128x128xf32>
    %c3_114 = arith.constant 3 : index
    %c0_115 = arith.constant 0 : index
    %c0_116 = arith.constant 0 : index
    %155 = vector.load %arg13[%c3_114, %c0_115, %c0_116] : memref<4x128x1xf32, #tpu.memory_space<vmem>>, vector<1x128x1xf32>
    %156 = vector.shape_cast %155 : vector<1x128x1xf32> to vector<128x1xf32>
    %157 = arith.mulf %151, %156 : vector<128x1xf32>
    %cst_117 = arith.constant dense<0.000000e+00> : vector<128xf32>
    %158 = vector.multi_reduction <add>, %154, %cst_117 [1] : vector<128x128xf32> to vector<128xf32>
    %159 = vector.shape_cast %158 : vector<128xf32> to vector<128x1xf32>
    %160 = arith.addf %157, %159 : vector<128x1xf32>
    %c3_118 = arith.constant 3 : index
    %c0_119 = arith.constant 0 : index
    %c0_120 = arith.constant 0 : index
    %161 = vector.load %arg13[%c3_118, %c0_119, %c0_120] : memref<4x128x1xf32, #tpu.memory_space<vmem>>, vector<1x128x1xf32>
    %162 = vector.shape_cast %161 : vector<1x128x1xf32> to vector<128x1xf32>
    %163 = vector.shape_cast %160 : vector<128x1xf32> to vector<1x128x1xf32>
    tpu.vector_store %arg13[%c3_118, %c0_119, %c0_120], %163 {strides = array<i32>} : memref<4x128x1xf32, #tpu.memory_space<vmem>>, vector<1x128x1xf32>,
    %c3_121 = arith.constant 3 : index
    %c0_122 = arith.constant 0 : index
    %c0_123 = arith.constant 0 : index
    %164 = vector.load %arg14[%c3_121, %c0_122, %c0_123] : memref<4x128x32xf32, #tpu.memory_space<vmem>>, vector<1x128x32xf32>
    %165 = vector.shape_cast %164 : vector<1x128x32xf32> to vector<128x32xf32>
    %166 = vector.broadcast %151 : vector<128x1xf32> to vector<128x32xf32>
    %167 = arith.mulf %166, %165 : vector<128x32xf32>
    %168 = arith.truncf %154 : vector<128x128xf32> to vector<128x128xbf16>
    %cst_124 = arith.constant dense<0.000000e+00> : vector<128x32xf32>
    %169 = tpu.matmul %168, %141, %cst_124 {dimension_numbers = #tpu.dot_dimension_numbers<[1], [0], [0], [1], [0, 0, 1, 1], [], []>} : vector<128x128xbf16>, vector<128x32xbf16>, vector<128x32xf32> -> vector<128x32xf32>
    %170 = arith.addf %167, %169 : vector<128x32xf32>
    %c3_125 = arith.constant 3 : index
    %c0_126 = arith.constant 0 : index
    %c0_127 = arith.constant 0 : index
    %171 = vector.load %arg14[%c3_125, %c0_126, %c0_127] : memref<4x128x32xf32, #tpu.memory_space<vmem>>, vector<1x128x32xf32>
    %172 = vector.shape_cast %171 : vector<1x128x32xf32> to vector<128x32xf32>
    %173 = vector.shape_cast %170 : vector<128x32xf32> to vector<1x128x32xf32>
    tpu.vector_store %arg14[%c3_125, %c0_126, %c0_127], %173 {strides = array<i32>} : memref<4x128x32xf32, #tpu.memory_space<vmem>>, vector<1x128x32xf32>,
    %c3_128 = arith.constant 3 : index
    %c0_129 = arith.constant 0 : index
    %c0_130 = arith.constant 0 : index
    %174 = vector.load %arg12[%c3_128, %c0_129, %c0_130] : memref<4x128x1xf32, #tpu.memory_space<vmem>>, vector<1x128x1xf32>
    %175 = vector.shape_cast %174 : vector<1x128x1xf32> to vector<128x1xf32>
    %176 = vector.shape_cast %149 : vector<128x1xf32> to vector<1x128x1xf32>
    tpu.vector_store %arg12[%c3_128, %c0_129, %c0_130], %176 {strides = array<i32>} : memref<4x128x1xf32, #tpu.memory_space<vmem>>, vector<1x128x1xf32>,
    %c1_i32 = arith.constant 1 : i32
    %177 = arith.cmpi eq, %arg2, %c1_i32 : i32
    %178 = arith.extui %177 : i1 to i32
    %c0_i32_131 = arith.constant 0 : i32
    %179 = arith.cmpi ne, %178, %c0_i32_131 : i32
    scf.if %179 {
      %cst_132 = arith.constant 0.000000e+00 : f32
      %180 = vector.broadcast %cst_132 : f32 to vector<128x128xf32>
      %c0_133 = arith.constant 0 : index
      %c0_134 = arith.constant 0 : index
      %c0_135 = arith.constant 0 : index
      %181 = vector.load %arg13[%c0_133, %c0_134, %c0_135] : memref<4x128x1xf32, #tpu.memory_space<vmem>>, vector<1x128x1xf32>
      %182 = vector.shape_cast %181 : vector<1x128x1xf32> to vector<128x1xf32>
      %183 = tpu.reciprocal %182 {approx = true} : vector<128x1xf32> -> vector<128x1xf32>
      %c0_136 = arith.constant 0 : index
      %c0_137 = arith.constant 0 : index
      %c0_138 = arith.constant 0 : index
      %184 = vector.load %arg14[%c0_136, %c0_137, %c0_138] : memref<4x128x32xf32, #tpu.memory_space<vmem>>, vector<1x128x32xf32>
      %185 = vector.shape_cast %184 : vector<1x128x32xf32> to vector<128x32xf32>
      %186 = vector.broadcast %183 : vector<128x1xf32> to vector<128x32xf32>
      %187 = arith.mulf %185, %186 : vector<128x32xf32>
      %188 = arith.truncf %187 : vector<128x32xf32> to vector<128x32xbf16>
      %c0_139 = arith.constant 0 : index
      %c0_140 = arith.constant 0 : index
      %c0_141 = arith.constant 0 : index
      %189 = vector.load %arg8[%c0_139, %c0_140, %c0_141] : memref<4x32x128xbf16, #tpu.memory_space<vmem>>, vector<1x32x128xbf16>
      %190 = vector.shape_cast %189 : vector<1x32x128xbf16> to vector<32x128xbf16>
      %cst_142 = arith.constant dense<0.000000e+00> : vector<128x128xf32>
      %191 = tpu.matmul %188, %190, %cst_142 {dimension_numbers = #tpu.dot_dimension_numbers<[1], [0], [0], [1], [0, 0, 1, 1], [], []>} : vector<128x32xbf16>, vector<32x128xbf16>, vector<128x128xf32> -> vector<128x128xf32>
      %192 = arith.addf %180, %191 : vector<128x128xf32>
      %c1_143 = arith.constant 1 : index
      %c0_144 = arith.constant 0 : index
      %c0_145 = arith.constant 0 : index
      %193 = vector.load %arg13[%c1_143, %c0_144, %c0_145] : memref<4x128x1xf32, #tpu.memory_space<vmem>>, vector<1x128x1xf32>
      %194 = vector.shape_cast %193 : vector<1x128x1xf32> to vector<128x1xf32>
      %195 = tpu.reciprocal %194 {approx = true} : vector<128x1xf32> -> vector<128x1xf32>
      %c1_146 = arith.constant 1 : index
      %c0_147 = arith.constant 0 : index
      %c0_148 = arith.constant 0 : index
      %196 = vector.load %arg14[%c1_146, %c0_147, %c0_148] : memref<4x128x32xf32, #tpu.memory_space<vmem>>, vector<1x128x32xf32>
      %197 = vector.shape_cast %196 : vector<1x128x32xf32> to vector<128x32xf32>
      %198 = vector.broadcast %195 : vector<128x1xf32> to vector<128x32xf32>
      %199 = arith.mulf %197, %198 : vector<128x32xf32>
      %200 = arith.truncf %199 : vector<128x32xf32> to vector<128x32xbf16>
      %c1_149 = arith.constant 1 : index
      %c0_150 = arith.constant 0 : index
      %c0_151 = arith.constant 0 : index
      %201 = vector.load %arg8[%c1_149, %c0_150, %c0_151] : memref<4x32x128xbf16, #tpu.memory_space<vmem>>, vector<1x32x128xbf16>
      %202 = vector.shape_cast %201 : vector<1x32x128xbf16> to vector<32x128xbf16>
      %cst_152 = arith.constant dense<0.000000e+00> : vector<128x128xf32>
      %203 = tpu.matmul %200, %202, %cst_152 {dimension_numbers = #tpu.dot_dimension_numbers<[1], [0], [0], [1], [0, 0, 1, 1], [], []>} : vector<128x32xbf16>, vector<32x128xbf16>, vector<128x128xf32> -> vector<128x128xf32>
      %204 = arith.addf %192, %203 : vector<128x128xf32>
      %c2_153 = arith.constant 2 : index
      %c0_154 = arith.constant 0 : index
      %c0_155 = arith.constant 0 : index
      %205 = vector.load %arg13[%c2_153, %c0_154, %c0_155] : memref<4x128x1xf32, #tpu.memory_space<vmem>>, vector<1x128x1xf32>
      %206 = vector.shape_cast %205 : vector<1x128x1xf32> to vector<128x1xf32>
      %207 = tpu.reciprocal %206 {approx = true} : vector<128x1xf32> -> vector<128x1xf32>
      %c2_156 = arith.constant 2 : index
      %c0_157 = arith.constant 0 : index
      %c0_158 = arith.constant 0 : index
      %208 = vector.load %arg14[%c2_156, %c0_157, %c0_158] : memref<4x128x32xf32, #tpu.memory_space<vmem>>, vector<1x128x32xf32>
      %209 = vector.shape_cast %208 : vector<1x128x32xf32> to vector<128x32xf32>
      %210 = vector.broadcast %207 : vector<128x1xf32> to vector<128x32xf32>
      %211 = arith.mulf %209, %210 : vector<128x32xf32>
      %212 = arith.truncf %211 : vector<128x32xf32> to vector<128x32xbf16>
      %c2_159 = arith.constant 2 : index
      %c0_160 = arith.constant 0 : index
      %c0_161 = arith.constant 0 : index
      %213 = vector.load %arg8[%c2_159, %c0_160, %c0_161] : memref<4x32x128xbf16, #tpu.memory_space<vmem>>, vector<1x32x128xbf16>
      %214 = vector.shape_cast %213 : vector<1x32x128xbf16> to vector<32x128xbf16>
      %cst_162 = arith.constant dense<0.000000e+00> : vector<128x128xf32>
      %215 = tpu.matmul %212, %214, %cst_162 {dimension_numbers = #tpu.dot_dimension_numbers<[1], [0], [0], [1], [0, 0, 1, 1], [], []>} : vector<128x32xbf16>, vector<32x128xbf16>, vector<128x128xf32> -> vector<128x128xf32>
      %216 = arith.addf %204, %215 : vector<128x128xf32>
      %c3_163 = arith.constant 3 : index
      %c0_164 = arith.constant 0 : index
      %c0_165 = arith.constant 0 : index
      %217 = vector.load %arg13[%c3_163, %c0_164, %c0_165] : memref<4x128x1xf32, #tpu.memory_space<vmem>>, vector<1x128x1xf32>
      %218 = vector.shape_cast %217 : vector<1x128x1xf32> to vector<128x1xf32>
      %219 = tpu.reciprocal %218 {approx = true} : vector<128x1xf32> -> vector<128x1xf32>
      %c3_166 = arith.constant 3 : index
      %c0_167 = arith.constant 0 : index
      %c0_168 = arith.constant 0 : index
      %220 = vector.load %arg14[%c3_166, %c0_167, %c0_168] : memref<4x128x32xf32, #tpu.memory_space<vmem>>, vector<1x128x32xf32>
      %221 = vector.shape_cast %220 : vector<1x128x32xf32> to vector<128x32xf32>
      %222 = vector.broadcast %219 : vector<128x1xf32> to vector<128x32xf32>
      %223 = arith.mulf %221, %222 : vector<128x32xf32>
      %224 = arith.truncf %223 : vector<128x32xf32> to vector<128x32xbf16>
      %c3_169 = arith.constant 3 : index
      %c0_170 = arith.constant 0 : index
      %c0_171 = arith.constant 0 : index
      %225 = vector.load %arg8[%c3_169, %c0_170, %c0_171] : memref<4x32x128xbf16, #tpu.memory_space<vmem>>, vector<1x32x128xbf16>
      %226 = vector.shape_cast %225 : vector<1x32x128xbf16> to vector<32x128xbf16>
      %cst_172 = arith.constant dense<0.000000e+00> : vector<128x128xf32>
      %227 = tpu.matmul %224, %226, %cst_172 {dimension_numbers = #tpu.dot_dimension_numbers<[1], [0], [0], [1], [0, 0, 1, 1], [], []>} : vector<128x32xbf16>, vector<32x128xbf16>, vector<128x128xf32> -> vector<128x128xf32>
      %228 = arith.addf %216, %227 : vector<128x128xf32>
      %c0_173 = arith.constant 0 : index
      %c0_174 = arith.constant 0 : index
      %229 = vector.load %arg9[%c0_173, %c0_174] : memref<1x128xf32, #tpu.memory_space<vmem>>, vector<1x128xf32>
      %230 = vector.broadcast %229 : vector<1x128xf32> to vector<128x128xf32>
      %231 = arith.addf %228, %230 : vector<128x128xf32>
      %c0_175 = arith.constant 0 : index
      %c0_176 = arith.constant 0 : index
      %c0_177 = arith.constant 0 : index
      %232 = vector.load %arg10[%c0_175, %c0_176, %c0_177] : memref<1x128x128xf32, #tpu.memory_space<vmem>>, vector<1x128x128xf32>
      %233 = vector.shape_cast %232 : vector<1x128x128xf32> to vector<128x128xf32>
      %234 = vector.shape_cast %231 : vector<128x128xf32> to vector<1x128x128xf32>
      tpu.vector_store %arg10[%c0_175, %c0_176, %c0_177], %234 {strides = array<i32>} : memref<1x128x128xf32, #tpu.memory_space<vmem>>, vector<1x128x128xf32>,
    } else {
    }
    return
  }
  func.func @transform_0(%arg0: i32, %arg1: i32, %arg2: i32) -> (i32, i32, i32) {
    %c0_i32 = arith.constant 0 : i32
    %c0_i32_0 = arith.constant 0 : i32
    return %arg0, %arg1, %c0_i32 : i32, i32, i32
  }
  func.func @transform_1(%arg0: i32, %arg1: i32, %arg2: i32) -> (i32, i32, i32) {
    %c0_i32 = arith.constant 0 : i32
    %c0_i32_0 = arith.constant 0 : i32
    return %arg0, %arg2, %c0_i32 : i32, i32, i32
  }
  func.func @transform_2(%arg0: i32, %arg1: i32, %arg2: i32) -> (i32, i32, i32) {
    %c0_i32 = arith.constant 0 : i32
    %c0_i32_0 = arith.constant 0 : i32
    %c0_i32_1 = arith.constant 0 : i32
    %c0_i32_2 = arith.constant 0 : i32
    return %c0_i32, %c0_i32_0, %c0_i32_1 : i32, i32, i32
  }
  func.func @transform_3(%arg0: i32, %arg1: i32, %arg2: i32) -> (i32, i32, i32) {
    %c0_i32 = arith.constant 0 : i32
    %c0_i32_0 = arith.constant 0 : i32
    %c0_i32_1 = arith.constant 0 : i32
    %c0_i32_2 = arith.constant 0 : i32
    return %c0_i32, %c0_i32_0, %c0_i32_1 : i32, i32, i32
  }
  func.func @transform_4(%arg0: i32, %arg1: i32, %arg2: i32) -> (i32, i32, i32) {
    %c0_i32 = arith.constant 0 : i32
    %c0_i32_0 = arith.constant 0 : i32
    %c0_i32_1 = arith.constant 0 : i32
    %c0_i32_2 = arith.constant 0 : i32
    return %c0_i32, %c0_i32_0, %c0_i32_1 : i32, i32, i32
  }
  func.func @transform_5(%arg0: i32, %arg1: i32, %arg2: i32) -> (i32, i32, i32) {
    %c0_i32 = arith.constant 0 : i32
    %c0_i32_0 = arith.constant 0 : i32
    %c0_i32_1 = arith.constant 0 : i32
    %c0_i32_2 = arith.constant 0 : i32
    return %c0_i32, %c0_i32_0, %c0_i32_1 : i32, i32, i32
  }
  func.func @transform_6(%arg0: i32, %arg1: i32, %arg2: i32) -> (i32, i32) {
    %c0_i32 = arith.constant 0 : i32
    %c0_i32_0 = arith.constant 0 : i32
    %c0_i32_1 = arith.constant 0 : i32
    return %c0_i32, %c0_i32_0 : i32, i32
  }
  func.func @transform_7(%arg0: i32, %arg1: i32, %arg2: i32) -> (i32, i32, i32) {
    %c0_i32 = arith.constant 0 : i32
    %c0_i32_0 = arith.constant 0 : i32
    return %arg0, %arg1, %c0_i32 : i32, i32, i32
  }
}

</mosaic_0001>

<bundles_post_ra>
// kernel: tpu_custom_call.1
= control target key start
LH: loop header
LB: loop body
LE: loop exit
PB: predicated region body
PF: predicated region fallthrough
CT: control target
= control target key end

     0   :  { %12 = vsyncpa [#allocation7], 0  ;;  %s13205_s0 = inlined_call_operand.vmem [shape: bf16[2,256,128], index: 0, kind: input, shape index: {}]   ;;  %s13206_s1 = inlined_call_operand.vmem [shape: bf16[2,256,128], index: 1, kind: input, shape index: {}]   ;;  %s13207_s2 = inlined_call_operand.vmem [shape: bf16[4,128,32], index: 2, kind: input, shape index: {}]   ;;  %s13208_s3 = inlined_call_operand.vmem [shape: bf16[4,128,32], index: 3, kind: input, shape index: {}]   ;;  %s13209_s4 = inlined_call_operand.vmem [shape: bf16[4,128,32], index: 4, kind: input, shape index: {}]   ;;  %s13210_s5 = inlined_call_operand.vmem [shape: bf16[4,32,128], index: 5, kind: input, shape index: {}]   ;;  %s13211_s6 = inlined_call_operand.vmem [shape: f32[1,128], index: 6, kind: input, shape index: {}]   ;;  %s13212_s7 = inlined_call_operand.hbm [shape: f32[2,256,128], index: 7, kind: output, shape index: {}]  }
   0x1   :  { %14 = vsyncpa [#allocation7 + $0x1], 0  ;;  %s10024_s24 = smov 0   ;;  %s10026_s25 = smov 0  }
   0x2   :  { %s10028_s26 = smov 0   ;;  %s10030_s27 = smov 0  }
   0x3   :  { %s10032_s28 = smov 0   ;;  %s10034_s29 = smov 0  }
   0x4   :  { %s10036_s30 = smov 0   ;;  %s10038_s8 = smov 0  }
   0x5   :  { %s10040_s9 = smov 0   ;;  %s10042_s10 = smov 0  }
   0x6 LB: > { %13335 = sst [smem:[#allocation9_spill]] %s9947_s26  ;;  %s7585_s11 = sadd.s32 4294967295, %s9975_s10   ;;  %s9975_s10 = sphi %s10042_s10, %s20_s10   ;;  %s9971_s9 = sphi %s10040_s9, %s13743_s9   ;;  %s9967_s8 = sphi %s10038_s8, %s13742_s8   ;;  %s9963_s30 = sphi %s10036_s30, %s13741_s30   ;;  %s9959_s29 = sphi %s10034_s29, %s13740_s29   ;;  %s9955_s28 = sphi %s10032_s28, %s13739_s28   ;;  %s9951_s27 = sphi %s10030_s27, %s13738_s27   ;;  %s9947_s26 = sphi %s10028_s26, %s13737_s26   ;;  %s9943_s25 = sphi %s10026_s25, %s13745_s25   ;;  %s9939_s24 = sphi %s10024_s24, %s13744_s24  }
   0x7   : > { %13336 = sst [smem:[#allocation10_spill]] %s9963_s30  ;;  %s7586_s12 = sadd.s32 4294967294, %s9975_s10  }
   0x8   : > { %13337 = sst [smem:[#allocation11_spill]] %s9967_s8  ;;  %s32_s13 = sadd.s32 1, %s9963_s30 }
   0x9   : > { %13338 = sst [smem:[#allocation12_spill]] %s9971_s9  ;;  %p33_p0 = scmp.ge.s32.totalorder %s32_s13, 2 }
   0xa   : > { %s35_s14 = sadd.s32 1, %s9967_s8  ;;  %s39_s15 = sadd.s32 1, %s9971_s9 }
   0xb   : > { %p219_p1 = scmp.ne.s32.totalorder %s9947_s26, %s9943_s25  ;;  %s13747_s13 = smov (%p33_p0, %s32_s13), 0 }
   0xc   : > { %13339 = sst [smem:[#allocation13_spill]] %s13747_s13  ;;  %s13749_s14 = smov (!%p33_p0, %s35_s14), %s9967_s8 }
   0xd   : > { %p220_p2 = scmp.eq.s32.totalorder %s7585_s11, 7  ;;  %p225_p3 = scmp.ne.s32.totalorder %s9943_s25, %s9939_s24 }
   0xe   : > { %p37_p4 = scmp.ge.s32.totalorder %s13749_s14, 2  ;;  %p226_p5 = scmp.eq.s32.totalorder %s7586_s12, 7 }
   0xf   : > { %p10086_p6 = por %p220_p2, %p219_p1  ;;  %p7589_p8 = scmp.ge.s32.totalorder %s9975_s10, 1 }
  0x10   : > { %s13751_s14 = smov (%p37_p4, %s13749_s14), 0  ;;  %s13753_s15 = smov (!%p37_p4, %s39_s15), %s9971_s9 }
  0x11   : > { %13341 = sst [smem:[#allocation14_spill]] %s13751_s14  ;;  %p10093_p7 = por %p226_p5, %p225_p3 }
  0x12   : > { %p41_p9 = scmp.ge.s32.totalorder %s13753_s15, 2  ;;  %p285_p10 = scmp.lt.s32.totalorder %s9975_s10, 9 }
  0x13   : > { %s13342_s17 = scalar_select %p10093_p7, 1, 0 }
  0x14   : > { %s205_s18 = ssub.s32 %s9967_s8, %s13751_s14  ;;  %s13755_s15 = smov (%p41_p9, %s13753_s15), 0 }
  0x15   : > { %13343 = sst [smem:[#allocation15_spill]] %s13342_s17  ;;  %p286_p11 = pnand %p7589_p8, %p285_p10 }
  0x16   : > { %13344 = sst [smem:[#allocation16_spill]] %s13755_s15  ;;  %s204_s19 = ssub.s32 %s9971_s9, %s13755_s15 }
  0x17   : > { %s206_s20 = sor.u32 %s205_s18, %s204_s19  ;;  %s209_s21 = sadd.s32 1, %s9947_s26 }
  0x18   : > { %p207_p12 = scmp.eq.s32.totalorder %s206_s20, 0  ;;  %289 = sbr.rel (%p286_p11) target bundleno = 4304 (0x10d0), region = 48 }
  0x1a   : > { %s10107_s22 = scalar_select %p207_p12, %s9947_s26, %s209_s21  }
  0x1c   : > { %13345 = sst [smem:[#allocation17_spill]] %s10107_s22 }
  0x1d   : > { %s13219_s23 = sand.u32 1, %s9943_s25   ;;  %s10111_s11 = sshll.u32 %s9955_s28, 4 }
  0x1e   : > { %s7590_s12 = sshll.u32 %s13219_s23, 7  ;;  %p331_p13 = scmp.lt.s32.totalorder %s9959_s29, 1 }
  0x1f   : > { %p333_p0 = scmp.lt.s32.totalorder %s10111_s11, 31  ;;  %s7594_s21 = sshll.u32 %s9951_s27, 4 }
  0x20   : > { %s332_s18 = scalar_select %p331_p13, %s9959_s29, 1 }
  0x21   : > { %s334_s19 = scalar_select %p333_p0, %s10111_s11, 31 }
  0x22   : > { %s7592_s20 = sshll.u32 %s332_s18, 5  ;;  %p343_p1 = scmp.lt.s32.totalorder %s7594_s21, 31 }
  0x23   : > { %s336_s15 = sadd.s32 %s7592_s20, %s334_s19  ;;  %s10130_s17 = scalar_lea.vmem [#allocation6], %s7590_s12 }
  0x24   : > { %s7593_s14 = sshll.u32 %s336_s15, 2  ;;  %s13757_s21 = smov (!%p343_p1, %s7594_s21), 31 }
  0x25   : > { %s10123_s8 = scalar_lea.vmem %s13205_s0, %s7593_s14  ;;  %s346_s28 = sadd.s32 %s7592_s20, %s13757_s21 }
  0x26   : > { %s7596_s30 = sshll.u32 %s346_s28, 2  ;;  %p7597_p2 = scmp.ne.s32.totalorder %s9951_s27, 0 }
  0x27   : > { %s10128_s23 = scalar_lea.vmem %s13206_s1, %s7596_s30 }
  0x28   : > { %355 = sbr.rel (%p7597_p2) target bundleno = 337 (0x151), region = 52 }
  0x2d   : > { %vm356_vm0 = vcmask 7168   ;;  %vm485_vm1 = vcmask 261120   ;;  %v9977_v0 = vmov -inf   ;;  %v9978_v1 = vmov 0.0   ;;  %v9311_v2 = vld [vmem:[%s13207_s2 + $0x38] sm:$0xff]   ;;  %v9313_v4 = vld [vmem:[%s13207_s2 + $0x30] sm:$0xff]  }
  0x2e   : > { %357 = vst.msk [vmem:[#allocation3] sm:$0xff] %vm356_vm0, %v9977_v0  ;;  %358 = vst.msk [vmem:[#allocation3 + $0x8] sm:$0xff] %vm356_vm0, %v9977_v0  ;;  %v9312_v3 = vld [vmem:[%s13207_s2 + $0x78] sm:$0xff]   ;;  %8466 = vmatprep.subr.bf16.mxu0 %v9311_v2  ;;  %v9314_v5 = vld [vmem:[%s13207_s2 + $0x70] sm:$0xff]   ;;  %vm839_vm2 = vcmask 257024  }
  0x2f   : > { %359 = vst.msk [vmem:[#allocation3 + $0x10] sm:$0xff] %vm356_vm0, %v9977_v0  ;;  %360 = vst.msk [vmem:[#allocation3 + $0x18] sm:$0xff] %vm356_vm0, %v9977_v0  ;;  %8498 = vmatprep.subr.bf16.mxu1 %v9312_v3  ;;  %8467 = vmatpush3.bf16.msra.mxu0 %v9311_v2  ;;  %v9315_v6 = vld [vmem:[%s13207_s2 + $0x28] sm:$0xff]   ;;  %v9317_v8 = vld [vmem:[%s13207_s2 + $0x20] sm:$0xff]  }
  0x30   : > { %361 = vst.msk [vmem:[#allocation3 + $0x20] sm:$0xff] %vm356_vm0, %v9977_v0  ;;  %362 = vst.msk [vmem:[#allocation3 + $0x28] sm:$0xff] %vm356_vm0, %v9977_v0  ;;  %8499 = vmatpush3.bf16.msra.mxu1 %v9312_v3  ;;  %8468 = vmatprep.subr.bf16.mxu0 %v9313_v4  ;;  %v9316_v7 = vld [vmem:[%s13207_s2 + $0x68] sm:$0xff]   ;;  %v9318_v9 = vld [vmem:[%s13207_s2 + $0x60] sm:$0xff]  }
  0x31   : > { %363 = vst.msk [vmem:[#allocation3 + $0x30] sm:$0xff] %vm356_vm0, %v9977_v0  ;;  %364 = vst.msk [vmem:[#allocation3 + $0x38] sm:$0xff] %vm356_vm0, %v9977_v0  ;;  %8500 = vmatprep.subr.bf16.mxu1 %v9314_v5  ;;  %v9319_v10 = vld [vmem:[%s13207_s2 + $0x18] sm:$0xff]   ;;  %v9321_v12 = vld [vmem:[%s13207_s2 + $0x10] sm:$0xff]  }
  0x32   : > { %365 = vst.msk [vmem:[#allocation3 + $0x40] sm:$0xff] %vm356_vm0, %v9977_v0  ;;  %366 = vst.msk [vmem:[#allocation3 + $0x48] sm:$0xff] %vm356_vm0, %v9977_v0  ;;  %v9320_v11 = vld [vmem:[%s13207_s2 + $0x58] sm:$0xff]   ;;  %v10551_v13 = vld [vmem:[%s10123_s8] sm:$0xff]  }
  0x33   : > { %367 = vst.msk [vmem:[#allocation3 + $0x50] sm:$0xff] %vm356_vm0, %v9977_v0  ;;  %368 = vst.msk [vmem:[#allocation3 + $0x58] sm:$0xff] %vm356_vm0, %v9977_v0  ;;  %8469 = vmatpush3.bf16.msra.mxu0 %v9313_v4  ;;  %v9322_v14 = vld [vmem:[%s13207_s2 + $0x50] sm:$0xff]   ;;  %8482 = vmatprep.mubr.bf16.mxu0 %v10551_v13  ;;  %v9323_v15 = vld [vmem:[%s13207_s2 + $0x8] sm:$0xff]  }
  0x34   : > { %369 = vst.msk [vmem:[#allocation3 + $0x60] sm:$0xff] %vm356_vm0, %v9977_v0  ;;  %370 = vst.msk [vmem:[#allocation3 + $0x68] sm:$0xff] %vm356_vm0, %v9977_v0  ;;  %8501 = vmatpush3.bf16.msra.mxu1 %v9314_v5  ;;  %8470 = vmatprep.subr.bf16.mxu0 %v9315_v6  ;;  %v9324_v16 = vld [vmem:[%s13207_s2 + $0x48] sm:$0xff]   ;;  %v9325_v17 = vld [vmem:[%s13207_s2] sm:$0xff]  }
  0x35   : > { %371 = vst.msk [vmem:[#allocation3 + $0x70] sm:$0xff] %vm356_vm0, %v9977_v0  ;;  %372 = vst.msk [vmem:[#allocation3 + $0x78] sm:$0xff] %vm356_vm0, %v9977_v0  ;;  %8502 = vmatprep.subr.bf16.mxu1 %v9316_v7  ;;  %8514 = vmatprep.mubr.bf16.mxu1 %v10551_v13  ;;  %v9326_v18 = vld [vmem:[%s13207_s2 + $0x40] sm:$0xff]   ;;  %v9329_v19 = vld [vmem:[%s13207_s2 + $0xb8] sm:$0xff]  }
  0x36   : > { %373 = vst.msk [vmem:[#allocation3 + $0x80] sm:$0xff] %vm356_vm0, %v9977_v0  ;;  %374 = vst.msk [vmem:[#allocation3 + $0x88] sm:$0xff] %vm356_vm0, %v9977_v0  ;;  %v9330_v20 = vld [vmem:[%s13207_s2 + $0xf8] sm:$0xff]   ;;  %v10577_v21 = vld [vmem:[%s10123_s8 + $0x8] sm:$0xff]  }
  0x37   : > { %375 = vst.msk [vmem:[#allocation3 + $0x90] sm:$0xff] %vm356_vm0, %v9977_v0  ;;  %376 = vst.msk [vmem:[#allocation3 + $0x98] sm:$0xff] %vm356_vm0, %v9977_v0  ;;  %8471 = vmatpush3.bf16.msra.mxu0 %v9315_v6  ;;  %v9331_v22 = vld [vmem:[%s13207_s2 + $0xb0] sm:$0xff]   ;;  %v9335_v25 = vld [vmem:[%s13207_s2 + $0xa8] sm:$0xff]  }
  0x38   : > { %377 = vst.msk [vmem:[#allocation3 + $0xa0] sm:$0xff] %vm356_vm0, %v9977_v0  ;;  %378 = vst.msk [vmem:[#allocation3 + $0xa8] sm:$0xff] %vm356_vm0, %v9977_v0  ;;  %8503 = vmatpush3.bf16.msra.mxu1 %v9316_v7  ;;  %8472 = vmatprep.subr.bf16.mxu0 %v9317_v8  ;;  %v9332_v23 = vld [vmem:[%s13207_s2 + $0xf0] sm:$0xff]   ;;  %v9336_v26 = vld [vmem:[%s13207_s2 + $0xe8] sm:$0xff]  }
  0x39   : > { %379 = vst.msk [vmem:[#allocation3 + $0xb0] sm:$0xff] %vm356_vm0, %v9977_v0  ;;  %380 = vst.msk [vmem:[#allocation3 + $0xb8] sm:$0xff] %vm356_vm0, %v9977_v0  ;;  %8504 = vmatprep.subr.bf16.mxu1 %v9318_v9  ;;  %v10586_v24 = vld [vmem:[%s10123_s8 + $0x10] sm:$0xff]   ;;  %v9334_v27 = vld [vmem:[%s10123_s8 + $0x18] sm:$0xff]  }
  0x3a   : > { %381 = vst.msk [vmem:[#allocation3 + $0xc0] sm:$0xff] %vm356_vm0, %v9977_v0  ;;  %382 = vst.msk [vmem:[#allocation3 + $0xc8] sm:$0xff] %vm356_vm0, %v9977_v0  ;;  %v9337_v28 = vld [vmem:[%s13207_s2 + $0xa0] sm:$0xff]   ;;  %v9341_v31 = vld [vmem:[%s13207_s2 + $0x98] sm:$0xff]  }
  0x3b   : > { %383 = vst.msk [vmem:[#allocation3 + $0xd0] sm:$0xff] %vm356_vm0, %v9977_v0  ;;  %384 = vst.msk [vmem:[#allocation3 + $0xd8] sm:$0xff] %vm356_vm0, %v9977_v0  ;;  %8473 = vmatpush3.bf16.msra.mxu0 %v9317_v8  ;;  %v9338_v29 = vld [vmem:[%s13207_s2 + $0xe0] sm:$0xff]   ;;  %v9342_v32 = vld [vmem:[%s13207_s2 + $0xd8] sm:$0xff]  }
  0x3c   : > { %385 = vst.msk [vmem:[#allocation3 + $0xe0] sm:$0xff] %vm356_vm0, %v9977_v0  ;;  %386 = vst.msk [vmem:[#allocation3 + $0xe8] sm:$0xff] %vm356_vm0, %v9977_v0  ;;  %8505 = vmatpush3.bf16.msra.mxu1 %v9318_v9  ;;  %8474 = vmatprep.subr.bf16.mxu0 %v9319_v10  ;;  %v9339_v30 = vld [vmem:[%s10123_s8 + $0x20] sm:$0xff]   ;;  %v9340_v33 = vld [vmem:[%s10123_s8 + $0x28] sm:$0xff]  }
  0x3d   : > { %387 = vst.msk [vmem:[#allocation3 + $0xf0] sm:$0xff] %vm356_vm0, %v9977_v0  ;;  %388 = vst.msk [vmem:[#allocation3 + $0xf8] sm:$0xff] %vm356_vm0, %v9977_v0  ;;  %8506 = vmatprep.subr.bf16.mxu1 %v9320_v11  ;;  %v9343_v34 = vld [vmem:[%s13207_s2 + $0x90] sm:$0xff]   ;;  %v9347_v37 = vld [vmem:[%s13207_s2 + $0x88] sm:$0xff]  }
  0x3e   : > { %389 = vst.msk [vmem:[#allocation3 + $0x100] sm:$0xff] %vm356_vm0, %v9977_v0  ;;  %390 = vst.msk [vmem:[#allocation3 + $0x108] sm:$0xff] %vm356_vm0, %v9977_v0  ;;  %v9344_v35 = vld [vmem:[%s13207_s2 + $0xd0] sm:$0xff]   ;;  %v9348_v38 = vld [vmem:[%s13207_s2 + $0xc8] sm:$0xff]  }
  0x3f   : > { %391 = vst.msk [vmem:[#allocation3 + $0x110] sm:$0xff] %vm356_vm0, %v9977_v0  ;;  %392 = vst.msk [vmem:[#allocation3 + $0x118] sm:$0xff] %vm356_vm0, %v9977_v0  ;;  %8475 = vmatpush3.bf16.msra.mxu0 %v9319_v10  ;;  %v9345_v36 = vld [vmem:[%s10123_s8 + $0x30] sm:$0xff]   ;;  %v9346_v39 = vld [vmem:[%s10123_s8 + $0x38] sm:$0xff]  }
  0x40   : > { %393 = vst.msk [vmem:[#allocation3 + $0x120] sm:$0xff] %vm356_vm0, %v9977_v0  ;;  %394 = vst.msk [vmem:[#allocation3 + $0x128] sm:$0xff] %vm356_vm0, %v9977_v0  ;;  %8507 = vmatpush3.bf16.msra.mxu1 %v9320_v11  ;;  %8476 = vmatprep.subr.bf16.mxu0 %v9321_v12  ;;  %v9349_v40 = vld [vmem:[%s13207_s2 + $0x80] sm:$0xff]  }
  0x41   : > { %395 = vst.msk [vmem:[#allocation3 + $0x130] sm:$0xff] %vm356_vm0, %v9977_v0  ;;  %396 = vst.msk [vmem:[#allocation3 + $0x138] sm:$0xff] %vm356_vm0, %v9977_v0  ;;  %8508 = vmatprep.subr.bf16.mxu1 %v9322_v14  ;;  %v9350_v41 = vld [vmem:[%s13207_s2 + $0xc0] sm:$0xff]  }
  0x42   : > { %397 = vst.msk [vmem:[#allocation3 + $0x140] sm:$0xff] %vm356_vm0, %v9977_v0  ;;  %398 = vst.msk [vmem:[#allocation3 + $0x148] sm:$0xff] %vm356_vm0, %v9977_v0 }
  0x43   : > { %399 = vst.msk [vmem:[#allocation3 + $0x150] sm:$0xff] %vm356_vm0, %v9977_v0  ;;  %400 = vst.msk [vmem:[#allocation3 + $0x158] sm:$0xff] %vm356_vm0, %v9977_v0  ;;  %8477 = vmatpush3.bf16.msra.mxu0 %v9321_v12 }
  0x44   : > { %401 = vst.msk [vmem:[#allocation3 + $0x160] sm:$0xff] %vm356_vm0, %v9977_v0  ;;  %402 = vst.msk [vmem:[#allocation3 + $0x168] sm:$0xff] %vm356_vm0, %v9977_v0  ;;  %8509 = vmatpush3.bf16.msra.mxu1 %v9322_v14  ;;  %8478 = vmatprep.subr.bf16.mxu0 %v9323_v15 }
  0x45   : > { %403 = vst.msk [vmem:[#allocation3 + $0x170] sm:$0xff] %vm356_vm0, %v9977_v0  ;;  %404 = vst.msk [vmem:[#allocation3 + $0x178] sm:$0xff] %vm356_vm0, %v9977_v0  ;;  %8510 = vmatprep.subr.bf16.mxu1 %v9324_v16 }
  0x46   : > { %405 = vst.msk [vmem:[#allocation3 + $0x180] sm:$0xff] %vm356_vm0, %v9977_v0  ;;  %406 = vst.msk [vmem:[#allocation3 + $0x188] sm:$0xff] %vm356_vm0, %v9977_v0 }
  0x47   : > { %407 = vst.msk [vmem:[#allocation3 + $0x190] sm:$0xff] %vm356_vm0, %v9977_v0  ;;  %408 = vst.msk [vmem:[#allocation3 + $0x198] sm:$0xff] %vm356_vm0, %v9977_v0  ;;  %8479 = vmatpush3.bf16.msra.mxu0 %v9323_v15 }
  0x48   : > { %409 = vst.msk [vmem:[#allocation3 + $0x1a0] sm:$0xff] %vm356_vm0, %v9977_v0  ;;  %410 = vst.msk [vmem:[#allocation3 + $0x1a8] sm:$0xff] %vm356_vm0, %v9977_v0  ;;  %8511 = vmatpush3.bf16.msra.mxu1 %v9324_v16  ;;  %8480 = vmatprep.subr.bf16.mxu0 %v9325_v17 }
  0x49   : > { %411 = vst.msk [vmem:[#allocation3 + $0x1b0] sm:$0xff] %vm356_vm0, %v9977_v0  ;;  %412 = vst.msk [vmem:[#allocation3 + $0x1b8] sm:$0xff] %vm356_vm0, %v9977_v0  ;;  %8512 = vmatprep.subr.bf16.mxu1 %v9326_v18 }
  0x4a   : > { %413 = vst.msk [vmem:[#allocation3 + $0x1c0] sm:$0xff] %vm356_vm0, %v9977_v0  ;;  %414 = vst.msk [vmem:[#allocation3 + $0x1c8] sm:$0xff] %vm356_vm0, %v9977_v0 }
  0x4b   : > { %415 = vst.msk [vmem:[#allocation3 + $0x1d0] sm:$0xff] %vm356_vm0, %v9977_v0  ;;  %416 = vst.msk [vmem:[#allocation3 + $0x1d8] sm:$0xff] %vm356_vm0, %v9977_v0  ;;  %8481 = vmatpush3.bf16.msra.mxu0 %v9325_v17 }
  0x4c   : > { %417 = vst.msk [vmem:[#allocation3 + $0x1e0] sm:$0xff] %vm356_vm0, %v9977_v0  ;;  %418 = vst.msk [vmem:[#allocation3 + $0x1e8] sm:$0xff] %vm356_vm0, %v9977_v0  ;;  %8513 = vmatpush3.bf16.msra.mxu1 %v9326_v18  ;;  %8530 = vmatprep.subr.bf16.mxu0 %v9329_v19 }
  0x4d   : > { %419 = vst.msk [vmem:[#allocation3 + $0x1f0] sm:$0xff] %vm356_vm0, %v9977_v0  ;;  %420 = vst.msk [vmem:[#allocation3 + $0x1f8] sm:$0xff] %vm356_vm0, %v9977_v0  ;;  %8562 = vmatprep.subr.bf16.mxu1 %v9330_v20 }
  0x4e   : > { %421 = vst.msk [vmem:[#allocation4] sm:$0xff] %vm356_vm0, %v9978_v1  ;;  %422 = vst.msk [vmem:[#allocation4 + $0x8] sm:$0xff] %vm356_vm0, %v9978_v1  ;;  %8483 = vmatmul.mubr.bf16.vlgmr.msra.gmra.mxu0 %v10577_v21 }
  0x4f   : > { %423 = vst.msk [vmem:[#allocation4 + $0x10] sm:$0xff] %vm356_vm0, %v9978_v1  ;;  %424 = vst.msk [vmem:[#allocation4 + $0x18] sm:$0xff] %vm356_vm0, %v9978_v1  ;;  %8515 = vmatmul.mubr.bf16.vlgmr.msra.gmra.mxu1 %v10577_v21  ;;  %8531 = vmatpush3.bf16.msra.mxu0 %v9329_v19 }
  0x50   : > { %425 = vst.msk [vmem:[#allocation4 + $0x20] sm:$0xff] %vm356_vm0, %v9978_v1  ;;  %426 = vst.msk [vmem:[#allocation4 + $0x28] sm:$0xff] %vm356_vm0, %v9978_v1  ;;  %8563 = vmatpush3.bf16.msra.mxu1 %v9330_v20  ;;  %8532 = vmatprep.subr.bf16.mxu0 %v9331_v22 }
  0x51   : > { %427 = vst.msk [vmem:[#allocation4 + $0x30] sm:$0xff] %vm356_vm0, %v9978_v1  ;;  %428 = vst.msk [vmem:[#allocation4 + $0x38] sm:$0xff] %vm356_vm0, %v9978_v1  ;;  %8564 = vmatprep.subr.bf16.mxu1 %v9332_v23  ;;  %8486 = vmatprep.mubr.bf16.mxu0 %v10586_v24 }
  0x52   : > { %429 = vst.msk [vmem:[#allocation4 + $0x40] sm:$0xff] %vm356_vm0, %v9978_v1  ;;  %430 = vst.msk [vmem:[#allocation4 + $0x48] sm:$0xff] %vm356_vm0, %v9978_v1  ;;  %8518 = vmatprep.mubr.bf16.mxu1 %v10586_v24 }
  0x53   : > { %431 = vst.msk [vmem:[#allocation4 + $0x50] sm:$0xff] %vm356_vm0, %v9978_v1  ;;  %432 = vst.msk [vmem:[#allocation4 + $0x58] sm:$0xff] %vm356_vm0, %v9978_v1  ;;  %8533 = vmatpush3.bf16.msra.mxu0 %v9331_v22 }
  0x54   : > { %433 = vst.msk [vmem:[#allocation4 + $0x60] sm:$0xff] %vm356_vm0, %v9978_v1  ;;  %434 = vst.msk [vmem:[#allocation4 + $0x68] sm:$0xff] %vm356_vm0, %v9978_v1  ;;  %8565 = vmatpush3.bf16.msra.mxu1 %v9332_v23  ;;  %8534 = vmatprep.subr.bf16.mxu0 %v9335_v25 }
  0x55   : > { %435 = vst.msk [vmem:[#allocation4 + $0x70] sm:$0xff] %vm356_vm0, %v9978_v1  ;;  %436 = vst.msk [vmem:[#allocation4 + $0x78] sm:$0xff] %vm356_vm0, %v9978_v1  ;;  %8566 = vmatprep.subr.bf16.mxu1 %v9336_v26 }
  0x56   : > { %437 = vst.msk [vmem:[#allocation4 + $0x80] sm:$0xff] %vm356_vm0, %v9978_v1  ;;  %438 = vst.msk [vmem:[#allocation4 + $0x88] sm:$0xff] %vm356_vm0, %v9978_v1  ;;  %8487 = vmatmul.mubr.bf16.gmra.mxu0 %v9334_v27 }
  0x57   : > { %439 = vst.msk [vmem:[#allocation4 + $0x90] sm:$0xff] %vm356_vm0, %v9978_v1  ;;  %440 = vst.msk [vmem:[#allocation4 + $0x98] sm:$0xff] %vm356_vm0, %v9978_v1  ;;  %8519 = vmatmul.mubr.bf16.gmra.mxu1 %v9334_v27  ;;  %8535 = vmatpush3.bf16.msra.mxu0 %v9335_v25 }
  0x58   : > { %441 = vst.msk [vmem:[#allocation4 + $0xa0] sm:$0xff] %vm356_vm0, %v9978_v1  ;;  %442 = vst.msk [vmem:[#allocation4 + $0xa8] sm:$0xff] %vm356_vm0, %v9978_v1  ;;  %8567 = vmatpush3.bf16.msra.mxu1 %v9336_v26  ;;  %8536 = vmatprep.subr.bf16.mxu0 %v9337_v28 }
  0x59   : > { %443 = vst.msk [vmem:[#allocation4 + $0xb0] sm:$0xff] %vm356_vm0, %v9978_v1  ;;  %444 = vst.msk [vmem:[#allocation4 + $0xb8] sm:$0xff] %vm356_vm0, %v9978_v1  ;;  %8568 = vmatprep.subr.bf16.mxu1 %v9338_v29  ;;  %8490 = vmatprep.mubr.bf16.mxu0 %v9339_v30 }
  0x5a   : > { %445 = vst.msk [vmem:[#allocation4 + $0xc0] sm:$0xff] %vm356_vm0, %v9978_v1  ;;  %446 = vst.msk [vmem:[#allocation4 + $0xc8] sm:$0xff] %vm356_vm0, %v9978_v1  ;;  %8522 = vmatprep.mubr.bf16.mxu1 %v9339_v30 }
  0x5b   : > { %447 = vst.msk [vmem:[#allocation4 + $0xd0] sm:$0xff] %vm356_vm0, %v9978_v1  ;;  %448 = vst.msk [vmem:[#allocation4 + $0xd8] sm:$0xff] %vm356_vm0, %v9978_v1  ;;  %8537 = vmatpush3.bf16.msra.mxu0 %v9337_v28 }
  0x5c   : > { %449 = vst.msk [vmem:[#allocation4 + $0xe0] sm:$0xff] %vm356_vm0, %v9978_v1  ;;  %450 = vst.msk [vmem:[#allocation4 + $0xe8] sm:$0xff] %vm356_vm0, %v9978_v1  ;;  %8569 = vmatpush3.bf16.msra.mxu1 %v9338_v29  ;;  %8538 = vmatprep.subr.bf16.mxu0 %v9341_v31 }
  0x5d   : > { %451 = vst.msk [vmem:[#allocation4 + $0xf0] sm:$0xff] %vm356_vm0, %v9978_v1  ;;  %452 = vst.msk [vmem:[#allocation4 + $0xf8] sm:$0xff] %vm356_vm0, %v9978_v1  ;;  %8570 = vmatprep.subr.bf16.mxu1 %v9342_v32 }
  0x5e   : > { %453 = vst.msk [vmem:[#allocation4 + $0x100] sm:$0xff] %vm356_vm0, %v9978_v1  ;;  %454 = vst.msk [vmem:[#allocation4 + $0x108] sm:$0xff] %vm356_vm0, %v9978_v1  ;;  %8491 = vmatmul.mubr.bf16.gmra.mxu0 %v9340_v33 }
  0x5f   : > { %455 = vst.msk [vmem:[#allocation4 + $0x110] sm:$0xff] %vm356_vm0, %v9978_v1  ;;  %456 = vst.msk [vmem:[#allocation4 + $0x118] sm:$0xff] %vm356_vm0, %v9978_v1  ;;  %8523 = vmatmul.mubr.bf16.gmra.mxu1 %v9340_v33  ;;  %8539 = vmatpush3.bf16.msra.mxu0 %v9341_v31 }
  0x60   : > { %457 = vst.msk [vmem:[#allocation4 + $0x120] sm:$0xff] %vm356_vm0, %v9978_v1  ;;  %458 = vst.msk [vmem:[#allocation4 + $0x128] sm:$0xff] %vm356_vm0, %v9978_v1  ;;  %8571 = vmatpush3.bf16.msra.mxu1 %v9342_v32  ;;  %8540 = vmatprep.subr.bf16.mxu0 %v9343_v34 }
  0x61   : > { %459 = vst.msk [vmem:[#allocation4 + $0x130] sm:$0xff] %vm356_vm0, %v9978_v1  ;;  %460 = vst.msk [vmem:[#allocation4 + $0x138] sm:$0xff] %vm356_vm0, %v9978_v1  ;;  %8572 = vmatprep.subr.bf16.mxu1 %v9344_v35  ;;  %8494 = vmatprep.mubr.bf16.mxu0 %v9345_v36 }
  0x62   : > { %461 = vst.msk [vmem:[#allocation4 + $0x140] sm:$0xff] %vm356_vm0, %v9978_v1  ;;  %462 = vst.msk [vmem:[#allocation4 + $0x148] sm:$0xff] %vm356_vm0, %v9978_v1  ;;  %8526 = vmatprep.mubr.bf16.mxu1 %v9345_v36 }
  0x63   : > { %463 = vst.msk [vmem:[#allocation4 + $0x150] sm:$0xff] %vm356_vm0, %v9978_v1  ;;  %464 = vst.msk [vmem:[#allocation4 + $0x158] sm:$0xff] %vm356_vm0, %v9978_v1  ;;  %8541 = vmatpush3.bf16.msra.mxu0 %v9343_v34 }
  0x64   : > { %465 = vst.msk [vmem:[#allocation4 + $0x160] sm:$0xff] %vm356_vm0, %v9978_v1  ;;  %466 = vst.msk [vmem:[#allocation4 + $0x168] sm:$0xff] %vm356_vm0, %v9978_v1  ;;  %8573 = vmatpush3.bf16.msra.mxu1 %v9344_v35  ;;  %8542 = vmatprep.subr.bf16.mxu0 %v9347_v37 }
  0x65   : > { %467 = vst.msk [vmem:[#allocation4 + $0x170] sm:$0xff] %vm356_vm0, %v9978_v1  ;;  %468 = vst.msk [vmem:[#allocation4 + $0x178] sm:$0xff] %vm356_vm0, %v9978_v1  ;;  %8574 = vmatprep.subr.bf16.mxu1 %v9348_v38 }
  0x66   : > { %469 = vst.msk [vmem:[#allocation4 + $0x180] sm:$0xff] %vm356_vm0, %v9978_v1  ;;  %470 = vst.msk [vmem:[#allocation4 + $0x188] sm:$0xff] %vm356_vm0, %v9978_v1  ;;  %8495 = vmatmul.mubr.bf16.gmra.mxu0 %v9346_v39 }
  0x67   : > { %471 = vst.msk [vmem:[#allocation4 + $0x190] sm:$0xff] %vm356_vm0, %v9978_v1  ;;  %472 = vst.msk [vmem:[#allocation4 + $0x198] sm:$0xff] %vm356_vm0, %v9978_v1  ;;  %8527 = vmatmul.mubr.bf16.gmra.mxu1 %v9346_v39  ;;  %8543 = vmatpush3.bf16.msra.mxu0 %v9347_v37 }
  0x68   : > { %473 = vst.msk [vmem:[#allocation4 + $0x1a0] sm:$0xff] %vm356_vm0, %v9978_v1  ;;  %474 = vst.msk [vmem:[#allocation4 + $0x1a8] sm:$0xff] %vm356_vm0, %v9978_v1  ;;  %8575 = vmatpush3.bf16.msra.mxu1 %v9348_v38  ;;  %8544 = vmatprep.subr.bf16.mxu0 %v9349_v40 }
  0x69   : > { %475 = vst.msk [vmem:[#allocation4 + $0x1b0] sm:$0xff] %vm356_vm0, %v9978_v1  ;;  %476 = vst.msk [vmem:[#allocation4 + $0x1b8] sm:$0xff] %vm356_vm0, %v9978_v1  ;;  %8576 = vmatprep.subr.bf16.mxu1 %v9350_v41  ;;  %8546 = vmatprep.mubr.bf16.mxu0 %v10551_v13 }
  0x6a   : > { %477 = vst.msk [vmem:[#allocation4 + $0x1c0] sm:$0xff] %vm356_vm0, %v9978_v1  ;;  %478 = vst.msk [vmem:[#allocation4 + $0x1c8] sm:$0xff] %vm356_vm0, %v9978_v1  ;;  %8578 = vmatprep.mubr.bf16.mxu1 %v10551_v13 }
  0x6b   : > { %479 = vst.msk [vmem:[#allocation4 + $0x1d0] sm:$0xff] %vm356_vm0, %v9978_v1  ;;  %480 = vst.msk [vmem:[#allocation4 + $0x1d8] sm:$0xff] %vm356_vm0, %v9978_v1  ;;  %8545 = vmatpush3.bf16.msra.mxu0 %v9349_v40 }
  0x6c   : > { %481 = vst.msk [vmem:[#allocation4 + $0x1e0] sm:$0xff] %vm356_vm0, %v9978_v1  ;;  %482 = vst.msk [vmem:[#allocation4 + $0x1e8] sm:$0xff] %vm356_vm0, %v9978_v1  ;;  %8577 = vmatpush3.bf16.msra.mxu1 %v9350_v41 }
  0x6d   : > { %483 = vst.msk [vmem:[#allocation4 + $0x1f0] sm:$0xff] %vm356_vm0, %v9978_v1  ;;  %484 = vst.msk [vmem:[#allocation4 + $0x1f8] sm:$0xff] %vm356_vm0, %v9978_v1 }
  0x6e   : > { %486 = vst.msk [vmem:[#allocation5] sm:$0xff] %vm485_vm1, %v9978_v1  ;;  %487 = vst.msk [vmem:[#allocation5 + $0x8] sm:$0xff] %vm485_vm1, %v9978_v1  ;;  %8547 = vmatmul.mubr.bf16.vlgmr.msra.gmra.mxu0 %v10577_v21 }
  0x6f   : > { %488 = vst.msk [vmem:[#allocation5 + $0x10] sm:$0xff] %vm485_vm1, %v9978_v1  ;;  %489 = vst.msk [vmem:[#allocation5 + $0x18] sm:$0xff] %vm485_vm1, %v9978_v1  ;;  %8579 = vmatmul.mubr.bf16.vlgmr.msra.gmra.mxu1 %v10577_v21  ;;  %8550 = vmatprep.mubr.bf16.mxu0 %v10586_v24 }
  0x70   : > { %490 = vst.msk [vmem:[#allocation5 + $0x20] sm:$0xff] %vm485_vm1, %v9978_v1  ;;  %491 = vst.msk [vmem:[#allocation5 + $0x28] sm:$0xff] %vm485_vm1, %v9978_v1  ;;  %8582 = vmatprep.mubr.bf16.mxu1 %v10586_v24 }
  0x71   : > { %492 = vst.msk [vmem:[#allocation5 + $0x30] sm:$0xff] %vm485_vm1, %v9978_v1  ;;  %493 = vst.msk [vmem:[#allocation5 + $0x38] sm:$0xff] %vm485_vm1, %v9978_v1 }
  0x72   : > { %494 = vst.msk [vmem:[#allocation5 + $0x40] sm:$0xff] %vm485_vm1, %v9978_v1  ;;  %495 = vst.msk [vmem:[#allocation5 + $0x48] sm:$0xff] %vm485_vm1, %v9978_v1 }
  0x73   : > { %496 = vst.msk [vmem:[#allocation5 + $0x50] sm:$0xff] %vm485_vm1, %v9978_v1  ;;  %497 = vst.msk [vmem:[#allocation5 + $0x58] sm:$0xff] %vm485_vm1, %v9978_v1 }
  0x74   : > { %498 = vst.msk [vmem:[#allocation5 + $0x60] sm:$0xff] %vm485_vm1, %v9978_v1  ;;  %499 = vst.msk [vmem:[#allocation5 + $0x68] sm:$0xff] %vm485_vm1, %v9978_v1 }
  0x75   : > { %500 = vst.msk [vmem:[#allocation5 + $0x70] sm:$0xff] %vm485_vm1, %v9978_v1  ;;  %501 = vst.msk [vmem:[#allocation5 + $0x78] sm:$0xff] %vm485_vm1, %v9978_v1 }
  0x76   : > { %502 = vst.msk [vmem:[#allocation5 + $0x80] sm:$0xff] %vm485_vm1, %v9978_v1  ;;  %503 = vst.msk [vmem:[#allocation5 + $0x88] sm:$0xff] %vm485_vm1, %v9978_v1  ;;  %8551 = vmatmul.mubr.bf16.gmra.mxu0 %v9334_v27 }
  0x77   : > { %504 = vst.msk [vmem:[#allocation5 + $0x90] sm:$0xff] %vm485_vm1, %v9978_v1  ;;  %505 = vst.msk [vmem:[#allocation5 + $0x98] sm:$0xff] %vm485_vm1, %v9978_v1  ;;  %8583 = vmatmul.mubr.bf16.gmra.mxu1 %v9334_v27  ;;  %8554 = vmatprep.mubr.bf16.mxu0 %v9339_v30 }
  0x78   : > { %506 = vst.msk [vmem:[#allocation5 + $0xa0] sm:$0xff] %vm485_vm1, %v9978_v1  ;;  %507 = vst.msk [vmem:[#allocation5 + $0xa8] sm:$0xff] %vm485_vm1, %v9978_v1  ;;  %8586 = vmatprep.mubr.bf16.mxu1 %v9339_v30 }
  0x79   : > { %508 = vst.msk [vmem:[#allocation5 + $0xb0] sm:$0xff] %vm485_vm1, %v9978_v1  ;;  %509 = vst.msk [vmem:[#allocation5 + $0xb8] sm:$0xff] %vm485_vm1, %v9978_v1 }
  0x7a   : > { %510 = vst.msk [vmem:[#allocation5 + $0xc0] sm:$0xff] %vm485_vm1, %v9978_v1  ;;  %511 = vst.msk [vmem:[#allocation5 + $0xc8] sm:$0xff] %vm485_vm1, %v9978_v1 }
  0x7b   : > { %512 = vst.msk [vmem:[#allocation5 + $0xd0] sm:$0xff] %vm485_vm1, %v9978_v1  ;;  %513 = vst.msk [vmem:[#allocation5 + $0xd8] sm:$0xff] %vm485_vm1, %v9978_v1 }
  0x7c   : > { %514 = vst.msk [vmem:[#allocation5 + $0xe0] sm:$0xff] %vm485_vm1, %v9978_v1  ;;  %515 = vst.msk [vmem:[#allocation5 + $0xe8] sm:$0xff] %vm485_vm1, %v9978_v1 }
  0x7d   : > { %516 = vst.msk [vmem:[#allocation5 + $0xf0] sm:$0xff] %vm485_vm1, %v9978_v1  ;;  %517 = vst.msk [vmem:[#allocation5 + $0xf8] sm:$0xff] %vm485_vm1, %v9978_v1 }
  0x7e   : > { %518 = vst.msk [vmem:[#allocation5 + $0x100] sm:$0xff] %vm485_vm1, %v9978_v1  ;;  %519 = vst.msk [vmem:[#allocation5 + $0x108] sm:$0xff] %vm485_vm1, %v9978_v1  ;;  %8555 = vmatmul.mubr.bf16.gmra.mxu0 %v9340_v33 }
  0x7f   : > { %520 = vst.msk [vmem:[#allocation5 + $0x110] sm:$0xff] %vm485_vm1, %v9978_v1  ;;  %521 = vst.msk [vmem:[#allocation5 + $0x118] sm:$0xff] %vm485_vm1, %v9978_v1  ;;  %8587 = vmatmul.mubr.bf16.gmra.mxu1 %v9340_v33  ;;  %8558 = vmatprep.mubr.bf16.mxu0 %v9345_v36 }
  0x80   : > { %522 = vst.msk [vmem:[#allocation5 + $0x120] sm:$0xff] %vm485_vm1, %v9978_v1  ;;  %523 = vst.msk [vmem:[#allocation5 + $0x128] sm:$0xff] %vm485_vm1, %v9978_v1  ;;  %8590 = vmatprep.mubr.bf16.mxu1 %v9345_v36 }
  0x81   : > { %524 = vst.msk [vmem:[#allocation5 + $0x130] sm:$0xff] %vm485_vm1, %v9978_v1  ;;  %525 = vst.msk [vmem:[#allocation5 + $0x138] sm:$0xff] %vm485_vm1, %v9978_v1 }
  0x82   : > { %526 = vst.msk [vmem:[#allocation5 + $0x140] sm:$0xff] %vm485_vm1, %v9978_v1  ;;  %527 = vst.msk [vmem:[#allocation5 + $0x148] sm:$0xff] %vm485_vm1, %v9978_v1 }
  0x83   : > { %528 = vst.msk [vmem:[#allocation5 + $0x150] sm:$0xff] %vm485_vm1, %v9978_v1  ;;  %529 = vst.msk [vmem:[#allocation5 + $0x158] sm:$0xff] %vm485_vm1, %v9978_v1 }
  0x84   : > { %530 = vst.msk [vmem:[#allocation5 + $0x160] sm:$0xff] %vm485_vm1, %v9978_v1  ;;  %531 = vst.msk [vmem:[#allocation5 + $0x168] sm:$0xff] %vm485_vm1, %v9978_v1 }
  0x85   : > { %532 = vst.msk [vmem:[#allocation5 + $0x170] sm:$0xff] %vm485_vm1, %v9978_v1  ;;  %533 = vst.msk [vmem:[#allocation5 + $0x178] sm:$0xff] %vm485_vm1, %v9978_v1 }
  0x86   : > { %534 = vst.msk [vmem:[#allocation5 + $0x180] sm:$0xff] %vm485_vm1, %v9978_v1  ;;  %535 = vst.msk [vmem:[#allocation5 + $0x188] sm:$0xff] %vm485_vm1, %v9978_v1  ;;  %8559 = vmatmul.mubr.bf16.gmra.mxu0 %v9346_v39 }
  0x87   : > { %536 = vst.msk [vmem:[#allocation5 + $0x190] sm:$0xff] %vm485_vm1, %v9978_v1  ;;  %537 = vst.msk [vmem:[#allocation5 + $0x198] sm:$0xff] %vm485_vm1, %v9978_v1  ;;  %8591 = vmatmul.mubr.bf16.gmra.mxu1 %v9346_v39 }
  0x88   : > { %538 = vst.msk [vmem:[#allocation5 + $0x1a0] sm:$0xff] %vm485_vm1, %v9978_v1  ;;  %539 = vst.msk [vmem:[#allocation5 + $0x1a8] sm:$0xff] %vm485_vm1, %v9978_v1 }
  0x89   : > { %540 = vst.msk [vmem:[#allocation5 + $0x1b0] sm:$0xff] %vm485_vm1, %v9978_v1  ;;  %541 = vst.msk [vmem:[#allocation5 + $0x1b8] sm:$0xff] %vm485_vm1, %v9978_v1 }
  0x8a   : > { %542 = vst.msk [vmem:[#allocation5 + $0x1c0] sm:$0xff] %vm485_vm1, %v9978_v1  ;;  %543 = vst.msk [vmem:[#allocation5 + $0x1c8] sm:$0xff] %vm485_vm1, %v9978_v1 }
  0x8b   : > { %544 = vst.msk [vmem:[#allocation5 + $0x1d0] sm:$0xff] %vm485_vm1, %v9978_v1  ;;  %545 = vst.msk [vmem:[#allocation5 + $0x1d8] sm:$0xff] %vm485_vm1, %v9978_v1 }
  0x8c   : > { %546 = vst.msk [vmem:[#allocation5 + $0x1e0] sm:$0xff] %vm485_vm1, %v9978_v1  ;;  %547 = vst.msk [vmem:[#allocation5 + $0x1e8] sm:$0xff] %vm485_vm1, %v9978_v1 }
  0x8d   : > { %548 = vst.msk [vmem:[#allocation5 + $0x1f0] sm:$0xff] %vm485_vm1, %v9978_v1  ;;  %549 = vst.msk [vmem:[#allocation5 + $0x1f8] sm:$0xff] %vm485_vm1, %v9978_v1 }
 0x10e   : > { %v8484_v42 = vpop.f32.mrf.mxu0 }
 0x10f   : > { %v8044_v43 = vpack.c.bf16 %v8484_v42, %v8484_v42  ;;  %v8516_v44 = vpop.f32.mrf.mxu1 }
 0x110   : > { %v8060_v45 = vpack.c.bf16 %v8516_v44, %v8516_v44  ;;  %v712_v46 = vpop.f32.mrf.mxu0 }
 0x111   : > { %842 = vst.msk [vmem:[#allocation2 + $0x8] sm:$0xf] %vm839_vm2, %v8044_v43  ;;  %v8042_v47 = vpack.c.bf16 %v712_v46, %v712_v46  ;;  %v955_v48 = vpop.f32.mrf.mxu1 }
 0x112   : > { %1085 = vst.msk [vmem:[#allocation2 + $0x48] sm:$0xf] %vm839_vm2, %v8060_v45  ;;  %v8058_v49 = vpack.c.bf16 %v955_v48, %v955_v48  ;;  %v8485_v50 = vpop.f32.mrf.mxu0 }
 0x113   : > { %840 = vst.msk [vmem:[#allocation2] sm:$0xf] %vm839_vm2, %v8042_v47  ;;  %v8045_v51 = vpack.c.bf16 %v8485_v50, %v8485_v50  ;;  %v8517_v52 = vpop.f32.mrf.mxu1 }
 0x114   : > { %1083 = vst.msk [vmem:[#allocation2 + $0x40] sm:$0xf] %vm839_vm2, %v8058_v49  ;;  %v8061_v53 = vpack.c.bf16 %v8517_v52, %v8517_v52  ;;  %v715_v54 = vpop.f32.mrf.mxu0 }
 0x115   : > { %843 = vst.msk [vmem:[#allocation2 + $0xc] sm:$0xf] %vm839_vm2, %v8045_v51  ;;  %v8043_v55 = vpack.c.bf16 %v715_v54, %v715_v54  ;;  %v958_v56 = vpop.f32.mrf.mxu1 }
 0x116   : > { %1086 = vst.msk [vmem:[#allocation2 + $0x4c] sm:$0xf] %vm839_vm2, %v8061_v53  ;;  %v8059_v57 = vpack.c.bf16 %v958_v56, %v958_v56  ;;  %v8488_v58 = vpop.f32.mrf.mxu0 }
 0x117   : > { %841 = vst.msk [vmem:[#allocation2 + $0x4] sm:$0xf] %vm839_vm2, %v8043_v55  ;;  %v8048_v59 = vpack.c.bf16 %v8488_v58, %v8488_v58  ;;  %v8520_v60 = vpop.f32.mrf.mxu1 }
 0x118   : > { %1084 = vst.msk [vmem:[#allocation2 + $0x44] sm:$0xf] %vm839_vm2, %v8059_v57  ;;  %v8064_v61 = vpack.c.bf16 %v8520_v60, %v8520_v60  ;;  %v728_v62 = vpop.f32.mrf.mxu0 }
 0x119   : > { %846 = vst.msk [vmem:[#allocation2 + $0x18] sm:$0xf] %vm839_vm2, %v8048_v59  ;;  %v8046_v63 = vpack.c.bf16 %v728_v62, %v728_v62  ;;  %v971_v0 = vpop.f32.mrf.mxu1 }
 0x11a   : > { %1089 = vst.msk [vmem:[#allocation2 + $0x58] sm:$0xf] %vm839_vm2, %v8064_v61  ;;  %v8062_v1 = vpack.c.bf16 %v971_v0, %v971_v0  ;;  %v8489_v2 = vpop.f32.mrf.mxu0 }
 0x11b   : > { %844 = vst.msk [vmem:[#allocation2 + $0x10] sm:$0xf] %vm839_vm2, %v8046_v63  ;;  %v8049_v3 = vpack.c.bf16 %v8489_v2, %v8489_v2  ;;  %v8521_v4 = vpop.f32.mrf.mxu1 }
 0x11c   : > { %1087 = vst.msk [vmem:[#allocation2 + $0x50] sm:$0xf] %vm839_vm2, %v8062_v1  ;;  %v8065_v5 = vpack.c.bf16 %v8521_v4, %v8521_v4  ;;  %v731_v6 = vpop.f32.mrf.mxu0 }
 0x11d   : > { %847 = vst.msk [vmem:[#allocation2 + $0x1c] sm:$0xf] %vm839_vm2, %v8049_v3  ;;  %v8047_v7 = vpack.c.bf16 %v731_v6, %v731_v6  ;;  %v974_v8 = vpop.f32.mrf.mxu1 }
 0x11e   : > { %1090 = vst.msk [vmem:[#allocation2 + $0x5c] sm:$0xf] %vm839_vm2, %v8065_v5  ;;  %v8063_v9 = vpack.c.bf16 %v974_v8, %v974_v8  ;;  %v8492_v10 = vpop.f32.mrf.mxu0 }
 0x11f   : > { %845 = vst.msk [vmem:[#allocation2 + $0x14] sm:$0xf] %vm839_vm2, %v8047_v7  ;;  %v8052_v11 = vpack.c.bf16 %v8492_v10, %v8492_v10  ;;  %v8524_v12 = vpop.f32.mrf.mxu1 }
 0x120   : > { %1088 = vst.msk [vmem:[#allocation2 + $0x54] sm:$0xf] %vm839_vm2, %v8063_v9  ;;  %v8068_v13 = vpack.c.bf16 %v8524_v12, %v8524_v12  ;;  %v744_v14 = vpop.f32.mrf.mxu0 }
 0x121   : > { %850 = vst.msk [vmem:[#allocation2 + $0x28] sm:$0xf] %vm839_vm2, %v8052_v11  ;;  %v8050_v15 = vpack.c.bf16 %v744_v14, %v744_v14  ;;  %v987_v16 = vpop.f32.mrf.mxu1 }
 0x122   : > { %1093 = vst.msk [vmem:[#allocation2 + $0x68] sm:$0xf] %vm839_vm2, %v8068_v13  ;;  %v8066_v17 = vpack.c.bf16 %v987_v16, %v987_v16  ;;  %v8493_v18 = vpop.f32.mrf.mxu0 }
 0x123   : > { %848 = vst.msk [vmem:[#allocation2 + $0x20] sm:$0xf] %vm839_vm2, %v8050_v15  ;;  %v8053_v19 = vpack.c.bf16 %v8493_v18, %v8493_v18  ;;  %v8525_v20 = vpop.f32.mrf.mxu1 }
 0x124   : > { %1091 = vst.msk [vmem:[#allocation2 + $0x60] sm:$0xf] %vm839_vm2, %v8066_v17  ;;  %v8069_v21 = vpack.c.bf16 %v8525_v20, %v8525_v20  ;;  %v747_v22 = vpop.f32.mrf.mxu0 }
 0x125   : > { %851 = vst.msk [vmem:[#allocation2 + $0x2c] sm:$0xf] %vm839_vm2, %v8053_v19  ;;  %v8051_v23 = vpack.c.bf16 %v747_v22, %v747_v22  ;;  %v990_v24 = vpop.f32.mrf.mxu1 }
 0x126   : > { %1094 = vst.msk [vmem:[#allocation2 + $0x6c] sm:$0xf] %vm839_vm2, %v8069_v21  ;;  %v8067_v25 = vpack.c.bf16 %v990_v24, %v990_v24  ;;  %v8496_v26 = vpop.f32.mrf.mxu0 }
 0x127   : > { %849 = vst.msk [vmem:[#allocation2 + $0x24] sm:$0xf] %vm839_vm2, %v8051_v23  ;;  %v8056_v27 = vpack.c.bf16 %v8496_v26, %v8496_v26  ;;  %v8528_v28 = vpop.f32.mrf.mxu1 }
 0x128   : > { %1092 = vst.msk [vmem:[#allocation2 + $0x64] sm:$0xf] %vm839_vm2, %v8067_v25  ;;  %v8072_v29 = vpack.c.bf16 %v8528_v28, %v8528_v28  ;;  %v760_v30 = vpop.f32.mrf.mxu0 }
 0x129   : > { %854 = vst.msk [vmem:[#allocation2 + $0x38] sm:$0xf] %vm839_vm2, %v8056_v27  ;;  %v8054_v31 = vpack.c.bf16 %v760_v30, %v760_v30  ;;  %v1003_v32 = vpop.f32.mrf.mxu1 }
 0x12a   : > { %1097 = vst.msk [vmem:[#allocation2 + $0x78] sm:$0xf] %vm839_vm2, %v8072_v29  ;;  %v8070_v33 = vpack.c.bf16 %v1003_v32, %v1003_v32  ;;  %v8497_v34 = vpop.f32.mrf.mxu0 }
 0x12b   : > { %852 = vst.msk [vmem:[#allocation2 + $0x30] sm:$0xf] %vm839_vm2, %v8054_v31  ;;  %v8057_v35 = vpack.c.bf16 %v8497_v34, %v8497_v34  ;;  %v8529_v36 = vpop.f32.mrf.mxu1 }
 0x12c   : > { %1095 = vst.msk [vmem:[#allocation2 + $0x70] sm:$0xf] %vm839_vm2, %v8070_v33  ;;  %v8073_v37 = vpack.c.bf16 %v8529_v36, %v8529_v36  ;;  %v763_v38 = vpop.f32.mrf.mxu0 }
 0x12d   : > { %855 = vst.msk [vmem:[#allocation2 + $0x3c] sm:$0xf] %vm839_vm2, %v8057_v35  ;;  %v8055_v39 = vpack.c.bf16 %v763_v38, %v763_v38  ;;  %v1006_v40 = vpop.f32.mrf.mxu1 }
 0x12e   : > { %1098 = vst.msk [vmem:[#allocation2 + $0x7c] sm:$0xf] %vm839_vm2, %v8073_v37  ;;  %v8071_v41 = vpack.c.bf16 %v1006_v40, %v1006_v40  ;;  %v8548_v42 = vpop.f32.mrf.mxu0 }
 0x12f   : > { %853 = vst.msk [vmem:[#allocation2 + $0x34] sm:$0xf] %vm839_vm2, %v8055_v39  ;;  %v8076_v43 = vpack.c.bf16 %v8548_v42, %v8548_v42  ;;  %v8580_v44 = vpop.f32.mrf.mxu1 }
 0x130   : > { %1096 = vst.msk [vmem:[#allocation2 + $0x74] sm:$0xf] %vm839_vm2, %v8071_v41  ;;  %v8092_v45 = vpack.c.bf16 %v8580_v44, %v8580_v44  ;;  %v1198_v46 = vpop.f32.mrf.mxu0 }
 0x131   : > { %1328 = vst.msk [vmem:[#allocation2 + $0x88] sm:$0xf] %vm839_vm2, %v8076_v43  ;;  %v8074_v47 = vpack.c.bf16 %v1198_v46, %v1198_v46  ;;  %v1441_v48 = vpop.f32.mrf.mxu1 }
 0x132   : > { %1571 = vst.msk [vmem:[#allocation2 + $0xc8] sm:$0xf] %vm839_vm2, %v8092_v45  ;;  %v8090_v49 = vpack.c.bf16 %v1441_v48, %v1441_v48  ;;  %v8549_v50 = vpop.f32.mrf.mxu0 }
 0x133   : > { %1326 = vst.msk [vmem:[#allocation2 + $0x80] sm:$0xf] %vm839_vm2, %v8074_v47  ;;  %v8077_v51 = vpack.c.bf16 %v8549_v50, %v8549_v50  ;;  %v8581_v52 = vpop.f32.mrf.mxu1 }
 0x134   : > { %1569 = vst.msk [vmem:[#allocation2 + $0xc0] sm:$0xf] %vm839_vm2, %v8090_v49  ;;  %v8093_v53 = vpack.c.bf16 %v8581_v52, %v8581_v52  ;;  %v1201_v54 = vpop.f32.mrf.mxu0 }
 0x135   : > { %1329 = vst.msk [vmem:[#allocation2 + $0x8c] sm:$0xf] %vm839_vm2, %v8077_v51  ;;  %v8075_v55 = vpack.c.bf16 %v1201_v54, %v1201_v54  ;;  %v1444_v56 = vpop.f32.mrf.mxu1 }
 0x136   : > { %1572 = vst.msk [vmem:[#allocation2 + $0xcc] sm:$0xf] %vm839_vm2, %v8093_v53  ;;  %v8091_v57 = vpack.c.bf16 %v1444_v56, %v1444_v56  ;;  %v8552_v58 = vpop.f32.mrf.mxu0 }
 0x137   : > { %1327 = vst.msk [vmem:[#allocation2 + $0x84] sm:$0xf] %vm839_vm2, %v8075_v55  ;;  %v8080_v59 = vpack.c.bf16 %v8552_v58, %v8552_v58  ;;  %v8584_v60 = vpop.f32.mrf.mxu1 }
 0x138   : > { %1570 = vst.msk [vmem:[#allocation2 + $0xc4] sm:$0xf] %vm839_vm2, %v8091_v57  ;;  %v8096_v61 = vpack.c.bf16 %v8584_v60, %v8584_v60  ;;  %v1214_v62 = vpop.f32.mrf.mxu0 }
 0x139   : > { %1332 = vst.msk [vmem:[#allocation2 + $0x98] sm:$0xf] %vm839_vm2, %v8080_v59  ;;  %v8078_v63 = vpack.c.bf16 %v1214_v62, %v1214_v62  ;;  %v1457_v0 = vpop.f32.mrf.mxu1 }
 0x13a   : > { %1575 = vst.msk [vmem:[#allocation2 + $0xd8] sm:$0xf] %vm839_vm2, %v8096_v61  ;;  %v8094_v1 = vpack.c.bf16 %v1457_v0, %v1457_v0  ;;  %v8553_v2 = vpop.f32.mrf.mxu0 }
 0x13b   : > { %1330 = vst.msk [vmem:[#allocation2 + $0x90] sm:$0xf] %vm839_vm2, %v8078_v63  ;;  %v8081_v3 = vpack.c.bf16 %v8553_v2, %v8553_v2  ;;  %v8585_v4 = vpop.f32.mrf.mxu1 }
 0x13c   : > { %1573 = vst.msk [vmem:[#allocation2 + $0xd0] sm:$0xf] %vm839_vm2, %v8094_v1  ;;  %v8097_v5 = vpack.c.bf16 %v8585_v4, %v8585_v4  ;;  %v1217_v6 = vpop.f32.mrf.mxu0 }
 0x13d   : > { %1333 = vst.msk [vmem:[#allocation2 + $0x9c] sm:$0xf] %vm839_vm2, %v8081_v3  ;;  %v8079_v7 = vpack.c.bf16 %v1217_v6, %v1217_v6  ;;  %v1460_v8 = vpop.f32.mrf.mxu1 }
 0x13e   : > { %1576 = vst.msk [vmem:[#allocation2 + $0xdc] sm:$0xf] %vm839_vm2, %v8097_v5  ;;  %v8095_v9 = vpack.c.bf16 %v1460_v8, %v1460_v8  ;;  %v8556_v10 = vpop.f32.mrf.mxu0 }
 0x13f   : > { %1331 = vst.msk [vmem:[#allocation2 + $0x94] sm:$0xf] %vm839_vm2, %v8079_v7  ;;  %v8084_v11 = vpack.c.bf16 %v8556_v10, %v8556_v10  ;;  %v8588_v12 = vpop.f32.mrf.mxu1 }
 0x140   : > { %1574 = vst.msk [vmem:[#allocation2 + $0xd4] sm:$0xf] %vm839_vm2, %v8095_v9  ;;  %v8100_v13 = vpack.c.bf16 %v8588_v12, %v8588_v12  ;;  %v1230_v14 = vpop.f32.mrf.mxu0 }
 0x141   : > { %1336 = vst.msk [vmem:[#allocation2 + $0xa8] sm:$0xf] %vm839_vm2, %v8084_v11  ;;  %v8082_v15 = vpack.c.bf16 %v1230_v14, %v1230_v14  ;;  %v1473_v16 = vpop.f32.mrf.mxu1 }
 0x142   : > { %1579 = vst.msk [vmem:[#allocation2 + $0xe8] sm:$0xf] %vm839_vm2, %v8100_v13  ;;  %v8098_v17 = vpack.c.bf16 %v1473_v16, %v1473_v16  ;;  %v8557_v18 = vpop.f32.mrf.mxu0 }
 0x143   : > { %1334 = vst.msk [vmem:[#allocation2 + $0xa0] sm:$0xf] %vm839_vm2, %v8082_v15  ;;  %v8085_v19 = vpack.c.bf16 %v8557_v18, %v8557_v18  ;;  %v8589_v20 = vpop.f32.mrf.mxu1 }
 0x144   : > { %1577 = vst.msk [vmem:[#allocation2 + $0xe0] sm:$0xf] %vm839_vm2, %v8098_v17  ;;  %v8101_v21 = vpack.c.bf16 %v8589_v20, %v8589_v20  ;;  %v1233_v22 = vpop.f32.mrf.mxu0 }
 0x145   : > { %1337 = vst.msk [vmem:[#allocation2 + $0xac] sm:$0xf] %vm839_vm2, %v8085_v19  ;;  %v8083_v23 = vpack.c.bf16 %v1233_v22, %v1233_v22  ;;  %v1476_v24 = vpop.f32.mrf.mxu1 }
 0x146   : > { %1580 = vst.msk [vmem:[#allocation2 + $0xec] sm:$0xf] %vm839_vm2, %v8101_v21  ;;  %v8099_v25 = vpack.c.bf16 %v1476_v24, %v1476_v24  ;;  %v8560_v26 = vpop.f32.mrf.mxu0 }
 0x147   : > { %1335 = vst.msk [vmem:[#allocation2 + $0xa4] sm:$0xf] %vm839_vm2, %v8083_v23  ;;  %v8088_v27 = vpack.c.bf16 %v8560_v26, %v8560_v26  ;;  %v8592_v28 = vpop.f32.mrf.mxu1 }
 0x148   : > { %1578 = vst.msk [vmem:[#allocation2 + $0xe4] sm:$0xf] %vm839_vm2, %v8099_v25  ;;  %v8104_v29 = vpack.c.bf16 %v8592_v28, %v8592_v28  ;;  %v1246_v30 = vpop.f32.mrf.mxu0 }
 0x149   : > { %1340 = vst.msk [vmem:[#allocation2 + $0xb8] sm:$0xf] %vm839_vm2, %v8088_v27  ;;  %v8086_v31 = vpack.c.bf16 %v1246_v30, %v1246_v30  ;;  %v1489_v32 = vpop.f32.mrf.mxu1 }
 0x14a   : > { %1583 = vst.msk [vmem:[#allocation2 + $0xf8] sm:$0xf] %vm839_vm2, %v8104_v29  ;;  %v8102_v33 = vpack.c.bf16 %v1489_v32, %v1489_v32  ;;  %v8561_v34 = vpop.f32.mrf.mxu0 }
 0x14b   : > { %1338 = vst.msk [vmem:[#allocation2 + $0xb0] sm:$0xf] %vm839_vm2, %v8086_v31  ;;  %v8089_v35 = vpack.c.bf16 %v8561_v34, %v8561_v34  ;;  %v8593_v36 = vpop.f32.mrf.mxu1 }
 0x14c   : > { %1581 = vst.msk [vmem:[#allocation2 + $0xf0] sm:$0xf] %vm839_vm2, %v8102_v33  ;;  %v8105_v37 = vpack.c.bf16 %v8593_v36, %v8593_v36  ;;  %v1249_v38 = vpop.f32.mrf.mxu0 }
 0x14d   : > { %1341 = vst.msk [vmem:[#allocation2 + $0xbc] sm:$0xf] %vm839_vm2, %v8089_v35  ;;  %v8087_v39 = vpack.c.bf16 %v1249_v38, %v1249_v38  ;;  %v1492_v40 = vpop.f32.mrf.mxu1 }
 0x14e   : > { %1584 = vst.msk [vmem:[#allocation2 + $0xfc] sm:$0xf] %vm839_vm2, %v8105_v37  ;;  %v8103_v41 = vpack.c.bf16 %v1492_v40, %v1492_v40 }
 0x14f   : > { %1339 = vst.msk [vmem:[#allocation2 + $0xb4] sm:$0xf] %vm839_vm2, %v8087_v39 }
 0x150   : > { %1582 = vst.msk [vmem:[#allocation2 + $0xf4] sm:$0xf] %vm839_vm2, %v8103_v41 }
 0x151 PF: > { %v9353_v42 = vld [vmem:[%s13208_s3 + $0x38] sm:$0xff]   ;;  %v9354_v43 = vld [vmem:[%s13208_s3 + $0x30] sm:$0xff]   ;;  %v9355_v44 = vld [vmem:[%s13208_s3 + $0x28] sm:$0xff]   ;;  %vm2043_vm3 = vcmask 261120   ;;  %vm2509_vm4 = vcmask 7168   ;;  %p7982_p3 = scmp.ne.s32.totalorder %s9951_s27, 1 }
 0x152   : > { %8594 = vmatprep.subr.bf16.mxu0 %v9353_v42  ;;  %v9356_v45 = vld [vmem:[%s13208_s3 + $0x20] sm:$0xff]   ;;  %v9357_v47 = vld [vmem:[%s13208_s3 + $0x18] sm:$0xff]   ;;  %v9358_v48 = vld [vmem:[%s13208_s3 + $0x10] sm:$0xff]  }
 0x153   : > { %8595 = vmatpush3.bf16.msra.mxu0 %v9353_v42  ;;  %v10716_v46 = vld [vmem:[%s10128_s23] sm:$0xff]   ;;  %v9359_v49 = vld [vmem:[%s13208_s3 + $0x8] sm:$0xff]   ;;  %v9363_v52 = vld [vmem:[%s10128_s23 + $0x10] sm:$0xff]  }
 0x154   : > { %8596 = vmatprep.subr.bf16.mxu0 %v9354_v43  ;;  %8610 = vmatprep.mubr.bf16.mxu0 %v10716_v46  ;;  %v9360_v50 = vld [vmem:[%s13208_s3] sm:$0xff]   ;;  %v9362_v51 = vld [vmem:[%s10128_s23 + $0x8] sm:$0xff]   ;;  %v9364_v53 = vld [vmem:[%s10128_s23 + $0x18] sm:$0xff]  }
 0x155   : > { %8642 = vmatprep.mubr.bf16.mxu1 %v10716_v46  ;;  %v9365_v54 = vld [vmem:[%s10128_s23 + $0x20] sm:$0xff]   ;;  %v10737_v55 = vld [vmem:[%s10128_s23 + $0x28] sm:$0xff]   ;;  %v10740_v56 = vld [vmem:[%s10128_s23 + $0x30] sm:$0xff]  }
 0x156   : > { %v10745_v57 = vld [vmem:[%s10128_s23 + $0x38] sm:$0xff]   ;;  %v9369_v58 = vld [vmem:[#allocation2] sm:$0xff]   ;;  %v9378_v60 = vld [vmem:[%s13209_s4 + $0x30] sm:$0xff]  }
 0x157   : > { %8597 = vmatpush3.bf16.msra.mxu0 %v9354_v43  ;;  %v9377_v59 = vld [vmem:[%s13209_s4 + $0x38] sm:$0xff]   ;;  %v9379_v61 = vld [vmem:[%s13209_s4 + $0x28] sm:$0xff]   ;;  %v9380_v62 = vld [vmem:[%s13209_s4 + $0x20] sm:$0xff]  }
 0x158   : > { %8598 = vmatprep.subr.bf16.mxu0 %v9355_v44  ;;  %8626 = vmatprep.subr.bf16.mxu1 %v9377_v59  ;;  %v9381_v1 = vld [vmem:[%s13209_s4 + $0x18] sm:$0xff]   ;;  %v9382_v5 = vld [vmem:[%s13209_s4 + $0x10] sm:$0xff]   ;;  %v9383_v8 = vld [vmem:[%s13209_s4 + $0x8] sm:$0xff]  }
 0x159   : > { %8627 = vmatpush3.bf16.msra.mxu1 %v9377_v59  ;;  %v9384_v11 = vld [vmem:[%s13209_s4] sm:$0xff]   ;;  %v9370_v35 = vld [vmem:[#allocation2 + $0x8] sm:$0xff]   ;;  %v9371_v36 = vld [vmem:[#allocation2 + $0x10] sm:$0xff]  }
 0x15a   : > { %8628 = vmatprep.subr.bf16.mxu1 %v9378_v60  ;;  %v9372_v37 = vld [vmem:[#allocation2 + $0x18] sm:$0xff]   ;;  %v9373_v38 = vld [vmem:[#allocation2 + $0x20] sm:$0xff]   ;;  %v9374_v39 = vld [vmem:[#allocation2 + $0x28] sm:$0xff]  }
 0x15b   : > { %8599 = vmatpush3.bf16.msra.mxu0 %v9355_v44  ;;  %v9375_v40 = vld [vmem:[#allocation2 + $0x30] sm:$0xff]   ;;  %v9376_v41 = vld [vmem:[#allocation2 + $0x38] sm:$0xff]  }
 0x15c   : > { %8600 = vmatprep.subr.bf16.mxu0 %v9356_v45 }
 0x15d   : > { %8629 = vmatpush3.bf16.msra.mxu1 %v9378_v60 }
 0x15e   : > { %8630 = vmatprep.subr.bf16.mxu1 %v9379_v61 }
 0x15f   : > { %8601 = vmatpush3.bf16.msra.mxu0 %v9356_v45 }
 0x160   : > { %8602 = vmatprep.subr.bf16.mxu0 %v9357_v47 }
 0x161   : > { %8631 = vmatpush3.bf16.msra.mxu1 %v9379_v61 }
 0x162   : > { %8632 = vmatprep.subr.bf16.mxu1 %v9380_v62 }
 0x163   : > { %8603 = vmatpush3.bf16.msra.mxu0 %v9357_v47 }
 0x164   : > { %8604 = vmatprep.subr.bf16.mxu0 %v9358_v48 }
 0x165   : > { %8633 = vmatpush3.bf16.msra.mxu1 %v9380_v62 }
 0x166   : > { %8634 = vmatprep.subr.bf16.mxu1 %v9381_v1 }
 0x167   : > { %8605 = vmatpush3.bf16.msra.mxu0 %v9358_v48 }
 0x168   : > { %8606 = vmatprep.subr.bf16.mxu0 %v9359_v49 }
 0x169   : > { %8635 = vmatpush3.bf16.msra.mxu1 %v9381_v1 }
 0x16a   : > { %8636 = vmatprep.subr.bf16.mxu1 %v9382_v5 }
 0x16b   : > { %8607 = vmatpush3.bf16.msra.mxu0 %v9359_v49  ;;  %v9979_v49 = vmov 0  }
 0x16c   : > { %8608 = vmatprep.subr.bf16.mxu0 %v9360_v50  ;;  %9352 = vset.pattern.permute.xlu1 %v9979_v49 }
 0x16d   : > { %8637 = vmatpush3.bf16.msra.mxu1 %v9382_v5  ;;  %9351 = vset.pattern.permute.xlu0 %v9979_v49 }
 0x16e   : > { %8638 = vmatprep.subr.bf16.mxu1 %v9383_v8 }
 0x16f   : > { %8609 = vmatpush3.bf16.msra.mxu0 %v9360_v50 }
 0x171   : > { %8639 = vmatpush3.bf16.msra.mxu1 %v9383_v8 }
 0x172   : > { %8611 = vmatmul.mubr.bf16.vlgmr.msra.gmra.mxu0 %v9362_v51  ;;  %8640 = vmatprep.subr.bf16.mxu1 %v9384_v11 }
 0x173   : > { %8614 = vmatprep.mubr.bf16.mxu0 %v9363_v52 }
 0x175   : > { %8641 = vmatpush3.bf16.msra.mxu1 %v9384_v11 }
 0x178   : > { %8643 = vmatmul.mubr.bf16.vlgmr.msra.gmra.mxu1 %v9362_v51 }
 0x179   : > { %8646 = vmatprep.mubr.bf16.mxu1 %v9363_v52 }
 0x17a   : > { %8615 = vmatmul.mubr.bf16.gmra.mxu0 %v9364_v53 }
 0x17b   : > { %8618 = vmatprep.mubr.bf16.mxu0 %v9365_v54 }
 0x180   : > { %8647 = vmatmul.mubr.bf16.gmra.mxu1 %v9364_v53 }
 0x181   : > { %8650 = vmatprep.mubr.bf16.mxu1 %v9365_v54 }
 0x182   : > { %8619 = vmatmul.mubr.bf16.gmra.mxu0 %v10737_v55 }
 0x183   : > { %8622 = vmatprep.mubr.bf16.mxu0 %v10740_v56 }
 0x188   : > { %8651 = vmatmul.mubr.bf16.gmra.mxu1 %v10737_v55 }
 0x189   : > { %8654 = vmatprep.mubr.bf16.mxu1 %v10740_v56 }
 0x18a   : > { %8623 = vmatmul.mubr.bf16.gmra.mxu0 %v10745_v57 }
 0x18b   : > { %8674 = vmatprep.mubr.msk.bf16.mxu0 %vm2043_vm3, %v9369_v58 }
 0x190   : > { %8655 = vmatmul.mubr.bf16.gmra.mxu1 %v10745_v57 }
 0x232   : > { %v8612_v63 = vpop.f32.mrf.mxu0 }
 0x234   : > { %v10761_v0 = vpop.f32.mrf.mxu0 }
 0x236   : > { %v8613_v2 = vpop.f32.mrf.mxu0 }
 0x237   : > { %v1811_v3 = vpack.c.bf16 %v8613_v2, %v8612_v63 }
 0x238   : > { %v1750_v4 = vpop.f32.mrf.mxu0  ;;  %v8644_v62 = vpop.f32.mrf.mxu1 }
 0x239   : > { %v2072_v32 = vsel %vm2043_vm3, %v1811_v3, 0  ;;  %v1810_v33 = vpack.c.bf16 %v1750_v4, %v10761_v0 }
 0x23a   : > { %v8616_v6 = vpop.f32.mrf.mxu0  ;;  %v1916_v63 = vpop.f32.mrf.mxu1 }
 0x23b   : > { %v2069_v34 = vsel %vm2043_vm3, %v1810_v33, 0 }
 0x23c   : > { %v1763_v7 = vpop.f32.mrf.mxu0  ;;  %v8645_v0 = vpop.f32.mrf.mxu1 }
 0x23e   : > { %v8617_v9 = vpop.f32.mrf.mxu0  ;;  %v1919_v1 = vpop.f32.mrf.mxu1 }
 0x23f   : > { %v1813_v27 = vpack.c.bf16 %v8617_v9, %v8616_v6 }
 0x240   : > { %v1766_v10 = vpop.f32.mrf.mxu0  ;;  %v8648_v2 = vpop.f32.mrf.mxu1 }
 0x241   : > { %v2078_v29 = vsel %vm2043_vm3, %v1813_v27, 0  ;;  %v1812_v30 = vpack.c.bf16 %v1766_v10, %v1763_v7 }
 0x242   : > { %v8620_v12 = vpop.f32.mrf.mxu0 }
 0x243   : > { %v2075_v31 = vsel %vm2043_vm3, %v1812_v30, 0 }
 0x244   : > { %v1779_v13 = vpop.f32.mrf.mxu0 }
 0x246   : > { %v8621_v14 = vpop.f32.mrf.mxu0 }
 0x247   : > { %v1815_v23 = vpack.c.bf16 %v8621_v14, %v8620_v12 }
 0x248   : > { %v1782_v15 = vpop.f32.mrf.mxu0 }
 0x249   : > { %v2084_v25 = vsel %vm2043_vm3, %v1815_v23, 0  ;;  %v1814_v26 = vpack.c.bf16 %v1782_v15, %v1779_v13 }
 0x24a   : > { %v8624_v16 = vpop.f32.mrf.mxu0 }
 0x24b   : > { %v2081_v28 = vsel %vm2043_vm3, %v1814_v26, 0 }
 0x24c   : > { %v1795_v17 = vpop.f32.mrf.mxu0 }
 0x24e   : > { %v8625_v18 = vpop.f32.mrf.mxu0 }
 0x24f   : > { %v1817_v19 = vpack.c.bf16 %v8625_v18, %v8624_v16 }
 0x250   : > { %v1798_v20 = vpop.f32.mrf.mxu0 }
 0x251   : > { %v2090_v21 = vsel %vm2043_vm3, %v1817_v19, 0  ;;  %v1816_v22 = vpack.c.bf16 %v1798_v20, %v1795_v17  ;;  %9186 = vmatprep.subr.msk.bf16.mxu0 %vm2043_vm3, %v1817_v19  ;;  %v1980_v20 = vpack.c.bf16 %v8645_v0, %v8644_v62  ;;  %v10898_v62 = vld [vmem:[#allocation3 + $0x30] sm:$0xff] }
 0x252   : > { %8659 = vmatpush3.bf16.xpose.msra.mxu0 %v2090_v21  ;;  %v1979_v21 = vpack.c.bf16 %v1919_v1, %v1916_v63  ;;  %13356 = vst [vmem:[#allocation28_spill] sm:$0xff] %v10898_v62 }
 0x253   : > { %9187 = vmatprep.subr.msk.bf16.mxu0 %vm2043_vm3, %v1816_v22  ;;  %v2087_v24 = vsel %vm2043_vm3, %v1816_v22, 0  ;;  %v10851_v22 = vld [vmem:[#allocation3 + $0x10] sm:$0xff] }
 0x25a   : > { %8661 = vmatpush3.bf16.xpose.msra.mxu0 %v2087_v24  ;;  %v10853_v24 = vld [vmem:[#allocation3] sm:$0xff] }
 0x25b   : > { %9188 = vmatprep.subr.msk.bf16.mxu0 %vm2043_vm3, %v1815_v23  ;;  %13346 = vst [vmem:[#allocation18_spill] sm:$0xff] %v10853_v24 }
 0x262   : > { %8663 = vmatpush3.bf16.xpose.msra.mxu0 %v2084_v25 }
 0x263   : > { %9189 = vmatprep.subr.msk.bf16.mxu0 %vm2043_vm3, %v1814_v26 }
 0x26a   : > { %8665 = vmatpush3.bf16.xpose.msra.mxu0 %v2081_v28 }
 0x26b   : > { %9190 = vmatprep.subr.msk.bf16.mxu0 %vm2043_vm3, %v1813_v27  ;;  %v10858_v27 = vld [vmem:[#allocation3 + $0x18] sm:$0xff] }
 0x26c   : > { %13348 = vst [vmem:[#allocation20_spill] sm:$0xff] %v10858_v27 }
 0x272   : > { %8667 = vmatpush3.bf16.xpose.msra.mxu0 %v2078_v29 }
 0x273   : > { %9191 = vmatprep.subr.msk.bf16.mxu0 %vm2043_vm3, %v1812_v30 }
 0x27a   : > { %8669 = vmatpush3.bf16.xpose.msra.mxu0 %v2075_v31  ;;  %v10868_v31 = vld [vmem:[#allocation3 + $0x8] sm:$0xff] }
 0x27b   : > { %9192 = vmatprep.subr.msk.bf16.mxu0 %vm2043_vm3, %v1811_v3  ;;  %v1932_v3 = vpop.f32.mrf.mxu1  ;;  %13350 = vst [vmem:[#allocation22_spill] sm:$0xff] %v10868_v31 }
 0x27d   : > { %v8649_v4 = vpop.f32.mrf.mxu1 }
 0x27e   : > { %v1982_v18 = vpack.c.bf16 %v8649_v4, %v8648_v2  ;;  %v10907_v2 = vld [vmem:[#allocation3 + $0x28] sm:$0xff] }
 0x27f   : > { %v1935_v5 = vpop.f32.mrf.mxu1  ;;  %13358 = vst [vmem:[#allocation30_spill] sm:$0xff] %v10907_v2 }
 0x280   : > { %v1981_v19 = vpack.c.bf16 %v1935_v5, %v1932_v3 }
 0x281   : > { %v8652_v6 = vpop.f32.mrf.mxu1 }
 0x282   : > { %8671 = vmatpush3.bf16.xpose.msra.mxu0 %v2072_v32 }
 0x283   : > { %9193 = vmatprep.subr.msk.bf16.mxu0 %vm2043_vm3, %v1810_v33  ;;  %v1948_v7 = vpop.f32.mrf.mxu1 }
 0x285   : > { %v8653_v8 = vpop.f32.mrf.mxu1 }
 0x286   : > { %v1984_v16 = vpack.c.bf16 %v8653_v8, %v8652_v6  ;;  %v10916_v6 = vld [vmem:[#allocation3 + $0x40] sm:$0xff] }
 0x287   : > { %v1951_v9 = vpop.f32.mrf.mxu1  ;;  %13360 = vst [vmem:[#allocation32_spill] sm:$0xff] %v10916_v6 }
 0x288   : > { %v1983_v17 = vpack.c.bf16 %v1951_v9, %v1948_v7 }
 0x289   : > { %v8656_v10 = vpop.f32.mrf.mxu1 }
 0x28a   : > { %8673 = vmatpush3.bf16.xpose.msra.mxu0 %v2069_v34 }
 0x28b   : > { %v1964_v11 = vpop.f32.mrf.mxu1 }
 0x28d   : > { %v8657_v12 = vpop.f32.mrf.mxu1 }
 0x28e   : > { %v1986_v13 = vpack.c.bf16 %v8657_v12, %v8656_v10  ;;  %v10926_v10 = vld [vmem:[#allocation3 + $0x58] sm:$0xff] }
 0x28f   : > { %v1967_v14 = vpop.f32.mrf.mxu1  ;;  %13362 = vst [vmem:[#allocation34_spill] sm:$0xff] %v10926_v10 }
 0x290   : > { %8690 = vmatprep.subr.bf16.mxu1 %v1986_v13  ;;  %v1985_v15 = vpack.c.bf16 %v1967_v14, %v1964_v11  ;;  %v10935_v14 = vld [vmem:[#allocation3 + $0x50] sm:$0xff] }
 0x291   : > { %8675 = vmatmul.mubr.msk.bf16.vlgmr.msra.gmra.mxu0 %vm2043_vm3, %v9370_v35  ;;  %8691 = vmatpush3.bf16.msra.mxu1 %v1986_v13  ;;  %13364 = vst [vmem:[#allocation36_spill] sm:$0xff] %v10935_v14 }
 0x292   : > { %8678 = vmatprep.mubr.msk.bf16.mxu0 %vm2043_vm3, %v9371_v36  ;;  %8692 = vmatprep.subr.bf16.mxu1 %v1985_v15 }
 0x295   : > { %8693 = vmatpush3.bf16.msra.mxu1 %v1985_v15 }
 0x296   : > { %8694 = vmatprep.subr.bf16.mxu1 %v1984_v16 }
 0x299   : > { %8679 = vmatmul.mubr.msk.bf16.gmra.mxu0 %vm2043_vm3, %v9372_v37  ;;  %8695 = vmatpush3.bf16.msra.mxu1 %v1984_v16  ;;  %v10886_v37 = vld [vmem:[#allocation3 + $0x20] sm:$0xff] }
 0x29a   : > { %8682 = vmatprep.mubr.msk.bf16.mxu0 %vm2043_vm3, %v9373_v38  ;;  %8696 = vmatprep.subr.bf16.mxu1 %v1983_v17  ;;  %13353 = vst [vmem:[#allocation25_spill] sm:$0xff] %v10886_v37 }
 0x29d   : > { %8697 = vmatpush3.bf16.msra.mxu1 %v1983_v17 }
 0x29e   : > { %8698 = vmatprep.subr.bf16.mxu1 %v1982_v18 }
 0x2a1   : > { %8683 = vmatmul.mubr.msk.bf16.gmra.mxu0 %vm2043_vm3, %v9374_v39  ;;  %8699 = vmatpush3.bf16.msra.mxu1 %v1982_v18  ;;  %v10945_v18 = vld [vmem:[#allocation3 + $0x48] sm:$0xff] }
 0x2a2   : > { %8686 = vmatprep.mubr.msk.bf16.mxu0 %vm2043_vm3, %v9375_v40  ;;  %8700 = vmatprep.subr.bf16.mxu1 %v1981_v19  ;;  %v10892_v40 = vld [vmem:[#allocation3 + $0x38] sm:$0xff]  ;;  %13366 = vst [vmem:[#allocation38_spill] sm:$0xff] %v10945_v18 }
 0x2a3   : > { %13354 = vst [vmem:[#allocation26_spill] sm:$0xff] %v10892_v40 }
 0x2a5   : > { %8701 = vmatpush3.bf16.msra.mxu1 %v1981_v19 }
 0x2a6   : > { %8702 = vmatprep.subr.bf16.mxu1 %v1980_v20 }
 0x2a9   : > { %8687 = vmatmul.mubr.msk.bf16.gmra.mxu0 %vm2043_vm3, %v9376_v41  ;;  %8703 = vmatpush3.bf16.msra.mxu1 %v1980_v20 }
 0x2aa   : > { %8770 = vmatprep.mubr.bf16.mxu0 %v10716_v46  ;;  %8704 = vmatprep.subr.bf16.mxu1 %v1979_v21 }
 0x2ad   : > { %8705 = vmatpush3.bf16.msra.mxu1 %v1979_v21 }
 0x351   : > { %v10803_v42 = vpop.f32.mrf.mxu0 }
 0x352   : > { %2209 = vmax.xlane.f32.xlu1 %v10803_v42 }
 0x353   : > { %v10806_v43 = vpop.f32.mrf.mxu0 }
 0x354   : > { %2205 = vmax.xlane.f32.xlu0 %v10806_v43 }
 0x355   : > { %v10809_v44 = vpop.f32.mrf.mxu0 }
 0x356   : > { %2211 = vmax.xlane.f32.xlu1 %v10809_v44 }
 0x357   : > { %v10812_v45 = vpop.f32.mrf.mxu0 }
 0x358   : > { %2207 = vmax.xlane.f32.xlu0 %v10812_v45 }
 0x359   : > { %v10815_v47 = vpop.f32.mrf.mxu0 }
 0x35b   : > { %v10817_v48 = vpop.f32.mrf.mxu0 }
 0x35c   : > { %2213 = vmax.xlane.f32.xlu0 %v10817_v48 }
 0x35d   : > { %v10820_v46 = vpop.f32.mrf.mxu0 }
 0x35e   : > { %2219 = vmax.xlane.f32.xlu1 %v10820_v46 }
 0x35f   : > { %v10823_v50 = vpop.f32.mrf.mxu0 }
 0x360   : > { %2217 = vmax.xlane.f32.xlu0 %v10815_v47 }
 0x361   : > { %v10826_v51 = vpop.f32.mrf.mxu0 }
 0x362   : > { %2215 = vmax.xlane.f32.xlu1 %v10823_v50 }
 0x363   : > { %v10829_v52 = vpop.f32.mrf.mxu0 }
 0x364   : > { %2221 = vmax.xlane.f32.xlu0 %v10829_v52 }
 0x365   : > { %v10832_v53 = vpop.f32.mrf.mxu0 }
 0x366   : > { %2227 = vmax.xlane.f32.xlu1 %v10832_v53 }
 0x367   : > { %v10835_v54 = vpop.f32.mrf.mxu0 }
 0x368   : > { %2225 = vmax.xlane.f32.xlu0 %v10826_v51 }
 0x369   : > { %v10838_v58 = vpop.f32.mrf.mxu0 }
 0x36a   : > { %2223 = vmax.xlane.f32.xlu1 %v10835_v54 }
 0x36b   : > { %v10841_v59 = vpop.f32.mrf.mxu0 }
 0x36c   : > { %2229 = vmax.xlane.f32.xlu0 %v10841_v59 }
 0x36d   : > { %v10844_v60 = vpop.f32.mrf.mxu0 }
 0x36e   : > { %2235 = vmax.xlane.f32.xlu1 %v10844_v60 }
 0x36f   : > { %v10848_v61 = vpop.f32.mrf.mxu0 }
 0x370   : > { %2233 = vmax.xlane.f32.xlu0 %v10838_v58 }
 0x372   : > { %2231 = vmax.xlane.f32.xlu1 %v10848_v61 }
 0x3db   : > { %v2210_v23 = vpop.xlane.xlu1 %2209 }
 0x3dc   : > { %v10856_v25 = vmax.f32 %v10851_v22, %v2210_v23  ;;  %v10954_v23 = vld [vmem:[#allocation3 + $0x60] sm:$0xff] }
 0x3dd   : > { %v2206_v26 = vpop.xlane.xlu0 %2205  ;;  %13368 = vst [vmem:[#allocation40_spill] sm:$0xff] %v10954_v23 }
 0x3de   : > { %13347 = vst [vmem:[#allocation19_spill] sm:$0xff] %v10856_v25  ;;  %2777 = vst.msk [vmem:[#allocation3 + $0x10] sm:$0xff] %vm2509_vm4, %v10856_v25  ;;  %v10865_v29 = vmax.f32 %v10853_v24, %v2206_v26  ;;  %2313 = vperm.xlu1 %9352, %v10856_v25   ;;  %v10984_v26 = vld [vmem:[#allocation3 + $0x68] sm:$0xff] }
 0x3df   : > { %v2212_v30 = vpop.xlane.xlu1 %2211  ;;  %13374 = vst [vmem:[#allocation46_spill] sm:$0xff] %v10984_v26 }
 0x3e0   : > { %13349 = vst [vmem:[#allocation21_spill] sm:$0xff] %v10865_v29  ;;  %2775 = vst.msk [vmem:[#allocation3] sm:$0xff] %vm2509_vm4, %v10865_v29  ;;  %v10875_v33 = vmax.f32 %v10858_v27, %v2212_v30  ;;  %2303 = vperm.xlu0 %9351, %v10865_v29  }
 0x3e1   : > { %v2208_v34 = vpop.xlane.xlu0 %2207 }
 0x3e2   : > { %13351 = vst [vmem:[#allocation23_spill] sm:$0xff] %v10875_v33  ;;  %2778 = vst.msk [vmem:[#allocation3 + $0x18] sm:$0xff] %vm2509_vm4, %v10875_v33  ;;  %v10883_v36 = vmax.f32 %v10868_v31, %v2208_v34  ;;  %2318 = vperm.xlu1 %9352, %v10875_v33  }
 0x3e4   : > { %13352 = vst [vmem:[#allocation24_spill] sm:$0xff] %v10883_v36  ;;  %2776 = vst.msk [vmem:[#allocation3 + $0x8] sm:$0xff] %vm2509_vm4, %v10883_v36 }
 0x3e5   : > { %v2214_v39 = vpop.xlane.xlu0 %2213 }
 0x3e6   : > { %v10895_v41 = vmax.f32 %v10886_v37, %v2214_v39  ;;  %2308 = vperm.xlu1 %9352, %v10883_v36   ;;  %v10964_v39 = vld [vmem:[#allocation3 + $0x78] sm:$0xff] }
 0x3e7   : > { %v2220_v49 = vpop.xlane.xlu1 %2219  ;;  %13370 = vst [vmem:[#allocation42_spill] sm:$0xff] %v10964_v39 }
 0x3e8   : > { %13355 = vst [vmem:[#allocation27_spill] sm:$0xff] %v10895_v41  ;;  %2779 = vst.msk [vmem:[#allocation3 + $0x20] sm:$0xff] %vm2509_vm4, %v10895_v41  ;;  %v10905_v0 = vmax.f32 %v10892_v40, %v2220_v49 }
 0x3e9   : > { %v2218_v1 = vpop.xlane.xlu0 %2217 }
 0x3ea   : > { %13357 = vst [vmem:[#allocation29_spill] sm:$0xff] %v10905_v0  ;;  %2782 = vst.msk [vmem:[#allocation3 + $0x38] sm:$0xff] %vm2509_vm4, %v10905_v0  ;;  %v10914_v4 = vmax.f32 %v10898_v62, %v2218_v1 }
 0x3eb   : > { %v2216_v5 = vpop.xlane.xlu1 %2215 }
 0x3ec   : > { %13359 = vst [vmem:[#allocation31_spill] sm:$0xff] %v10914_v4  ;;  %2781 = vst.msk [vmem:[#allocation3 + $0x30] sm:$0xff] %vm2509_vm4, %v10914_v4  ;;  %v10923_v8 = vmax.f32 %v10907_v2, %v2216_v5  ;;  %2333 = vperm.xlu1 %9352, %v10914_v4  }
 0x3ed   : > { %v2222_v9 = vpop.xlane.xlu0 %2221 }
 0x3ee   : > { %13361 = vst [vmem:[#allocation33_spill] sm:$0xff] %v10923_v8  ;;  %2780 = vst.msk [vmem:[#allocation3 + $0x28] sm:$0xff] %vm2509_vm4, %v10923_v8  ;;  %v10933_v12 = vmax.f32 %v10916_v6, %v2222_v9  ;;  %v10974_v9 = vld [vmem:[#allocation3 + $0x70] sm:$0xff] }
 0x3ef   : > { %v2228_v13 = vpop.xlane.xlu1 %2227  ;;  %13372 = vst [vmem:[#allocation44_spill] sm:$0xff] %v10974_v9 }
 0x3f0   : > { %13363 = vst [vmem:[#allocation35_spill] sm:$0xff] %v10933_v12  ;;  %2783 = vst.msk [vmem:[#allocation3 + $0x40] sm:$0xff] %vm2509_vm4, %v10933_v12  ;;  %v10942_v16 = vmax.f32 %v10926_v10, %v2228_v13  ;;  %2323 = vperm.xlu1 %9352, %v10895_v41  }
 0x3f1   : > { %v2226_v17 = vpop.xlane.xlu0 %2225 }
 0x3f2   : > { %13365 = vst [vmem:[#allocation37_spill] sm:$0xff] %v10942_v16  ;;  %2786 = vst.msk [vmem:[#allocation3 + $0x58] sm:$0xff] %vm2509_vm4, %v10942_v16  ;;  %v10952_v20 = vmax.f32 %v10935_v14, %v2226_v17 }
 0x3f3   : > { %v2224_v21 = vpop.xlane.xlu1 %2223 }
 0x3f4   : > { %13367 = vst [vmem:[#allocation39_spill] sm:$0xff] %v10952_v20  ;;  %2785 = vst.msk [vmem:[#allocation3 + $0x50] sm:$0xff] %vm2509_vm4, %v10952_v20  ;;  %v10961_v30 = vmax.f32 %v10945_v18, %v2224_v21  ;;  %2328 = vperm.xlu1 %9352, %v10923_v8  }
 0x3f5   : > { %v2230_v34 = vpop.xlane.xlu0 %2229 }
 0x3f6   : > { %13369 = vst [vmem:[#allocation41_spill] sm:$0xff] %v10961_v30  ;;  %2784 = vst.msk [vmem:[#allocation3 + $0x48] sm:$0xff] %vm2509_vm4, %v10961_v30  ;;  %v10971_v1 = vmax.f32 %v10954_v23, %v2230_v34  ;;  %2348 = vperm.xlu0 %9351, %v10961_v30  }
 0x3f7   : > { %v2236_v5 = vpop.xlane.xlu1 %2235 }
 0x3f8   : > { %13371 = vst [vmem:[#allocation43_spill] sm:$0xff] %v10971_v1  ;;  %2787 = vst.msk [vmem:[#allocation3 + $0x60] sm:$0xff] %vm2509_vm4, %v10971_v1  ;;  %v10981_v17 = vmax.f32 %v10964_v39, %v2236_v5  ;;  %2338 = vperm.xlu1 %9352, %v10905_v0  }
 0x3f9   : > { %v2234_v21 = vpop.xlane.xlu0 %2233 }
 0x3fa   : > { %13373 = vst [vmem:[#allocation45_spill] sm:$0xff] %v10981_v17  ;;  %2790 = vst.msk [vmem:[#allocation3 + $0x78] sm:$0xff] %vm2509_vm4, %v10981_v17  ;;  %v10991_v19 = vmax.f32 %v10974_v9, %v2234_v21  ;;  %2358 = vperm.xlu0 %9351, %v10942_v16   ;;  %v9385_v21 = vld [vmem:[%s13208_s3 + $0x78] sm:$0xff]  }
 0x3fb   : > { %v2232_v13 = vpop.xlane.xlu1 %2231  ;;  %8722 = vmatprep.subr.bf16.mxu1 %v9385_v21 }
 0x3fc   : > { %13375 = vst [vmem:[#allocation47_spill] sm:$0xff] %v10991_v19  ;;  %2789 = vst.msk [vmem:[#allocation3 + $0x70] sm:$0xff] %vm2509_vm4, %v10991_v19  ;;  %v10999_v49 = vmax.f32 %v10984_v26, %v2232_v13  ;;  %2343 = vperm.xlu1 %9352, %v10933_v12  }
 0x3fe   : > { %13376 = vst [vmem:[#allocation48_spill] sm:$0xff] %v10999_v49  ;;  %2788 = vst.msk [vmem:[#allocation3 + $0x68] sm:$0xff] %vm2509_vm4, %v10999_v49  ;;  %2368 = vperm.xlu0 %9351, %v10999_v49  }
 0x400   : > { %2353 = vperm.xlu1 %9352, %v10952_v20  }
 0x402   : > { %2378 = vperm.xlu0 %9351, %v10981_v17  }
 0x404   : > { %2363 = vperm.xlu1 %9352, %v10971_v1  }
 0x408   : > { %2373 = vperm.xlu1 %9352, %v10991_v19  }
 0x459   : > { %v2314_v13 = vpop.permute.xlu1 %2313 }
 0x45a   : > { %v2383_v3 = vsub.f32 %v10803_v42, %v2314_v13 }
 0x45b   : > { %v2304_v5 = vpop.permute.xlu0 %2303 }
 0x45c   : > { %v2381_v34 = vsub.f32 %v10806_v43, %v2304_v5  ;;  %v2401_v32 = vmul.f32 1.442695, %v2383_v3 }
 0x45d   : > { %v2319_v15 = vpop.permute.xlu1 %2318 }
 0x45e   : > { %v2384_v7 = vsub.f32 %v10809_v44, %v2319_v15  ;;  %v2397_v11 = vmul.f32 1.442695, %v2381_v34 }
 0x460   : > { %v2403_v63 = vmul.f32 1.442695, %v2384_v7  ;;  %9457 = vpow2.f32 %v2397_v11 }
 0x461   : > { %v2309_v35 = vpop.permute.xlu1 %2308 }
 0x462   : > { %v2382_v38 = vsub.f32 %v10812_v45, %v2309_v35  ;;  %9459 = vpow2.f32 %v2403_v63 }
 0x464   : > { %v2399_v28 = vmul.f32 1.442695, %v2382_v38 }
 0x466   : > { %9461 = vpow2.f32 %v2399_v28 }
 0x467   : > { %9463 = vpow2.f32 %v2401_v32  ;;  %v2334_v19 = vpop.permute.xlu1 %2333 }
 0x468   : > { %v2387_v5 = vsub.f32 %v10815_v47, %v2334_v19  ;;  %v9386_v19 = vld [vmem:[%s13208_s3 + $0x70] sm:$0xff]  }
 0x46a   : > { %v2409_v28 = vmul.f32 1.442695, %v2387_v5 }
 0x46b   : > { %v2324_v9 = vpop.permute.xlu1 %2323 }
 0x46c   : > { %v2385_v43 = vsub.f32 %v10817_v48, %v2324_v9 }
 0x46d   : > { %v11021_v7 = vpop.eup %9457 }
 0x46e   : > { %v2405_v44 = vmul.f32 1.442695, %v2385_v43 }
 0x46f   : > { %v2329_v15 = vpop.permute.xlu1 %2328  ;;  %v11023_v45 = vpop.eup %9459 }
 0x470   : > { %v2386_v42 = vsub.f32 %v10823_v50, %v2329_v15  ;;  %9465 = vpow2.f32 %v2405_v44  ;;  %v9387_v44 = vld [vmem:[%s13208_s3 + $0x68] sm:$0xff]  }
 0x471   : > { %v2349_v34 = vpop.permute.xlu0 %2348 }
 0x472   : > { %v2407_v35 = vmul.f32 1.442695, %v2386_v42  ;;  %v2390_v32 = vsub.f32 %v10835_v54, %v2349_v34 }
 0x473   : > { %v11025_v38 = vpop.eup %9461  ;;  %v2339_v63 = vpop.permute.xlu1 %2338 }
 0x474   : > { %v11028_v48 = vpop.eup %9463  ;;  %9467 = vpow2.f32 %v2407_v35  ;;  %v2388_v47 = vsub.f32 %v10820_v46, %v2339_v63  ;;  %v2638_v50 = vpack.c.bf16 %v11025_v38, %v11021_v7  ;;  %v2415_v54 = vmul.f32 1.442695, %v2390_v32 }
 0x475   : > { %v2359_v3 = vpop.permute.xlu0 %2358  ;;  %v2639_v11 = vpack.c.bf16 %v11023_v45, %v11028_v48  ;;  %9469 = vpow2.f32 %v2409_v28 }
 0x476   : > { %v2411_v9 = vmul.f32 1.442695, %v2388_v47  ;;  %8706 = vmatprep.mubr.bf16.mxu1 %v2638_v50  ;;  %v2392_v13 = vsub.f32 %v10832_v53, %v2359_v3  ;;  %v9389_v3 = vld [vmem:[%s13208_s3 + $0x58] sm:$0xff]  }
 0x477   : > { %8707 = vmatmul.mubr.bf16.vlgmr.msra.gmra.mxu1 %v2639_v11  ;;  %v2344_v43 = vpop.permute.xlu1 %2343 }
 0x478   : > { %9471 = vpow2.f32 %v2411_v9  ;;  %v2389_v46 = vsub.f32 %v10829_v52, %v2344_v43  ;;  %8723 = vmatpush3.bf16.msra.mxu1 %v9385_v21  ;;  %v2419_v42 = vmul.f32 1.442695, %v2392_v13  ;;  %v9388_v52 = vld [vmem:[%s13208_s3 + $0x60] sm:$0xff]  }
 0x479   : > { %v2369_v5 = vpop.permute.xlu0 %2368  ;;  %8724 = vmatprep.subr.bf16.mxu1 %v9386_v19  ;;  %9473 = vpow2.f32 %v2415_v54 }
 0x47a   : > { %v2413_v15 = vmul.f32 1.442695, %v2389_v46  ;;  %v2394_v34 = vsub.f32 %v10848_v61, %v2369_v5  ;;  %v9390_v5 = vld [vmem:[%s13208_s3 + $0x50] sm:$0xff]  }
 0x47b   : > { %v2354_v35 = vpop.permute.xlu1 %2353 }
 0x47c   : > { %9475 = vpow2.f32 %v2413_v15  ;;  %v2391_v53 = vsub.f32 %v10826_v51, %v2354_v35  ;;  %8725 = vmatpush3.bf16.msra.mxu1 %v9386_v19  ;;  %v2423_v32 = vmul.f32 1.442695, %v2394_v34 }
 0x47d   : > { %v2379_v28 = vpop.permute.xlu0 %2378  ;;  %8726 = vmatprep.subr.bf16.mxu1 %v9387_v44  ;;  %9477 = vpow2.f32 %v2419_v42  ;;  %v11049_v50 = vpop.eup %9465  ;;  %v9391_v42 = vld [vmem:[%s13208_s3 + $0x48] sm:$0xff]  }
 0x47e   : > { %v2417_v21 = vmul.f32 1.442695, %v2391_v53  ;;  %v2396_v63 = vsub.f32 %v10844_v60, %v2379_v28  ;;  %v9392_v28 = vld [vmem:[%s13208_s3 + $0x40] sm:$0xff]  }
 0x47f   : > { %v2364_v47 = vpop.permute.xlu1 %2363 }
 0x480   : > { %9479 = vpow2.f32 %v2417_v21  ;;  %v2393_v61 = vsub.f32 %v10841_v59, %v2364_v47  ;;  %8727 = vmatpush3.bf16.msra.mxu1 %v9387_v44  ;;  %v2427_v60 = vmul.f32 1.442695, %v2396_v63 }
 0x481   : > { %v11052_v51 = vpop.eup %9467  ;;  %8728 = vmatprep.subr.bf16.mxu1 %v9388_v52  ;;  %9481 = vpow2.f32 %v2423_v32 }
 0x482   : > { %v2421_v11 = vmul.f32 1.442695, %v2393_v61  ;;  %v2640_v19 = vpack.c.bf16 %v11052_v51, %v11049_v50  ;;  %v11059_v54 = vpop.eup %9469 }
 0x483   : > { %v2374_v9 = vpop.permute.xlu1 %2373 }
 0x484   : > { %9483 = vpow2.f32 %v2421_v11  ;;  %v2395_v59 = vsub.f32 %v10838_v58, %v2374_v9  ;;  %8710 = vmatprep.mubr.bf16.mxu1 %v2640_v19  ;;  %8729 = vmatpush3.bf16.msra.mxu1 %v9388_v52  ;;  %v11104_v11 = vld [vmem:[%s10128_s23 + $0x8] sm:$0xff]   ;;  %v11108_v19 = vld [vmem:[%s10128_s23 + $0x10] sm:$0xff]   ;;  %v11116_v9 = vld [vmem:[%s10128_s23 + $0x20] sm:$0xff]  }
 0x485   : > { %v11062_v13 = vpop.eup %9471  ;;  %8730 = vmatprep.subr.bf16.mxu1 %v9389_v3  ;;  %9485 = vpow2.f32 %v2427_v60  ;;  %v11112_v60 = vld [vmem:[%s10128_s23 + $0x18] sm:$0xff]  }
 0x486   : > { %v2425_v43 = vmul.f32 1.442695, %v2395_v59  ;;  %v2641_v46 = vpack.c.bf16 %v11062_v13, %v11059_v54  ;;  %v11069_v44 = vpop.eup %9473  ;;  %v9393_v59 = vld [vmem:[#allocation2 + $0x40] sm:$0xff]  }
 0x488   : > { %9487 = vpow2.f32 %v2425_v43  ;;  %8711 = vmatmul.mubr.bf16.gmra.mxu1 %v2641_v46 }
 0x489   : > { %v11071_v15 = vpop.eup %9475  ;;  %8731 = vmatpush3.bf16.msra.mxu1 %v9389_v3  ;;  %v11100_v3 = vld [vmem:[%s10128_s23] sm:$0xff]  }
 0x48a   : > { %v2642_v58 = vpack.c.bf16 %v11069_v44, %v11071_v15  ;;  %8732 = vmatprep.subr.bf16.mxu1 %v9390_v5  ;;  %v11078_v34 = vpop.eup %9477 }
 0x48c   : > { %8714 = vmatprep.mubr.bf16.mxu1 %v2642_v58 }
 0x48d   : > { %v11080_v35 = vpop.eup %9479  ;;  %8733 = vmatpush3.bf16.msra.mxu1 %v9390_v5 }
 0x48e   : > { %v2643_v53 = vpack.c.bf16 %v11078_v34, %v11080_v35  ;;  %8734 = vmatprep.subr.bf16.mxu1 %v9391_v42  ;;  %v11087_v52 = vpop.eup %9481 }
 0x490   : > { %8715 = vmatmul.mubr.bf16.gmra.mxu1 %v2643_v53 }
 0x491   : > { %v11089_v21 = vpop.eup %9483  ;;  %8735 = vmatpush3.bf16.msra.mxu1 %v9391_v42 }
 0x492   : > { %v2644_v32 = vpack.c.bf16 %v11087_v52, %v11089_v21  ;;  %8736 = vmatprep.subr.bf16.mxu1 %v9392_v28  ;;  %v11093_v63 = vpop.eup %9485 }
 0x494   : > { %8718 = vmatprep.mubr.bf16.mxu1 %v2644_v32 }
 0x495   : > { %v11095_v47 = vpop.eup %9487  ;;  %8737 = vmatpush3.bf16.msra.mxu1 %v9392_v28 }
 0x496   : > { %v2645_v61 = vpack.c.bf16 %v11093_v63, %v11095_v47 }
 0x498   : > { %8719 = vmatmul.mubr.bf16.gmra.mxu1 %v2645_v61 }
 0x499   : > { %8738 = vmatprep.mubr.bf16.mxu1 %v11100_v3 }
 0x4a0   : > { %8739 = vmatmul.mubr.bf16.vlgmr.msra.gmra.mxu1 %v11104_v11 }
 0x4a1   : > { %8742 = vmatprep.mubr.bf16.mxu1 %v11108_v19 }
 0x4a8   : > { %8743 = vmatmul.mubr.bf16.gmra.mxu1 %v11112_v60 }
 0x4a9   : > { %8746 = vmatprep.mubr.bf16.mxu1 %v11116_v9 }
 0x4b0   : > { %8747 = vmatmul.mubr.bf16.gmra.mxu1 %v10737_v55 }
 0x4b1   : > { %8750 = vmatprep.mubr.bf16.mxu1 %v10740_v56 }
 0x4b8   : > { %8751 = vmatmul.mubr.bf16.gmra.mxu1 %v10745_v57 }
 0x4b9   : > { %8802 = vmatprep.mubr.msk.bf16.mxu1 %vm2043_vm3, %v9393_v59  ;;  %v9401_v59 = vld [vmem:[%s13209_s4 + $0x78] sm:$0xff]  }
 0x4ba   : > { %8754 = vmatprep.subr.bf16.mxu0 %v9401_v59 }
 0x4bb   : > { %8755 = vmatpush3.bf16.msra.mxu0 %v9401_v59  ;;  %v9405_v59 = vld [vmem:[%s13209_s4 + $0x58] sm:$0xff]  }
 0x537   : > { %v11122_v43 = vpop.f32.mrf.mxu1 }
 0x538   : > { %13377 = vst [vmem:[#allocation49_spill] sm:$0xff] %v11122_v43 }
 0x539   : > { %v11125_v46 = vpop.f32.mrf.mxu1 }
 0x53a   : > { %13378 = vst [vmem:[#allocation50_spill] sm:$0xff] %v11125_v46 }
 0x53b   : > { %v11127_v5 = vpop.f32.mrf.mxu1 }
 0x53c   : > { %13379 = vst [vmem:[#allocation51_spill] sm:$0xff] %v11127_v5 }
 0x53d   : > { %v11129_v58 = vpop.f32.mrf.mxu1 }
 0x53e   : > { %13380 = vst [vmem:[#allocation52_spill] sm:$0xff] %v11129_v58 }
 0x548   : > { %v11131_v42 = vpop.f32.mrf.mxu1 }
 0x549   : > { %13381 = vst [vmem:[#allocation53_spill] sm:$0xff] %v11131_v42  ;;  %v9402_v42 = vld [vmem:[%s13209_s4 + $0x70] sm:$0xff]  }
 0x54a   : > { %v11133_v53 = vpop.f32.mrf.mxu1  ;;  %8756 = vmatprep.subr.bf16.mxu0 %v9402_v42 }
 0x54b   : > { %13382 = vst [vmem:[#allocation54_spill] sm:$0xff] %v11133_v53  ;;  %8757 = vmatpush3.bf16.msra.mxu0 %v9402_v42  ;;  %v9406_v42 = vld [vmem:[%s13209_s4 + $0x50] sm:$0xff]  }
 0x54c   : > { %v11135_v55 = vpop.f32.mrf.mxu1 }
 0x54d   : > { %13383 = vst [vmem:[#allocation55_spill] sm:$0xff] %v11135_v55 }
 0x54e   : > { %v11137_v56 = vpop.f32.mrf.mxu1 }
 0x54f   : > { %13384 = vst [vmem:[#allocation56_spill] sm:$0xff] %v11137_v56 }
 0x550   : > { %v11139_v57 = vpop.f32.mrf.mxu1 }
 0x551   : > { %13385 = vst [vmem:[#allocation57_spill] sm:$0xff] %v11139_v57 }
 0x552   : > { %v11141_v28 = vpop.f32.mrf.mxu1 }
 0x553   : > { %13386 = vst [vmem:[#allocation58_spill] sm:$0xff] %v11141_v28  ;;  %v9404_v28 = vld [vmem:[%s13209_s4 + $0x60] sm:$0xff]  }
 0x554   : > { %v11143_v32 = vpop.f32.mrf.mxu1 }
 0x555   : > { %13387 = vst [vmem:[#allocation59_spill] sm:$0xff] %v11143_v32  ;;  %v9403_v32 = vld [vmem:[%s13209_s4 + $0x68] sm:$0xff]  }
 0x556   : > { %v11145_v61 = vpop.f32.mrf.mxu1  ;;  %8758 = vmatprep.subr.bf16.mxu0 %v9403_v32 }
 0x557   : > { %13388 = vst [vmem:[#allocation60_spill] sm:$0xff] %v11145_v61  ;;  %8759 = vmatpush3.bf16.msra.mxu0 %v9403_v32  ;;  %v9407_v32 = vld [vmem:[%s13209_s4 + $0x48] sm:$0xff]  }
 0x558   : > { %v11153_v53 = vpop.f32.mrf.mxu1  ;;  %8760 = vmatprep.subr.bf16.mxu0 %v9404_v28 }
 0x559   : > { %13389 = vst [vmem:[#allocation61_spill] sm:$0xff] %v11153_v53 }
 0x55a   : > { %v11155_v55 = vpop.f32.mrf.mxu1 }
 0x55b   : > { %13390 = vst [vmem:[#allocation62_spill] sm:$0xff] %v11155_v55  ;;  %8761 = vmatpush3.bf16.msra.mxu0 %v9404_v28 }
 0x55c   : > { %v11160_v57 = vpop.f32.mrf.mxu1  ;;  %8762 = vmatprep.subr.bf16.mxu0 %v9405_v59 }
 0x55d   : > { %13391 = vst [vmem:[#allocation63_spill] sm:$0xff] %v11160_v57 }
 0x55e   : > { %v11162_v61 = vpop.f32.mrf.mxu1 }
 0x55f   : > { %13392 = vst [vmem:[#allocation64_spill] sm:$0xff] %v11162_v61  ;;  %8763 = vmatpush3.bf16.msra.mxu0 %v9405_v59 }
 0x560   : > { %v8740_v53 = vpop.f32.mrf.mxu1  ;;  %8764 = vmatprep.subr.bf16.mxu0 %v9406_v42 }
 0x562   : > { %v2890_v56 = vpop.f32.mrf.mxu1 }
 0x563   : > { %8765 = vmatpush3.bf16.msra.mxu0 %v9406_v42 }
 0x564   : > { %v8741_v55 = vpop.f32.mrf.mxu1  ;;  %8766 = vmatprep.subr.bf16.mxu0 %v9407_v32 }
 0x565   : > { %v2954_v43 = vpack.c.bf16 %v8741_v55, %v8740_v53 }
 0x566   : > { %v2893_v5 = vpop.f32.mrf.mxu1 }
 0x567   : > { %v2953_v57 = vpack.c.bf16 %v2893_v5, %v2890_v56  ;;  %v9408_v5 = vld [vmem:[%s13209_s4 + $0x40] sm:$0xff]   ;;  %8767 = vmatpush3.bf16.msra.mxu0 %v9407_v32 }
 0x568   : > { %v8744_v61 = vpop.f32.mrf.mxu1  ;;  %8768 = vmatprep.subr.bf16.mxu0 %v9408_v5 }
 0x56a   : > { %v2906_v58 = vpop.f32.mrf.mxu1 }
 0x56b   : > { %8769 = vmatpush3.bf16.msra.mxu0 %v9408_v5 }
 0x56c   : > { %v8745_v46 = vpop.f32.mrf.mxu1 }
 0x56e   : > { %v2909_v17 = vpop.f32.mrf.mxu1  ;;  %8771 = vmatmul.mubr.bf16.vlgmr.msra.gmra.mxu0 %v11104_v11 }
 0x56f   : > { %8774 = vmatprep.mubr.bf16.mxu0 %v11108_v19 }
 0x570   : > { %v8748_v53 = vpop.f32.mrf.mxu1 }
 0x572   : > { %v2922_v55 = vpop.f32.mrf.mxu1 }
 0x574   : > { %v8749_v56 = vpop.f32.mrf.mxu1 }
 0x575   : > { %v2958_v32 = vpack.c.bf16 %v8749_v56, %v8748_v53 }
 0x576   : > { %v2925_v28 = vpop.f32.mrf.mxu1  ;;  %8775 = vmatmul.mubr.bf16.gmra.mxu0 %v11112_v60 }
 0x577   : > { %8778 = vmatprep.mubr.bf16.mxu0 %v11116_v9 }
 0x578   : > { %v8752_v59 = vpop.f32.mrf.mxu1 }
 0x57a   : > { %v2938_v39 = vpop.f32.mrf.mxu1 }
 0x57c   : > { %v8753_v42 = vpop.f32.mrf.mxu1 }
 0x57d   : > { %v2960_v49 = vpack.c.bf16 %v8753_v42, %v8752_v59  ;;  %v11189_v59 = vld [vmem:[%s10128_s23 + $0x28] sm:$0xff]   ;;  %v2955_v42 = vpack.c.bf16 %v2909_v17, %v2906_v58  ;;  %v9396_v17 = vld [vmem:[#allocation2 + $0x58] sm:$0xff]   ;;  %v9397_v58 = vld [vmem:[#allocation2 + $0x60] sm:$0xff]  }
 0x57e   : > { %v2941_v26 = vpop.f32.mrf.mxu1  ;;  %8779 = vmatmul.mubr.bf16.gmra.mxu0 %v11189_v59 }
 0x57f   : > { %v3234_v1 = vsel %vm2043_vm3, %v2960_v49, 0  ;;  %v2959_v23 = vpack.c.bf16 %v2941_v26, %v2938_v39  ;;  %9194 = vmatprep.subr.msk.bf16.mxu1 %vm2043_vm3, %v2960_v49  ;;  %v11193_v26 = vld [vmem:[%s10128_s23 + $0x30] sm:$0xff]   ;;  %v3228_v39 = vsel %vm2043_vm3, %v2958_v32, 0  ;;  %v2957_v49 = vpack.c.bf16 %v2925_v28, %v2922_v55 }
 0x580   : > { %8787 = vmatpush3.bf16.xpose.msra.mxu1 %v3234_v1  ;;  %8782 = vmatprep.mubr.bf16.mxu0 %v11193_v26  ;;  %v11199_v1 = vld [vmem:[%s10128_s23 + $0x38] sm:$0xff]   ;;  %v3219_v55 = vsel %vm2043_vm3, %v2955_v42, 0  ;;  %v3216_v28 = vsel %vm2043_vm3, %v2954_v43, 0 }
 0x581   : > { %9195 = vmatprep.subr.msk.bf16.mxu1 %vm2043_vm3, %v2959_v23  ;;  %v3231_v5 = vsel %vm2043_vm3, %v2959_v23, 0  ;;  %v2956_v23 = vpack.c.bf16 %v8745_v46, %v8744_v61  ;;  %v3225_v53 = vsel %vm2043_vm3, %v2957_v49, 0  ;;  %v3213_v46 = vsel %vm2043_vm3, %v2953_v57, 0  ;;  %v9394_v61 = vld [vmem:[#allocation2 + $0x48] sm:$0xff]  }
 0x583   : > { %v3222_v56 = vsel %vm2043_vm3, %v2956_v23, 0 }
 0x586   : > { %8783 = vmatmul.mubr.bf16.gmra.mxu0 %v11199_v1 }
 0x588   : > { %8789 = vmatpush3.bf16.xpose.msra.mxu1 %v3231_v5  ;;  %v9398_v5 = vld [vmem:[#allocation2 + $0x68] sm:$0xff]  }
 0x589   : > { %9196 = vmatprep.subr.msk.bf16.mxu1 %vm2043_vm3, %v2958_v32  ;;  %v9395_v32 = vld [vmem:[#allocation2 + $0x50] sm:$0xff]  }
 0x590   : > { %8791 = vmatpush3.bf16.xpose.msra.mxu1 %v3228_v39 }
 0x591   : > { %9197 = vmatprep.subr.msk.bf16.mxu1 %vm2043_vm3, %v2957_v49 }
 0x598   : > { %8793 = vmatpush3.bf16.xpose.msra.mxu1 %v3225_v53 }
 0x599   : > { %9198 = vmatprep.subr.msk.bf16.mxu1 %vm2043_vm3, %v2956_v23 }
 0x5a0   : > { %8795 = vmatpush3.bf16.xpose.msra.mxu1 %v3222_v56 }
 0x5a1   : > { %9199 = vmatprep.subr.msk.bf16.mxu1 %vm2043_vm3, %v2955_v42 }
 0x5a8   : > { %8797 = vmatpush3.bf16.xpose.msra.mxu1 %v3219_v55 }
 0x5a9   : > { %9200 = vmatprep.subr.msk.bf16.mxu1 %vm2043_vm3, %v2954_v43  ;;  %v9399_v43 = vld [vmem:[#allocation2 + $0x70] sm:$0xff]  }
 0x5b0   : > { %8799 = vmatpush3.bf16.xpose.msra.mxu1 %v3216_v28 }
 0x5b1   : > { %9201 = vmatprep.subr.msk.bf16.mxu1 %vm2043_vm3, %v2953_v57  ;;  %v9400_v57 = vld [vmem:[#allocation2 + $0x78] sm:$0xff]  }
 0x5b8   : > { %8801 = vmatpush3.bf16.xpose.msra.mxu1 %v3213_v46 }
 0x5bf   : > { %8803 = vmatmul.mubr.msk.bf16.vlgmr.msra.gmra.mxu1 %vm2043_vm3, %v9394_v61 }
 0x5c0   : > { %8806 = vmatprep.mubr.msk.bf16.mxu1 %vm2043_vm3, %v9395_v32 }
 0x5c7   : > { %8807 = vmatmul.mubr.msk.bf16.gmra.mxu1 %vm2043_vm3, %v9396_v17 }
 0x5c8   : > { %8810 = vmatprep.mubr.msk.bf16.mxu1 %vm2043_vm3, %v9397_v58 }
 0x5cf   : > { %8811 = vmatmul.mubr.msk.bf16.gmra.mxu1 %vm2043_vm3, %v9398_v5 }
 0x5d0   : > { %8814 = vmatprep.mubr.msk.bf16.mxu1 %vm2043_vm3, %v9399_v43 }
 0x5d7   : > { %8815 = vmatmul.mubr.msk.bf16.gmra.mxu1 %vm2043_vm3, %v9400_v57 }
 0x5d8   : > { %8898 = vmatprep.mubr.bf16.mxu1 %v11100_v3 }
 0x62e   : > { %v8772_v20 = vpop.f32.mrf.mxu0 }
 0x630   : > { %v3060_v14 = vpop.f32.mrf.mxu0 }
 0x632   : > { %v8773_v16 = vpop.f32.mrf.mxu0 }
 0x633   : > { %v3124_v25 = vpack.c.bf16 %v8773_v16, %v8772_v20 }
 0x634   : > { %v3063_v10 = vpop.f32.mrf.mxu0 }
 0x636   : > { %v8776_v30 = vpop.f32.mrf.mxu0 }
 0x638   : > { %v3076_v18 = vpop.f32.mrf.mxu0 }
 0x63a   : > { %v8777_v12 = vpop.f32.mrf.mxu0 }
 0x63b   : > { %v3126_v29 = vpack.c.bf16 %v8777_v12, %v8776_v30  ;;  %v11304_v12 = vld [vmem:[#allocation3 + $0xa8] sm:$0xff] }
 0x63c   : > { %v3079_v6 = vpop.f32.mrf.mxu0  ;;  %13402 = vst [vmem:[#allocation74_spill] sm:$0xff] %v11304_v12 }
 0x63d   : > { %v3125_v24 = vpack.c.bf16 %v3079_v6, %v3076_v18 }
 0x63e   : > { %v8780_v4 = vpop.f32.mrf.mxu0 }
 0x640   : > { %v3092_v62 = vpop.f32.mrf.mxu0 }
 0x642   : > { %v8781_v0 = vpop.f32.mrf.mxu0 }
 0x643   : > { %v3128_v36 = vpack.c.bf16 %v8781_v0, %v8780_v4  ;;  %v11287_v0 = vld [vmem:[#allocation3 + $0x90] sm:$0xff] }
 0x644   : > { %v3095_v40 = vpop.f32.mrf.mxu0  ;;  %13399 = vst [vmem:[#allocation71_spill] sm:$0xff] %v11287_v0 }
 0x645   : > { %v3127_v31 = vpack.c.bf16 %v3095_v40, %v3092_v62 }
 0x646   : > { %v8784_v8 = vpop.f32.mrf.mxu0 }
 0x648   : > { %v3108_v2 = vpop.f32.mrf.mxu0 }
 0x64a   : > { %v8785_v41 = vpop.f32.mrf.mxu0 }
 0x64b   : > { %v3130_v37 = vpack.c.bf16 %v8785_v41, %v8784_v8  ;;  %v3123_v41 = vpack.c.bf16 %v3063_v10, %v3060_v14  ;;  %v11302_v10 = vld [vmem:[#allocation3 + $0xa0] sm:$0xff]  ;;  %v11339_v14 = vld [vmem:[#allocation3 + $0xc8] sm:$0xff] }
 0x64c   : > { %v3111_v33 = vpop.f32.mrf.mxu0  ;;  %13401 = vst [vmem:[#allocation73_spill] sm:$0xff] %v11302_v10  ;;  %13410 = vst [vmem:[#allocation82_spill] sm:$0xff] %v11339_v14 }
 0x64d   : > { %8818 = vmatprep.subr.bf16.mxu0 %v3130_v37  ;;  %v3129_v27 = vpack.c.bf16 %v3111_v33, %v3108_v2  ;;  %v11267_v33 = vld [vmem:[#allocation3 + $0x80] sm:$0xff] }
 0x64e   : > { %8819 = vmatpush3.bf16.msra.mxu0 %v3130_v37  ;;  %13393 = vst [vmem:[#allocation65_spill] sm:$0xff] %v11267_v33  ;;  %v11337_v2 = vld [vmem:[#allocation3 + $0xc0] sm:$0xff] }
 0x64f   : > { %8820 = vmatprep.subr.bf16.mxu0 %v3129_v27  ;;  %13409 = vst [vmem:[#allocation81_spill] sm:$0xff] %v11337_v2 }
 0x652   : > { %8821 = vmatpush3.bf16.msra.mxu0 %v3129_v27 }
 0x653   : > { %8822 = vmatprep.subr.bf16.mxu0 %v3128_v36 }
 0x656   : > { %8823 = vmatpush3.bf16.msra.mxu0 %v3128_v36  ;;  %v11272_v36 = vld [vmem:[#allocation3 + $0x98] sm:$0xff] }
 0x657   : > { %8824 = vmatprep.subr.bf16.mxu0 %v3127_v31  ;;  %13395 = vst [vmem:[#allocation67_spill] sm:$0xff] %v11272_v36 }
 0x65a   : > { %8825 = vmatpush3.bf16.msra.mxu0 %v3127_v31  ;;  %v11274_v31 = vld [vmem:[#allocation3 + $0x88] sm:$0xff] }
 0x65b   : > { %8826 = vmatprep.subr.bf16.mxu0 %v3126_v29  ;;  %13396 = vst [vmem:[#allocation68_spill] sm:$0xff] %v11274_v31 }
 0x65e   : > { %8827 = vmatpush3.bf16.msra.mxu0 %v3126_v29 }
 0x65f   : > { %8828 = vmatprep.subr.bf16.mxu0 %v3125_v24 }
 0x662   : > { %8829 = vmatpush3.bf16.msra.mxu0 %v3125_v24 }
 0x663   : > { %8830 = vmatprep.subr.bf16.mxu0 %v3124_v25 }
 0x666   : > { %8831 = vmatpush3.bf16.msra.mxu0 %v3124_v25 }
 0x667   : > { %8832 = vmatprep.subr.bf16.mxu0 %v3123_v41 }
 0x66a   : > { %8833 = vmatpush3.bf16.msra.mxu0 %v3123_v41  ;;  %v11317_v41 = vld [vmem:[#allocation3 + $0xb0] sm:$0xff] }
 0x66b   : > { %13405 = vst [vmem:[#allocation77_spill] sm:$0xff] %v11317_v41 }
 0x67f   : > { %v11219_v39 = vpop.f32.mrf.mxu1 }
 0x681   : > { %v11221_v49 = vpop.f32.mrf.mxu1 }
 0x682   : > { %3350 = vmax.xlane.f32.xlu1 %v11221_v49 }
 0x683   : > { %v11224_v23 = vpop.f32.mrf.mxu1 }
 0x685   : > { %v11226_v53 = vpop.f32.mrf.mxu1 }
 0x686   : > { %3356 = vmax.xlane.f32.xlu1 %v11224_v23  ;;  %3352 = vmax.xlane.f32.xlu0 %v11226_v53 }
 0x687   : > { %v11230_v56 = vpop.f32.mrf.mxu1 }
 0x689   : > { %v11232_v42 = vpop.f32.mrf.mxu1 }
 0x68a   : > { %3354 = vmax.xlane.f32.xlu0 %v11219_v39 }
 0x68b   : > { %v11235_v55 = vpop.f32.mrf.mxu1 }
 0x68d   : > { %v11237_v28 = vpop.f32.mrf.mxu1 }
 0x68e   : > { %3358 = vmax.xlane.f32.xlu0 %v11232_v42  ;;  %3360 = vmax.xlane.f32.xlu1 %v11237_v28 }
 0x68f   : > { %v11241_v46 = vpop.f32.mrf.mxu1 }
 0x691   : > { %v11243_v61 = vpop.f32.mrf.mxu1 }
 0x692   : > { %3362 = vmax.xlane.f32.xlu0 %v11230_v56  ;;  %3364 = vmax.xlane.f32.xlu1 %v11235_v55 }
 0x693   : > { %v11247_v32 = vpop.f32.mrf.mxu1 }
 0x695   : > { %v11249_v17 = vpop.f32.mrf.mxu1 }
 0x696   : > { %3366 = vmax.xlane.f32.xlu0 %v11243_v61  ;;  %3368 = vmax.xlane.f32.xlu1 %v11249_v17 }
 0x697   : > { %v11253_v58 = vpop.f32.mrf.mxu1 }
 0x699   : > { %v11255_v5 = vpop.f32.mrf.mxu1 }
 0x69a   : > { %3370 = vmax.xlane.f32.xlu0 %v11241_v46  ;;  %3372 = vmax.xlane.f32.xlu1 %v11247_v32 }
 0x69b   : > { %v11259_v43 = vpop.f32.mrf.mxu1 }
 0x69d   : > { %v11261_v57 = vpop.f32.mrf.mxu1 }
 0x69e   : > { %3374 = vmax.xlane.f32.xlu0 %v11255_v5  ;;  %3376 = vmax.xlane.f32.xlu1 %v11261_v57 }
 0x6a2   : > { %3378 = vmax.xlane.f32.xlu0 %v11253_v58  ;;  %3380 = vmax.xlane.f32.xlu1 %v11259_v43 }
 0x70b   : > { %v3351_v27 = vpop.xlane.xlu1 %3350 }
 0x70c   : > { %v11270_v37 = vmax.f32 %v11267_v33, %v3351_v27  ;;  %v11319_v27 = vld [vmem:[#allocation3 + $0xb8] sm:$0xff] }
 0x70d   : > { %13406 = vst [vmem:[#allocation78_spill] sm:$0xff] %v11319_v27 }
 0x70e   : > { %13394 = vst [vmem:[#allocation66_spill] sm:$0xff] %v11270_v37  ;;  %3921 = vst.msk [vmem:[#allocation3 + $0x80] sm:$0xff] %vm2509_vm4, %v11270_v37  ;;  %3448 = vperm.xlu0 %9351, %v11270_v37  }
 0x70f   : > { %v3357_v24 = vpop.xlane.xlu1 %3356  ;;  %v3353_v25 = vpop.xlane.xlu0 %3352 }
 0x710   : > { %v11282_v40 = vmax.f32 %v11272_v36, %v3357_v24  ;;  %v11285_v62 = vmax.f32 %v11274_v31, %v3353_v25 }
 0x712   : > { %13397 = vst [vmem:[#allocation69_spill] sm:$0xff] %v11282_v40  ;;  %13398 = vst [vmem:[#allocation70_spill] sm:$0xff] %v11285_v62  ;;  %3463 = vperm.xlu0 %9351, %v11282_v40   ;;  %3453 = vperm.xlu1 %9352, %v11285_v62  }
 0x713   : > { %3924 = vst.msk [vmem:[#allocation3 + $0x98] sm:$0xff] %vm2509_vm4, %v11282_v40  ;;  %3922 = vst.msk [vmem:[#allocation3 + $0x88] sm:$0xff] %vm2509_vm4, %v11285_v62  ;;  %v3355_v6 = vpop.xlane.xlu0 %3354 }
 0x714   : > { %v11300_v8 = vmax.f32 %v11287_v0, %v3355_v6 }
 0x716   : > { %13400 = vst [vmem:[#allocation72_spill] sm:$0xff] %v11300_v8  ;;  %3923 = vst.msk [vmem:[#allocation3 + $0x90] sm:$0xff] %vm2509_vm4, %v11300_v8  ;;  %3458 = vperm.xlu1 %9352, %v11300_v8  }
 0x717   : > { %v3359_v16 = vpop.xlane.xlu0 %3358  ;;  %v3361_v18 = vpop.xlane.xlu1 %3360 }
 0x718   : > { %v11312_v20 = vmax.f32 %v11302_v10, %v3359_v16  ;;  %v11315_v30 = vmax.f32 %v11304_v12, %v3361_v18 }
 0x71a   : > { %13403 = vst [vmem:[#allocation75_spill] sm:$0xff] %v11312_v20  ;;  %13404 = vst [vmem:[#allocation76_spill] sm:$0xff] %v11315_v30  ;;  %3473 = vperm.xlu0 %9351, %v11315_v30   ;;  %3468 = vperm.xlu1 %9352, %v11312_v20  }
 0x71b   : > { %3925 = vst.msk [vmem:[#allocation3 + $0xa0] sm:$0xff] %vm2509_vm4, %v11312_v20  ;;  %3926 = vst.msk [vmem:[#allocation3 + $0xa8] sm:$0xff] %vm2509_vm4, %v11315_v30  ;;  %v3363_v6 = vpop.xlane.xlu0 %3362  ;;  %v3365_v16 = vpop.xlane.xlu1 %3364  ;;  %v11359_v30 = vld [vmem:[#allocation3 + $0xd8] sm:$0xff] }
 0x71c   : > { %v11332_v18 = vmax.f32 %v11317_v41, %v3363_v6  ;;  %v11335_v24 = vmax.f32 %v11319_v27, %v3365_v16  ;;  %v11357_v41 = vld [vmem:[#allocation3 + $0xd0] sm:$0xff]  ;;  %13414 = vst [vmem:[#allocation86_spill] sm:$0xff] %v11359_v30 }
 0x71d   : > { %13413 = vst [vmem:[#allocation85_spill] sm:$0xff] %v11357_v41 }
 0x71e   : > { %13407 = vst [vmem:[#allocation79_spill] sm:$0xff] %v11332_v18  ;;  %13408 = vst [vmem:[#allocation80_spill] sm:$0xff] %v11335_v24  ;;  %3483 = vperm.xlu0 %9351, %v11335_v24   ;;  %3478 = vperm.xlu1 %9352, %v11332_v18  }
 0x71f   : > { %3927 = vst.msk [vmem:[#allocation3 + $0xb0] sm:$0xff] %vm2509_vm4, %v11332_v18  ;;  %3928 = vst.msk [vmem:[#allocation3 + $0xb8] sm:$0xff] %vm2509_vm4, %v11335_v24  ;;  %v3367_v6 = vpop.xlane.xlu0 %3366  ;;  %v3369_v16 = vpop.xlane.xlu1 %3368  ;;  %v11379_v18 = vld [vmem:[#allocation3 + $0xe8] sm:$0xff]  ;;  %v11384_v24 = vld [vmem:[%s13208_s3 + $0xb8] sm:$0xff]  }
 0x720   : > { %v11352_v4 = vmax.f32 %v11337_v2, %v3367_v6  ;;  %v11355_v25 = vmax.f32 %v11339_v14, %v3369_v16  ;;  %v11377_v2 = vld [vmem:[#allocation3 + $0xe0] sm:$0xff]  ;;  %13418 = vst [vmem:[#allocation90_spill] sm:$0xff] %v11379_v18  ;;  %8850 = vmatprep.subr.bf16.mxu0 %v11384_v24 }
 0x721   : > { %13417 = vst [vmem:[#allocation89_spill] sm:$0xff] %v11377_v2 }
 0x722   : > { %13411 = vst [vmem:[#allocation83_spill] sm:$0xff] %v11352_v4  ;;  %13412 = vst [vmem:[#allocation84_spill] sm:$0xff] %v11355_v25  ;;  %3493 = vperm.xlu0 %9351, %v11355_v25   ;;  %3488 = vperm.xlu1 %9352, %v11352_v4  }
 0x723   : > { %3929 = vst.msk [vmem:[#allocation3 + $0xc0] sm:$0xff] %vm2509_vm4, %v11352_v4  ;;  %3930 = vst.msk [vmem:[#allocation3 + $0xc8] sm:$0xff] %vm2509_vm4, %v11355_v25  ;;  %v3371_v6 = vpop.xlane.xlu0 %3370  ;;  %v3373_v16 = vpop.xlane.xlu1 %3372 }
 0x724   : > { %v11372_v27 = vmax.f32 %v11357_v41, %v3371_v6  ;;  %v11375_v29 = vmax.f32 %v11359_v30, %v3373_v16  ;;  %v11403_v41 = vld [vmem:[#allocation3 + $0xf0] sm:$0xff]  ;;  %v11405_v6 = vld [vmem:[#allocation3 + $0xf8] sm:$0xff] }
 0x725   : > { %13421 = vst [vmem:[#allocation93_spill] sm:$0xff] %v11403_v41  ;;  %13422 = vst [vmem:[#allocation94_spill] sm:$0xff] %v11405_v6 }
 0x726   : > { %13415 = vst [vmem:[#allocation87_spill] sm:$0xff] %v11372_v27  ;;  %13416 = vst [vmem:[#allocation88_spill] sm:$0xff] %v11375_v29  ;;  %3503 = vperm.xlu0 %9351, %v11375_v29   ;;  %3498 = vperm.xlu1 %9352, %v11372_v27  }
 0x727   : > { %3931 = vst.msk [vmem:[#allocation3 + $0xd0] sm:$0xff] %vm2509_vm4, %v11372_v27  ;;  %3932 = vst.msk [vmem:[#allocation3 + $0xd8] sm:$0xff] %vm2509_vm4, %v11375_v29  ;;  %v3375_v16 = vpop.xlane.xlu0 %3374  ;;  %v3377_v14 = vpop.xlane.xlu1 %3376 }
 0x728   : > { %v11398_v4 = vmax.f32 %v11377_v2, %v3375_v16  ;;  %v11401_v25 = vmax.f32 %v11379_v18, %v3377_v14 }
 0x72a   : > { %13419 = vst [vmem:[#allocation91_spill] sm:$0xff] %v11398_v4  ;;  %13420 = vst [vmem:[#allocation92_spill] sm:$0xff] %v11401_v25  ;;  %3508 = vperm.xlu1 %9352, %v11398_v4   ;;  %3513 = vperm.xlu0 %9351, %v11401_v25  }
 0x72b   : > { %3933 = vst.msk [vmem:[#allocation3 + $0xe0] sm:$0xff] %vm2509_vm4, %v11398_v4  ;;  %3934 = vst.msk [vmem:[#allocation3 + $0xe8] sm:$0xff] %vm2509_vm4, %v11401_v25  ;;  %v3379_v14 = vpop.xlane.xlu0 %3378  ;;  %v3381_v16 = vpop.xlane.xlu1 %3380 }
 0x72c   : > { %v11418_v27 = vmax.f32 %v11403_v41, %v3379_v14  ;;  %v11421_v30 = vmax.f32 %v11405_v6, %v3381_v16 }
 0x72e   : > { %13423 = vst [vmem:[#allocation95_spill] sm:$0xff] %v11418_v27  ;;  %13424 = vst [vmem:[#allocation96_spill] sm:$0xff] %v11421_v30  ;;  %3518 = vperm.xlu1 %9352, %v11418_v27   ;;  %3523 = vperm.xlu0 %9351, %v11421_v30  }
 0x72f   : > { %3935 = vst.msk [vmem:[#allocation3 + $0xf0] sm:$0xff] %vm2509_vm4, %v11418_v27  ;;  %3936 = vst.msk [vmem:[#allocation3 + $0xf8] sm:$0xff] %vm2509_vm4, %v11421_v30 }
 0x789   : > { %v3449_v14 = vpop.permute.xlu0 %3448 }
 0x78a   : > { %v3526_v16 = vsub.f32 %v11221_v49, %v3449_v14 }
 0x78c   : > { %v3542_v4 = vmul.f32 1.442695, %v3526_v16 }
 0x78d   : > { %v3464_v25 = vpop.permute.xlu0 %3463  ;;  %v3454_v18 = vpop.permute.xlu1 %3453 }
 0x78e   : > { %v3529_v2 = vsub.f32 %v11224_v23, %v3464_v25  ;;  %v3527_v41 = vsub.f32 %v11226_v53, %v3454_v18  ;;  %9489 = vpow2.f32 %v3542_v4 }
 0x790   : > { %v3544_v12 = vmul.f32 1.442695, %v3527_v41  ;;  %v3548_v20 = vmul.f32 1.442695, %v3529_v2 }
 0x791   : > { %v3459_v29 = vpop.permute.xlu1 %3458 }
 0x792   : > { %v3528_v6 = vsub.f32 %v11219_v39, %v3459_v29  ;;  %9491 = vpow2.f32 %v3544_v12 }
 0x793   : > { %9493 = vpow2.f32 %v3548_v20 }
 0x794   : > { %v3546_v27 = vmul.f32 1.442695, %v3528_v6 }
 0x795   : > { %v3474_v30 = vpop.permute.xlu0 %3473  ;;  %v3469_v10 = vpop.permute.xlu1 %3468 }
 0x796   : > { %9495 = vpow2.f32 %v3546_v27  ;;  %v3531_v49 = vsub.f32 %v11237_v28, %v3474_v30  ;;  %v3530_v14 = vsub.f32 %v11232_v42, %v3469_v10 }
 0x798   : > { %v3552_v16 = vmul.f32 1.442695, %v3531_v49  ;;  %v3550_v23 = vmul.f32 1.442695, %v3530_v14 }
 0x799   : > { %v3484_v25 = vpop.permute.xlu0 %3483  ;;  %v3479_v53 = vpop.permute.xlu1 %3478 }
 0x79a   : > { %9497 = vpow2.f32 %v3552_v16  ;;  %v3533_v2 = vsub.f32 %v11235_v55, %v3484_v25  ;;  %v3532_v4 = vsub.f32 %v11230_v56, %v3479_v53  ;;  %v9410_v25 = vld [vmem:[%s13208_s3 + $0xb0] sm:$0xff]  }
 0x79b   : > { %9499 = vpow2.f32 %v3550_v23  ;;  %v11443_v42 = vpop.eup %9489 }
 0x79c   : > { %v3556_v39 = vmul.f32 1.442695, %v3533_v2  ;;  %v3554_v29 = vmul.f32 1.442695, %v3532_v4 }
 0x79d   : > { %v3494_v12 = vpop.permute.xlu0 %3493  ;;  %v3489_v20 = vpop.permute.xlu1 %3488 }
 0x79e   : > { %9501 = vpow2.f32 %v3556_v39  ;;  %v3535_v41 = vsub.f32 %v11249_v17, %v3494_v12  ;;  %v3534_v28 = vsub.f32 %v11243_v61, %v3489_v20  ;;  %v9411_v20 = vld [vmem:[%s13208_s3 + $0xa8] sm:$0xff]  }
 0x79f   : > { %9503 = vpow2.f32 %v3554_v29  ;;  %v11445_v10 = vpop.eup %9491 }
 0x7a0   : > { %v3560_v30 = vmul.f32 1.442695, %v3535_v41  ;;  %v3558_v27 = vmul.f32 1.442695, %v3534_v28  ;;  %v3784_v56 = vpack.c.bf16 %v11445_v10, %v11443_v42  ;;  %v11449_v6 = vpop.eup %9493 }
 0x7a1   : > { %v3504_v55 = vpop.permute.xlu0 %3503  ;;  %v3499_v18 = vpop.permute.xlu1 %3498 }
 0x7a2   : > { %9505 = vpow2.f32 %v3560_v30  ;;  %v3537_v49 = vsub.f32 %v11247_v32, %v3504_v55  ;;  %v3536_v17 = vsub.f32 %v11241_v46, %v3499_v18  ;;  %8834 = vmatprep.mubr.bf16.mxu0 %v3784_v56 }
 0x7a3   : > { %v11453_v61 = vpop.eup %9495  ;;  %9507 = vpow2.f32 %v3558_v27 }
 0x7a4   : > { %v3564_v14 = vmul.f32 1.442695, %v3537_v49  ;;  %v3562_v16 = vmul.f32 1.442695, %v3536_v17  ;;  %v3785_v23 = vpack.c.bf16 %v11449_v6, %v11453_v61  ;;  %v9412_v49 = vld [vmem:[%s13208_s3 + $0xa0] sm:$0xff]  }
 0x7a5   : > { %v3514_v53 = vpop.permute.xlu0 %3513  ;;  %v3509_v2 = vpop.permute.xlu1 %3508 }
 0x7a6   : > { %9509 = vpow2.f32 %v3564_v14  ;;  %v3539_v32 = vsub.f32 %v11261_v57, %v3514_v53  ;;  %v3538_v46 = vsub.f32 %v11255_v5, %v3509_v2  ;;  %8835 = vmatmul.mubr.bf16.vlgmr.msra.gmra.mxu0 %v3785_v23  ;;  %v9413_v14 = vld [vmem:[%s13208_s3 + $0x98] sm:$0xff]   ;;  %v9414_v53 = vld [vmem:[%s13208_s3 + $0x90] sm:$0xff]  }
 0x7a7   : > { %v11462_v4 = vpop.eup %9497  ;;  %9511 = vpow2.f32 %v3562_v16  ;;  %8851 = vmatpush3.bf16.msra.mxu0 %v11384_v24 }
 0x7a8   : > { %v11465_v39 = vpop.eup %9499  ;;  %v3568_v29 = vmul.f32 1.442695, %v3539_v32  ;;  %v3566_v12 = vmul.f32 1.442695, %v3538_v46  ;;  %8852 = vmatprep.subr.bf16.mxu0 %v9410_v25 }
 0x7a9   : > { %v3524_v41 = vpop.permute.xlu0 %3523  ;;  %v3519_v28 = vpop.permute.xlu1 %3518  ;;  %v3786_v5 = vpack.c.bf16 %v11462_v4, %v11465_v39 }
 0x7aa   : > { %9513 = vpow2.f32 %v3568_v29  ;;  %v3541_v57 = vsub.f32 %v11259_v43, %v3524_v41  ;;  %v3540_v30 = vsub.f32 %v11253_v58, %v3519_v28  ;;  %v9415_v29 = vld [vmem:[%s13208_s3 + $0x88] sm:$0xff]   ;;  %v9416_v28 = vld [vmem:[%s13208_s3 + $0x80] sm:$0xff]  }
 0x7ab   : > { %v11474_v24 = vpop.eup %9501  ;;  %9515 = vpow2.f32 %v3566_v12  ;;  %8838 = vmatprep.mubr.bf16.mxu0 %v3786_v5  ;;  %8853 = vmatpush3.bf16.msra.mxu0 %v9410_v25  ;;  %v9417_v5 = vld [vmem:[#allocation2 + $0x80] sm:$0xff]  }
 0x7ac   : > { %v11476_v27 = vpop.eup %9503  ;;  %v3572_v55 = vmul.f32 1.442695, %v3541_v57  ;;  %v3570_v18 = vmul.f32 1.442695, %v3540_v30  ;;  %8854 = vmatprep.subr.bf16.mxu0 %v9411_v20 }
 0x7ad   : > { %v3787_v56 = vpack.c.bf16 %v11474_v24, %v11476_v27 }
 0x7ae   : > { %9517 = vpow2.f32 %v3572_v55 }
 0x7af   : > { %v11483_v43 = vpop.eup %9505  ;;  %9519 = vpow2.f32 %v3570_v18  ;;  %8839 = vmatmul.mubr.bf16.gmra.mxu0 %v3787_v56 }
 0x7b0   : > { %v11485_v58 = vpop.eup %9507  ;;  %8855 = vmatpush3.bf16.msra.mxu0 %v9411_v20 }
 0x7b1   : > { %8856 = vmatprep.subr.bf16.mxu0 %v9412_v49  ;;  %v3788_v17 = vpack.c.bf16 %v11483_v43, %v11485_v58 }
 0x7b3   : > { %v11492_v16 = vpop.eup %9509  ;;  %8842 = vmatprep.mubr.bf16.mxu0 %v3788_v17 }
 0x7b4   : > { %v11494_v23 = vpop.eup %9511  ;;  %8857 = vmatpush3.bf16.msra.mxu0 %v9412_v49 }
 0x7b5   : > { %8858 = vmatprep.subr.bf16.mxu0 %v9413_v14  ;;  %v3789_v25 = vpack.c.bf16 %v11492_v16, %v11494_v23 }
 0x7b7   : > { %v11501_v2 = vpop.eup %9513  ;;  %8843 = vmatmul.mubr.bf16.gmra.mxu0 %v3789_v25 }
 0x7b8   : > { %v11503_v32 = vpop.eup %9515  ;;  %8859 = vmatpush3.bf16.msra.mxu0 %v9413_v14 }
 0x7b9   : > { %8860 = vmatprep.subr.bf16.mxu0 %v9414_v53  ;;  %v3790_v46 = vpack.c.bf16 %v11501_v2, %v11503_v32 }
 0x7bb   : > { %v11510_v12 = vpop.eup %9517  ;;  %8846 = vmatprep.mubr.bf16.mxu0 %v3790_v46 }
 0x7bc   : > { %v11512_v20 = vpop.eup %9519  ;;  %8861 = vmatpush3.bf16.msra.mxu0 %v9414_v53 }
 0x7bd   : > { %8862 = vmatprep.subr.bf16.mxu0 %v9415_v29  ;;  %v3791_v41 = vpack.c.bf16 %v11510_v12, %v11512_v20 }
 0x7bf   : > { %8847 = vmatmul.mubr.bf16.gmra.mxu0 %v3791_v41  ;;  %v9426_v41 = vld [vmem:[%s13209_s4 + $0xb0] sm:$0xff]  }
 0x7c0   : > { %8863 = vmatpush3.bf16.msra.mxu0 %v9415_v29  ;;  %8866 = vmatprep.mubr.bf16.mxu0 %v11100_v3  ;;  %v9425_v29 = vld [vmem:[%s13209_s4 + $0xb8] sm:$0xff]  }
 0x7c1   : > { %8864 = vmatprep.subr.bf16.mxu0 %v9416_v28  ;;  %8882 = vmatprep.subr.bf16.mxu1 %v9425_v29 }
 0x7c2   : > { %8883 = vmatpush3.bf16.msra.mxu1 %v9425_v29  ;;  %v9429_v29 = vld [vmem:[%s13209_s4 + $0x98] sm:$0xff]  }
 0x7c3   : > { %8884 = vmatprep.subr.bf16.mxu1 %v9426_v41 }
 0x7c4   : > { %8865 = vmatpush3.bf16.msra.mxu0 %v9416_v28 }
 0x7c6   : > { %8885 = vmatpush3.bf16.msra.mxu1 %v9426_v41  ;;  %v9430_v41 = vld [vmem:[%s13209_s4 + $0x90] sm:$0xff]  }
 0x7c7   : > { %8867 = vmatmul.mubr.bf16.vlgmr.msra.gmra.mxu0 %v11104_v11 }
 0x7c8   : > { %8870 = vmatprep.mubr.bf16.mxu0 %v11108_v19 }
 0x7cf   : > { %8871 = vmatmul.mubr.bf16.gmra.mxu0 %v11112_v60 }
 0x7d0   : > { %8874 = vmatprep.mubr.bf16.mxu0 %v11116_v9 }
 0x7d7   : > { %8875 = vmatmul.mubr.bf16.gmra.mxu0 %v11189_v59 }
 0x7d8   : > { %8878 = vmatprep.mubr.bf16.mxu0 %v11193_v26 }
 0x7df   : > { %8879 = vmatmul.mubr.bf16.gmra.mxu0 %v11199_v1 }
 0x7e0   : > { %8930 = vmatprep.mubr.msk.bf16.mxu0 %vm2043_vm3, %v9417_v5 }
 0x866   : > { %v11528_v3 = vpop.f32.mrf.mxu0 }
 0x867   : > { %13425 = vst [vmem:[#allocation97_spill] sm:$0xff] %v11528_v3 }
 0x868   : > { %v11530_v57 = vpop.f32.mrf.mxu0 }
 0x869   : > { %13426 = vst [vmem:[#allocation98_spill] sm:$0xff] %v11530_v57 }
 0x86a   : > { %v11532_v30 = vpop.f32.mrf.mxu0 }
 0x86b   : > { %13427 = vst [vmem:[#allocation99_spill] sm:$0xff] %v11532_v30 }
 0x86c   : > { %v11534_v55 = vpop.f32.mrf.mxu0 }
 0x86d   : > { %13428 = vst [vmem:[#allocation100_spill] sm:$0xff] %v11534_v55 }
 0x86f   : > { %v11536_v18 = vpop.f32.mrf.mxu0 }
 0x870   : > { %13429 = vst [vmem:[#allocation101_spill] sm:$0xff] %v11536_v18 }
 0x871   : > { %v11538_v56 = vpop.f32.mrf.mxu0 }
 0x872   : > { %13430 = vst [vmem:[#allocation102_spill] sm:$0xff] %v11538_v56 }
 0x873   : > { %v11540_v49 = vpop.f32.mrf.mxu0 }
 0x874   : > { %13431 = vst [vmem:[#allocation103_spill] sm:$0xff] %v11540_v49 }
 0x875   : > { %v11542_v17 = vpop.f32.mrf.mxu0 }
 0x876   : > { %13432 = vst [vmem:[#allocation104_spill] sm:$0xff] %v11542_v17 }
 0x877   : > { %v11544_v14 = vpop.f32.mrf.mxu0 }
 0x878   : > { %13433 = vst [vmem:[#allocation105_spill] sm:$0xff] %v11544_v14  ;;  %v9428_v14 = vld [vmem:[%s13209_s4 + $0xa0] sm:$0xff]  }
 0x879   : > { %v11546_v25 = vpop.f32.mrf.mxu0 }
 0x87a   : > { %13434 = vst [vmem:[#allocation106_spill] sm:$0xff] %v11546_v25 }
 0x87b   : > { %v11548_v53 = vpop.f32.mrf.mxu0 }
 0x87c   : > { %13435 = vst [vmem:[#allocation107_spill] sm:$0xff] %v11548_v53  ;;  %v9427_v53 = vld [vmem:[%s13209_s4 + $0xa8] sm:$0xff]  }
 0x87d   : > { %v11550_v46 = vpop.f32.mrf.mxu0  ;;  %8886 = vmatprep.subr.bf16.mxu1 %v9427_v53 }
 0x87e   : > { %13436 = vst [vmem:[#allocation108_spill] sm:$0xff] %v11550_v46  ;;  %8887 = vmatpush3.bf16.msra.mxu1 %v9427_v53  ;;  %v9431_v53 = vld [vmem:[%s13209_s4 + $0x88] sm:$0xff]  }
 0x87f   : > { %v11558_v28 = vpop.f32.mrf.mxu0  ;;  %8888 = vmatprep.subr.bf16.mxu1 %v9428_v14 }
 0x880   : > { %13437 = vst [vmem:[#allocation109_spill] sm:$0xff] %v11558_v28 }
 0x881   : > { %v11560_v5 = vpop.f32.mrf.mxu0 }
 0x882   : > { %13438 = vst [vmem:[#allocation110_spill] sm:$0xff] %v11560_v5  ;;  %8889 = vmatpush3.bf16.msra.mxu1 %v9428_v14 }
 0x883   : > { %v11565_v46 = vpop.f32.mrf.mxu0  ;;  %8890 = vmatprep.subr.bf16.mxu1 %v9429_v29 }
 0x884   : > { %13439 = vst [vmem:[#allocation111_spill] sm:$0xff] %v11565_v46 }
 0x885   : > { %v11567_v49 = vpop.f32.mrf.mxu0 }
 0x886   : > { %13440 = vst [vmem:[#allocation112_spill] sm:$0xff] %v11567_v49  ;;  %8891 = vmatpush3.bf16.msra.mxu1 %v9429_v29 }
 0x887   : > { %v8868_v28 = vpop.f32.mrf.mxu0  ;;  %8892 = vmatprep.subr.bf16.mxu1 %v9430_v41 }
 0x889   : > { %v4036_v25 = vpop.f32.mrf.mxu0 }
 0x88a   : > { %8893 = vmatpush3.bf16.msra.mxu1 %v9430_v41 }
 0x88b   : > { %v8869_v5 = vpop.f32.mrf.mxu0  ;;  %8894 = vmatprep.subr.bf16.mxu1 %v9431_v53 }
 0x88c   : > { %v4100_v18 = vpack.c.bf16 %v8869_v5, %v8868_v28 }
 0x88d   : > { %v4039_v17 = vpop.f32.mrf.mxu0 }
 0x88e   : > { %v4099_v46 = vpack.c.bf16 %v4039_v17, %v4036_v25  ;;  %v9432_v17 = vld [vmem:[%s13209_s4 + $0x80] sm:$0xff]   ;;  %8895 = vmatpush3.bf16.msra.mxu1 %v9431_v53 }
 0x88f   : > { %v8872_v49 = vpop.f32.mrf.mxu0  ;;  %8896 = vmatprep.subr.bf16.mxu1 %v9432_v17 }
 0x891   : > { %v4052_v56 = vpop.f32.mrf.mxu0 }
 0x892   : > { %8897 = vmatpush3.bf16.msra.mxu1 %v9432_v17 }
 0x893   : > { %v8873_v30 = vpop.f32.mrf.mxu0 }
 0x895   : > { %v4055_v3 = vpop.f32.mrf.mxu0  ;;  %8899 = vmatmul.mubr.bf16.vlgmr.msra.gmra.mxu1 %v11104_v11 }
 0x896   : > { %8902 = vmatprep.mubr.bf16.mxu1 %v11108_v19 }
 0x897   : > { %v8876_v14 = vpop.f32.mrf.mxu0 }
 0x899   : > { %v4068_v25 = vpop.f32.mrf.mxu0 }
 0x89b   : > { %v8877_v28 = vpop.f32.mrf.mxu0 }
 0x89c   : > { %v4104_v53 = vpack.c.bf16 %v8877_v28, %v8876_v14 }
 0x89d   : > { %v4071_v5 = vpop.f32.mrf.mxu0  ;;  %8903 = vmatmul.mubr.bf16.gmra.mxu1 %v11112_v60  ;;  %v4102_v60 = vpack.c.bf16 %v8873_v30, %v8872_v49  ;;  %v9419_v30 = vld [vmem:[#allocation2 + $0x90] sm:$0xff]   ;;  %v9424_v49 = vld [vmem:[#allocation2 + $0xb8] sm:$0xff]  }
 0x89e   : > { %8906 = vmatprep.mubr.bf16.mxu1 %v11116_v9  ;;  %v4374_v19 = vsel %vm2043_vm3, %v4104_v53, 0 }
 0x89f   : > { %v8880_v29 = vpop.f32.mrf.mxu0 }
 0x8a1   : > { %v4084_v57 = vpop.f32.mrf.mxu0 }
 0x8a3   : > { %v8881_v55 = vpop.f32.mrf.mxu0 }
 0x8a4   : > { %v4106_v41 = vpack.c.bf16 %v8881_v55, %v8880_v29  ;;  %v9421_v55 = vld [vmem:[#allocation2 + $0xa0] sm:$0xff]  }
 0x8a5   : > { %v4087_v40 = vpop.f32.mrf.mxu0  ;;  %8907 = vmatmul.mubr.bf16.gmra.mxu1 %v11189_v59 }
 0x8a6   : > { %v4380_v36 = vsel %vm2043_vm3, %v4106_v41, 0  ;;  %v4105_v8 = vpack.c.bf16 %v4087_v40, %v4084_v57  ;;  %9202 = vmatprep.subr.msk.bf16.mxu0 %vm2043_vm3, %v4106_v41  ;;  %8910 = vmatprep.mubr.bf16.mxu1 %v11193_v26  ;;  %v4103_v40 = vpack.c.bf16 %v4071_v5, %v4068_v25  ;;  %v4362_v26 = vsel %vm2043_vm3, %v4100_v18, 0  ;;  %v9418_v57 = vld [vmem:[#allocation2 + $0x88] sm:$0xff]  }
 0x8a7   : > { %8915 = vmatpush3.bf16.xpose.msra.mxu0 %v4380_v36  ;;  %v4368_v36 = vsel %vm2043_vm3, %v4102_v60, 0 }
 0x8a8   : > { %9203 = vmatprep.subr.msk.bf16.mxu0 %vm2043_vm3, %v4105_v8  ;;  %v4377_v11 = vsel %vm2043_vm3, %v4105_v8, 0  ;;  %v4371_v9 = vsel %vm2043_vm3, %v4103_v40, 0  ;;  %v4101_v8 = vpack.c.bf16 %v4055_v3, %v4052_v56  ;;  %v9420_v3 = vld [vmem:[#allocation2 + $0x98] sm:$0xff]   ;;  %v9423_v56 = vld [vmem:[#allocation2 + $0xb0] sm:$0xff]  }
 0x8aa   : > { %v4365_v59 = vsel %vm2043_vm3, %v4101_v8, 0 }
 0x8ad   : > { %8911 = vmatmul.mubr.bf16.gmra.mxu1 %v11199_v1  ;;  %v4359_v1 = vsel %vm2043_vm3, %v4099_v46, 0 }
 0x8af   : > { %8917 = vmatpush3.bf16.xpose.msra.mxu0 %v4377_v11 }
 0x8b0   : > { %9204 = vmatprep.subr.msk.bf16.mxu0 %vm2043_vm3, %v4104_v53 }
 0x8b7   : > { %8919 = vmatpush3.bf16.xpose.msra.mxu0 %v4374_v19 }
 0x8b8   : > { %9205 = vmatprep.subr.msk.bf16.mxu0 %vm2043_vm3, %v4103_v40 }
 0x8bf   : > { %8921 = vmatpush3.bf16.xpose.msra.mxu0 %v4371_v9 }
 0x8c0   : > { %9206 = vmatprep.subr.msk.bf16.mxu0 %vm2043_vm3, %v4102_v60 }
 0x8c7   : > { %8923 = vmatpush3.bf16.xpose.msra.mxu0 %v4368_v36 }
 0x8c8   : > { %9207 = vmatprep.subr.msk.bf16.mxu0 %vm2043_vm3, %v4101_v8 }
 0x8cf   : > { %8925 = vmatpush3.bf16.xpose.msra.mxu0 %v4365_v59 }
 0x8d0   : > { %9208 = vmatprep.subr.msk.bf16.mxu0 %vm2043_vm3, %v4100_v18  ;;  %v9422_v18 = vld [vmem:[#allocation2 + $0xa8] sm:$0xff]  }
 0x8d7   : > { %8927 = vmatpush3.bf16.xpose.msra.mxu0 %v4362_v26 }
 0x8d8   : > { %9209 = vmatprep.subr.msk.bf16.mxu0 %vm2043_vm3, %v4099_v46  ;;  %v11615_v46 = vld [vmem:[%s10128_s23] sm:$0xff]  }
 0x8d9   : > { %13441 = vst [vmem:[#allocation113_spill] sm:$0xff] %v11615_v46 }
 0x8df   : > { %8929 = vmatpush3.bf16.xpose.msra.mxu0 %v4359_v1 }
 0x8e6   : > { %8931 = vmatmul.mubr.msk.bf16.vlgmr.msra.gmra.mxu0 %vm2043_vm3, %v9418_v57 }
 0x8e7   : > { %8934 = vmatprep.mubr.msk.bf16.mxu0 %vm2043_vm3, %v9419_v30 }
 0x8ee   : > { %8935 = vmatmul.mubr.msk.bf16.gmra.mxu0 %vm2043_vm3, %v9420_v3 }
 0x8ef   : > { %8938 = vmatprep.mubr.msk.bf16.mxu0 %vm2043_vm3, %v9421_v55 }
 0x8f6   : > { %8939 = vmatmul.mubr.msk.bf16.gmra.mxu0 %vm2043_vm3, %v9422_v18 }
 0x8f7   : > { %8942 = vmatprep.mubr.msk.bf16.mxu0 %vm2043_vm3, %v9423_v56 }
 0x8fe   : > { %8943 = vmatmul.mubr.msk.bf16.gmra.mxu0 %vm2043_vm3, %v9424_v49 }
 0x8ff   : > { %9026 = vmatprep.mubr.bf16.mxu0 %v11615_v46 }
 0x955   : > { %v8900_v26 = vpop.f32.mrf.mxu1 }
 0x957   : > { %v4206_v1 = vpop.f32.mrf.mxu1 }
 0x959   : > { %v8901_v57 = vpop.f32.mrf.mxu1 }
 0x95b   : > { %v4209_v30 = vpop.f32.mrf.mxu1 }
 0x95d   : > { %v8904_v3 = vpop.f32.mrf.mxu1 }
 0x95f   : > { %v4222_v55 = vpop.f32.mrf.mxu1 }
 0x961   : > { %v8905_v18 = vpop.f32.mrf.mxu1 }
 0x963   : > { %v4225_v56 = vpop.f32.mrf.mxu1 }
 0x965   : > { %v8908_v49 = vpop.f32.mrf.mxu1 }
 0x967   : > { %v4238_v46 = vpop.f32.mrf.mxu1 }
 0x969   : > { %v8909_v0 = vpop.f32.mrf.mxu1 }
 0x96b   : > { %v4241_v37 = vpop.f32.mrf.mxu1 }
 0x96d   : > { %v8912_v33 = vpop.f32.mrf.mxu1 }
 0x96f   : > { %v4254_v62 = vpop.f32.mrf.mxu1 }
 0x971   : > { %v8913_v31 = vpop.f32.mrf.mxu1 }
 0x9a6   : > { %v11618_v17 = vpop.f32.mrf.mxu0 }
 0x9a8   : > { %v11620_v14 = vpop.f32.mrf.mxu0 }
 0x9a9   : > { %4496 = vmax.xlane.f32.xlu1 %v11620_v14 }
 0x9aa   : > { %v11623_v25 = vpop.f32.mrf.mxu0 }
 0x9ac   : > { %v11625_v28 = vpop.f32.mrf.mxu0 }
 0x9ad   : > { %4502 = vmax.xlane.f32.xlu1 %v11623_v25  ;;  %4498 = vmax.xlane.f32.xlu0 %v11625_v28 }
 0x9ae   : > { %v11629_v5 = vpop.f32.mrf.mxu0 }
 0x9b0   : > { %v11631_v29 = vpop.f32.mrf.mxu0 }
 0x9b1   : > { %4500 = vmax.xlane.f32.xlu0 %v11618_v17 }
 0x9b2   : > { %v11634_v41 = vpop.f32.mrf.mxu0 }
 0x9b4   : > { %v11636_v53 = vpop.f32.mrf.mxu0 }
 0x9b5   : > { %4504 = vmax.xlane.f32.xlu0 %v11631_v29  ;;  %4506 = vmax.xlane.f32.xlu1 %v11636_v53 }
 0x9b6   : > { %v11640_v11 = vpop.f32.mrf.mxu0 }
 0x9b7   : > { %13442 = vst [vmem:[#allocation114_spill] sm:$0xff] %v11640_v11 }
 0x9b8   : > { %v11642_v19 = vpop.f32.mrf.mxu0 }
 0x9b9   : > { %13443 = vst [vmem:[#allocation115_spill] sm:$0xff] %v11642_v19  ;;  %4508 = vmax.xlane.f32.xlu0 %v11629_v5  ;;  %4510 = vmax.xlane.f32.xlu1 %v11634_v41 }
 0x9ba   : > { %v11646_v40 = vpop.f32.mrf.mxu0 }
 0x9bb   : > { %13444 = vst [vmem:[#allocation116_spill] sm:$0xff] %v11646_v40 }
 0x9bc   : > { %v11648_v60 = vpop.f32.mrf.mxu0 }
 0x9bd   : > { %13445 = vst [vmem:[#allocation117_spill] sm:$0xff] %v11648_v60  ;;  %4512 = vmax.xlane.f32.xlu0 %v11642_v19  ;;  %4514 = vmax.xlane.f32.xlu1 %v11648_v60  ;;  %v4271_v19 = vpack.c.bf16 %v4225_v56, %v4222_v55  ;;  %v4270_v60 = vpack.c.bf16 %v8901_v57, %v8900_v26  ;;  %v11701_v57 = vld [vmem:[#allocation3 + $0x120] sm:$0xff] }
 0x9be   : > { %v11652_v9 = vpop.f32.mrf.mxu0 }
 0x9bf   : > { %13446 = vst [vmem:[#allocation118_spill] sm:$0xff] %v11652_v9 }
 0x9c0   : > { %v11654_v36 = vpop.f32.mrf.mxu0 }
 0x9c1   : > { %13447 = vst [vmem:[#allocation119_spill] sm:$0xff] %v11654_v36  ;;  %4516 = vmax.xlane.f32.xlu0 %v11640_v11  ;;  %4518 = vmax.xlane.f32.xlu1 %v11646_v40  ;;  %v4273_v11 = vpack.c.bf16 %v4241_v37, %v4238_v46  ;;  %v4272_v40 = vpack.c.bf16 %v8905_v18, %v8904_v3  ;;  %v11673_v46 = vld [vmem:[#allocation3 + $0x108] sm:$0xff] }
 0x9c2   : > { %v11658_v8 = vpop.f32.mrf.mxu0  ;;  %13452 = vst [vmem:[#allocation124_spill] sm:$0xff] %v11673_v46 }
 0x9c3   : > { %13448 = vst [vmem:[#allocation120_spill] sm:$0xff] %v11658_v8 }
 0x9c4   : > { %v11660_v59 = vpop.f32.mrf.mxu0 }
 0x9c5   : > { %13449 = vst [vmem:[#allocation121_spill] sm:$0xff] %v11660_v59  ;;  %4520 = vmax.xlane.f32.xlu0 %v11654_v36  ;;  %4522 = vmax.xlane.f32.xlu1 %v11660_v59  ;;  %v4276_v36 = vpack.c.bf16 %v8913_v31, %v8912_v33  ;;  %v4257_v59 = vpop.f32.mrf.mxu1  ;;  %v4269_v33 = vpack.c.bf16 %v4209_v30, %v4206_v1  ;;  %v11666_v31 = vld [vmem:[#allocation3 + $0x100] sm:$0xff]  ;;  %v11703_v30 = vld [vmem:[#allocation3 + $0x128] sm:$0xff] }
 0x9c6   : > { %13455 = vst [vmem:[#allocation127_spill] sm:$0xff] %v11703_v30 }
 0x9c7   : > { %8946 = vmatprep.subr.bf16.mxu1 %v4276_v36 }
 0x9c8   : > { %8947 = vmatpush3.bf16.msra.mxu1 %v4276_v36  ;;  %v11686_v36 = vld [vmem:[#allocation3 + $0x110] sm:$0xff] }
 0x9c9   : > { %4524 = vmax.xlane.f32.xlu0 %v11652_v9  ;;  %4526 = vmax.xlane.f32.xlu1 %v11658_v8  ;;  %v4275_v9 = vpack.c.bf16 %v4257_v59, %v4254_v62  ;;  %v4274_v8 = vpack.c.bf16 %v8909_v0, %v8908_v49  ;;  %v11671_v0 = vld [vmem:[#allocation3 + $0x118] sm:$0xff] }
 0x9ca   : > { %13451 = vst [vmem:[#allocation123_spill] sm:$0xff] %v11671_v0 }
 0x9cb   : > { %8948 = vmatprep.subr.bf16.mxu1 %v4275_v9 }
 0x9cc   : > { %8949 = vmatpush3.bf16.msra.mxu1 %v4275_v9 }
 0x9cd   : > { %8950 = vmatprep.subr.bf16.mxu1 %v4274_v8 }
 0x9d0   : > { %8951 = vmatpush3.bf16.msra.mxu1 %v4274_v8  ;;  %v11736_v8 = vld [vmem:[#allocation3 + $0x140] sm:$0xff] }
 0x9d1   : > { %8952 = vmatprep.subr.bf16.mxu1 %v4273_v11 }
 0x9d4   : > { %8953 = vmatpush3.bf16.msra.mxu1 %v4273_v11  ;;  %v11738_v11 = vld [vmem:[#allocation3 + $0x148] sm:$0xff] }
 0x9d5   : > { %8954 = vmatprep.subr.bf16.mxu1 %v4272_v40  ;;  %13459 = vst [vmem:[#allocation131_spill] sm:$0xff] %v11738_v11 }
 0x9d8   : > { %8955 = vmatpush3.bf16.msra.mxu1 %v4272_v40 }
 0x9d9   : > { %8956 = vmatprep.subr.bf16.mxu1 %v4271_v19 }
 0x9dc   : > { %8957 = vmatpush3.bf16.msra.mxu1 %v4271_v19 }
 0x9dd   : > { %8958 = vmatprep.subr.bf16.mxu1 %v4270_v60 }
 0x9e0   : > { %8959 = vmatpush3.bf16.msra.mxu1 %v4270_v60 }
 0x9e1   : > { %8960 = vmatprep.subr.bf16.mxu1 %v4269_v33 }
 0x9e4   : > { %8961 = vmatpush3.bf16.msra.mxu1 %v4269_v33  ;;  %v11716_v33 = vld [vmem:[#allocation3 + $0x130] sm:$0xff] }
 0xa32   : > { %v4497_v62 = vpop.xlane.xlu1 %4496 }
 0xa33   : > { %v11669_v37 = vmax.f32 %v11666_v31, %v4497_v62  ;;  %v11718_v62 = vld [vmem:[#allocation3 + $0x138] sm:$0xff] }
 0xa34   : > { %13457 = vst [vmem:[#allocation129_spill] sm:$0xff] %v11718_v62 }
 0xa35   : > { %13450 = vst [vmem:[#allocation122_spill] sm:$0xff] %v11669_v37  ;;  %5067 = vst.msk [vmem:[#allocation3 + $0x100] sm:$0xff] %vm2509_vm4, %v11669_v37  ;;  %4594 = vperm.xlu0 %9351, %v11669_v37  }
 0xa36   : > { %v4503_v19 = vpop.xlane.xlu1 %4502  ;;  %v4499_v40 = vpop.xlane.xlu0 %4498 }
 0xa37   : > { %v11681_v60 = vmax.f32 %v11671_v0, %v4503_v19  ;;  %v11684_v9 = vmax.f32 %v11673_v46, %v4499_v40  ;;  %v11778_v46 = vld [vmem:[#allocation3 + $0x168] sm:$0xff]  ;;  %v11802_v0 = vld [vmem:[#allocation3 + $0x170] sm:$0xff] }
 0xa38   : > { %13464 = vst [vmem:[#allocation136_spill] sm:$0xff] %v11778_v46  ;;  %13467 = vst [vmem:[#allocation139_spill] sm:$0xff] %v11802_v0 }
 0xa39   : > { %13453 = vst [vmem:[#allocation125_spill] sm:$0xff] %v11681_v60  ;;  %13454 = vst [vmem:[#allocation126_spill] sm:$0xff] %v11684_v9  ;;  %4609 = vperm.xlu0 %9351, %v11681_v60   ;;  %4599 = vperm.xlu1 %9352, %v11684_v9  }
 0xa3a   : > { %5070 = vst.msk [vmem:[#allocation3 + $0x118] sm:$0xff] %vm2509_vm4, %v11681_v60  ;;  %5068 = vst.msk [vmem:[#allocation3 + $0x108] sm:$0xff] %vm2509_vm4, %v11684_v9  ;;  %v4501_v26 = vpop.xlane.xlu0 %4500  ;;  %v11776_v9 = vld [vmem:[#allocation3 + $0x160] sm:$0xff] }
 0xa3b   : > { %v11699_v1 = vmax.f32 %v11686_v36, %v4501_v26  ;;  %13463 = vst [vmem:[#allocation135_spill] sm:$0xff] %v11776_v9 }
 0xa3d   : > { %5069 = vst.msk [vmem:[#allocation3 + $0x110] sm:$0xff] %vm2509_vm4, %v11699_v1  ;;  %4604 = vperm.xlu1 %9352, %v11699_v1  }
 0xa3e   : > { %v4505_v55 = vpop.xlane.xlu0 %4504  ;;  %v4507_v18 = vpop.xlane.xlu1 %4506 }
 0xa3f   : > { %v11711_v56 = vmax.f32 %v11701_v57, %v4505_v55  ;;  %v11714_v49 = vmax.f32 %v11703_v30, %v4507_v18  ;;  %v11758_v30 = vld [vmem:[#allocation3 + $0x158] sm:$0xff] }
 0xa40   : > { %13461 = vst [vmem:[#allocation133_spill] sm:$0xff] %v11758_v30 }
 0xa41   : > { %13456 = vst [vmem:[#allocation128_spill] sm:$0xff] %v11714_v49  ;;  %5071 = vst.msk [vmem:[#allocation3 + $0x120] sm:$0xff] %vm2509_vm4, %v11711_v56  ;;  %4619 = vperm.xlu0 %9351, %v11714_v49   ;;  %4614 = vperm.xlu1 %9352, %v11711_v56  }
 0xa42   : > { %5072 = vst.msk [vmem:[#allocation3 + $0x128] sm:$0xff] %vm2509_vm4, %v11714_v49  ;;  %v4509_v26 = vpop.xlane.xlu0 %4508  ;;  %v4511_v55 = vpop.xlane.xlu1 %4510  ;;  %v11756_v49 = vld [vmem:[#allocation3 + $0x150] sm:$0xff] }
 0xa43   : > { %v11731_v18 = vmax.f32 %v11716_v33, %v4509_v26  ;;  %v11734_v59 = vmax.f32 %v11718_v62, %v4511_v55 }
 0xa45   : > { %13458 = vst [vmem:[#allocation130_spill] sm:$0xff] %v11734_v59  ;;  %5073 = vst.msk [vmem:[#allocation3 + $0x130] sm:$0xff] %vm2509_vm4, %v11731_v18  ;;  %4629 = vperm.xlu0 %9351, %v11734_v59   ;;  %4624 = vperm.xlu1 %9352, %v11731_v18  }
 0xa46   : > { %5074 = vst.msk [vmem:[#allocation3 + $0x138] sm:$0xff] %vm2509_vm4, %v11734_v59  ;;  %v4513_v26 = vpop.xlane.xlu0 %4512  ;;  %v4515_v55 = vpop.xlane.xlu1 %4514  ;;  %v11783_v59 = vld [vmem:[%s13208_s3 + $0xf8] sm:$0xff]  }
 0xa47   : > { %v11751_v3 = vmax.f32 %v11736_v8, %v4513_v26  ;;  %v11754_v40 = vmax.f32 %v11738_v11, %v4515_v55  ;;  %8978 = vmatprep.subr.bf16.mxu1 %v11783_v59 }
 0xa49   : > { %13460 = vst [vmem:[#allocation132_spill] sm:$0xff] %v11754_v40  ;;  %5075 = vst.msk [vmem:[#allocation3 + $0x140] sm:$0xff] %vm2509_vm4, %v11751_v3  ;;  %4639 = vperm.xlu0 %9351, %v11754_v40   ;;  %4634 = vperm.xlu1 %9352, %v11751_v3  }
 0xa4a   : > { %5076 = vst.msk [vmem:[#allocation3 + $0x148] sm:$0xff] %vm2509_vm4, %v11754_v40  ;;  %v4517_v26 = vpop.xlane.xlu0 %4516  ;;  %v4519_v55 = vpop.xlane.xlu1 %4518 }
 0xa4b   : > { %v11771_v62 = vmax.f32 %v11756_v49, %v4517_v26  ;;  %v11774_v19 = vmax.f32 %v11758_v30, %v4519_v55  ;;  %v11804_v26 = vld [vmem:[#allocation3 + $0x178] sm:$0xff] }
 0xa4c   : > { %13468 = vst [vmem:[#allocation140_spill] sm:$0xff] %v11804_v26 }
 0xa4d   : > { %13462 = vst [vmem:[#allocation134_spill] sm:$0xff] %v11774_v19  ;;  %5077 = vst.msk [vmem:[#allocation3 + $0x150] sm:$0xff] %vm2509_vm4, %v11771_v62  ;;  %4649 = vperm.xlu0 %9351, %v11774_v19   ;;  %4644 = vperm.xlu1 %9352, %v11771_v62  }
 0xa4e   : > { %5078 = vst.msk [vmem:[#allocation3 + $0x158] sm:$0xff] %vm2509_vm4, %v11774_v19  ;;  %v4521_v55 = vpop.xlane.xlu0 %4520  ;;  %v4523_v11 = vpop.xlane.xlu1 %4522 }
 0xa4f   : > { %v11797_v60 = vmax.f32 %v11776_v9, %v4521_v55  ;;  %v11800_v40 = vmax.f32 %v11778_v46, %v4523_v11  ;;  %v2435_v46 = vld [vmem:[#allocation4 + $0x30] sm:$0xff] }
 0xa51   : > { %13465 = vst [vmem:[#allocation137_spill] sm:$0xff] %v11797_v60  ;;  %13466 = vst [vmem:[#allocation138_spill] sm:$0xff] %v11800_v40  ;;  %4654 = vperm.xlu1 %9352, %v11797_v60   ;;  %4659 = vperm.xlu0 %9351, %v11800_v40  }
 0xa52   : > { %5079 = vst.msk [vmem:[#allocation3 + $0x160] sm:$0xff] %vm2509_vm4, %v11797_v60  ;;  %5080 = vst.msk [vmem:[#allocation3 + $0x168] sm:$0xff] %vm2509_vm4, %v11800_v40  ;;  %v4525_v11 = vpop.xlane.xlu0 %4524  ;;  %v4527_v55 = vpop.xlane.xlu1 %4526 }
 0xa53   : > { %v11817_v37 = vmax.f32 %v11802_v0, %v4525_v11  ;;  %v11820_v30 = vmax.f32 %v11804_v26, %v4527_v55  ;;  %v12119_v0 = vld [vmem:[%s10128_s23 + $0x28] sm:$0xff]  }
 0xa55   : > { %13469 = vst [vmem:[#allocation141_spill] sm:$0xff] %v11817_v37  ;;  %13470 = vst [vmem:[#allocation142_spill] sm:$0xff] %v11820_v30  ;;  %4664 = vperm.xlu1 %9352, %v11817_v37   ;;  %4669 = vperm.xlu0 %9351, %v11820_v30  }
 0xa56   : > { %5081 = vst.msk [vmem:[#allocation3 + $0x170] sm:$0xff] %vm2509_vm4, %v11817_v37  ;;  %5082 = vst.msk [vmem:[#allocation3 + $0x178] sm:$0xff] %vm2509_vm4, %v11820_v30 }
 0xa74   : > { %2463 = vadd.xlane.f32.xlu0 %v11025_v38  ;;  %v13471_v38 = vld [vmem:[#allocation19_spill] sm:$0xff] }
 0xa78   : > { %2465 = vadd.xlane.f32.xlu0 %v11028_v48  ;;  %v13472_v48 = vsub.f32 %v10851_v22, %v13471_v38  ;;  %v13479_v22 = vld [vmem:[#allocation20_spill] sm:$0xff] }
 0xa79   : > { %2461 = vadd.xlane.f32.xlu1 %v11021_v7 }
 0xa7c   : > { %2469 = vadd.xlane.f32.xlu0 %v11049_v50  ;;  %v2273_v50 = vmul.f32 1.442695, %v13472_v48 }
 0xa7d   : > { %2467 = vadd.xlane.f32.xlu1 %v11023_v45 }
 0xa7e   : > { %9521 = vpow2.f32 %v2273_v50 }
 0xa80   : > { %2473 = vadd.xlane.f32.xlu0 %v11059_v54  ;;  %v13474_v54 = vld [vmem:[#allocation21_spill] sm:$0xff] }
 0xa81   : > { %2471 = vadd.xlane.f32.xlu1 %v11052_v51  ;;  %v13473_v51 = vld [vmem:[#allocation18_spill] sm:$0xff] }
 0xa84   : > { %2477 = vadd.xlane.f32.xlu0 %v11071_v15  ;;  %v13476_v15 = vld [vmem:[#allocation22_spill] sm:$0xff] }
 0xa85   : > { %2475 = vadd.xlane.f32.xlu1 %v11062_v13  ;;  %v13475_v13 = vsub.f32 %v13473_v51, %v13474_v54  ;;  %v13491_v54 = vld [vmem:[#allocation28_spill] sm:$0xff] }
 0xa88   : > { %2481 = vadd.xlane.f32.xlu0 %v11080_v35 }
 0xa89   : > { %2479 = vadd.xlane.f32.xlu1 %v11069_v44  ;;  %v2269_v44 = vmul.f32 1.442695, %v13475_v13  ;;  %v13492_v13 = vld [vmem:[#allocation31_spill] sm:$0xff] }
 0xa8b   : > { %9523 = vpow2.f32 %v2269_v44  ;;  %v13493_v44 = vsub.f32 %v13491_v54, %v13492_v13  ;;  %v13508_v13 = vld [vmem:[#allocation116_spill] sm:$0xff] }
 0xa8c   : > { %2485 = vadd.xlane.f32.xlu0 %v11089_v21 }
 0xa8d   : > { %2483 = vadd.xlane.f32.xlu1 %v11078_v34  ;;  %v13477_v34 = vld [vmem:[#allocation24_spill] sm:$0xff] }
 0xa8e   : > { %v13478_v35 = vsub.f32 %v13476_v15, %v13477_v34  ;;  %v2281_v15 = vmul.f32 1.442695, %v13493_v44 }
 0xa90   : > { %2489 = vadd.xlane.f32.xlu0 %v11095_v47 }
 0xa91   : > { %2487 = vadd.xlane.f32.xlu1 %v11087_v52  ;;  %v2271_v52 = vmul.f32 1.442695, %v13478_v35 }
 0xa93   : > { %9525 = vpow2.f32 %v2271_v52 }
 0xa94   : > { %3609 = vadd.xlane.f32.xlu0 %v11445_v10 }
 0xa95   : > { %2491 = vadd.xlane.f32.xlu1 %v11093_v63 }
 0xa98   : > { %3611 = vadd.xlane.f32.xlu0 %v11453_v61 }
 0xa99   : > { %3607 = vadd.xlane.f32.xlu1 %v11443_v42 }
 0xa9c   : > { %3615 = vadd.xlane.f32.xlu0 %v11465_v39 }
 0xa9d   : > { %3613 = vadd.xlane.f32.xlu1 %v11449_v6  ;;  %v13480_v6 = vld [vmem:[#allocation23_spill] sm:$0xff] }
 0xa9e   : > { %v13481_v61 = vsub.f32 %v13479_v22, %v13480_v6  ;;  %13560 = vst [vmem:[#allocation23_spill] sm:$0xff] %v12119_v0 }
 0xaa0   : > { %3619 = vadd.xlane.f32.xlu0 %v11476_v27 }
 0xaa1   : > { %3617 = vadd.xlane.f32.xlu1 %v11462_v4  ;;  %v2275_v4 = vmul.f32 1.442695, %v13481_v61  ;;  %v13497_v61 = vld [vmem:[#allocation38_spill] sm:$0xff] }
 0xaa4   : > { %3623 = vadd.xlane.f32.xlu0 %v11485_v58  ;;  %v13482_v58 = vld [vmem:[#allocation25_spill] sm:$0xff] }
 0xaa5   : > { %3621 = vadd.xlane.f32.xlu1 %v11474_v24 }
 0xaa8   : > { %3627 = vadd.xlane.f32.xlu0 %v11494_v23 }
 0xaa9   : > { %3625 = vadd.xlane.f32.xlu1 %v11483_v43 }
 0xaac   : > { %3631 = vadd.xlane.f32.xlu0 %v11503_v32 }
 0xaad   : > { %3629 = vadd.xlane.f32.xlu1 %v11492_v16  ;;  %v13483_v16 = vld [vmem:[#allocation27_spill] sm:$0xff] }
 0xaae   : > { %v13484_v23 = vsub.f32 %v13482_v58, %v13483_v16  ;;  %v13501_v16 = vld [vmem:[#allocation115_spill] sm:$0xff] }
 0xab0   : > { %v4595_v7 = vpop.permute.xlu0 %4594  ;;  %3635 = vadd.xlane.f32.xlu0 %v11512_v20  ;;  %v13486_v20 = vld [vmem:[#allocation33_spill] sm:$0xff] }
 0xab1   : > { %v4672_v45 = vsub.f32 %v11620_v14, %v4595_v7  ;;  %3633 = vadd.xlane.f32.xlu1 %v11501_v2  ;;  %v2277_v2 = vmul.f32 1.442695, %v13484_v23 }
 0xab3   : > { %v4688_v47 = vmul.f32 1.442695, %v4672_v45  ;;  %v13489_v45 = vld [vmem:[#allocation29_spill] sm:$0xff] }
 0xab4   : > { %v4610_v21 = vpop.permute.xlu0 %4609  ;;  %v4600_v63 = vpop.permute.xlu1 %4599 }
 0xab5   : > { %v4675_v42 = vsub.f32 %v11623_v25, %v4610_v21  ;;  %v4673_v10 = vsub.f32 %v11625_v28, %v4600_v63  ;;  %3637 = vadd.xlane.f32.xlu1 %v11510_v12  ;;  %9527 = vpow2.f32 %v4688_v47  ;;  %v13485_v12 = vld [vmem:[#allocation30_spill] sm:$0xff]  ;;  %v13494_v21 = vld [vmem:[#allocation32_spill] sm:$0xff]  ;;  %v13495_v63 = vld [vmem:[#allocation35_spill] sm:$0xff] }
 0xab6   : > { %v13487_v14 = vsub.f32 %v13485_v12, %v13486_v20  ;;  %v13496_v47 = vsub.f32 %v13494_v21, %v13495_v63  ;;  %v13502_v12 = vld [vmem:[#allocation34_spill] sm:$0xff]  ;;  %v13503_v20 = vld [vmem:[#allocation37_spill] sm:$0xff] }
 0xab7   : > { %v4690_v39 = vmul.f32 1.442695, %v4673_v10  ;;  %v4694_v24 = vmul.f32 1.442695, %v4675_v42 }
 0xab8   : > { %v4605_v27 = vpop.permute.xlu1 %4604  ;;  %v2279_v25 = vmul.f32 1.442695, %v13487_v14  ;;  %v2285_v42 = vmul.f32 1.442695, %v13496_v47  ;;  %v13504_v14 = vsub.f32 %v13502_v12, %v13503_v20  ;;  %v13517_v12 = vld [vmem:[#allocation119_spill] sm:$0xff] }
 0xab9   : > { %v4674_v43 = vsub.f32 %v11618_v17, %v4605_v27  ;;  %9529 = vpow2.f32 %v4690_v39  ;;  %v13488_v17 = vld [vmem:[#allocation26_spill] sm:$0xff] }
 0xaba   : > { %9531 = vpow2.f32 %v2275_v4  ;;  %v13490_v38 = vsub.f32 %v13488_v17, %v13489_v45  ;;  %v13498_v4 = vld [vmem:[#allocation41_spill] sm:$0xff]  ;;  %v13506_v17 = vld [vmem:[#allocation39_spill] sm:$0xff] }
 0xabb   : > { %v4692_v32 = vmul.f32 1.442695, %v4674_v43  ;;  %9533 = vpow2.f32 %v4694_v24  ;;  %v13499_v39 = vsub.f32 %v13497_v61, %v13498_v4  ;;  %v13500_v43 = vld [vmem:[#allocation117_spill] sm:$0xff]  ;;  %v13513_v4 = vld [vmem:[#allocation46_spill] sm:$0xff] }
 0xabc   : > { %v4620_v28 = vpop.permute.xlu0 %4619  ;;  %v4615_v11 = vpop.permute.xlu1 %4614  ;;  %v2283_v48 = vmul.f32 1.442695, %v13490_v38 }
 0xabd   : > { %9535 = vpow2.f32 %v4692_v32  ;;  %v4677_v55 = vsub.f32 %v11636_v53, %v4620_v28  ;;  %v4676_v7 = vsub.f32 %v11631_v29, %v4615_v11  ;;  %v11896_v29 = vpop.eup %9521  ;;  %v2287_v24 = vmul.f32 1.442695, %v13499_v39  ;;  %v13514_v39 = vld [vmem:[#allocation48_spill] sm:$0xff] }
 0xabe   : > { %9537 = vpow2.f32 %v2277_v2  ;;  %v11901_v6 = vpop.eup %9523 }
 0xabf   : > { %v4698_v50 = vmul.f32 1.442695, %v4677_v55  ;;  %v4696_v51 = vmul.f32 1.442695, %v4676_v7  ;;  %9539 = vpow2.f32 %v2279_v25  ;;  %v2291_v25 = vmul.f32 1.442695, %v13504_v14 }
 0xac0   : > { %v4630_v34 = vpop.permute.xlu0 %4629  ;;  %v4625_v35 = vpop.permute.xlu1 %4624  ;;  %v13505_v7 = vld [vmem:[#allocation36_spill] sm:$0xff] }
 0xac1   : > { %9541 = vpow2.f32 %v4698_v50  ;;  %v4679_v52 = vsub.f32 %v11634_v41, %v4630_v34  ;;  %v4678_v53 = vsub.f32 %v11629_v5, %v4625_v35  ;;  %v11906_v5 = vpop.eup %9525  ;;  %v13507_v45 = vsub.f32 %v13505_v7, %v13506_v17 }
 0xac2   : > { %9543 = vpow2.f32 %v4696_v51  ;;  %v11910_v2 = vpop.eup %9527 }
 0xac3   : > { %9545 = vpow2.f32 %v2283_v48  ;;  %v4702_v10 = vmul.f32 1.442695, %v4679_v52  ;;  %v4700_v22 = vmul.f32 1.442695, %v4678_v53  ;;  %v2289_v38 = vmul.f32 1.442695, %v13507_v45 }
 0xac4   : > { %9547 = vpow2.f32 %v2281_v15  ;;  %v4640_v41 = vpop.permute.xlu0 %4639  ;;  %v4635_v27 = vpop.permute.xlu1 %4634  ;;  %v13509_v15 = vld [vmem:[#allocation114_spill] sm:$0xff]  ;;  %v13510_v52 = vld [vmem:[#allocation40_spill] sm:$0xff]  ;;  %v13511_v53 = vld [vmem:[#allocation43_spill] sm:$0xff] }
 0xac5   : > { %9549 = vpow2.f32 %v4702_v10  ;;  %v4681_v58 = vsub.f32 %v13500_v43, %v4640_v41  ;;  %v4680_v23 = vsub.f32 %v13501_v16, %v4635_v27  ;;  %v13512_v21 = vsub.f32 %v13510_v52, %v13511_v53  ;;  %v13516_v16 = vld [vmem:[#allocation121_spill] sm:$0xff]  ;;  %v9435_v52 = vld [vmem:[%s13208_s3 + $0xe8] sm:$0xff]  }
 0xac6   : > { %9551 = vpow2.f32 %v4700_v22  ;;  %2549 = vperm.xlu1 %9352, %v11906_v5   ;;  %2544 = vperm.xlu0 %9351, %v11901_v6   ;;  %v11914_v32 = vpop.eup %9529  ;;  %v9434_v22 = vld [vmem:[%s13208_s3 + $0xf0] sm:$0xff]  }
 0xac7   : > { %9553 = vpow2.f32 %v2285_v42  ;;  %v4706_v28 = vmul.f32 1.442695, %v4681_v58  ;;  %v4704_v11 = vmul.f32 1.442695, %v4680_v23  ;;  %v11919_v55 = vpop.eup %9531  ;;  %v4930_v51 = vpack.c.bf16 %v11914_v32, %v11910_v2 }
 0xac8   : > { %9555 = vpow2.f32 %v2287_v24  ;;  %v4650_v48 = vpop.permute.xlu0 %4649  ;;  %v4645_v50 = vpop.permute.xlu1 %4644  ;;  %v2293_v63 = vmul.f32 1.442695, %v13512_v21  ;;  %v13515_v24 = vsub.f32 %v13513_v4, %v13514_v39  ;;  %v13524_v21 = vld [vmem:[#allocation120_spill] sm:$0xff] }
 0xac9   : > { %v11926_v54 = vpop.eup %9533  ;;  %9557 = vpow2.f32 %v4706_v28  ;;  %v4683_v44 = vsub.f32 %v13508_v13, %v4650_v48  ;;  %v4682_v34 = vsub.f32 %v13509_v15, %v4645_v50  ;;  %8962 = vmatprep.mubr.bf16.mxu1 %v4930_v51  ;;  %v13518_v28 = vld [vmem:[#allocation42_spill] sm:$0xff]  ;;  %v13521_v50 = vld [vmem:[#allocation44_spill] sm:$0xff]  ;;  %v13522_v51 = vld [vmem:[#allocation47_spill] sm:$0xff] }
 0xaca   : > { %v11930_v35 = vpop.eup %9535  ;;  %9559 = vpow2.f32 %v4704_v11  ;;  %2554 = vperm.xlu1 %9352, %v11896_v29   ;;  %2559 = vperm.xlu0 %9351, %v11919_v55   ;;  %v2295_v41 = vmul.f32 1.442695, %v13515_v24  ;;  %v13519_v11 = vld [vmem:[#allocation45_spill] sm:$0xff]  ;;  %v13523_v13 = vsub.f32 %v13521_v50, %v13522_v51 }
 0xacb   : > { %9561 = vpow2.f32 %v2291_v25  ;;  %v4710_v47 = vmul.f32 1.442695, %v4683_v44  ;;  %v4708_v42 = vmul.f32 1.442695, %v4682_v34  ;;  %v4931_v10 = vpack.c.bf16 %v11926_v54, %v11930_v35  ;;  %v11942_v61 = vpop.eup %9537 }
 0xacc   : > { %9563 = vpow2.f32 %v2289_v38  ;;  %v4660_v27 = vpop.permute.xlu0 %4659  ;;  %v4655_v43 = vpop.permute.xlu1 %4654  ;;  %v13520_v7 = vsub.f32 %v13518_v28, %v13519_v11  ;;  %v13529_v11 = vld [vmem:[#allocation65_spill] sm:$0xff] }
 0xacd   : > { %v11947_v58 = vpop.eup %9539  ;;  %9565 = vpow2.f32 %v4710_v47  ;;  %v4685_v23 = vsub.f32 %v13516_v16, %v4660_v27  ;;  %v4684_v20 = vsub.f32 %v13517_v12, %v4655_v43  ;;  %8963 = vmatmul.mubr.bf16.vlgmr.msra.gmra.mxu1 %v4931_v10  ;;  %v13525_v47 = vld [vmem:[#allocation118_spill] sm:$0xff]  ;;  %v13526_v16 = vld [vmem:[#allocation68_spill] sm:$0xff] }
 0xace   : > { %v11951_v14 = vpop.eup %9541  ;;  %9567 = vpow2.f32 %v4708_v42  ;;  %8979 = vmatpush3.bf16.msra.mxu1 %v11783_v59  ;;  %2564 = vperm.xlu1 %9352, %v11942_v61   ;;  %v2299_v17 = vmul.f32 1.442695, %v13520_v7  ;;  %v2297_v59 = vmul.f32 1.442695, %v13523_v13  ;;  %v13530_v7 = vld [vmem:[#allocation66_spill] sm:$0xff]  ;;  %v9437_v13 = vld [vmem:[%s13208_s3 + $0xd8] sm:$0xff]  }
 0xacf   : > { %v11955_v25 = vpop.eup %9543  ;;  %9569 = vpow2.f32 %v2293_v63  ;;  %v4714_v45 = vmul.f32 1.442695, %v4685_v23  ;;  %v4712_v38 = vmul.f32 1.442695, %v4684_v20  ;;  %2569 = vperm.xlu0 %9351, %v11947_v58   ;;  %8980 = vmatprep.subr.bf16.mxu1 %v9434_v22  ;;  %v13527_v23 = vld [vmem:[#allocation70_spill] sm:$0xff] }
 0xad0   : > { %v11961_v48 = vpop.eup %9545  ;;  %9571 = vpow2.f32 %v2295_v41  ;;  %v4670_v44 = vpop.permute.xlu0 %4669  ;;  %v4932_v34 = vpack.c.bf16 %v11951_v14, %v11955_v25  ;;  %v13528_v12 = vsub.f32 %v13526_v16, %v13527_v23  ;;  %v9438_v23 = vld [vmem:[%s13208_s3 + $0xd0] sm:$0xff]  }
 0xad1   : > { %v4665_v15 = vpop.permute.xlu1 %4664  ;;  %v11971_v53 = vpop.eup %9547  ;;  %9573 = vpow2.f32 %v4714_v45  ;;  %v4687_v63 = vsub.f32 %v13524_v21, %v4670_v44  ;;  %v13532_v44 = vld [vmem:[#allocation71_spill] sm:$0xff] }
 0xad2   : > { %v4686_v42 = vsub.f32 %v13525_v47, %v4665_v15  ;;  %v11975_v10 = vpop.eup %9549  ;;  %9575 = vpow2.f32 %v4712_v38  ;;  %8966 = vmatprep.mubr.bf16.mxu1 %v4932_v34  ;;  %8981 = vmatpush3.bf16.msra.mxu1 %v9434_v22  ;;  %v9436_v22 = vld [vmem:[%s13208_s3 + $0xe0] sm:$0xff]   ;;  %v3416_v20 = vmul.f32 1.442695, %v13528_v12  ;;  %v13533_v15 = vld [vmem:[#allocation72_spill] sm:$0xff]  ;;  %v13536_v47 = vld [vmem:[#allocation69_spill] sm:$0xff] }
 0xad3   : > { %v11977_v4 = vpop.eup %9551  ;;  %9577 = vpow2.f32 %v2299_v17  ;;  %v4718_v39 = vmul.f32 1.442695, %v4687_v63  ;;  %2574 = vperm.xlu1 %9352, %v11971_v53   ;;  %2579 = vperm.xlu0 %9351, %v11961_v48   ;;  %v13531_v17 = vsub.f32 %v13529_v11, %v13530_v7  ;;  %v13534_v34 = vsub.f32 %v13532_v44, %v13533_v15  ;;  %v13535_v63 = vld [vmem:[#allocation67_spill] sm:$0xff] }
 0xad4   : > { %v4716_v24 = vmul.f32 1.442695, %v4686_v42  ;;  %v11981_v41 = vpop.eup %9553  ;;  %9579 = vpow2.f32 %v2297_v59  ;;  %8982 = vmatprep.subr.bf16.mxu1 %v9435_v52  ;;  %v4933_v27 = vpack.c.bf16 %v11975_v10, %v11977_v4  ;;  %v13537_v42 = vsub.f32 %v13535_v63, %v13536_v47  ;;  %v13539_v11 = vld [vmem:[#allocation75_spill] sm:$0xff] }
 0xad5   : > { %v11988_v43 = vpop.eup %9555  ;;  %9581 = vpow2.f32 %v4718_v39  ;;  %v3414_v45 = vmul.f32 1.442695, %v13531_v17  ;;  %v9439_v47 = vld [vmem:[%s13208_s3 + $0xc8] sm:$0xff]  }
 0xad6   : > { %v11993_v28 = vpop.eup %9557  ;;  %9583 = vpow2.f32 %v4716_v24  ;;  %8967 = vmatmul.mubr.bf16.gmra.mxu1 %v4933_v27  ;;  %v3420_v39 = vmul.f32 1.442695, %v13537_v42 }
 0xad7   : > { %v11998_v38 = vpop.eup %9559  ;;  %8983 = vmatpush3.bf16.msra.mxu1 %v9435_v52  ;;  %2584 = vperm.xlu1 %9352, %v11981_v41   ;;  %9585 = vpow2.f32 %v3416_v20  ;;  %v3418_v52 = vmul.f32 1.442695, %v13534_v34  ;;  %v13538_v20 = vld [vmem:[#allocation73_spill] sm:$0xff] }
 0xad8   : > { %v12001_v50 = vpop.eup %9561  ;;  %2589 = vperm.xlu0 %9351, %v11988_v43   ;;  %8984 = vmatprep.subr.bf16.mxu1 %v9436_v22  ;;  %v4934_v51 = vpack.c.bf16 %v11993_v28, %v11998_v38  ;;  %9587 = vpow2.f32 %v3414_v45  ;;  %v13541_v45 = vld [vmem:[#allocation74_spill] sm:$0xff] }
 0xad9   : > { %v12009_v59 = vpop.eup %9563  ;;  %9589 = vpow2.f32 %v3418_v52 }
 0xada   : > { %v12014_v21 = vpop.eup %9565  ;;  %8970 = vmatprep.mubr.bf16.mxu1 %v4934_v51  ;;  %9591 = vpow2.f32 %v3420_v39  ;;  %v13542_v51 = vld [vmem:[#allocation76_spill] sm:$0xff]  ;;  %v13544_v39 = vld [vmem:[#allocation77_spill] sm:$0xff] }
 0xadb   : > { %v12019_v24 = vpop.eup %9567  ;;  %8985 = vmatpush3.bf16.msra.mxu1 %v9436_v22  ;;  %2594 = vperm.xlu1 %9352, %v12009_v59   ;;  %v13540_v22 = vsub.f32 %v13538_v20, %v13539_v11  ;;  %v13543_v44 = vsub.f32 %v13541_v45, %v13542_v51  ;;  %v13549_v51 = vld [vmem:[#allocation81_spill] sm:$0xff] }
 0xadc   : > { %v12022_v27 = vpop.eup %9569  ;;  %2599 = vperm.xlu0 %9351, %v12001_v50   ;;  %8986 = vmatprep.subr.bf16.mxu1 %v9437_v13  ;;  %v4935_v16 = vpack.c.bf16 %v12014_v21, %v12019_v24 }
 0xadd   : > { %v12030_v12 = vpop.eup %9571  ;;  %v3422_v7 = vmul.f32 1.442695, %v13540_v22  ;;  %v3424_v15 = vmul.f32 1.442695, %v13543_v44  ;;  %v13550_v44 = vld [vmem:[#allocation83_spill] sm:$0xff] }
 0xade   : > { %v12035_v17 = vpop.eup %9573  ;;  %8971 = vmatmul.mubr.bf16.gmra.mxu1 %v4935_v16  ;;  %v13545_v16 = vld [vmem:[#allocation79_spill] sm:$0xff] }
 0xadf   : > { %v12040_v34 = vpop.eup %9575  ;;  %8987 = vmatpush3.bf16.msra.mxu1 %v9437_v13  ;;  %2604 = vperm.xlu1 %9352, %v12022_v27   ;;  %9593 = vpow2.f32 %v3422_v7  ;;  %v13546_v13 = vsub.f32 %v13544_v39, %v13545_v16  ;;  %v9440_v7 = vld [vmem:[%s13208_s3 + $0xc0] sm:$0xff]   ;;  %v13552_v16 = vld [vmem:[#allocation85_spill] sm:$0xff] }
 0xae0   : > { %v12043_v63 = vpop.eup %9577  ;;  %2609 = vperm.xlu0 %9351, %v12030_v12   ;;  %8988 = vmatprep.subr.bf16.mxu1 %v9438_v23  ;;  %v4936_v52 = vpack.c.bf16 %v12035_v17, %v12040_v34  ;;  %9595 = vpow2.f32 %v3424_v15  ;;  %v13551_v15 = vsub.f32 %v13549_v51, %v13550_v44  ;;  %v13555_v51 = vld [vmem:[#allocation113_spill] sm:$0xff] }
 0xae1   : > { %v12051_v42 = vpop.eup %9579  ;;  %v3426_v20 = vmul.f32 1.442695, %v13546_v13  ;;  %v13553_v13 = vld [vmem:[#allocation87_spill] sm:$0xff] }
 0xae2   : > { %v12056_v11 = vpop.eup %9581  ;;  %8974 = vmatprep.mubr.bf16.mxu1 %v4936_v52  ;;  %v3430_v52 = vmul.f32 1.442695, %v13551_v15  ;;  %v12089_v15 = vld [vmem:[%s10128_s23 + $0x8] sm:$0xff]  }
 0xae3   : > { %13547 = vst [vmem:[#allocation19_spill] sm:$0xff] %v12056_v11  ;;  %v12058_v22 = vpop.eup %9583  ;;  %8989 = vmatpush3.bf16.msra.mxu1 %v9438_v23  ;;  %2614 = vperm.xlu1 %9352, %v12051_v42   ;;  %9597 = vpow2.f32 %v3426_v20  ;;  %v13554_v20 = vsub.f32 %v13552_v16, %v13553_v13  ;;  %13556 = vst [vmem:[#allocation21_spill] sm:$0xff] %v12089_v15  ;;  %v12096_v16 = vld [vmem:[%s10128_s23 + $0x10] sm:$0xff]   ;;  %v12106_v13 = vld [vmem:[%s10128_s23 + $0x18] sm:$0xff]  }
 0xae4   : > { %13548 = vst [vmem:[#allocation18_spill] sm:$0xff] %v12058_v22  ;;  %2619 = vperm.xlu0 %9351, %v12043_v63   ;;  %8990 = vmatprep.subr.bf16.mxu1 %v9439_v47  ;;  %v4937_v45 = vpack.c.bf16 %v12056_v11, %v12058_v22  ;;  %v12070_v39 = vpop.eup %9585  ;;  %9599 = vpow2.f32 %v3430_v52  ;;  %13557 = vst [vmem:[#allocation22_spill] sm:$0xff] %v12096_v16  ;;  %v2431_v11 = vld [vmem:[#allocation4 + $0x10] sm:$0xff]  ;;  %v2429_v22 = vld [vmem:[#allocation4] sm:$0xff] }
 0xae5   : > { %v12072_v23 = vpop.eup %9587  ;;  %v3434_v19 = vmul.f32 1.442695, %v13554_v20  ;;  %13558 = vst [vmem:[#allocation24_spill] sm:$0xff] %v12106_v13  ;;  %v12111_v20 = vld [vmem:[%s10128_s23 + $0x20] sm:$0xff]  }
 0xae6   : > { %8975 = vmatmul.mubr.bf16.gmra.mxu1 %v4937_v45  ;;  %v12080_v44 = vpop.eup %9589  ;;  %13559 = vst [vmem:[#allocation20_spill] sm:$0xff] %v12111_v20 }
 0xae7   : > { %8991 = vmatpush3.bf16.msra.mxu1 %v9439_v47  ;;  %3695 = vperm.xlu1 %9352, %v12070_v39   ;;  %v12082_v45 = vpop.eup %9591  ;;  %9601 = vpow2.f32 %v3434_v19 }
 0xae8   : > { %3690 = vperm.xlu0 %9351, %v12072_v23   ;;  %8992 = vmatprep.subr.bf16.mxu1 %v9440_v7 }
 0xae9   : > { %8994 = vmatprep.mubr.bf16.mxu1 %v13555_v51  ;;  %v2430_v51 = vld [vmem:[#allocation4 + $0x8] sm:$0xff] }
 0xaea   : > { %v2446_v30 = vmul.f32 %v11906_v5, %v2430_v51  ;;  %v2445_v5 = vmul.f32 %v11901_v6, %v2429_v22  ;;  %v2433_v51 = vld [vmem:[#allocation4 + $0x20] sm:$0xff] }
 0xaeb   : > { %8993 = vmatpush3.bf16.msra.mxu1 %v9440_v7  ;;  %3700 = vperm.xlu1 %9352, %v12080_v44  }
 0xaec   : > { %3705 = vperm.xlu0 %9351, %v12082_v45   ;;  %v12086_v47 = vpop.eup %9593 }
 0xaed   : > { %v12092_v52 = vpop.eup %9595 }
 0xaee   : > { %8995 = vmatmul.mubr.bf16.vlgmr.msra.gmra.mxu1 %v12089_v15 }
 0xaef   : > { %3710 = vperm.xlu1 %9352, %v12086_v47   ;;  %8998 = vmatprep.mubr.bf16.mxu1 %v12096_v16 }
 0xaf0   : > { %3715 = vperm.xlu0 %9351, %v12092_v52   ;;  %v12100_v7 = vpop.eup %9597 }
 0xaf1   : > { %v12103_v19 = vpop.eup %9599 }
 0xaf3   : > { %3720 = vperm.xlu1 %9352, %v12100_v7  }
 0xaf4   : > { %v12114_v9 = vpop.eup %9601 }
 0xaf6   : > { %8999 = vmatmul.mubr.bf16.gmra.mxu1 %v12106_v13  ;;  %v12123_v13 = vld [vmem:[%s10128_s23 + $0x30] sm:$0xff]  }
 0xaf7   : > { %3730 = vperm.xlu1 %9352, %v12103_v19   ;;  %9002 = vmatprep.mubr.bf16.mxu1 %v12111_v20  ;;  %13561 = vst [vmem:[#allocation25_spill] sm:$0xff] %v12123_v13  ;;  %v2447_v20 = vmul.f32 %v11896_v29, %v2431_v11  ;;  %v12134_v29 = vld [vmem:[%s10128_s23 + $0x38] sm:$0xff]   ;;  %v2434_v11 = vld [vmem:[#allocation4 + $0x28] sm:$0xff] }
 0xafb   : > { %3740 = vperm.xlu1 %9352, %v12114_v9  }
 0xafd   : > { %v2464_v26 = vpop.xlane.xlu0 %2463 }
 0xafe   : > { %v2494_v37 = vadd.f32 %v2464_v26, %v2446_v30  ;;  %9003 = vmatmul.mubr.bf16.gmra.mxu1 %v12119_v0  ;;  %v2432_v26 = vld [vmem:[#allocation4 + $0x18] sm:$0xff]  ;;  %v2449_v0 = vmul.f32 %v11942_v61, %v2433_v51 }
 0xaff   : > { %9006 = vmatprep.mubr.bf16.mxu1 %v12123_v13 }
 0xb00   : > { %2511 = vst.msk [vmem:[#allocation4 + $0x8] sm:$0xff] %vm2509_vm4, %v2494_v37  ;;  %v2448_v37 = vmul.f32 %v11919_v55, %v2432_v26  ;;  %v2438_v26 = vld [vmem:[#allocation4 + $0x48] sm:$0xff] }
 0xb01   : > { %v2466_v16 = vpop.xlane.xlu0 %2465 }
 0xb02   : > { %v2495_v15 = vadd.f32 %v2466_v16, %v2447_v20  ;;  %v2462_v30 = vpop.xlane.xlu1 %2461  ;;  %v2437_v16 = vld [vmem:[#allocation4 + $0x40] sm:$0xff] }
 0xb03   : > { %v2493_v40 = vadd.f32 %v2462_v30, %v2445_v5  ;;  %v2453_v5 = vmul.f32 %v11981_v41, %v2437_v16  ;;  %v2454_v41 = vmul.f32 %v11988_v43, %v2438_v26  ;;  %v2443_v16 = vld [vmem:[#allocation4 + $0x70] sm:$0xff]  ;;  %v2442_v43 = vld [vmem:[#allocation4 + $0x68] sm:$0xff]  ;;  %v2444_v26 = vld [vmem:[#allocation4 + $0x78] sm:$0xff] }
 0xb04   : > { %2512 = vst.msk [vmem:[#allocation4 + $0x10] sm:$0xff] %vm2509_vm4, %v2495_v15  ;;  %v2451_v15 = vmul.f32 %v11971_v53, %v2435_v46  ;;  %v2439_v46 = vld [vmem:[#allocation4 + $0x50] sm:$0xff] }
 0xb05   : > { %2510 = vst.msk [vmem:[#allocation4] sm:$0xff] %vm2509_vm4, %v2493_v40  ;;  %v2470_v13 = vpop.xlane.xlu0 %2469  ;;  %v2450_v40 = vmul.f32 %v11947_v58, %v2434_v11  ;;  %v2441_v11 = vld [vmem:[#allocation4 + $0x60] sm:$0xff] }
 0xb06   : > { %v2497_v60 = vadd.f32 %v2470_v13, %v2449_v0  ;;  %9007 = vmatmul.mubr.bf16.gmra.mxu1 %v12134_v29  ;;  %v2468_v6 = vpop.xlane.xlu1 %2467  ;;  %v2436_v0 = vld [vmem:[#allocation4 + $0x38] sm:$0xff] }
 0xb07   : > { %v2496_v22 = vadd.f32 %v2468_v6, %v2448_v37  ;;  %v2455_v37 = vmul.f32 %v12009_v59, %v2439_v46  ;;  %v3576_v46 = vld [vmem:[#allocation4 + $0x88] sm:$0xff] }
 0xb08   : > { %2514 = vst.msk [vmem:[#allocation4 + $0x20] sm:$0xff] %vm2509_vm4, %v2497_v60  ;;  %v2452_v60 = vmul.f32 %v11961_v48, %v2436_v0  ;;  %v2440_v48 = vld [vmem:[#allocation4 + $0x58] sm:$0xff] }
 0xb09   : > { %2513 = vst.msk [vmem:[#allocation4 + $0x18] sm:$0xff] %vm2509_vm4, %v2496_v22  ;;  %v2474_v61 = vpop.xlane.xlu0 %2473  ;;  %v2456_v59 = vmul.f32 %v12001_v50, %v2440_v48  ;;  %v2458_v50 = vmul.f32 %v12030_v12, %v2442_v43  ;;  %v2460_v12 = vmul.f32 %v12043_v63, %v2444_v26  ;;  %v13572_v63 = vld [vmem:[#allocation88_spill] sm:$0xff] }
 0xb0a   : > { %v2499_v55 = vadd.f32 %v2474_v61, %v2451_v15  ;;  %v2472_v20 = vpop.xlane.xlu1 %2471 }
 0xb0b   : > { %v2498_v13 = vadd.f32 %v2472_v20, %v2450_v40 }
 0xb0c   : > { %2516 = vst.msk [vmem:[#allocation4 + $0x30] sm:$0xff] %vm2509_vm4, %v2499_v55 }
 0xb0d   : > { %2515 = vst.msk [vmem:[#allocation4 + $0x28] sm:$0xff] %vm2509_vm4, %v2498_v13  ;;  %v2478_v51 = vpop.xlane.xlu0 %2477  ;;  %v13562_v13 = vld [vmem:[#allocation78_spill] sm:$0xff] }
 0xb0e   : > { %v2501_v53 = vadd.f32 %v2478_v51, %v2453_v5  ;;  %v2476_v30 = vpop.xlane.xlu1 %2475  ;;  %v13563_v5 = vld [vmem:[#allocation80_spill] sm:$0xff] }
 0xb0f   : > { %4757 = vadd.xlane.f32.xlu0 %v11930_v35  ;;  %v2500_v58 = vadd.f32 %v2476_v30, %v2452_v60  ;;  %v2457_v35 = vmul.f32 %v12022_v27, %v2441_v11  ;;  %v13564_v51 = vsub.f32 %v13562_v13, %v13563_v5  ;;  %v3578_v5 = vld [vmem:[#allocation4 + $0x98] sm:$0xff] }
 0xb10   : > { %2518 = vst.msk [vmem:[#allocation4 + $0x40] sm:$0xff] %vm2509_vm4, %v2501_v53 }
 0xb11   : > { %2517 = vst.msk [vmem:[#allocation4 + $0x38] sm:$0xff] %vm2509_vm4, %v2500_v58  ;;  %v2482_v6 = vpop.xlane.xlu0 %2481  ;;  %v3428_v27 = vmul.f32 1.442695, %v13564_v51  ;;  %v13565_v58 = vld [vmem:[#allocation82_spill] sm:$0xff] }
 0xb12   : > { %v2503_v22 = vadd.f32 %v2482_v6, %v2455_v37  ;;  %v2480_v15 = vpop.xlane.xlu1 %2479  ;;  %v13566_v37 = vld [vmem:[#allocation84_spill] sm:$0xff] }
 0xb13   : > { %4765 = vadd.xlane.f32.xlu0 %v11977_v4  ;;  %v2502_v61 = vadd.f32 %v2480_v15, %v2454_v41  ;;  %v2459_v4 = vmul.f32 %v12051_v42, %v2443_v16  ;;  %v3592_v42 = vmul.f32 %v12070_v39, %v3576_v46  ;;  %9603 = vpow2.f32 %v3428_v27  ;;  %v13568_v39 = vld [vmem:[#allocation89_spill] sm:$0xff]  ;;  %v13575_v27 = vld [vmem:[#allocation95_spill] sm:$0xff] }
 0xb14   : > { %2520 = vst.msk [vmem:[#allocation4 + $0x50] sm:$0xff] %vm2509_vm4, %v2503_v22  ;;  %v13567_v6 = vsub.f32 %v13565_v58, %v13566_v37  ;;  %v3577_v22 = vld [vmem:[#allocation4 + $0x90] sm:$0xff]  ;;  %v3580_v37 = vld [vmem:[#allocation4 + $0xa8] sm:$0xff] }
 0xb15   : > { %2519 = vst.msk [vmem:[#allocation4 + $0x48] sm:$0xff] %vm2509_vm4, %v2502_v61  ;;  %v2486_v40 = vpop.xlane.xlu0 %2485  ;;  %v3575_v61 = vld [vmem:[#allocation4 + $0x80] sm:$0xff]  ;;  %v3593_v16 = vmul.f32 %v12080_v44, %v3577_v22  ;;  %v13574_v44 = vld [vmem:[#allocation93_spill] sm:$0xff] }
 0xb16   : > { %v2505_v55 = vadd.f32 %v2486_v40, %v2457_v35  ;;  %v2484_v20 = vpop.xlane.xlu1 %2483  ;;  %v3432_v41 = vmul.f32 1.442695, %v13567_v6  ;;  %v13569_v35 = vld [vmem:[#allocation91_spill] sm:$0xff] }
 0xb17   : > { %4761 = vadd.xlane.f32.xlu0 %v11955_v25  ;;  %v2504_v0 = vadd.f32 %v2484_v20, %v2456_v59  ;;  %v13570_v40 = vsub.f32 %v13568_v39, %v13569_v35  ;;  %v3582_v39 = vld [vmem:[#allocation4 + $0xb8] sm:$0xff] }
 0xb18   : > { %2522 = vst.msk [vmem:[#allocation4 + $0x60] sm:$0xff] %vm2509_vm4, %v2505_v55  ;;  %9605 = vpow2.f32 %v3432_v41  ;;  %v13571_v55 = vld [vmem:[#allocation86_spill] sm:$0xff] }
 0xb19   : > { %2521 = vst.msk [vmem:[#allocation4 + $0x58] sm:$0xff] %vm2509_vm4, %v2504_v0  ;;  %v2490_v60 = vpop.xlane.xlu0 %2489  ;;  %v3438_v59 = vmul.f32 1.442695, %v13570_v40  ;;  %v13573_v20 = vsub.f32 %v13571_v55, %v13572_v63  ;;  %v13580_v41 = vld [vmem:[#allocation94_spill] sm:$0xff] }
 0xb1a   : > { %v2507_v53 = vadd.f32 %v2490_v60, %v2459_v4  ;;  %v2488_v30 = vpop.xlane.xlu1 %2487  ;;  %v13576_v60 = vsub.f32 %v13574_v44, %v13575_v27 }
 0xb1b   : > { %4773 = vadd.xlane.f32.xlu0 %v12019_v24  ;;  %v2506_v25 = vadd.f32 %v2488_v30, %v2458_v50  ;;  %v3436_v43 = vmul.f32 1.442695, %v13573_v20  ;;  %9607 = vpow2.f32 %v3438_v59  ;;  %v3584_v20 = vld [vmem:[#allocation4 + $0xc8] sm:$0xff] }
 0xb1c   : > { %2524 = vst.msk [vmem:[#allocation4 + $0x70] sm:$0xff] %vm2509_vm4, %v2507_v53  ;;  %v3442_v50 = vmul.f32 1.442695, %v13576_v60  ;;  %v13578_v53 = vld [vmem:[#allocation92_spill] sm:$0xff] }
 0xb1d   : > { %2523 = vst.msk [vmem:[#allocation4 + $0x68] sm:$0xff] %vm2509_vm4, %v2506_v25  ;;  %v3610_v11 = vpop.xlane.xlu0 %3609  ;;  %9609 = vpow2.f32 %v3436_v43  ;;  %v3581_v25 = vld [vmem:[#allocation4 + $0xb0] sm:$0xff] }
 0xb1e   : > { %v3640_v15 = vadd.f32 %v3610_v11, %v3592_v42  ;;  %v2492_v48 = vpop.xlane.xlu1 %2491  ;;  %9611 = vpow2.f32 %v3442_v50  ;;  %v13581_v11 = vld [vmem:[#allocation96_spill] sm:$0xff] }
 0xb1f   : > { %4769 = vadd.xlane.f32.xlu0 %v11998_v38  ;;  %4753 = vadd.xlane.f32.xlu1 %v11910_v2  ;;  %v2508_v24 = vadd.f32 %v2492_v48, %v2460_v12  ;;  %v3591_v38 = vmul.f32 %v12072_v23, %v3575_v61  ;;  %v3579_v2 = vld [vmem:[#allocation4 + $0xa0] sm:$0xff]  ;;  %v13582_v12 = vsub.f32 %v13580_v41, %v13581_v11  ;;  %v3589_v50 = vld [vmem:[#allocation4 + $0xf0] sm:$0xff] }
 0xb20   : > { %3656 = vst.msk [vmem:[#allocation4 + $0x88] sm:$0xff] %vm2509_vm4, %v3640_v15  ;;  %v3595_v46 = vmul.f32 %v12086_v47, %v3579_v2  ;;  %v13577_v23 = vld [vmem:[#allocation90_spill] sm:$0xff]  ;;  %v3597_v47 = vmul.f32 %v12100_v7, %v3581_v25  ;;  %v3596_v15 = vmul.f32 %v12092_v52, %v3580_v37  ;;  %v12203_v61 = vpop.eup %9603  ;;  %v3585_v52 = vld [vmem:[#allocation4 + $0xd0] sm:$0xff]  ;;  %v3590_v37 = vld [vmem:[#allocation4 + $0xf8] sm:$0xff] }
 0xb21   : > { %2525 = vst.msk [vmem:[#allocation4 + $0x78] sm:$0xff] %vm2509_vm4, %v2508_v24  ;;  %v3612_v0 = vpop.xlane.xlu0 %3611  ;;  %v13579_v30 = vsub.f32 %v13577_v23, %v13578_v53  ;;  %v3444_v22 = vmul.f32 1.442695, %v13582_v12  ;;  %v3583_v48 = vld [vmem:[#allocation4 + $0xc0] sm:$0xff]  ;;  %v3598_v59 = vmul.f32 %v12203_v61, %v3582_v39  ;;  %v3601_v43 = vmul.f32 %v12114_v9, %v3585_v52  ;;  %v2527_v12 = vld [vmem:[#allocation5 + $0x8] sm:$0xff]  ;;  %v2528_v39 = vld [vmem:[#allocation5 + $0x10] sm:$0xff] }
 0xb22   : > { %v3641_v4 = vadd.f32 %v3612_v0, %v3593_v16  ;;  %v3608_v13 = vpop.xlane.xlu1 %3607  ;;  %v3599_v7 = vmul.f32 %v12103_v19, %v3583_v48  ;;  %v3587_v2 = vld [vmem:[#allocation4 + $0xe0] sm:$0xff] }
 0xb23   : > { %4777 = vadd.xlane.f32.xlu0 %v12040_v34  ;;  %4759 = vadd.xlane.f32.xlu1 %v11926_v54  ;;  %v3639_v51 = vadd.f32 %v3608_v13, %v3591_v38  ;;  %v3440_v26 = vmul.f32 1.442695, %v13579_v30  ;;  %v3594_v54 = vmul.f32 %v12082_v45, %v3578_v5  ;;  %v3588_v30 = vld [vmem:[#allocation4 + $0xe8] sm:$0xff]  ;;  %v2526_v11 = vld [vmem:[#allocation5] sm:$0xff] }
 0xb24   : > { %3657 = vst.msk [vmem:[#allocation4 + $0x90] sm:$0xff] %vm2509_vm4, %v3641_v4 }
 0xb25   : > { %3655 = vst.msk [vmem:[#allocation4 + $0x80] sm:$0xff] %vm2509_vm4, %v3639_v51  ;;  %v3616_v34 = vpop.xlane.xlu0 %3615  ;;  %9613 = vpow2.f32 %v3440_v26  ;;  %v12210_v16 = vpop.eup %9605  ;;  %v3586_v51 = vld [vmem:[#allocation4 + $0xd8] sm:$0xff] }
 0xb26   : > { %v3643_v42 = vadd.f32 %v3616_v34, %v3595_v46  ;;  %v3614_v58 = vpop.xlane.xlu1 %3613  ;;  %9615 = vpow2.f32 %v3444_v22  ;;  %v3600_v38 = vmul.f32 %v12210_v16, %v3584_v20  ;;  %v2530_v20 = vld [vmem:[#allocation5 + $0x20] sm:$0xff] }
 0xb27   : > { %4755 = vadd.xlane.f32.xlu1 %v11914_v32  ;;  %v3642_v6 = vadd.f32 %v3614_v58, %v3594_v54 }
 0xb28   : > { %3659 = vst.msk [vmem:[#allocation4 + $0xa0] sm:$0xff] %vm2509_vm4, %v3643_v42  ;;  %v12215_v19 = vpop.eup %9607 }
 0xb29   : > { %3658 = vst.msk [vmem:[#allocation4 + $0x98] sm:$0xff] %vm2509_vm4, %v3642_v6  ;;  %v3620_v45 = vpop.xlane.xlu0 %3619  ;;  %v3603_v9 = vmul.f32 %v12215_v19, %v3587_v2 }
 0xb2a   : > { %v3645_v32 = vadd.f32 %v3620_v45, %v3597_v47  ;;  %v3618_v24 = vpop.xlane.xlu1 %3617  ;;  %v12219_v4 = vpop.eup %9609 }
 0xb2b   : > { %4767 = vadd.xlane.f32.xlu1 %v11975_v10  ;;  %v3644_v35 = vadd.f32 %v3618_v24, %v3596_v15  ;;  %v12224_v44 = vpop.eup %9611  ;;  %v3602_v60 = vmul.f32 %v12219_v4, %v3586_v51 }
 0xb2c   : > { %3661 = vst.msk [vmem:[#allocation4 + $0xb0] sm:$0xff] %vm2509_vm4, %v3645_v32  ;;  %v3605_v26 = vmul.f32 %v12224_v44, %v3589_v50  ;;  %v13583_v32 = vld [vmem:[#allocation50_spill] sm:$0xff] }
 0xb2d   : > { %3660 = vst.msk [vmem:[#allocation4 + $0xa8] sm:$0xff] %vm2509_vm4, %v3644_v35  ;;  %v3624_v40 = vpop.xlane.xlu0 %3623  ;;  %v13584_v35 = vld [vmem:[#allocation52_spill] sm:$0xff]  ;;  %v13588_v50 = vld [vmem:[#allocation54_spill] sm:$0xff] }
 0xb2e   : > { %v3647_v55 = vadd.f32 %v3624_v40, %v3599_v7  ;;  %v3622_v63 = vpop.xlane.xlu1 %3621 }
 0xb2f   : > { %4763 = vadd.xlane.f32.xlu1 %v11951_v14  ;;  %v3646_v10 = vadd.f32 %v3622_v63, %v3598_v59  ;;  %v2531_v63 = vld [vmem:[#allocation5 + $0x28] sm:$0xff] }
 0xb30   : > { %3663 = vst.msk [vmem:[#allocation4 + $0xc0] sm:$0xff] %vm2509_vm4, %v3647_v55 }
 0xb31   : > { %3662 = vst.msk [vmem:[#allocation4 + $0xb8] sm:$0xff] %vm2509_vm4, %v3646_v10  ;;  %v3628_v0 = vpop.xlane.xlu0 %3627  ;;  %v13585_v10 = vld [vmem:[#allocation51_spill] sm:$0xff] }
 0xb32   : > { %v3649_v13 = vadd.f32 %v3628_v0, %v3601_v43  ;;  %v3626_v5 = vpop.xlane.xlu1 %3625  ;;  %v12228_v46 = vpop.eup %9613  ;;  %v13586_v0 = vld [vmem:[#allocation49_spill] sm:$0xff] }
 0xb33   : > { %4775 = vadd.xlane.f32.xlu1 %v12014_v21  ;;  %v3648_v14 = vadd.f32 %v3626_v5, %v3600_v38  ;;  %v3604_v54 = vmul.f32 %v12228_v46, %v3588_v30  ;;  %v12235_v25 = vpop.eup %9615 }
 0xb34   : > { %3665 = vst.msk [vmem:[#allocation4 + $0xd0] sm:$0xff] %vm2509_vm4, %v3649_v13 }
 0xb35   : > { %3664 = vst.msk [vmem:[#allocation4 + $0xc8] sm:$0xff] %vm2509_vm4, %v3648_v14  ;;  %v3632_v27 = vpop.xlane.xlu0 %3631  ;;  %v2533_v14 = vld [vmem:[#allocation5 + $0x38] sm:$0xff] }
 0xb36   : > { %v3651_v23 = vadd.f32 %v3632_v27, %v3603_v9  ;;  %v3630_v53 = vpop.xlane.xlu1 %3629  ;;  %v2532_v9 = vld [vmem:[#allocation5 + $0x30] sm:$0xff] }
 0xb37   : > { %4771 = vadd.xlane.f32.xlu1 %v11993_v28  ;;  %v3650_v21 = vadd.f32 %v3630_v53, %v3602_v60  ;;  %v3606_v28 = vmul.f32 %v12235_v25, %v3590_v37  ;;  %v13587_v27 = vld [vmem:[#allocation56_spill] sm:$0xff] }
 0xb38   : > { %3667 = vst.msk [vmem:[#allocation4 + $0xe0] sm:$0xff] %vm2509_vm4, %v3651_v23 }
 0xb39   : > { %3666 = vst.msk [vmem:[#allocation4 + $0xd8] sm:$0xff] %vm2509_vm4, %v3650_v21  ;;  %v3636_v34 = vpop.xlane.xlu0 %3635 }
 0xb3a   : > { %v3653_v42 = vadd.f32 %v3636_v34, %v3605_v26  ;;  %v3634_v58 = vpop.xlane.xlu1 %3633  ;;  %v2534_v34 = vld [vmem:[#allocation5 + $0x40] sm:$0xff] }
 0xb3b   : > { %4779 = vadd.xlane.f32.xlu1 %v12035_v17  ;;  %v3652_v6 = vadd.f32 %v3634_v58, %v3604_v54  ;;  %v2529_v17 = vld [vmem:[#allocation5 + $0x18] sm:$0xff]  ;;  %v13589_v54 = vld [vmem:[#allocation55_spill] sm:$0xff] }
 0xb3c   : > { %3669 = vst.msk [vmem:[#allocation4 + $0xf0] sm:$0xff] %vm2509_vm4, %v3653_v42  ;;  %v13590_v58 = vld [vmem:[#allocation53_spill] sm:$0xff] }
 0xb3d   : > { %3668 = vst.msk [vmem:[#allocation4 + $0xe8] sm:$0xff] %vm2509_vm4, %v3652_v6  ;;  %v2535_v6 = vld [vmem:[#allocation5 + $0x48] sm:$0xff] }
 0xb3e   : > { %v3638_v47 = vpop.xlane.xlu1 %3637 }
 0xb3f   : > { %v3654_v41 = vadd.f32 %v3638_v47, %v3606_v28 }
 0xb41   : > { %3670 = vst.msk [vmem:[#allocation4 + $0xf8] sm:$0xff] %vm2509_vm4, %v3654_v41  ;;  %v2545_v22 = vpop.permute.xlu0 %2544 }
 0xb42   : > { %v2622_v45 = vmul.f32 %v2545_v22, %v2526_v11  ;;  %v2550_v15 = vpop.permute.xlu1 %2549  ;;  %v13591_v22 = vld [vmem:[#allocation58_spill] sm:$0xff] }
 0xb43   : > { %v2623_v48 = vmul.f32 %v2550_v15, %v2527_v12  ;;  %v2536_v12 = vld [vmem:[#allocation5 + $0x50] sm:$0xff]  ;;  %v2537_v15 = vld [vmem:[#allocation5 + $0x58] sm:$0xff] }
 0xb44   : > { %v2743_v24 = vadd.f32 %v13583_v32, %v2622_v45 }
 0xb45   : > { %v2744_v7 = vadd.f32 %v13584_v35, %v2623_v48  ;;  %v2560_v40 = vpop.permute.xlu0 %2559  ;;  %v13592_v48 = vld [vmem:[#allocation60_spill] sm:$0xff] }
 0xb46   : > { %2759 = vst.msk [vmem:[#allocation5] sm:$0xff] %vm2043_vm3, %v2743_v24  ;;  %v2555_v59 = vpop.permute.xlu1 %2554  ;;  %v2625_v52 = vmul.f32 %v2560_v40, %v2529_v17  ;;  %v13593_v40 = vld [vmem:[#allocation57_spill] sm:$0xff] }
 0xb47   : > { %2760 = vst.msk [vmem:[#allocation5 + $0x8] sm:$0xff] %vm2043_vm3, %v2744_v7  ;;  %v2624_v55 = vmul.f32 %v2555_v59, %v2528_v39  ;;  %v2538_v7 = vld [vmem:[#allocation5 + $0x60] sm:$0xff] }
 0xb48   : > { %v2746_v43 = vadd.f32 %v13585_v10, %v2625_v52  ;;  %v2539_v52 = vld [vmem:[#allocation5 + $0x68] sm:$0xff] }
 0xb49   : > { %v2745_v38 = vadd.f32 %v13586_v0, %v2624_v55  ;;  %v13594_v55 = vld [vmem:[#allocation59_spill] sm:$0xff] }
 0xb4a   : > { %v2570_v2 = vpop.permute.xlu0 %2569  ;;  %v2565_v13 = vpop.permute.xlu1 %2564  ;;  %2762 = vst.msk [vmem:[#allocation5 + $0x18] sm:$0xff] %vm2043_vm3, %v2746_v43 }
 0xb4b   : > { %2761 = vst.msk [vmem:[#allocation5 + $0x10] sm:$0xff] %vm2043_vm3, %v2745_v38  ;;  %v2627_v5 = vmul.f32 %v2570_v2, %v2531_v63  ;;  %v2626_v51 = vmul.f32 %v2565_v13, %v2530_v20  ;;  %v2540_v38 = vld [vmem:[#allocation5 + $0x70] sm:$0xff]  ;;  %v13595_v2 = vld [vmem:[#allocation62_spill] sm:$0xff] }
 0xb4d   : > { %v2748_v60 = vadd.f32 %v13587_v27, %v2627_v5  ;;  %v2747_v23 = vadd.f32 %v13588_v50, %v2626_v51  ;;  %v2541_v5 = vld [vmem:[#allocation5 + $0x78] sm:$0xff]  ;;  %v13596_v51 = vld [vmem:[#allocation64_spill] sm:$0xff] }
 0xb4e   : > { %v2580_v53 = vpop.permute.xlu0 %2579  ;;  %v2575_v30 = vpop.permute.xlu1 %2574 }
 0xb4f   : > { %2764 = vst.msk [vmem:[#allocation5 + $0x28] sm:$0xff] %vm2043_vm3, %v2748_v60  ;;  %2763 = vst.msk [vmem:[#allocation5 + $0x20] sm:$0xff] %vm2043_vm3, %v2747_v23  ;;  %v2629_v21 = vmul.f32 %v2580_v53, %v2533_v14  ;;  %v2628_v26 = vmul.f32 %v2575_v30, %v2532_v9  ;;  %v3673_v23 = vld [vmem:[#allocation5 + $0x88] sm:$0xff]  ;;  %v13597_v53 = vld [vmem:[#allocation61_spill] sm:$0xff] }
 0xb51   : > { %v2750_v42 = vadd.f32 %v13589_v54, %v2629_v21  ;;  %v2749_v37 = vadd.f32 %v13590_v58, %v2628_v26  ;;  %v3672_v21 = vld [vmem:[#allocation5 + $0x80] sm:$0xff]  ;;  %v13598_v26 = vld [vmem:[#allocation63_spill] sm:$0xff] }
 0xb52   : > { %v2585_v28 = vpop.permute.xlu1 %2584 }
 0xb53   : > { %2766 = vst.msk [vmem:[#allocation5 + $0x38] sm:$0xff] %vm2043_vm3, %v2750_v42  ;;  %2765 = vst.msk [vmem:[#allocation5 + $0x30] sm:$0xff] %vm2043_vm3, %v2749_v37  ;;  %v2590_v47 = vpop.permute.xlu0 %2589  ;;  %v2630_v41 = vmul.f32 %v2585_v28, %v2534_v34  ;;  %v13599_v28 = vld [vmem:[#allocation100_spill] sm:$0xff] }
 0xb54   : > { %v2631_v11 = vmul.f32 %v2590_v47, %v2535_v6  ;;  %v3674_v6 = vld [vmem:[#allocation5 + $0x90] sm:$0xff] }
 0xb55   : > { %v2751_v45 = vadd.f32 %v13591_v22, %v2630_v41  ;;  %v3675_v41 = vld [vmem:[#allocation5 + $0x98] sm:$0xff] }
 0xb56   : > { %v2752_v32 = vadd.f32 %v13592_v48, %v2631_v11  ;;  %v2595_v24 = vpop.permute.xlu1 %2594  ;;  %v13600_v11 = vld [vmem:[#allocation98_spill] sm:$0xff] }
 0xb57   : > { %2767 = vst.msk [vmem:[#allocation5 + $0x40] sm:$0xff] %vm2043_vm3, %v2751_v45  ;;  %v2600_v17 = vpop.permute.xlu0 %2599  ;;  %v2632_v39 = vmul.f32 %v2595_v24, %v2536_v12  ;;  %v13601_v24 = vld [vmem:[#allocation97_spill] sm:$0xff] }
 0xb58   : > { %2768 = vst.msk [vmem:[#allocation5 + $0x48] sm:$0xff] %vm2043_vm3, %v2752_v32  ;;  %v2633_v35 = vmul.f32 %v2600_v17, %v2537_v15  ;;  %v3676_v32 = vld [vmem:[#allocation5 + $0xa0] sm:$0xff] }
 0xb59   : > { %v2753_v59 = vadd.f32 %v13593_v40, %v2632_v39  ;;  %v3677_v39 = vld [vmem:[#allocation5 + $0xa8] sm:$0xff] }
 0xb5a   : > { %v2754_v63 = vadd.f32 %v13594_v55, %v2633_v35  ;;  %v2605_v20 = vpop.permute.xlu1 %2604  ;;  %v13602_v35 = vld [vmem:[#allocation99_spill] sm:$0xff] }
 0xb5b   : > { %2769 = vst.msk [vmem:[#allocation5 + $0x50] sm:$0xff] %vm2043_vm3, %v2753_v59  ;;  %v2610_v10 = vpop.permute.xlu0 %2609  ;;  %v2634_v43 = vmul.f32 %v2605_v20, %v2538_v7  ;;  %v13603_v20 = vld [vmem:[#allocation102_spill] sm:$0xff] }
 0xb5c   : > { %2770 = vst.msk [vmem:[#allocation5 + $0x58] sm:$0xff] %vm2043_vm3, %v2754_v63  ;;  %v2635_v0 = vmul.f32 %v2610_v10, %v2539_v52  ;;  %v3678_v63 = vld [vmem:[#allocation5 + $0xb0] sm:$0xff] }
 0xb5d   : > { %v2755_v13 = vadd.f32 %v13595_v2, %v2634_v43  ;;  %v13604_v43 = vld [vmem:[#allocation104_spill] sm:$0xff] }
 0xb5e   : > { %v2756_v14 = vadd.f32 %v13596_v51, %v2635_v0  ;;  %v2615_v9 = vpop.permute.xlu1 %2614 }
 0xb5f   : > { %2771 = vst.msk [vmem:[#allocation5 + $0x60] sm:$0xff] %vm2043_vm3, %v2755_v13  ;;  %v2620_v27 = vpop.permute.xlu0 %2619  ;;  %v2636_v60 = vmul.f32 %v2615_v9, %v2540_v38  ;;  %v3680_v13 = vld [vmem:[#allocation5 + $0xc0] sm:$0xff] }
 0xb60   : > { %2772 = vst.msk [vmem:[#allocation5 + $0x68] sm:$0xff] %vm2043_vm3, %v2756_v14  ;;  %v2637_v50 = vmul.f32 %v2620_v27, %v2541_v5  ;;  %v13605_v5 = vld [vmem:[#allocation101_spill] sm:$0xff]  ;;  %v3682_v27 = vld [vmem:[#allocation5 + $0xd0] sm:$0xff] }
 0xb61   : > { %v2757_v30 = vadd.f32 %v13597_v53, %v2636_v60  ;;  %v13606_v60 = vld [vmem:[#allocation106_spill] sm:$0xff] }
 0xb62   : > { %v2758_v34 = vadd.f32 %v13598_v26, %v2637_v50  ;;  %v3696_v54 = vpop.permute.xlu1 %3695  ;;  %v13608_v26 = vsub.f32 %v11686_v36, %v11699_v1  ;;  %v13612_v36 = vsub.f32 %v11756_v49, %v11771_v62  ;;  %v13620_v62 = vld [vmem:[#allocation135_spill] sm:$0xff] }
 0xb63   : > { %2773 = vst.msk [vmem:[#allocation5 + $0x70] sm:$0xff] %vm2043_vm3, %v2757_v30  ;;  %v3691_v42 = vpop.permute.xlu0 %3690  ;;  %v3769_v58 = vmul.f32 %v3696_v54, %v3673_v23  ;;  %v13607_v30 = vld [vmem:[#allocation105_spill] sm:$0xff]  ;;  %v9441_v54 = vld [vmem:[#allocation2 + $0xc0] sm:$0xff]  }
 0xb64   : > { %2774 = vst.msk [vmem:[#allocation5 + $0x78] sm:$0xff] %vm2043_vm3, %v2758_v34  ;;  %v3768_v37 = vmul.f32 %v3691_v42, %v3672_v21  ;;  %v4564_v34 = vmul.f32 1.442695, %v13608_v26  ;;  %v13609_v42 = vsub.f32 %v11716_v33, %v11731_v18  ;;  %9058 = vmatprep.mubr.msk.bf16.mxu1 %vm2043_vm3, %v9441_v54  ;;  %v4580_v1 = vmul.f32 1.442695, %v13612_v36 }
 0xb65   : > { %v3890_v47 = vadd.f32 %v13599_v28, %v3769_v58  ;;  %v13615_v33 = vsub.f32 %v11736_v8, %v11751_v3 }
 0xb66   : > { %v3889_v12 = vadd.f32 %v13600_v11, %v3768_v37  ;;  %v3701_v22 = vpop.permute.xlu1 %3700  ;;  %9617 = vpow2.f32 %v4564_v34  ;;  %v4572_v58 = vmul.f32 1.442695, %v13609_v42  ;;  %v13610_v37 = vsub.f32 %v11701_v57, %v11711_v56  ;;  %v13617_v56 = vld [vmem:[#allocation122_spill] sm:$0xff] }
 0xb67   : > { %3906 = vst.msk [vmem:[#allocation5 + $0x88] sm:$0xff] %vm2043_vm3, %v3890_v47  ;;  %v3706_v45 = vpop.permute.xlu0 %3705  ;;  %v3770_v15 = vmul.f32 %v3701_v22, %v3674_v6  ;;  %v4576_v18 = vmul.f32 1.442695, %v13615_v33 }
 0xb68   : > { %3905 = vst.msk [vmem:[#allocation5 + $0x80] sm:$0xff] %vm2043_vm3, %v3889_v12  ;;  %v3771_v48 = vmul.f32 %v3706_v45, %v3675_v41  ;;  %v4568_v6 = vmul.f32 1.442695, %v13610_v37  ;;  %9619 = vpow2.f32 %v4572_v58  ;;  %v13618_v12 = vsub.f32 %v11666_v31, %v13617_v56  ;;  %v4723_v45 = vld [vmem:[#allocation4 + $0x110] sm:$0xff]  ;;  %v13638_v58 = vld [vmem:[#allocation127_spill] sm:$0xff] }
 0xb69   : > { %v3891_v17 = vadd.f32 %v13601_v24, %v3770_v15  ;;  %v13621_v15 = vld [vmem:[#allocation137_spill] sm:$0xff]  ;;  %v13623_v24 = vld [vmem:[#allocation123_spill] sm:$0xff]  ;;  %v13639_v37 = vld [vmem:[#allocation128_spill] sm:$0xff] }
 0xb6a   : > { %v3892_v7 = vadd.f32 %v13602_v35, %v3771_v48  ;;  %v3711_v40 = vpop.permute.xlu1 %3710  ;;  %9621 = vpow2.f32 %v4568_v6  ;;  %v4560_v22 = vmul.f32 1.442695, %v13618_v12  ;;  %v13622_v48 = vsub.f32 %v13620_v62, %v13621_v15  ;;  %v9450_v62 = vld [vmem:[%s13209_s4 + $0xf0] sm:$0xff]  }
 0xb6b   : > { %3907 = vst.msk [vmem:[#allocation5 + $0x90] sm:$0xff] %vm2043_vm3, %v3891_v17  ;;  %v3716_v59 = vpop.permute.xlu0 %3715  ;;  %v3772_v52 = vmul.f32 %v3711_v40, %v3676_v32  ;;  %9623 = vpow2.f32 %v4580_v1  ;;  %v13624_v17 = vld [vmem:[#allocation125_spill] sm:$0xff]  ;;  %v4727_v40 = vld [vmem:[#allocation4 + $0x130] sm:$0xff]  ;;  %v13640_v6 = vsub.f32 %v13638_v58, %v13639_v37  ;;  %v4722_v37 = vld [vmem:[#allocation4 + $0x108] sm:$0xff] }
 0xb6c   : > { %3908 = vst.msk [vmem:[#allocation5 + $0x98] sm:$0xff] %vm2043_vm3, %v3892_v7  ;;  %v3773_v55 = vmul.f32 %v3716_v59, %v3677_v39  ;;  %9625 = vpow2.f32 %v4576_v18  ;;  %v4584_v32 = vmul.f32 1.442695, %v13622_v48  ;;  %v13625_v39 = vsub.f32 %v13623_v24, %v13624_v17  ;;  %v4729_v18 = vld [vmem:[#allocation4 + $0x140] sm:$0xff] }
 0xb6d   : > { %v3893_v10 = vadd.f32 %v13603_v20, %v3772_v52  ;;  %9627 = vpow2.f32 %v4560_v22  ;;  %v13628_v20 = vld [vmem:[#allocation124_spill] sm:$0xff]  ;;  %v4570_v36 = vmul.f32 1.442695, %v13640_v6  ;;  %v4721_v22 = vld [vmem:[#allocation4 + $0x100] sm:$0xff] }
 0xb6e   : > { %v3894_v0 = vadd.f32 %v13604_v43, %v3773_v55  ;;  %v3721_v38 = vpop.permute.xlu1 %3720  ;;  %v4566_v35 = vmul.f32 1.442695, %v13625_v39  ;;  %9629 = vpow2.f32 %v4584_v32  ;;  %v13644_v24 = vld [vmem:[#allocation134_spill] sm:$0xff] }
 0xb6f   : > { %3909 = vst.msk [vmem:[#allocation5 + $0xa0] sm:$0xff] %vm2043_vm3, %v3893_v10  ;;  %v3774_v2 = vmul.f32 %v3721_v38, %v3678_v63  ;;  %v13629_v10 = vld [vmem:[#allocation126_spill] sm:$0xff] }
 0xb70   : > { %3910 = vst.msk [vmem:[#allocation5 + $0xa8] sm:$0xff] %vm2043_vm3, %v3894_v0  ;;  %9631 = vpow2.f32 %v4566_v35  ;;  %v13630_v43 = vsub.f32 %v13628_v20, %v13629_v10  ;;  %v9452_v6 = vld [vmem:[%s13209_s4 + $0xe0] sm:$0xff]  }
 0xb71   : > { %v3895_v51 = vadd.f32 %v13605_v5, %v3774_v2 }
 0xb72   : > { %v3731_v14 = vpop.permute.xlu1 %3730  ;;  %v4562_v0 = vmul.f32 1.442695, %v13630_v43  ;;  %v4724_v43 = vld [vmem:[#allocation4 + $0x118] sm:$0xff] }
 0xb73   : > { %3911 = vst.msk [vmem:[#allocation5 + $0xb0] sm:$0xff] %vm2043_vm3, %v3895_v51  ;;  %v3776_v9 = vmul.f32 %v3731_v14, %v3680_v13  ;;  %v12316_v57 = vpop.eup %9617  ;;  %v4725_v13 = vld [vmem:[#allocation4 + $0x120] sm:$0xff] }
 0xb74   : > { %v4739_v8 = vmul.f32 %v12316_v57, %v4723_v45  ;;  %9633 = vpow2.f32 %v4562_v0  ;;  %v9449_v45 = vld [vmem:[%s13209_s4 + $0xf8] sm:$0xff]   ;;  %v9451_v0 = vld [vmem:[%s13209_s4 + $0xe8] sm:$0xff]  }
 0xb75   : > { %v3897_v50 = vadd.f32 %v13606_v60, %v3776_v9  ;;  %v12327_v3 = vpop.eup %9619  ;;  %v13634_v60 = vld [vmem:[#allocation130_spill] sm:$0xff]  ;;  %9010 = vmatprep.subr.bf16.mxu0 %v9449_v45 }
 0xb76   : > { %v3741_v23 = vpop.permute.xlu1 %3740  ;;  %v4743_v55 = vmul.f32 %v12327_v3, %v4727_v40  ;;  %9011 = vmatpush3.bf16.msra.mxu0 %v9449_v45 }
 0xb77   : > { %3913 = vst.msk [vmem:[#allocation5 + $0xc0] sm:$0xff] %vm2043_vm3, %v3897_v50  ;;  %v3778_v53 = vmul.f32 %v3741_v23, %v3682_v27  ;;  %v12338_v63 = vpop.eup %9621  ;;  %v13633_v27 = vld [vmem:[#allocation129_spill] sm:$0xff]  ;;  %9012 = vmatprep.subr.bf16.mxu0 %v9450_v62 }
 0xb78   : > { %v4741_v14 = vmul.f32 %v12338_v63, %v4725_v13  ;;  %v12349_v9 = vpop.eup %9623  ;;  %v13635_v50 = vsub.f32 %v13633_v27, %v13634_v60  ;;  %v13649_v27 = vld [vmem:[#allocation132_spill] sm:$0xff] }
 0xb79   : > { %v3899_v21 = vadd.f32 %v13607_v30, %v3778_v53  ;;  %v12360_v42 = vpop.eup %9625 }
 0xb7a   : > { %v4574_v23 = vmul.f32 1.442695, %v13635_v50  ;;  %v12367_v56 = vpop.eup %9627  ;;  %v4745_v48 = vmul.f32 %v12360_v42, %v4729_v18  ;;  %9013 = vmatpush3.bf16.msra.mxu0 %v9450_v62  ;;  %v13652_v18 = vld [vmem:[#allocation136_spill] sm:$0xff] }
 0xb7b   : > { %3915 = vst.msk [vmem:[#allocation5 + $0xd0] sm:$0xff] %vm2043_vm3, %v3899_v21  ;;  %v4731_v21 = vld [vmem:[#allocation4 + $0x150] sm:$0xff]  ;;  %v12379_v32 = vpop.eup %9629  ;;  %v4737_v40 = vmul.f32 %v12367_v56, %v4721_v22  ;;  %9014 = vmatprep.subr.bf16.mxu0 %v9451_v0 }
 0xb7c   : > { %v4747_v54 = vmul.f32 %v12349_v9, %v4731_v21  ;;  %9635 = vpow2.f32 %v4574_v23 }
 0xb7d   : > { %9637 = vpow2.f32 %v4570_v36 }
 0xb7e   : > { %9015 = vmatpush3.bf16.msra.mxu0 %v9451_v0 }
 0xb7f   : > { %9016 = vmatprep.subr.bf16.mxu0 %v9452_v6 }
 0xb82   : > { %9017 = vmatpush3.bf16.msra.mxu0 %v9452_v6 }
 0xb8d   : > { %v12302_v28 = vpop.f32.mrf.mxu1 }
 0xb8e   : > { %13611 = vst [vmem:[#allocation27_spill] sm:$0xff] %v12302_v28 }
 0xb8f   : > { %v12307_v47 = vpop.f32.mrf.mxu1 }
 0xb90   : > { %13613 = vst [vmem:[#allocation30_spill] sm:$0xff] %v12307_v47 }
 0xb91   : > { %v12309_v41 = vpop.f32.mrf.mxu1 }
 0xb92   : > { %13614 = vst [vmem:[#allocation33_spill] sm:$0xff] %v12309_v41  ;;  %v4735_v41 = vld [vmem:[#allocation4 + $0x170] sm:$0xff] }
 0xb93   : > { %v12314_v11 = vpop.f32.mrf.mxu1 }
 0xb94   : > { %13616 = vst [vmem:[#allocation26_spill] sm:$0xff] %v12314_v11 }
 0xb96   : > { %v12321_v49 = vpop.f32.mrf.mxu1 }
 0xb97   : > { %13619 = vst [vmem:[#allocation29_spill] sm:$0xff] %v12321_v49  ;;  %v12654_v49 = vld [vmem:[#allocation3 + $0x1c8] sm:$0xff] }
 0xb98   : > { %v4758_v7 = vpop.xlane.xlu0 %4757  ;;  %v12332_v31 = vpop.f32.mrf.mxu1 }
 0xb99   : > { %13626 = vst [vmem:[#allocation28_spill] sm:$0xff] %v12332_v31  ;;  %v4787_v59 = vadd.f32 %v4758_v7, %v4739_v8  ;;  %v13643_v8 = vld [vmem:[#allocation133_spill] sm:$0xff]  ;;  %v12667_v31 = vld [vmem:[#allocation3 + $0x1e0] sm:$0xff] }
 0xb9a   : > { %v12334_v52 = vpop.f32.mrf.mxu1  ;;  %v13645_v17 = vsub.f32 %v13643_v8, %v13644_v24 }
 0xb9b   : > { %13627 = vst [vmem:[#allocation31_spill] sm:$0xff] %v12334_v52  ;;  %4803 = vst.msk [vmem:[#allocation4 + $0x110] sm:$0xff] %vm2509_vm4, %v4787_v59  ;;  %v4733_v59 = vld [vmem:[#allocation4 + $0x160] sm:$0xff] }
 0xb9c   : > { %v4766_v38 = vpop.xlane.xlu0 %4765  ;;  %v12343_v2 = vpop.f32.mrf.mxu1  ;;  %v4582_v39 = vmul.f32 1.442695, %v13645_v17  ;;  %v4728_v17 = vld [vmem:[#allocation4 + $0x138] sm:$0xff] }
 0xb9d   : > { %13631 = vst [vmem:[#allocation32_spill] sm:$0xff] %v12343_v2  ;;  %v4791_v5 = vadd.f32 %v4766_v38, %v4743_v55  ;;  %v12387_v55 = vpop.eup %9631 }
 0xb9e   : > { %v12345_v51 = vpop.f32.mrf.mxu1  ;;  %9639 = vpow2.f32 %v4582_v39  ;;  %v4740_v21 = vmul.f32 %v12387_v55, %v4724_v43  ;;  %v9453_v39 = vld [vmem:[%s13209_s4 + $0xd8] sm:$0xff]  }
 0xb9f   : > { %13632 = vst [vmem:[#allocation35_spill] sm:$0xff] %v12345_v51  ;;  %4807 = vst.msk [vmem:[#allocation4 + $0x130] sm:$0xff] %vm2509_vm4, %v4791_v5  ;;  %v4749_v5 = vmul.f32 %v12379_v32, %v4733_v59  ;;  %9018 = vmatprep.subr.bf16.mxu0 %v9453_v39 }
 0xba0   : > { %v4762_v53 = vpop.xlane.xlu0 %4761  ;;  %v12354_v30 = vpop.f32.mrf.mxu1  ;;  %9019 = vmatpush3.bf16.msra.mxu0 %v9453_v39 }
 0xba1   : > { %13636 = vst [vmem:[#allocation38_spill] sm:$0xff] %v12354_v30  ;;  %v4789_v26 = vadd.f32 %v4762_v53, %v4741_v14  ;;  %v13648_v14 = vld [vmem:[#allocation131_spill] sm:$0xff] }
 0xba2   : > { %v12356_v34 = vpop.f32.mrf.mxu1  ;;  %v13650_v60 = vsub.f32 %v13648_v14, %v13649_v27  ;;  %v9454_v14 = vld [vmem:[%s13209_s4 + $0xd0] sm:$0xff]  }
 0xba3   : > { %13637 = vst [vmem:[#allocation41_spill] sm:$0xff] %v12356_v34  ;;  %4805 = vst.msk [vmem:[#allocation4 + $0x120] sm:$0xff] %vm2509_vm4, %v4789_v26  ;;  %v12403_v26 = vpop.eup %9633  ;;  %9020 = vmatprep.subr.bf16.mxu0 %v9454_v14  ;;  %v12634_v34 = vld [vmem:[#allocation3 + $0x1d8] sm:$0xff] }
 0xba4   : > { %v4774_v1 = vpop.xlane.xlu0 %4773  ;;  %v12365_v33 = vpop.f32.mrf.mxu1  ;;  %v4578_v50 = vmul.f32 1.442695, %v13650_v60  ;;  %9021 = vmatpush3.bf16.msra.mxu0 %v9454_v14 }
 0xba5   : > { %13641 = vst [vmem:[#allocation117_spill] sm:$0xff] %v12365_v33  ;;  %v4795_v12 = vadd.f32 %v4774_v1, %v4747_v54  ;;  %v12414_v8 = vpop.eup %9635  ;;  %v12645_v33 = vld [vmem:[#allocation3 + $0x1f0] sm:$0xff] }
 0xba6   : > { %v12375_v15 = vpop.f32.mrf.mxu1  ;;  %9641 = vpow2.f32 %v4578_v50  ;;  %v12423_v43 = vpop.eup %9637  ;;  %13674 = vst [vmem:[#allocation42_spill] sm:$0xff] %v12645_v33 }
 0xba7   : > { %13642 = vst [vmem:[#allocation115_spill] sm:$0xff] %v12375_v15  ;;  %4811 = vst.msk [vmem:[#allocation4 + $0x150] sm:$0xff] %vm2509_vm4, %v4795_v12  ;;  %v13653_v12 = vld [vmem:[#allocation138_spill] sm:$0xff] }
 0xba8   : > { %v4770_v35 = vpop.xlane.xlu0 %4769  ;;  %v12384_v7 = vpop.f32.mrf.mxu1  ;;  %v13654_v22 = vsub.f32 %v13652_v18, %v13653_v12 }
 0xba9   : > { %13646 = vst [vmem:[#allocation34_spill] sm:$0xff] %v12384_v7  ;;  %v4793_v20 = vadd.f32 %v4770_v35, %v4745_v48  ;;  %v4754_v10 = vpop.xlane.xlu1 %4753  ;;  %v4738_v48 = vmul.f32 %v12403_v26, %v4722_v37  ;;  %v9455_v37 = vld [vmem:[%s13209_s4 + $0xc8] sm:$0xff]  }
 0xbaa   : > { %v4785_v38 = vadd.f32 %v4754_v10, %v4737_v40  ;;  %v12392_v13 = vpop.f32.mrf.mxu1  ;;  %v4586_v45 = vmul.f32 1.442695, %v13654_v22  ;;  %v4744_v10 = vmul.f32 %v12414_v8, %v4728_v17  ;;  %9022 = vmatprep.subr.bf16.mxu0 %v9455_v37 }
 0xbab   : > { %13647 = vst [vmem:[#allocation37_spill] sm:$0xff] %v12392_v13  ;;  %4809 = vst.msk [vmem:[#allocation4 + $0x140] sm:$0xff] %vm2509_vm4, %v4793_v20  ;;  %9023 = vmatpush3.bf16.msra.mxu0 %v9455_v37 }
 0xbac   : > { %4801 = vst.msk [vmem:[#allocation4 + $0x100] sm:$0xff] %vm2509_vm4, %v4785_v38  ;;  %v4778_v23 = vpop.xlane.xlu0 %4777  ;;  %v12400_v53 = vpop.f32.mrf.mxu1  ;;  %9643 = vpow2.f32 %v4586_v45  ;;  %v4730_v45 = vld [vmem:[#allocation4 + $0x148] sm:$0xff] }
 0xbad   : > { %13651 = vst [vmem:[#allocation36_spill] sm:$0xff] %v12400_v53  ;;  %v4797_v54 = vadd.f32 %v4778_v23, %v4749_v5  ;;  %v4760_v58 = vpop.xlane.xlu1 %4759  ;;  %v4726_v5 = vld [vmem:[#allocation4 + $0x128] sm:$0xff] }
 0xbae   : > { %v4788_v36 = vadd.f32 %v4760_v58, %v4740_v21  ;;  %v8996_v1 = vpop.f32.mrf.mxu1  ;;  %v4742_v23 = vmul.f32 %v12423_v43, %v4726_v5  ;;  %v12436_v21 = vpop.eup %9639  ;;  %v4732_v58 = vld [vmem:[#allocation4 + $0x158] sm:$0xff] }
 0xbaf   : > { %4813 = vst.msk [vmem:[#allocation4 + $0x160] sm:$0xff] %vm2509_vm4, %v4797_v54  ;;  %v4748_v18 = vmul.f32 %v12436_v21, %v4732_v58  ;;  %v13655_v58 = vld [vmem:[#allocation21_spill] sm:$0xff] }
 0xbb0   : > { %4804 = vst.msk [vmem:[#allocation4 + $0x118] sm:$0xff] %vm2509_vm4, %v4788_v36  ;;  %v5182_v62 = vpop.f32.mrf.mxu1 }
 0xbb1   : > { %v4756_v24 = vpop.xlane.xlu1 %4755 }
 0xbb2   : > { %v4786_v35 = vadd.f32 %v4756_v24, %v4738_v48  ;;  %v8997_v40 = vpop.f32.mrf.mxu1 }
 0xbb3   : > { %v12419_v59 = vpack.c.bf16 %v8997_v40, %v8996_v1  ;;  %v12443_v12 = vpop.eup %9641 }
 0xbb4   : > { %4802 = vst.msk [vmem:[#allocation4 + $0x108] sm:$0xff] %vm2509_vm4, %v4786_v35  ;;  %v5185_v20 = vpop.f32.mrf.mxu1  ;;  %v4746_v39 = vmul.f32 %v12443_v12, %v4730_v45 }
 0xbb5   : > { %v12425_v0 = vpack.c.bf16 %v5185_v20, %v5182_v62  ;;  %v4768_v38 = vpop.xlane.xlu1 %4767  ;;  %v9456_v62 = vld [vmem:[%s13209_s4 + $0xc0] sm:$0xff]   ;;  %v4734_v20 = vld [vmem:[#allocation4 + $0x168] sm:$0xff] }
 0xbb6   : > { %v4792_v27 = vadd.f32 %v4768_v38, %v4744_v10  ;;  %v12430_v60 = vpop.f32.mrf.mxu1  ;;  %9024 = vmatprep.subr.bf16.mxu0 %v9456_v62 }
 0xbb7   : > { %9025 = vmatpush3.bf16.msra.mxu0 %v9456_v62  ;;  %v13657_v62 = vld [vmem:[#allocation24_spill] sm:$0xff] }
 0xbb8   : > { %4808 = vst.msk [vmem:[#allocation4 + $0x138] sm:$0xff] %vm2509_vm4, %v4792_v27  ;;  %v12433_v50 = vpop.f32.mrf.mxu1 }
 0xbb9   : > { %v4764_v54 = vpop.xlane.xlu1 %4763  ;;  %v12450_v35 = vpop.eup %9643 }
 0xbba   : > { %v4790_v6 = vadd.f32 %v4764_v54, %v4742_v23  ;;  %v9001_v36 = vpop.f32.mrf.mxu1  ;;  %v4750_v14 = vmul.f32 %v12450_v35, %v4734_v20  ;;  %9027 = vmatmul.mubr.bf16.vlgmr.msra.gmra.mxu0 %v13655_v58 }
 0xbbb   : > { %v5248_v58 = vpack.c.bf16 %v9001_v36, %v12430_v60  ;;  %v5505_v60 = vsel %vm2043_vm3, %v12425_v0, 0  ;;  %v9443_v36 = vld [vmem:[#allocation2 + $0xd0] sm:$0xff]  }
 0xbbc   : > { %4806 = vst.msk [vmem:[#allocation4 + $0x128] sm:$0xff] %vm2509_vm4, %v4790_v6  ;;  %v5201_v1 = vpop.f32.mrf.mxu1  ;;  %v13656_v6 = vld [vmem:[#allocation22_spill] sm:$0xff] }
 0xbbd   : > { %v4776_v22 = vpop.xlane.xlu1 %4775  ;;  %9030 = vmatprep.mubr.bf16.mxu0 %v13656_v6  ;;  %v9447_v6 = vld [vmem:[#allocation2 + $0xf0] sm:$0xff]  }
 0xbbe   : > { %v4796_v48 = vadd.f32 %v4776_v22, %v4748_v18  ;;  %v9004_v24 = vpop.f32.mrf.mxu1 }
 0xbc0   : > { %4812 = vst.msk [vmem:[#allocation4 + $0x158] sm:$0xff] %vm2509_vm4, %v4796_v48  ;;  %v5214_v17 = vpop.f32.mrf.mxu1 }
 0xbc1   : > { %v4772_v40 = vpop.xlane.xlu1 %4771 }
 0xbc2   : > { %v4794_v10 = vadd.f32 %v4772_v40, %v4746_v39  ;;  %v9005_v38 = vpop.f32.mrf.mxu1  ;;  %9031 = vmatmul.mubr.bf16.gmra.mxu0 %v13657_v62  ;;  %v13658_v40 = vld [vmem:[#allocation20_spill] sm:$0xff] }
 0xbc3   : > { %9034 = vmatprep.mubr.bf16.mxu0 %v13658_v40  ;;  %v5250_v20 = vpack.c.bf16 %v9005_v38, %v9004_v24  ;;  %v5514_v38 = vsel %vm2043_vm3, %v5248_v58, 0 }
 0xbc4   : > { %4810 = vst.msk [vmem:[#allocation4 + $0x148] sm:$0xff] %vm2509_vm4, %v4794_v10  ;;  %v5217_v5 = vpop.f32.mrf.mxu1 }
 0xbc5   : > { %v4780_v27 = vpop.xlane.xlu1 %4779 }
 0xbc6   : > { %v4798_v23 = vadd.f32 %v4780_v27, %v4750_v14  ;;  %v9008_v54 = vpop.f32.mrf.mxu1  ;;  %v13659_v14 = vld [vmem:[#allocation23_spill] sm:$0xff]  ;;  %v13660_v27 = vld [vmem:[#allocation25_spill] sm:$0xff] }
 0xbc8   : > { %4814 = vst.msk [vmem:[#allocation4 + $0x168] sm:$0xff] %vm2509_vm4, %v4798_v23  ;;  %v5230_v37 = vpop.f32.mrf.mxu1  ;;  %v5520_v23 = vsel %vm2043_vm3, %v5250_v20, 0 }
 0xbca   : > { %v9009_v18 = vpop.f32.mrf.mxu1  ;;  %9035 = vmatmul.mubr.bf16.gmra.mxu0 %v13659_v14 }
 0xbcb   : > { %v5252_v22 = vpack.c.bf16 %v9009_v18, %v9008_v54  ;;  %9038 = vmatprep.mubr.bf16.mxu0 %v13660_v27  ;;  %v5249_v54 = vpack.c.bf16 %v5217_v5, %v5214_v17  ;;  %v9445_v5 = vld [vmem:[#allocation2 + $0xe0] sm:$0xff]  }
 0xbcc   : > { %v5233_v45 = vpop.f32.mrf.mxu1 }
 0xbcd   : > { %v5526_v48 = vsel %vm2043_vm3, %v5252_v22, 0  ;;  %v5251_v39 = vpack.c.bf16 %v5233_v45, %v5230_v37  ;;  %9210 = vmatprep.subr.msk.bf16.mxu1 %vm2043_vm3, %v5252_v22  ;;  %v5517_v24 = vsel %vm2043_vm3, %v5249_v54, 0  ;;  %v5247_v37 = vpack.c.bf16 %v5201_v1, %v12433_v50  ;;  %v9442_v50 = vld [vmem:[#allocation2 + $0xc8] sm:$0xff]   ;;  %v9444_v1 = vld [vmem:[#allocation2 + $0xd8] sm:$0xff]  }
 0xbce   : > { %9043 = vmatpush3.bf16.xpose.msra.mxu1 %v5526_v48 }
 0xbcf   : > { %9211 = vmatprep.subr.msk.bf16.mxu1 %vm2043_vm3, %v5251_v39  ;;  %v5523_v10 = vsel %vm2043_vm3, %v5251_v39, 0  ;;  %v5511_v17 = vsel %vm2043_vm3, %v5247_v37, 0 }
 0xbd2   : > { %9039 = vmatmul.mubr.bf16.gmra.mxu0 %v12134_v29  ;;  %v5508_v29 = vsel %vm2043_vm3, %v12419_v59, 0 }
 0xbd6   : > { %9045 = vmatpush3.bf16.xpose.msra.mxu1 %v5523_v10 }
 0xbd7   : > { %9212 = vmatprep.subr.msk.bf16.mxu1 %vm2043_vm3, %v5250_v20 }
 0xbde   : > { %9047 = vmatpush3.bf16.xpose.msra.mxu1 %v5520_v23 }
 0xbdf   : > { %9213 = vmatprep.subr.msk.bf16.mxu1 %vm2043_vm3, %v5249_v54 }
 0xbe6   : > { %9049 = vmatpush3.bf16.xpose.msra.mxu1 %v5517_v24  ;;  %v13668_v24 = vld [vmem:[#allocation18_spill] sm:$0xff] }
 0xbe7   : > { %9214 = vmatprep.subr.msk.bf16.mxu1 %vm2043_vm3, %v5248_v58 }
 0xbee   : > { %9051 = vmatpush3.bf16.xpose.msra.mxu1 %v5514_v38 }
 0xbef   : > { %9215 = vmatprep.subr.msk.bf16.mxu1 %vm2043_vm3, %v5247_v37 }
 0xbf6   : > { %9053 = vmatpush3.bf16.xpose.msra.mxu1 %v5511_v17 }
 0xbf7   : > { %9216 = vmatprep.subr.msk.bf16.mxu1 %vm2043_vm3, %v12419_v59  ;;  %v9446_v59 = vld [vmem:[#allocation2 + $0xe8] sm:$0xff]  }
 0xbfe   : > { %9055 = vmatpush3.bf16.xpose.msra.mxu1 %v5508_v29 }
 0xbff   : > { %9217 = vmatprep.subr.msk.bf16.mxu1 %vm2043_vm3, %v12425_v0  ;;  %v9448_v0 = vld [vmem:[#allocation2 + $0xf8] sm:$0xff]  }
 0xc06   : > { %9057 = vmatpush3.bf16.xpose.msra.mxu1 %v5505_v60 }
 0xc0d   : > { %9059 = vmatmul.mubr.msk.bf16.vlgmr.msra.gmra.mxu1 %vm2043_vm3, %v9442_v50 }
 0xc0e   : > { %9062 = vmatprep.mubr.msk.bf16.mxu1 %vm2043_vm3, %v9443_v36 }
 0xc15   : > { %9063 = vmatmul.mubr.msk.bf16.gmra.mxu1 %vm2043_vm3, %v9444_v1 }
 0xc16   : > { %9066 = vmatprep.mubr.msk.bf16.mxu1 %vm2043_vm3, %v9445_v5 }
 0xc1d   : > { %9067 = vmatmul.mubr.msk.bf16.gmra.mxu1 %vm2043_vm3, %v9446_v59 }
 0xc1e   : > { %9070 = vmatprep.mubr.msk.bf16.mxu1 %vm2043_vm3, %v9447_v6 }
 0xc25   : > { %9071 = vmatmul.mubr.msk.bf16.gmra.mxu1 %vm2043_vm3, %v9448_v0 }
 0xc7a   : > { %v9028_v17 = vpop.f32.mrf.mxu0 }
 0xc7c   : > { %v5352_v29 = vpop.f32.mrf.mxu0 }
 0xc7e   : > { %v9029_v60 = vpop.f32.mrf.mxu0 }
 0xc80   : > { %v5355_v50 = vpop.f32.mrf.mxu0 }
 0xc82   : > { %v9032_v36 = vpop.f32.mrf.mxu0 }
 0xc84   : > { %v5368_v1 = vpop.f32.mrf.mxu0 }
 0xc86   : > { %v9033_v5 = vpop.f32.mrf.mxu0 }
 0xc88   : > { %v5371_v59 = vpop.f32.mrf.mxu0 }
 0xc89   : > { %v5417_v30 = vpack.c.bf16 %v5371_v59, %v5368_v1  ;;  %v12615_v1 = vld [vmem:[#allocation3 + $0x1a8] sm:$0xff] }
 0xc8a   : > { %v9036_v6 = vpop.f32.mrf.mxu0 }
 0xccd   : > { %v12491_v18 = vpop.f32.mrf.mxu1 }
 0xcce   : > { %5646 = vmax.xlane.f32.xlu1 %v12491_v18 }
 0xccf   : > { %v12494_v22 = vpop.f32.mrf.mxu1 }
 0xcd0   : > { %5642 = vmax.xlane.f32.xlu0 %v12494_v22 }
 0xcd1   : > { %v12497_v45 = vpop.f32.mrf.mxu1 }
 0xcd3   : > { %v12499_v48 = vpop.f32.mrf.mxu1 }
 0xcd4   : > { %5648 = vmax.xlane.f32.xlu0 %v12497_v45 }
 0xcd5   : > { %v12502_v39 = vpop.f32.mrf.mxu1 }
 0xcd6   : > { %5654 = vmax.xlane.f32.xlu1 %v12502_v39 }
 0xcd7   : > { %v12505_v62 = vpop.f32.mrf.mxu1 }
 0xcd8   : > { %5644 = vmax.xlane.f32.xlu0 %v12499_v48 }
 0xcd9   : > { %v12508_v40 = vpop.f32.mrf.mxu1 }
 0xcda   : > { %13661 = vst [vmem:[#allocation39_spill] sm:$0xff] %v12508_v40  ;;  %5650 = vmax.xlane.f32.xlu1 %v12505_v62 }
 0xcdb   : > { %v12511_v20 = vpop.f32.mrf.mxu1 }
 0xcdc   : > { %5656 = vmax.xlane.f32.xlu0 %v12508_v40  ;;  %v12699_v40 = vld [vmem:[#allocation3 + $0x1e8] sm:$0xff] }
 0xcdd   : > { %v12514_v10 = vpop.f32.mrf.mxu1 }
 0xcde   : > { %13662 = vst [vmem:[#allocation116_spill] sm:$0xff] %v12514_v10  ;;  %5662 = vmax.xlane.f32.xlu1 %v12514_v10 }
 0xcdf   : > { %v12517_v14 = vpop.f32.mrf.mxu1 }
 0xce0   : > { %13663 = vst [vmem:[#allocation114_spill] sm:$0xff] %v12517_v14  ;;  %5652 = vmax.xlane.f32.xlu0 %v12511_v20 }
 0xce1   : > { %v12520_v27 = vpop.f32.mrf.mxu1 }
 0xce2   : > { %13664 = vst [vmem:[#allocation40_spill] sm:$0xff] %v12520_v27  ;;  %5658 = vmax.xlane.f32.xlu1 %v12517_v14  ;;  %v3685_v14 = vld [vmem:[#allocation5 + $0xe8] sm:$0xff] }
 0xce3   : > { %v12523_v23 = vpop.f32.mrf.mxu1 }
 0xce4   : > { %13665 = vst [vmem:[#allocation43_spill] sm:$0xff] %v12523_v23  ;;  %5664 = vmax.xlane.f32.xlu0 %v12520_v27  ;;  %v13677_v27 = vld [vmem:[#allocation110_spill] sm:$0xff] }
 0xce5   : > { %v12526_v54 = vpop.f32.mrf.mxu1 }
 0xce6   : > { %13666 = vst [vmem:[#allocation46_spill] sm:$0xff] %v12526_v54  ;;  %5670 = vmax.xlane.f32.xlu1 %v12526_v54  ;;  %v12690_v54 = vld [vmem:[#allocation3 + $0x1f8] sm:$0xff] }
 0xce7   : > { %v12530_v58 = vpop.f32.mrf.mxu1  ;;  %13676 = vst [vmem:[#allocation44_spill] sm:$0xff] %v12690_v54 }
 0xce8   : > { %5660 = vmax.xlane.f32.xlu0 %v12523_v23  ;;  %13667 = vst [vmem:[#allocation48_spill] sm:$0xff] %v12530_v58 }
 0xce9   : > { %v12534_v38 = vpop.f32.mrf.mxu1 }
 0xcea   : > { %5666 = vmax.xlane.f32.xlu1 %v12530_v58  ;;  %13669 = vst [vmem:[#allocation121_spill] sm:$0xff] %v12534_v38  ;;  %v3686_v58 = vld [vmem:[#allocation5 + $0xf0] sm:$0xff] }
 0xceb   : > { %v12537_v37 = vpop.f32.mrf.mxu1 }
 0xcec   : > { %4781 = vadd.xlane.f32.xlu0 %v13668_v24  ;;  %13670 = vst [vmem:[#allocation119_spill] sm:$0xff] %v12537_v37 }
 0xcf0   : > { %5672 = vmax.xlane.f32.xlu0 %v12534_v38  ;;  %v3684_v38 = vld [vmem:[#allocation5 + $0xe0] sm:$0xff] }
 0xcf4   : > { %5668 = vmax.xlane.f32.xlu0 %v12537_v37 }
 0xcfb   : > { %3750 = vperm.xlu1 %9352, %v12215_v19   ;;  %v5384_v19 = vpop.f32.mrf.mxu0 }
 0xcfd   : > { %v9037_v0 = vpop.f32.mrf.mxu0 }
 0xcfe   : > { %v5420_v7 = vpack.c.bf16 %v9037_v0, %v9036_v6  ;;  %v12573_v6 = vld [vmem:[#allocation3 + $0x188] sm:$0xff]  ;;  %v13672_v0 = vld [vmem:[#allocation141_spill] sm:$0xff] }
 0xcff   : > { %3760 = vperm.xlu1 %9352, %v12224_v44   ;;  %v5387_v44 = vpop.f32.mrf.mxu0 }
 0xd01   : > { %v9040_v24 = vpop.f32.mrf.mxu0 }
 0xd03   : > { %v5400_v13 = vpop.f32.mrf.mxu0 }
 0xd0a   : > { %3725 = vperm.xlu0 %9351, %v12203_v61   ;;  %v9041_v61 = vpop.f32.mrf.mxu0 }
 0xd0b   : > { %v5422_v53 = vpack.c.bf16 %v9041_v61, %v9040_v24  ;;  %v5415_v24 = vpack.c.bf16 %v5355_v50, %v5352_v29  ;;  %v12568_v50 = vld [vmem:[#allocation3 + $0x1b0] sm:$0xff] }
 0xd0c   : > { %v5403_v15 = vpop.f32.mrf.mxu0 }
 0xd0d   : > { %9074 = vmatprep.subr.bf16.mxu0 %v5422_v53 }
 0xd0e   : > { %3735 = vperm.xlu0 %9351, %v12210_v16   ;;  %v5421_v16 = vpack.c.bf16 %v5403_v15, %v5400_v13  ;;  %9075 = vmatpush3.bf16.msra.mxu0 %v5422_v53  ;;  %v12547_v15 = vld [vmem:[#allocation3 + $0x190] sm:$0xff]  ;;  %v12549_v53 = vld [vmem:[#allocation3 + $0x180] sm:$0xff] }
 0xd10   : > { %9076 = vmatprep.subr.bf16.mxu0 %v5421_v16 }
 0xd12   : > { %3745 = vperm.xlu0 %9351, %v12219_v4   ;;  %9077 = vmatpush3.bf16.msra.mxu0 %v5421_v16  ;;  %v5419_v4 = vpack.c.bf16 %v5387_v44, %v5384_v19  ;;  %v13671_v19 = vld [vmem:[#allocation139_spill] sm:$0xff] }
 0xd13   : > { %9078 = vmatprep.subr.bf16.mxu0 %v5420_v7  ;;  %v13673_v44 = vsub.f32 %v13671_v19, %v13672_v0 }
 0xd15   : > { %v4588_v61 = vmul.f32 1.442695, %v13673_v44  ;;  %v12606_v44 = vld [vmem:[#allocation3 + $0x1d0] sm:$0xff] }
 0xd16   : > { %3755 = vperm.xlu0 %9351, %v12228_v46   ;;  %9079 = vmatpush3.bf16.msra.mxu0 %v5420_v7  ;;  %v5418_v46 = vpack.c.bf16 %v9033_v5, %v9032_v36 }
 0xd17   : > { %9080 = vmatprep.subr.bf16.mxu0 %v5419_v4  ;;  %9645 = vpow2.f32 %v4588_v61 }
 0xd1a   : > { %3765 = vperm.xlu0 %9351, %v12235_v25   ;;  %9081 = vmatpush3.bf16.msra.mxu0 %v5419_v4  ;;  %v5416_v25 = vpack.c.bf16 %v9029_v60, %v9028_v17  ;;  %v12561_v17 = vld [vmem:[#allocation3 + $0x198] sm:$0xff] }
 0xd1b   : > { %9082 = vmatprep.subr.bf16.mxu0 %v5418_v46 }
 0xd1e   : > { %9083 = vmatpush3.bf16.msra.mxu0 %v5418_v46 }
 0xd1f   : > { %9084 = vmatprep.subr.bf16.mxu0 %v5417_v30 }
 0xd22   : > { %9085 = vmatpush3.bf16.msra.mxu0 %v5417_v30 }
 0xd23   : > { %9086 = vmatprep.subr.bf16.mxu0 %v5416_v25 }
 0xd26   : > { %9087 = vmatpush3.bf16.msra.mxu0 %v5416_v25  ;;  %v12586_v25 = vld [vmem:[#allocation3 + $0x1a0] sm:$0xff] }
 0xd27   : > { %9088 = vmatprep.subr.bf16.mxu0 %v5415_v24 }
 0xd2a   : > { %9089 = vmatpush3.bf16.msra.mxu0 %v5415_v24 }
 0xd57   : > { %v5647_v13 = vpop.xlane.xlu1 %5646 }
 0xd58   : > { %v12552_v7 = vmax.f32 %v12547_v15, %v5647_v13 }
 0xd59   : > { %v5643_v36 = vpop.xlane.xlu0 %5642 }
 0xd5a   : > { %6215 = vst.msk [vmem:[#allocation3 + $0x190] sm:$0xff] %vm2509_vm4, %v12552_v7  ;;  %v12559_v30 = vmax.f32 %v12549_v53, %v5643_v36 }
 0xd5c   : > { %6213 = vst.msk [vmem:[#allocation3 + $0x180] sm:$0xff] %vm2509_vm4, %v12559_v30  ;;  %5740 = vperm.xlu1 %9352, %v12559_v30  }
 0xd5d   : > { %v5649_v60 = vpop.xlane.xlu0 %5648 }
 0xd5e   : > { %v12571_v5 = vmax.f32 %v12561_v17, %v5649_v60  ;;  %v12595_v60 = vld [vmem:[#allocation3 + $0x1b8] sm:$0xff] }
 0xd5f   : > { %v5655_v59 = vpop.xlane.xlu1 %5654 }
 0xd60   : > { %6216 = vst.msk [vmem:[#allocation3 + $0x198] sm:$0xff] %vm2509_vm4, %v12571_v5  ;;  %v12583_v4 = vmax.f32 %v12568_v50, %v5655_v59  ;;  %5750 = vperm.xlu1 %9352, %v12552_v7  }
 0xd61   : > { %v5645_v46 = vpop.xlane.xlu0 %5644 }
 0xd62   : > { %6219 = vst.msk [vmem:[#allocation3 + $0x1b0] sm:$0xff] %vm2509_vm4, %v12583_v4  ;;  %v12593_v13 = vmax.f32 %v12573_v6, %v5645_v46  ;;  %v12625_v46 = vld [vmem:[#allocation3 + $0x1c0] sm:$0xff] }
 0xd63   : > { %v5651_v36 = vpop.xlane.xlu1 %5650 }
 0xd64   : > { %6214 = vst.msk [vmem:[#allocation3 + $0x188] sm:$0xff] %vm2509_vm4, %v12593_v13  ;;  %v12602_v19 = vmax.f32 %v12586_v25, %v5651_v36  ;;  %5745 = vperm.xlu0 %9351, %v12593_v13   ;;  %5755 = vperm.xlu1 %9352, %v12571_v5  }
 0xd65   : > { %v5657_v0 = vpop.xlane.xlu0 %5656 }
 0xd66   : > { %6217 = vst.msk [vmem:[#allocation3 + $0x1a0] sm:$0xff] %vm2509_vm4, %v12602_v19  ;;  %v12613_v61 = vmax.f32 %v12595_v60, %v5657_v0 }
 0xd67   : > { %v5663_v16 = vpop.xlane.xlu1 %5662 }
 0xd68   : > { %6220 = vst.msk [vmem:[#allocation3 + $0x1b8] sm:$0xff] %vm2509_vm4, %v12613_v61  ;;  %v12622_v24 = vmax.f32 %v12606_v44, %v5663_v16  ;;  %5760 = vperm.xlu0 %9351, %v12602_v19  }
 0xd69   : > { %v5653_v29 = vpop.xlane.xlu0 %5652 }
 0xd6a   : > { %6223 = vst.msk [vmem:[#allocation3 + $0x1d0] sm:$0xff] %vm2509_vm4, %v12622_v24  ;;  %v12632_v59 = vmax.f32 %v12615_v1, %v5653_v29  ;;  %v12665_v29 = vpop.eup %9645 }
 0xd6b   : > { %v5659_v36 = vpop.xlane.xlu1 %5658  ;;  %v4751_v28 = vmul.f32 %v12665_v29, %v4735_v41 }
 0xd6c   : > { %6218 = vst.msk [vmem:[#allocation3 + $0x1a8] sm:$0xff] %vm2509_vm4, %v12632_v59  ;;  %v12641_v51 = vmax.f32 %v12625_v46, %v5659_v36  ;;  %5765 = vperm.xlu1 %9352, %v12632_v59   ;;  %5770 = vperm.xlu0 %9351, %v12583_v4  }
 0xd6d   : > { %v5665_v0 = vpop.xlane.xlu0 %5664 }
 0xd6e   : > { %6221 = vst.msk [vmem:[#allocation3 + $0x1c0] sm:$0xff] %vm2509_vm4, %v12641_v51  ;;  %v12652_v16 = vmax.f32 %v12634_v34, %v5665_v0 }
 0xd6f   : > { %v5671_v52 = vpop.xlane.xlu1 %5670 }
 0xd70   : > { %6224 = vst.msk [vmem:[#allocation3 + $0x1d8] sm:$0xff] %vm2509_vm4, %v12652_v16  ;;  %v12661_v2 = vmax.f32 %v12645_v33, %v5671_v52  ;;  %5775 = vperm.xlu1 %9352, %v12613_v61   ;;  %5780 = vperm.xlu0 %9351, %v12641_v51  }
 0xd71   : > { %v5661_v0 = vpop.xlane.xlu0 %5660 }
 0xd72   : > { %13675 = vst [vmem:[#allocation45_spill] sm:$0xff] %v12661_v2  ;;  %6227 = vst.msk [vmem:[#allocation3 + $0x1f0] sm:$0xff] %vm2509_vm4, %v12661_v2  ;;  %v12674_v36 = vmax.f32 %v12654_v49, %v5661_v0 }
 0xd73   : > { %v5667_v52 = vpop.xlane.xlu1 %5666 }
 0xd74   : > { %6222 = vst.msk [vmem:[#allocation3 + $0x1c8] sm:$0xff] %vm2509_vm4, %v12674_v36  ;;  %v12681_v47 = vmax.f32 %v12667_v31, %v5667_v52  ;;  %5785 = vperm.xlu1 %9352, %v12674_v36   ;;  %5790 = vperm.xlu0 %9351, %v12622_v24  }
 0xd75   : > { %v4782_v33 = vpop.xlane.xlu0 %4781 }
 0xd76   : > { %6225 = vst.msk [vmem:[#allocation3 + $0x1e0] sm:$0xff] %vm2509_vm4, %v12681_v47  ;;  %v4799_v11 = vadd.f32 %v4782_v33, %v4751_v28  ;;  %v3683_v28 = vld [vmem:[#allocation5 + $0xd8] sm:$0xff] }
 0xd77   : > { %v3751_v37 = vpop.permute.xlu1 %3750 }
 0xd78   : > { %4815 = vst.msk [vmem:[#allocation4 + $0x170] sm:$0xff] %vm2509_vm4, %v4799_v11  ;;  %v3780_v52 = vmul.f32 %v3751_v37, %v3684_v38  ;;  %5795 = vperm.xlu1 %9352, %v12652_v16   ;;  %5800 = vperm.xlu0 %9351, %v12681_v47   ;;  %v13679_v38 = vld [vmem:[#allocation109_spill] sm:$0xff] }
 0xd79   : > { %v5673_v41 = vpop.xlane.xlu0 %5672 }
 0xd7a   : > { %v3901_v23 = vadd.f32 %v13677_v27, %v3780_v52  ;;  %v12697_v0 = vmax.f32 %v12690_v54, %v5673_v41  ;;  %v3679_v52 = vld [vmem:[#allocation5 + $0xb8] sm:$0xff]  ;;  %v3681_v41 = vld [vmem:[#allocation5 + $0xc8] sm:$0xff] }
 0xd7b   : > { %v3761_v10 = vpop.permute.xlu1 %3760 }
 0xd7c   : > { %13678 = vst [vmem:[#allocation47_spill] sm:$0xff] %v12697_v0  ;;  %3917 = vst.msk [vmem:[#allocation5 + $0xe0] sm:$0xff] %vm2043_vm3, %v3901_v23  ;;  %v3782_v11 = vmul.f32 %v3761_v10, %v3686_v58  ;;  %5810 = vperm.xlu0 %9351, %v12661_v2   ;;  %v13681_v23 = vld [vmem:[#allocation108_spill] sm:$0xff] }
 0xd7d   : > { %6228 = vst.msk [vmem:[#allocation3 + $0x1f8] sm:$0xff] %vm2509_vm4, %v12697_v0  ;;  %v5669_v33 = vpop.xlane.xlu0 %5668 }
 0xd7e   : > { %v3903_v27 = vadd.f32 %v13679_v38, %v3782_v11  ;;  %v12709_v37 = vmax.f32 %v12699_v40, %v5669_v33  ;;  %v13680_v11 = vld [vmem:[#allocation103_spill] sm:$0xff] }
 0xd80   : > { %3919 = vst.msk [vmem:[#allocation5 + $0xf0] sm:$0xff] %vm2043_vm3, %v3903_v27  ;;  %5805 = vperm.xlu1 %9352, %v12709_v37  }
 0xd81   : > { %6226 = vst.msk [vmem:[#allocation3 + $0x1e8] sm:$0xff] %vm2509_vm4, %v12709_v37 }
 0xd84   : > { %5815 = vperm.xlu1 %9352, %v12697_v0  }
 0xd85   : > { %v3726_v10 = vpop.permute.xlu0 %3725 }
 0xd86   : > { %v3775_v58 = vmul.f32 %v3726_v10, %v3679_v52  ;;  %v13682_v52 = vld [vmem:[#allocation107_spill] sm:$0xff] }
 0xd88   : > { %v3896_v38 = vadd.f32 %v13680_v11, %v3775_v58  ;;  %4836 = vperm.xlu1 %9352, %v12367_v56   ;;  %v3687_v11 = vld [vmem:[#allocation5 + $0xf8] sm:$0xff] }
 0xd89   : > { %v3736_v33 = vpop.permute.xlu0 %3735 }
 0xd8a   : > { %3912 = vst.msk [vmem:[#allocation5 + $0xb8] sm:$0xff] %vm2043_vm3, %v3896_v38  ;;  %v3777_v27 = vmul.f32 %v3736_v33, %v3681_v41  ;;  %v13683_v41 = vld [vmem:[#allocation112_spill] sm:$0xff] }
 0xd8c   : > { %v3898_v2 = vadd.f32 %v13681_v23, %v3777_v27  ;;  %4841 = vperm.xlu1 %9352, %v12403_v26   ;;  %v13690_v27 = vsub.f32 %v12586_v25, %v12602_v19 }
 0xd8d   : > { %v3746_v54 = vpop.permute.xlu0 %3745 }
 0xd8e   : > { %3914 = vst.msk [vmem:[#allocation5 + $0xc8] sm:$0xff] %vm2043_vm3, %v3898_v2  ;;  %v3779_v0 = vmul.f32 %v3746_v54, %v3683_v28  ;;  %v13684_v2 = vld [vmem:[#allocation111_spill] sm:$0xff]  ;;  %v13688_v28 = vld [vmem:[#allocation142_spill] sm:$0xff] }
 0xd90   : > { %v3900_v10 = vadd.f32 %v13682_v52, %v3779_v0  ;;  %4846 = vperm.xlu1 %9352, %v12316_v57   ;;  %v13685_v57 = vld [vmem:[#allocation19_spill] sm:$0xff]  ;;  %v13687_v0 = vld [vmem:[#allocation140_spill] sm:$0xff]  ;;  %v5714_v52 = vmul.f32 1.442695, %v13690_v27 }
 0xd91   : > { %v3756_v58 = vpop.permute.xlu0 %3755  ;;  %v13689_v33 = vsub.f32 %v13687_v0, %v13688_v28 }
 0xd92   : > { %3916 = vst.msk [vmem:[#allocation5 + $0xd8] sm:$0xff] %vm2043_vm3, %v3900_v10  ;;  %v3781_v56 = vmul.f32 %v3756_v58, %v3685_v14 }
 0xd94   : > { %v3902_v38 = vadd.f32 %v13683_v41, %v3781_v56  ;;  %4851 = vperm.xlu1 %9352, %v12387_v55   ;;  %v13686_v55 = vsub.f32 %v12573_v6, %v12593_v13  ;;  %v13693_v6 = vsub.f32 %v12547_v15, %v12552_v7 }
 0xd95   : > { %v3766_v23 = vpop.permute.xlu0 %3765 }
 0xd96   : > { %3918 = vst.msk [vmem:[#allocation5 + $0xe8] sm:$0xff] %vm2043_vm3, %v3902_v38  ;;  %v3783_v26 = vmul.f32 %v3766_v23, %v3687_v11  ;;  %v5708_v14 = vmul.f32 1.442695, %v13686_v55  ;;  %v5710_v25 = vmul.f32 1.442695, %v13693_v6 }
 0xd98   : > { %v3904_v54 = vadd.f32 %v13684_v2, %v3783_v26  ;;  %4856 = vperm.xlu1 %9352, %v12338_v63   ;;  %v4590_v63 = vmul.f32 1.442695, %v13689_v33  ;;  %9647 = vpow2.f32 %v5708_v14 }
 0xd9a   : > { %3920 = vst.msk [vmem:[#allocation5 + $0xf8] sm:$0xff] %vm2043_vm3, %v3904_v54  ;;  %9649 = vpow2.f32 %v4590_v63 }
 0xd9b   : > { %4783 = vadd.xlane.f32.xlu0 %v13685_v57  ;;  %9651 = vpow2.f32 %v5714_v52 }
 0xd9c   : > { %4861 = vperm.xlu1 %9352, %v12423_v43   ;;  %v13692_v43 = vsub.f32 %v12568_v50, %v12583_v4 }
 0xda0   : > { %4866 = vperm.xlu1 %9352, %v12327_v3   ;;  %v13691_v3 = vsub.f32 %v12549_v53, %v12559_v30 }
 0xda4   : > { %4871 = vperm.xlu1 %9352, %v12414_v8   ;;  %v5706_v8 = vmul.f32 1.442695, %v13691_v3 }
 0xda5   : > { %v12770_v7 = vpop.eup %9647 }
 0xda6   : > { %9653 = vpow2.f32 %v5706_v8  ;;  %v13703_v8 = vld [vmem:[#allocation114_spill] sm:$0xff] }
 0xda7   : > { %v12777_v4 = vpop.eup %9649 }
 0xda8   : > { %4881 = vperm.xlu1 %9352, %v12443_v12   ;;  %v5718_v12 = vmul.f32 1.442695, %v13692_v43 }
 0xdaa   : > { %9655 = vpow2.f32 %v5718_v12  ;;  %v13704_v12 = vld [vmem:[#allocation39_spill] sm:$0xff] }
 0xdab   : > { %9657 = vpow2.f32 %v5710_v25 }
 0xdac   : > { %4886 = vperm.xlu1 %9352, %v12349_v9   ;;  %v13694_v9 = vsub.f32 %v12606_v44, %v12622_v24 }
 0xdae   : > { %v5726_v53 = vmul.f32 1.442695, %v13694_v9 }
 0xdb0   : > { %4891 = vperm.xlu1 %9352, %v12436_v21   ;;  %v13695_v21 = vsub.f32 %v12561_v17, %v12571_v5  ;;  %9659 = vpow2.f32 %v5726_v53  ;;  %v13698_v17 = vsub.f32 %v12667_v31, %v12681_v47  ;;  %v13700_v47 = vsub.f32 %v12634_v34, %v12652_v16 }
 0xdb1   : > { %4876 = vperm.xlu0 %9351, %v12360_v42   ;;  %v13696_v42 = vsub.f32 %v12625_v46, %v12641_v51  ;;  %v12782_v51 = vpop.eup %9651  ;;  %v13702_v34 = vsub.f32 %v12699_v40, %v12709_v37 }
 0xdb2   : > { %v5712_v30 = vmul.f32 1.442695, %v13695_v21  ;;  %v5730_v5 = vmul.f32 1.442695, %v13698_v17  ;;  %v5728_v31 = vmul.f32 1.442695, %v13700_v47 }
 0xdb3   : > { %v5722_v15 = vmul.f32 1.442695, %v13696_v42  ;;  %v12789_v13 = vpop.eup %9653  ;;  %v5732_v16 = vmul.f32 1.442695, %v13702_v34  ;;  %v13706_v42 = vld [vmem:[#allocation43_spill] sm:$0xff] }
 0xdb4   : > { %4896 = vperm.xlu1 %9352, %v12379_v32   ;;  %9661 = vpow2.f32 %v5712_v30  ;;  %v13697_v32 = vsub.f32 %v12595_v60, %v12613_v61  ;;  %v13705_v30 = vld [vmem:[#allocation116_spill] sm:$0xff] }
 0xdb5   : > { %4906 = vperm.xlu0 %9351, %v12665_v29   ;;  %9663 = vpow2.f32 %v5722_v15 }
 0xdb6   : > { %v5720_v50 = vmul.f32 1.442695, %v13697_v32 }
 0xdb7   : > { %v12791_v60 = vpop.eup %9655 }
 0xdb8   : > { %4901 = vperm.xlu1 %9352, %v12450_v35   ;;  %9665 = vpow2.f32 %v5720_v50  ;;  %v13699_v35 = vsub.f32 %v12615_v1, %v12632_v59  ;;  %v12798_v19 = vpop.eup %9657  ;;  %v13701_v1 = vsub.f32 %v12654_v49, %v12674_v36 }
 0xdb9   : > { %5987 = vperm.xlu0 %9351, %v12770_v7   ;;  %9667 = vpow2.f32 %v5730_v5 }
 0xdba   : > { %v5716_v24 = vmul.f32 1.442695, %v13699_v35  ;;  %v5724_v59 = vmul.f32 1.442695, %v13701_v1  ;;  %v13707_v1 = vld [vmem:[#allocation40_spill] sm:$0xff] }
 0xdbc   : > { %4911 = vperm.xlu1 %9352, %v12777_v4   ;;  %9669 = vpow2.f32 %v5716_v24 }
 0xdbd   : > { %6002 = vperm.xlu0 %9351, %v12782_v51   ;;  %v12800_v44 = vpop.eup %9659  ;;  %9671 = vpow2.f32 %v5728_v31 }
 0xdbe   : > { %9673 = vpow2.f32 %v5724_v59 }
 0xdbf   : > { %9675 = vpow2.f32 %v5732_v16  ;;  %v13708_v16 = vld [vmem:[#allocation48_spill] sm:$0xff] }
 0xdc0   : > { %5982 = vperm.xlu1 %9352, %v12789_v13  }
 0xdc1   : > { %6012 = vperm.xlu0 %9351, %v12791_v60   ;;  %v12807_v46 = vpop.eup %9661 }
 0xdc2   : > { %v12809_v61 = vpop.eup %9663 }
 0xdc4   : > { %5992 = vperm.xlu1 %9352, %v12798_v19  }
 0xdc5   : > { %6032 = vperm.xlu0 %9351, %v12800_v44   ;;  %v12816_v29 = vpop.eup %9665 }
 0xdc6   : > { %v12818_v10 = vpop.eup %9667 }
 0xdc8   : > { %5997 = vperm.xlu1 %9352, %v12807_v46  }
 0xdc9   : > { %6022 = vperm.xlu0 %9351, %v12809_v61   ;;  %v12822_v49 = vpop.eup %9669 }
 0xdca   : > { %v12825_v36 = vpop.eup %9671 }
 0xdcb   : > { %v12828_v58 = vpop.eup %9673 }
 0xdcc   : > { %6017 = vperm.xlu1 %9352, %v12816_v29   ;;  %v12831_v37 = vpop.eup %9675 }
 0xdcd   : > { %6042 = vperm.xlu0 %9351, %v12818_v10  }
 0xdd0   : > { %6007 = vperm.xlu1 %9352, %v12822_v49  }
 0xdd4   : > { %6037 = vperm.xlu1 %9352, %v12825_v36  }
 0xdd7   : > { %v5741_v40 = vpop.permute.xlu1 %5740 }
 0xdd8   : > { %6027 = vperm.xlu1 %9352, %v12828_v58   ;;  %v5818_v56 = vsub.f32 %v12494_v22, %v5741_v40 }
 0xdda   : > { %v5834_v23 = vmul.f32 1.442695, %v5818_v56 }
 0xddb   : > { %v5751_v11 = vpop.permute.xlu1 %5750 }
 0xddc   : > { %v5820_v41 = vsub.f32 %v12491_v18, %v5751_v11  ;;  %6047 = vperm.xlu1 %9352, %v12831_v37  }
 0xdde   : > { %v5838_v38 = vmul.f32 1.442695, %v5820_v41 }
 0xddf   : > { %v5746_v26 = vpop.permute.xlu0 %5745  ;;  %v5756_v2 = vpop.permute.xlu1 %5755 }
 0xde0   : > { %9677 = vpow2.f32 %v5838_v38  ;;  %v5819_v54 = vsub.f32 %v12499_v48, %v5746_v26  ;;  %v5821_v57 = vsub.f32 %v12497_v45, %v5756_v2 }
 0xde1   : > { %9679 = vpow2.f32 %v5834_v23  ;;  %v13709_v23 = vld [vmem:[#allocation46_spill] sm:$0xff] }
 0xde2   : > { %v5836_v55 = vmul.f32 1.442695, %v5819_v54  ;;  %v5840_v14 = vmul.f32 1.442695, %v5821_v57  ;;  %v13710_v57 = vld [vmem:[#allocation119_spill] sm:$0xff] }
 0xde3   : > { %v5761_v0 = vpop.permute.xlu0 %5760 }
 0xde4   : > { %9681 = vpow2.f32 %v5836_v55  ;;  %v5822_v22 = vsub.f32 %v12505_v62, %v5761_v0 }
 0xde5   : > { %9683 = vpow2.f32 %v5840_v14 }
 0xde6   : > { %v5842_v33 = vmul.f32 1.442695, %v5822_v22 }
 0xde7   : > { %v5771_v18 = vpop.permute.xlu0 %5770  ;;  %v5766_v28 = vpop.permute.xlu1 %5765 }
 0xde8   : > { %v5824_v63 = vsub.f32 %v12502_v39, %v5771_v18  ;;  %v5823_v27 = vsub.f32 %v12511_v20, %v5766_v28  ;;  %9685 = vpow2.f32 %v5842_v33 }
 0xdea   : > { %v5844_v52 = vmul.f32 1.442695, %v5823_v27  ;;  %v5846_v45 = vmul.f32 1.442695, %v5824_v63  ;;  %v13711_v63 = vld [vmem:[#allocation121_spill] sm:$0xff] }
 0xdeb   : > { %v5781_v3 = vpop.permute.xlu0 %5780  ;;  %v5776_v48 = vpop.permute.xlu1 %5775 }
 0xdec   : > { %v5826_v43 = vsub.f32 %v13703_v8, %v5781_v3  ;;  %v5825_v6 = vsub.f32 %v13704_v12, %v5776_v48  ;;  %9687 = vpow2.f32 %v5844_v52  ;;  %v4818_v3 = vld [vmem:[#allocation5 + $0x100] sm:$0xff] }
 0xded   : > { %v9678_v25 = vpop.eup %9677  ;;  %9689 = vpow2.f32 %v5846_v45 }
 0xdee   : > { %v5848_v62 = vmul.f32 1.442695, %v5825_v6  ;;  %5903 = vadd.xlane.f32.xlu0 %v9678_v25  ;;  %v9680_v21 = vpop.eup %9679  ;;  %v5850_v39 = vmul.f32 1.442695, %v5826_v43 }
 0xdef   : > { %v5791_v9 = vpop.permute.xlu0 %5790  ;;  %v5786_v53 = vpop.permute.xlu1 %5785 }
 0xdf0   : > { %v5828_v20 = vsub.f32 %v13705_v30, %v5791_v9  ;;  %v5827_v15 = vsub.f32 %v13706_v42, %v5786_v53  ;;  %9691 = vpow2.f32 %v5848_v62  ;;  %v13712_v9 = vld [vmem:[#allocation30_spill] sm:$0xff] }
 0xdf1   : > { %v9682_v32 = vpop.eup %9681  ;;  %9693 = vpow2.f32 %v5850_v39  ;;  %v13713_v42 = vld [vmem:[#allocation26_spill] sm:$0xff] }
 0xdf2   : > { %v9684_v50 = vpop.eup %9683  ;;  %v5852_v17 = vmul.f32 1.442695, %v5827_v15  ;;  %5899 = vadd.xlane.f32.xlu0 %v9680_v21  ;;  %v6076_v5 = vpack.c.bf16 %v9682_v32, %v9680_v21  ;;  %v5854_v31 = vmul.f32 1.442695, %v5828_v20  ;;  %v4820_v20 = vld [vmem:[#allocation5 + $0x110] sm:$0xff] }
 0xdf3   : > { %v6077_v35 = vpack.c.bf16 %v9684_v50, %v9678_v25  ;;  %v5801_v24 = vpop.permute.xlu0 %5800  ;;  %v5796_v47 = vpop.permute.xlu1 %5795  ;;  %v4819_v25 = vld [vmem:[#allocation5 + $0x108] sm:$0xff] }
 0xdf4   : > { %v5829_v59 = vsub.f32 %v13707_v1, %v5796_v47  ;;  %9090 = vmatprep.mubr.bf16.mxu0 %v6076_v5  ;;  %9695 = vpow2.f32 %v5852_v17  ;;  %v5830_v40 = vsub.f32 %v13708_v16, %v5801_v24  ;;  %v13714_v24 = vld [vmem:[#allocation27_spill] sm:$0xff] }
 0xdf5   : > { %9091 = vmatmul.mubr.bf16.vlgmr.msra.gmra.mxu0 %v6077_v35  ;;  %9697 = vpow2.f32 %v5854_v31  ;;  %v9686_v11 = vpop.eup %9685  ;;  %v4821_v35 = vld [vmem:[#allocation5 + $0x118] sm:$0xff] }
 0xdf6   : > { %v5856_v34 = vmul.f32 1.442695, %v5829_v59  ;;  %5905 = vadd.xlane.f32.xlu0 %v9684_v50  ;;  %v5858_v38 = vmul.f32 1.442695, %v5830_v40  ;;  %v4822_v40 = vld [vmem:[#allocation5 + $0x120] sm:$0xff] }
 0xdf7   : > { %v5811_v56 = vpop.permute.xlu0 %5810 }
 0xdf8   : > { %9699 = vpow2.f32 %v5856_v34  ;;  %v5832_v26 = vsub.f32 %v13709_v23, %v5811_v56  ;;  %v13715_v56 = vld [vmem:[#allocation33_spill] sm:$0xff] }
 0xdf9   : > { %v9688_v41 = vpop.eup %9687  ;;  %9701 = vpow2.f32 %v5858_v38 }
 0xdfa   : > { %v6078_v54 = vpack.c.bf16 %v9688_v41, %v9686_v11  ;;  %v9690_v14 = vpop.eup %9689  ;;  %v5862_v18 = vmul.f32 1.442695, %v5832_v26  ;;  %v4823_v26 = vld [vmem:[#allocation5 + $0x128] sm:$0xff] }
 0xdfb   : > { %v5806_v2 = vpop.permute.xlu1 %5805 }
 0xdfc   : > { %v5831_v55 = vsub.f32 %v13710_v57, %v5806_v2  ;;  %9094 = vmatprep.mubr.bf16.mxu0 %v6078_v54  ;;  %v13716_v2 = vld [vmem:[#allocation28_spill] sm:$0xff] }
 0xdfd   : > { %v9692_v0 = vpop.eup %9691  ;;  %v13717_v57 = vld [vmem:[#allocation44_spill] sm:$0xff] }
 0xdfe   : > { %v5860_v22 = vmul.f32 1.442695, %v5831_v55  ;;  %5913 = vadd.xlane.f32.xlu0 %v9692_v0  ;;  %v6079_v33 = vpack.c.bf16 %v9692_v0, %v9690_v14  ;;  %v9694_v52 = vpop.eup %9693  ;;  %v13718_v55 = vld [vmem:[#allocation47_spill] sm:$0xff] }
 0xdff   : > { %v5816_v28 = vpop.permute.xlu1 %5815 }
 0xe00   : > { %9703 = vpow2.f32 %v5860_v22  ;;  %v5833_v27 = vsub.f32 %v13711_v63, %v5816_v28  ;;  %5901 = vadd.xlane.f32.xlu1 %v9682_v32  ;;  %9095 = vmatmul.mubr.bf16.gmra.mxu0 %v6079_v33  ;;  %v4824_v28 = vld [vmem:[#allocation5 + $0x130] sm:$0xff]  ;;  %v13720_v33 = vld [vmem:[#allocation42_spill] sm:$0xff]  ;;  %v13721_v63 = vld [vmem:[#allocation45_spill] sm:$0xff] }
 0xe01   : > { %v9696_v48 = vpop.eup %9695  ;;  %9705 = vpow2.f32 %v5862_v18 }
 0xe02   : > { %v5864_v45 = vmul.f32 1.442695, %v5833_v27  ;;  %5909 = vadd.xlane.f32.xlu0 %v9688_v41  ;;  %v6080_v43 = vpack.c.bf16 %v9696_v48, %v9694_v52  ;;  %v9698_v6 = vpop.eup %9697  ;;  %v13722_v27 = vsub.f32 %v13720_v33, %v13721_v63  ;;  %v13731_v33 = vld [vmem:[#allocation115_spill] sm:$0xff] }
 0xe03   : > { %v4837_v8 = vpop.permute.xlu1 %4836 }
 0xe04   : > { %9707 = vpow2.f32 %v5864_v45  ;;  %v4914_v12 = vmul.f32 %v4837_v8, %v4818_v3  ;;  %5911 = vadd.xlane.f32.xlu1 %v9690_v14  ;;  %9098 = vmatprep.mubr.bf16.mxu0 %v6080_v43  ;;  %v13719_v14 = vsub.f32 %v13717_v57, %v13718_v55  ;;  %v13723_v3 = vld [vmem:[#allocation32_spill] sm:$0xff]  ;;  %v4825_v43 = vld [vmem:[#allocation5 + $0x138] sm:$0xff] }
 0xe05   : > { %v9700_v62 = vpop.eup %9699 }
 0xe06   : > { %v5035_v53 = vadd.f32 %v13712_v9, %v4914_v12  ;;  %5921 = vadd.xlane.f32.xlu0 %v9700_v62  ;;  %v6081_v39 = vpack.c.bf16 %v9700_v62, %v9698_v6  ;;  %v9702_v50 = vpop.eup %9701  ;;  %v5736_v0 = vmul.f32 1.442695, %v13719_v14  ;;  %v13724_v12 = vld [vmem:[#allocation29_spill] sm:$0xff] }
 0xe07   : > { %v4842_v21 = vpop.permute.xlu1 %4841  ;;  %v4736_v9 = vld [vmem:[#allocation4 + $0x178] sm:$0xff] }
 0xe08   : > { %5051 = vst.msk [vmem:[#allocation5 + $0x100] sm:$0xff] %vm2043_vm3, %v5035_v53  ;;  %v4915_v30 = vmul.f32 %v4842_v21, %v4819_v25  ;;  %5907 = vadd.xlane.f32.xlu1 %v9686_v11  ;;  %9099 = vmatmul.mubr.bf16.gmra.mxu0 %v6081_v39  ;;  %9709 = vpow2.f32 %v5736_v0  ;;  %v4827_v53 = vld [vmem:[#allocation5 + $0x148] sm:$0xff] }
 0xe09   : > { %v13725_v21 = vld [vmem:[#allocation31_spill] sm:$0xff] }
 0xe0a   : > { %v5036_v15 = vadd.f32 %v13713_v42, %v4915_v30  ;;  %5917 = vadd.xlane.f32.xlu0 %v9696_v48 }
 0xe0b   : > { %v4847_v32 = vpop.permute.xlu1 %4846 }
 0xe0c   : > { %5052 = vst.msk [vmem:[#allocation5 + $0x108] sm:$0xff] %vm2043_vm3, %v5036_v15  ;;  %v4916_v17 = vmul.f32 %v4847_v32, %v4820_v20  ;;  %5919 = vadd.xlane.f32.xlu1 %v9698_v6  ;;  %v4752_v20 = vmul.f32 %v12777_v4, %v4736_v9  ;;  %v13727_v4 = vld [vmem:[#allocation35_spill] sm:$0xff] }
 0xe0d   : > { %v9704_v5 = vpop.eup %9703 }
 0xe0e   : > { %v5037_v47 = vadd.f32 %v13714_v24, %v4916_v17  ;;  %v6082_v31 = vpack.c.bf16 %v9704_v5, %v9702_v50  ;;  %v9706_v59 = vpop.eup %9705  ;;  %v13726_v17 = vld [vmem:[#allocation117_spill] sm:$0xff] }
 0xe0f   : > { %v4852_v1 = vpop.permute.xlu1 %4851 }
 0xe10   : > { %5053 = vst.msk [vmem:[#allocation5 + $0x110] sm:$0xff] %vm2043_vm3, %v5037_v47  ;;  %v4917_v34 = vmul.f32 %v4852_v1, %v4821_v35  ;;  %5915 = vadd.xlane.f32.xlu1 %v9694_v52  ;;  %9102 = vmatprep.mubr.bf16.mxu0 %v6082_v31  ;;  %v5734_v52 = vmul.f32 1.442695, %v13722_v27  ;;  %v4829_v31 = vld [vmem:[#allocation5 + $0x158] sm:$0xff] }
 0xe11   : > { %v9708_v16 = vpop.eup %9707 }
 0xe12   : > { %v5038_v11 = vadd.f32 %v13715_v56, %v4917_v34  ;;  %5929 = vadd.xlane.f32.xlu0 %v9708_v16  ;;  %v6083_v41 = vpack.c.bf16 %v9708_v16, %v9706_v59  ;;  %9711 = vpow2.f32 %v5734_v52 }
 0xe13   : > { %v4857_v38 = vpop.permute.xlu1 %4856 }
 0xe14   : > { %5054 = vst.msk [vmem:[#allocation5 + $0x118] sm:$0xff] %vm2043_vm3, %v5038_v11  ;;  %v4918_v23 = vmul.f32 %v4857_v38, %v4822_v40  ;;  %5927 = vadd.xlane.f32.xlu1 %v9706_v59  ;;  %9103 = vmatmul.mubr.bf16.gmra.mxu0 %v6083_v41  ;;  %v4826_v59 = vld [vmem:[#allocation5 + $0x140] sm:$0xff]  ;;  %v13728_v38 = vld [vmem:[#allocation41_spill] sm:$0xff] }
 0xe15   : > { %v12875_v24 = vpop.eup %9709  ;;  %v4830_v41 = vld [vmem:[#allocation5 + $0x160] sm:$0xff] }
 0xe16   : > { %v5039_v54 = vadd.f32 %v13716_v2, %v4918_v23  ;;  %5925 = vadd.xlane.f32.xlu0 %v9704_v5  ;;  %v13729_v2 = vld [vmem:[#allocation38_spill] sm:$0xff] }
 0xe17   : > { %v4862_v22 = vpop.permute.xlu1 %4861 }
 0xe18   : > { %5055 = vst.msk [vmem:[#allocation5 + $0x120] sm:$0xff] %vm2043_vm3, %v5039_v54  ;;  %v4919_v18 = vmul.f32 %v4862_v22, %v4823_v26  ;;  %5923 = vadd.xlane.f32.xlu1 %v9702_v50  ;;  %v4828_v50 = vld [vmem:[#allocation5 + $0x150] sm:$0xff]  ;;  %v4831_v22 = vld [vmem:[#allocation5 + $0x168] sm:$0xff] }
 0xe19   : > { %v4832_v26 = vld [vmem:[#allocation5 + $0x170] sm:$0xff] }
 0xe1a   : > { %v5040_v48 = vadd.f32 %v13723_v3, %v4919_v18  ;;  %v13730_v18 = vld [vmem:[#allocation34_spill] sm:$0xff]  ;;  %v4833_v3 = vld [vmem:[#allocation5 + $0x178] sm:$0xff] }
 0xe1b   : > { %v4867_v45 = vpop.permute.xlu1 %4866 }
 0xe1c   : > { %5056 = vst.msk [vmem:[#allocation5 + $0x128] sm:$0xff] %vm2043_vm3, %v5040_v48  ;;  %v4920_v8 = vmul.f32 %v4867_v45, %v4824_v28  ;;  %v13732_v48 = vld [vmem:[#allocation36_spill] sm:$0xff] }
 0xe1e   : > { %v5041_v6 = vadd.f32 %v13724_v12, %v4920_v8  ;;  %v13733_v12 = vld [vmem:[#allocation37_spill] sm:$0xff] }
 0xe1f   : > { %v4872_v25 = vpop.permute.xlu1 %4871  ;;  %v12880_v34 = vpop.eup %9711 }
 0xe20   : > { %5057 = vst.msk [vmem:[#allocation5 + $0x130] sm:$0xff] %vm2043_vm3, %v5041_v6  ;;  %v4921_v62 = vmul.f32 %v4872_v25, %v4825_v43 }
 0xe22   : > { %v5042_v39 = vadd.f32 %v13725_v21, %v4921_v62 }
 0xe23   : > { %v4882_v30 = vpop.permute.xlu1 %4881 }
 0xe24   : > { %5058 = vst.msk [vmem:[#allocation5 + $0x138] sm:$0xff] %vm2043_vm3, %v5042_v39  ;;  %v4923_v42 = vmul.f32 %v4882_v30, %v4827_v53  ;;  %v4784_v15 = vpop.xlane.xlu0 %4783 }
 0xe25   : > { %v4800_v32 = vadd.f32 %v4784_v15, %v4752_v20 }
 0xe26   : > { %v5044_v5 = vadd.f32 %v13726_v17, %v4923_v42 }
 0xe27   : > { %4816 = vst.msk [vmem:[#allocation4 + $0x178] sm:$0xff] %vm2509_vm4, %v4800_v32  ;;  %v4887_v35 = vpop.permute.xlu1 %4886 }
 0xe28   : > { %5060 = vst.msk [vmem:[#allocation5 + $0x148] sm:$0xff] %vm2043_vm3, %v5044_v5  ;;  %v4924_v47 = vmul.f32 %v4887_v35, %v4828_v50  ;;  %v5869_v50 = vld [vmem:[#allocation4 + $0x190] sm:$0xff]  ;;  %v5867_v35 = vld [vmem:[#allocation4 + $0x180] sm:$0xff] }
 0xe29   : > { %6057 = vperm.xlu1 %9352, %v12875_v24   ;;  %v5885_v17 = vmul.f32 %v12798_v19, %v5869_v50 }
 0xe2a   : > { %v5045_v1 = vadd.f32 %v13727_v4, %v4924_v47  ;;  %v5883_v4 = vmul.f32 %v12789_v13, %v5867_v35 }
 0xe2b   : > { %v4892_v16 = vpop.permute.xlu1 %4891 }
 0xe2c   : > { %5061 = vst.msk [vmem:[#allocation5 + $0x150] sm:$0xff] %vm2043_vm3, %v5045_v1  ;;  %v4925_v40 = vmul.f32 %v4892_v16, %v4829_v31  ;;  %v4877_v56 = vpop.permute.xlu0 %4876  ;;  %6052 = vperm.xlu0 %9351, %v12880_v34  }
 0xe2d   : > { %v4922_v11 = vmul.f32 %v4877_v56, %v4826_v59  ;;  %v5870_v59 = vld [vmem:[#allocation4 + $0x198] sm:$0xff] }
 0xe2e   : > { %v5046_v23 = vadd.f32 %v13728_v38, %v4925_v40  ;;  %v5886_v40 = vmul.f32 %v12807_v46, %v5870_v59 }
 0xe2f   : > { %v5043_v54 = vadd.f32 %v13729_v2, %v4922_v11  ;;  %v4897_v57 = vpop.permute.xlu1 %4896 }
 0xe30   : > { %5062 = vst.msk [vmem:[#allocation5 + $0x158] sm:$0xff] %vm2043_vm3, %v5046_v23  ;;  %v4926_v55 = vmul.f32 %v4897_v57, %v4830_v41  ;;  %v4907_v14 = vpop.permute.xlu0 %4906  ;;  %v5874_v41 = vld [vmem:[#allocation4 + $0x1b8] sm:$0xff]  ;;  %v5868_v23 = vld [vmem:[#allocation4 + $0x188] sm:$0xff] }
 0xe31   : > { %5059 = vst.msk [vmem:[#allocation5 + $0x140] sm:$0xff] %vm2043_vm3, %v5043_v54  ;;  %v4928_v0 = vmul.f32 %v4907_v14, %v4832_v26  ;;  %v5890_v26 = vmul.f32 %v12816_v29, %v5874_v41  ;;  %v5884_v2 = vmul.f32 %v12770_v7, %v5868_v23  ;;  %v5872_v54 = vld [vmem:[#allocation4 + $0x1a8] sm:$0xff]  ;;  %v5873_v14 = vld [vmem:[#allocation4 + $0x1b0] sm:$0xff] }
 0xe32   : > { %v5047_v28 = vadd.f32 %v13730_v18, %v4926_v55  ;;  %v5889_v18 = vmul.f32 %v12791_v60, %v5873_v14 }
 0xe33   : > { %v5049_v63 = vadd.f32 %v13731_v33, %v4928_v0  ;;  %v4902_v27 = vpop.permute.xlu1 %4901  ;;  %v5888_v0 = vmul.f32 %v12822_v49, %v5872_v54  ;;  %v5876_v49 = vld [vmem:[#allocation4 + $0x1c8] sm:$0xff]  ;;  %v5964_v54 = vld [vmem:[#allocation5 + $0x180] sm:$0xff] }
 0xe34   : > { %5063 = vst.msk [vmem:[#allocation5 + $0x160] sm:$0xff] %vm2043_vm3, %v5047_v28  ;;  %v4927_v52 = vmul.f32 %v4902_v27, %v4831_v22  ;;  %v12896_v25 = vpop.permute.xlu0 %5987  ;;  %v5878_v28 = vld [vmem:[#allocation4 + $0x1d8] sm:$0xff]  ;;  %v5892_v60 = vmul.f32 %v12828_v58, %v5876_v49 }
 0xe35   : > { %5065 = vst.msk [vmem:[#allocation5 + $0x170] sm:$0xff] %vm2043_vm3, %v5049_v63  ;;  %v5871_v63 = vld [vmem:[#allocation4 + $0x1a0] sm:$0xff]  ;;  %v5894_v7 = vmul.f32 %v12825_v36, %v5878_v28 }
 0xe36   : > { %v5048_v45 = vadd.f32 %v13732_v48, %v4927_v52 }
 0xe37   : > { %v4912_v8 = vpop.permute.xlu1 %4911 }
 0xe38   : > { %5064 = vst.msk [vmem:[#allocation5 + $0x168] sm:$0xff] %vm2043_vm3, %v5048_v45  ;;  %v4929_v43 = vmul.f32 %v4912_v8, %v4833_v3  ;;  %v12898_v62 = vpop.permute.xlu0 %6002  ;;  %v5887_v3 = vmul.f32 %v12782_v51, %v5871_v63  ;;  %v5877_v8 = vld [vmem:[#allocation4 + $0x1d0] sm:$0xff]  ;;  %v5882_v51 = vld [vmem:[#allocation4 + $0x1f8] sm:$0xff] }
 0xe39   : > { %v5898_v58 = vmul.f32 %v12875_v24, %v5882_v51 }
 0xe3a   : > { %v5050_v6 = vadd.f32 %v13733_v12, %v4929_v43 }
 0xe3b   : > { %v12900_v9 = vpop.permute.xlu1 %5982 }
 0xe3c   : > { %5066 = vst.msk [vmem:[#allocation5 + $0x178] sm:$0xff] %vm2043_vm3, %v5050_v6  ;;  %v12902_v53 = vpop.permute.xlu0 %6012  ;;  %v5893_v6 = vmul.f32 %v12800_v44, %v5877_v8 }
 0xe3f   : > { %v12904_v21 = vpop.permute.xlu1 %5992 }
 0xe40   : > { %v12906_v39 = vpop.permute.xlu0 %6032 }
 0xe43   : > { %v12908_v30 = vpop.permute.xlu1 %5997 }
 0xe44   : > { %v12910_v20 = vpop.permute.xlu0 %6022 }
 0xe47   : > { %v12912_v42 = vpop.permute.xlu1 %6017 }
 0xe48   : > { %v12914_v15 = vpop.permute.xlu0 %6042 }
 0xe4b   : > { %v12916_v32 = vpop.permute.xlu1 %6007 }
 0xe4f   : > { %v12919_v31 = vpop.permute.xlu1 %6037 }
 0xe53   : > { %v12925_v56 = vpop.permute.xlu1 %6027 }
 0xe57   : > { %v12928_v38 = vpop.permute.xlu1 %6047 }
 0xe77   : > { %v5904_v5 = vpop.xlane.xlu0 %5903 }
 0xe78   : > { %v5933_v47 = vadd.f32 %v5904_v5, %v5885_v17  ;;  %v5875_v17 = vld [vmem:[#allocation4 + $0x1c0] sm:$0xff] }
 0xe79   : > { %v5891_v35 = vmul.f32 %v12809_v61, %v5875_v17  ;;  %v5975_v17 = vld [vmem:[#allocation5 + $0x1d8] sm:$0xff] }
 0xe7a   : > { %5949 = vst.msk [vmem:[#allocation4 + $0x190] sm:$0xff] %vm2509_vm4, %v5933_v47 }
 0xe7b   : > { %v5900_v1 = vpop.xlane.xlu0 %5899 }
 0xe7c   : > { %v5931_v16 = vadd.f32 %v5900_v1, %v5883_v4  ;;  %v5881_v4 = vld [vmem:[#allocation4 + $0x1f0] sm:$0xff] }
 0xe7e   : > { %5947 = vst.msk [vmem:[#allocation4 + $0x180] sm:$0xff] %vm2509_vm4, %v5931_v16  ;;  %v5880_v16 = vld [vmem:[#allocation4 + $0x1e8] sm:$0xff] }
 0xe7f   : > { %v5906_v11 = vpop.xlane.xlu0 %5905  ;;  %v5896_v23 = vmul.f32 %v12831_v37, %v5880_v16  ;;  %v6060_v37 = vmul.f32 %v12900_v9, %v5964_v54  ;;  %v5968_v9 = vld [vmem:[#allocation5 + $0x1a0] sm:$0xff]  ;;  %v5978_v16 = vld [vmem:[#allocation5 + $0x1f0] sm:$0xff] }
 0xe80   : > { %v5934_v19 = vadd.f32 %v5906_v11, %v5886_v40  ;;  %v5897_v40 = vmul.f32 %v12880_v34, %v5881_v4  ;;  %v5966_v34 = vld [vmem:[#allocation5 + $0x190] sm:$0xff] }
 0xe82   : > { %5950 = vst.msk [vmem:[#allocation4 + $0x198] sm:$0xff] %vm2509_vm4, %v5934_v19  ;;  %v5879_v19 = vld [vmem:[#allocation4 + $0x1e0] sm:$0xff] }
 0xe83   : > { %v5895_v24 = vmul.f32 %v12818_v10, %v5879_v19 }
 0xe87   : > { %v5914_v13 = vpop.xlane.xlu0 %5913 }
 0xe88   : > { %v5938_v57 = vadd.f32 %v5914_v13, %v5890_v26 }
 0xe89   : > { %v5902_v55 = vpop.xlane.xlu1 %5901 }
 0xe8a   : > { %v5932_v46 = vadd.f32 %v5902_v55, %v5884_v2  ;;  %5954 = vst.msk [vmem:[#allocation4 + $0x1b8] sm:$0xff] %vm2509_vm4, %v5938_v57  ;;  %v6062_v57 = vmul.f32 %v12904_v21, %v5966_v34  ;;  %v5967_v55 = vld [vmem:[#allocation5 + $0x198] sm:$0xff] }
 0xe8b   : > { %v5910_v22 = vpop.xlane.xlu0 %5909 }
 0xe8c   : > { %5948 = vst.msk [vmem:[#allocation4 + $0x188] sm:$0xff] %vm2509_vm4, %v5932_v46  ;;  %v5936_v33 = vadd.f32 %v5910_v22, %v5888_v0  ;;  %v5965_v0 = vld [vmem:[#allocation5 + $0x188] sm:$0xff] }
 0xe8d   : > { %v5912_v29 = vpop.xlane.xlu1 %5911 }
 0xe8e   : > { %v5937_v27 = vadd.f32 %v5912_v29, %v5889_v18  ;;  %5952 = vst.msk [vmem:[#allocation4 + $0x1a8] sm:$0xff] %vm2509_vm4, %v5936_v33  ;;  %v6063_v18 = vmul.f32 %v12908_v30, %v5967_v55  ;;  %v6061_v33 = vmul.f32 %v12896_v25, %v5965_v0  ;;  %v5971_v30 = vld [vmem:[#allocation5 + $0x1b8] sm:$0xff] }
 0xe8f   : > { %v5922_v52 = vpop.xlane.xlu0 %5921 }
 0xe90   : > { %5953 = vst.msk [vmem:[#allocation4 + $0x1b0] sm:$0xff] %vm2509_vm4, %v5937_v27  ;;  %v5942_v48 = vadd.f32 %v5922_v52, %v5894_v7  ;;  %v5970_v27 = vld [vmem:[#allocation5 + $0x1b0] sm:$0xff] }
 0xe91   : > { %v5908_v45 = vpop.xlane.xlu1 %5907  ;;  %v6066_v7 = vmul.f32 %v12902_v53, %v5970_v27  ;;  %v5972_v53 = vld [vmem:[#allocation5 + $0x1c0] sm:$0xff] }
 0xe92   : > { %v5935_v43 = vadd.f32 %v5908_v45, %v5887_v3  ;;  %5958 = vst.msk [vmem:[#allocation4 + $0x1d8] sm:$0xff] %vm2509_vm4, %v5942_v48  ;;  %v6064_v3 = vmul.f32 %v12898_v62, %v5968_v9  ;;  %v5969_v48 = vld [vmem:[#allocation5 + $0x1a8] sm:$0xff]  ;;  %v6067_v45 = vmul.f32 %v12912_v42, %v5971_v30  ;;  %v6068_v42 = vmul.f32 %v12910_v20, %v5972_v53 }
 0xe93   : > { %v5918_v12 = vpop.xlane.xlu0 %5917 }
 0xe94   : > { %5951 = vst.msk [vmem:[#allocation4 + $0x1a0] sm:$0xff] %vm2509_vm4, %v5935_v43  ;;  %v5940_v36 = vadd.f32 %v5918_v12, %v5892_v60  ;;  %v5974_v43 = vld [vmem:[#allocation5 + $0x1d0] sm:$0xff]  ;;  %v6065_v12 = vmul.f32 %v12916_v32, %v5969_v48  ;;  %v6071_v32 = vmul.f32 %v12919_v31, %v5975_v17  ;;  %v5979_v31 = vld [vmem:[#allocation5 + $0x1f8] sm:$0xff] }
 0xe95   : > { %v5920_v50 = vpop.xlane.xlu1 %5919 }
 0xe96   : > { %v5941_v5 = vadd.f32 %v5920_v50, %v5893_v6  ;;  %5956 = vst.msk [vmem:[#allocation4 + $0x1c8] sm:$0xff] %vm2509_vm4, %v5940_v36  ;;  %v6070_v50 = vmul.f32 %v12906_v39, %v5974_v43 }
 0xe98   : > { %5957 = vst.msk [vmem:[#allocation4 + $0x1d0] sm:$0xff] %vm2509_vm4, %v5941_v5 }
 0xe99   : > { %v5916_v47 = vpop.xlane.xlu1 %5915 }
 0xe9a   : > { %v5939_v1 = vadd.f32 %v5916_v47, %v5891_v35  ;;  %v5973_v35 = vld [vmem:[#allocation5 + $0x1c8] sm:$0xff] }
 0xe9b   : > { %v5930_v59 = vpop.xlane.xlu0 %5929  ;;  %v6069_v39 = vmul.f32 %v12925_v56, %v5973_v35  ;;  %v5977_v56 = vld [vmem:[#allocation5 + $0x1e8] sm:$0xff] }
 0xe9c   : > { %5955 = vst.msk [vmem:[#allocation4 + $0x1c0] sm:$0xff] %vm2509_vm4, %v5939_v1  ;;  %v5946_v44 = vadd.f32 %v5930_v59, %v5898_v58  ;;  %v6073_v34 = vmul.f32 %v12928_v38, %v5977_v56 }
 0xe9d   : > { %v5928_v11 = vpop.xlane.xlu1 %5927 }
 0xe9e   : > { %5962 = vst.msk [vmem:[#allocation4 + $0x1f8] sm:$0xff] %vm2509_vm4, %v5946_v44  ;;  %v5945_v41 = vadd.f32 %v5928_v11, %v5897_v40  ;;  %v5976_v40 = vld [vmem:[#allocation5 + $0x1e0] sm:$0xff] }
 0xe9f   : > { %v5926_v61 = vpop.xlane.xlu0 %5925 }
 0xea0   : > { %5961 = vst.msk [vmem:[#allocation4 + $0x1f0] sm:$0xff] %vm2509_vm4, %v5945_v41  ;;  %v5944_v26 = vadd.f32 %v5926_v61, %v5896_v23  ;;  %v6072_v23 = vmul.f32 %v12914_v15, %v5976_v40 }
 0xea1   : > { %v5924_v13 = vpop.xlane.xlu1 %5923 }
 0xea2   : > { %5960 = vst.msk [vmem:[#allocation4 + $0x1e8] sm:$0xff] %vm2509_vm4, %v5944_v26  ;;  %v5943_v2 = vadd.f32 %v5924_v13, %v5895_v24 }
 0xea4   : > { %5959 = vst.msk [vmem:[#allocation4 + $0x1e0] sm:$0xff] %vm2509_vm4, %v5943_v2 }
 0xea5   : > { %v6058_v19 = vpop.permute.xlu1 %6057 }
 0xea6   : > { %v6075_v24 = vmul.f32 %v6058_v19, %v5979_v31 }
 0xea7   : > { %v6053_v44 = vpop.permute.xlu0 %6052 }
 0xea8   : > { %v6074_v11 = vmul.f32 %v6053_v44, %v5978_v16 }
 0xeb5   : > { %v9092_v14 = vpop.f32.mrf.mxu0 }
 0xeb6   : > { %v6183_v46 = vadd.f32 %v9092_v14, %v6062_v57 }
 0xeb7   : > { %v6118_v22 = vpop.f32.mrf.mxu0 }
 0xeb8   : > { %6199 = vst.msk [vmem:[#allocation5 + $0x190] sm:$0xff] %vm2043_vm3, %v6183_v46  ;;  %v6181_v10 = vadd.f32 %v6118_v22, %v6060_v37 }
 0xeb9   : > { %v9093_v28 = vpop.f32.mrf.mxu0 }
 0xeba   : > { %6197 = vst.msk [vmem:[#allocation5 + $0x180] sm:$0xff] %vm2043_vm3, %v6181_v10  ;;  %v6184_v29 = vadd.f32 %v9093_v28, %v6063_v18 }
 0xebb   : > { %v6121_v63 = vpop.f32.mrf.mxu0 }
 0xebc   : > { %6200 = vst.msk [vmem:[#allocation5 + $0x198] sm:$0xff] %vm2043_vm3, %v6184_v29  ;;  %v6182_v21 = vadd.f32 %v6121_v63, %v6061_v33 }
 0xebe   : > { %6198 = vst.msk [vmem:[#allocation5 + $0x188] sm:$0xff] %vm2043_vm3, %v6182_v21 }
 0xec0   : > { %v9096_v52 = vpop.f32.mrf.mxu0 }
 0xec1   : > { %v6187_v49 = vadd.f32 %v9096_v52, %v6066_v7 }
 0xec2   : > { %v6134_v25 = vpop.f32.mrf.mxu0 }
 0xec3   : > { %6203 = vst.msk [vmem:[#allocation5 + $0x1b0] sm:$0xff] %vm2043_vm3, %v6187_v49  ;;  %v6185_v8 = vadd.f32 %v6134_v25, %v6064_v3 }
 0xec4   : > { %v9097_v60 = vpop.f32.mrf.mxu0 }
 0xec5   : > { %6201 = vst.msk [vmem:[#allocation5 + $0x1a0] sm:$0xff] %vm2043_vm3, %v6185_v8  ;;  %v6188_v6 = vadd.f32 %v9097_v60, %v6067_v45 }
 0xec6   : > { %v6137_v36 = vpop.f32.mrf.mxu0 }
 0xec7   : > { %6204 = vst.msk [vmem:[#allocation5 + $0x1b8] sm:$0xff] %vm2043_vm3, %v6188_v6  ;;  %v6186_v62 = vadd.f32 %v6137_v36, %v6065_v12 }
 0xec8   : > { %v9100_v5 = vpop.f32.mrf.mxu0 }
 0xec9   : > { %6202 = vst.msk [vmem:[#allocation5 + $0x1a8] sm:$0xff] %vm2043_vm3, %v6186_v62  ;;  %v6191_v51 = vadd.f32 %v9100_v5, %v6070_v50 }
 0xeca   : > { %v6150_v47 = vpop.f32.mrf.mxu0 }
 0xecb   : > { %6207 = vst.msk [vmem:[#allocation5 + $0x1d0] sm:$0xff] %vm2043_vm3, %v6191_v51  ;;  %v6189_v4 = vadd.f32 %v6150_v47, %v6068_v42 }
 0xecc   : > { %v9101_v1 = vpop.f32.mrf.mxu0 }
 0xecd   : > { %6205 = vst.msk [vmem:[#allocation5 + $0x1c0] sm:$0xff] %vm2043_vm3, %v6189_v4  ;;  %v6192_v58 = vadd.f32 %v9101_v1, %v6071_v32 }
 0xece   : > { %v6153_v59 = vpop.f32.mrf.mxu0 }
 0xecf   : > { %6208 = vst.msk [vmem:[#allocation5 + $0x1d8] sm:$0xff] %vm2043_vm3, %v6192_v58  ;;  %v6190_v20 = vadd.f32 %v6153_v59, %v6069_v39 }
 0xed1   : > { %6206 = vst.msk [vmem:[#allocation5 + $0x1c8] sm:$0xff] %vm2043_vm3, %v6190_v20 }
 0xed4   : > { %v9104_v41 = vpop.f32.mrf.mxu0 }
 0xed5   : > { %v6195_v61 = vadd.f32 %v9104_v41, %v6074_v11 }
 0xed6   : > { %v6166_v26 = vpop.f32.mrf.mxu0 }
 0xed7   : > { %6211 = vst.msk [vmem:[#allocation5 + $0x1f0] sm:$0xff] %vm2043_vm3, %v6195_v61  ;;  %v6193_v13 = vadd.f32 %v6166_v26, %v6072_v23 }
 0xed8   : > { %v9105_v2 = vpop.f32.mrf.mxu0 }
 0xed9   : > { %6209 = vst.msk [vmem:[#allocation5 + $0x1e0] sm:$0xff] %vm2043_vm3, %v6193_v13  ;;  %v6196_v54 = vadd.f32 %v9105_v2, %v6075_v24  ;;  %6232 = sbr.rel (%p7982_p3) target bundleno = 4278 (0x10b6), region = 56 }
 0xeda   : > { %v6169_v57 = vpop.f32.mrf.mxu0 }
 0xedb   : > { %6212 = vst.msk [vmem:[#allocation5 + $0x1f8] sm:$0xff] %vm2043_vm3, %v6196_v54  ;;  %v6194_v55 = vadd.f32 %v6169_v57, %v6073_v34 }
 0xedd   : > { %6210 = vst.msk [vmem:[#allocation5 + $0x1e8] sm:$0xff] %vm2043_vm3, %v6194_v55 }
 0xede   : > { %v6391_v15 = vld [vmem:[#allocation4 + $0x90] sm:$0xff]  ;;  %v6389_v14 = vld [vmem:[#allocation4 + $0x80] sm:$0xff]  ;;  %v6392_v37 = vld [vmem:[#allocation4 + $0x98] sm:$0xff]  ;;  %v9980_v46 = vmov 0  }
 0xedf   : > { %9730 = vset.pattern.permute.xlu1 %v9980_v46  ;;  %9729 = vset.pattern.permute.xlu0 %v9980_v46  ;;  %9739 = vrcp.f32 %v6391_v15  ;;  %v6390_v38 = vld [vmem:[#allocation4 + $0x88] sm:$0xff]  ;;  %v6233_v22 = vld [vmem:[#allocation4] sm:$0xff]  ;;  %v6236_v18 = vld [vmem:[#allocation4 + $0x18] sm:$0xff] }
 0xee0   : > { %9741 = vrcp.f32 %v6389_v14  ;;  %v6234_v0 = vld [vmem:[#allocation4 + $0x8] sm:$0xff]  ;;  %v6235_v10 = vld [vmem:[#allocation4 + $0x10] sm:$0xff]  ;;  %v6393_v33 = vld [vmem:[#allocation4 + $0xa0] sm:$0xff] }
 0xee1   : > { %9743 = vrcp.f32 %v6392_v37  ;;  %v6394_v28 = vld [vmem:[#allocation4 + $0xa8] sm:$0xff]  ;;  %v6396_v27 = vld [vmem:[#allocation4 + $0xb8] sm:$0xff]  ;;  %v6395_v7 = vld [vmem:[#allocation4 + $0xb0] sm:$0xff] }
 0xee2   : > { %9745 = vrcp.f32 %v6390_v38  ;;  %v6238_v52 = vld [vmem:[#allocation4 + $0x28] sm:$0xff]  ;;  %v6237_v49 = vld [vmem:[#allocation4 + $0x20] sm:$0xff]  ;;  %v9731_v48 = vld [vmem:[%s13210_s5 + $0x18] sm:$0xff]  }
 0xee3   : > { %9747 = vrcp.f32 %v6234_v0  ;;  %v6240_v45 = vld [vmem:[#allocation4 + $0x38] sm:$0xff]  ;;  %9106 = vmatprep.subr.bf16.mxu0 %v9731_v48  ;;  %v9732_v8 = vld [vmem:[%s13210_s5 + $0x10] sm:$0xff]   ;;  %v9733_v12 = vld [vmem:[%s13210_s5 + $0x8] sm:$0xff]  }
 0xee4   : > { %9749 = vrcp.f32 %v6233_v22  ;;  %v6239_v60 = vld [vmem:[#allocation4 + $0x30] sm:$0xff]  ;;  %9107 = vmatpush3.bf16.msra.mxu0 %v9731_v48  ;;  %v9734_v6 = vld [vmem:[%s13210_s5] sm:$0xff]   ;;  %v6398_v36 = vld [vmem:[#allocation4 + $0xc8] sm:$0xff]  ;;  %9126 = vmatprep.subr.bf16.mxu1 %v9733_v12 }
 0xee5   : > { %9751 = vrcp.f32 %v6236_v18  ;;  %9108 = vmatprep.subr.bf16.mxu0 %v9732_v8  ;;  %v6397_v50 = vld [vmem:[#allocation4 + $0xc0] sm:$0xff]  ;;  %9127 = vmatpush3.bf16.msra.mxu1 %v9733_v12  ;;  %v6400_v5 = vld [vmem:[#allocation4 + $0xd8] sm:$0xff]  ;;  %v6399_v51 = vld [vmem:[#allocation4 + $0xd0] sm:$0xff] }
 0xee6   : > { %9753 = vrcp.f32 %v6235_v10  ;;  %9128 = vmatprep.subr.bf16.mxu1 %v9734_v6  ;;  %v6242_v47 = vld [vmem:[#allocation4 + $0x48] sm:$0xff]  ;;  %v6241_v4 = vld [vmem:[#allocation4 + $0x40] sm:$0xff]  ;;  %v6244_v39 = vld [vmem:[#allocation4 + $0x58] sm:$0xff] }
 0xee7   : > { %9755 = vrcp.f32 %v6394_v28  ;;  %v6243_v59 = vld [vmem:[#allocation4 + $0x50] sm:$0xff]  ;;  %v6402_v44 = vld [vmem:[#allocation4 + $0xe8] sm:$0xff]  ;;  %v6401_v40 = vld [vmem:[#allocation4 + $0xe0] sm:$0xff] }
 0xee8   : > { %9757 = vrcp.f32 %v6393_v33  ;;  %9109 = vmatpush3.bf16.msra.mxu0 %v9732_v8  ;;  %v6404_v31 = vld [vmem:[#allocation4 + $0xf8] sm:$0xff]  ;;  %v6403_v41 = vld [vmem:[#allocation4 + $0xf0] sm:$0xff]  ;;  %v6246_v61 = vld [vmem:[#allocation4 + $0x68] sm:$0xff] }
 0xee9   : > { %9759 = vrcp.f32 %v6396_v27  ;;  %9129 = vmatpush3.bf16.msra.mxu1 %v9734_v6  ;;  %v6245_v26 = vld [vmem:[#allocation4 + $0x60] sm:$0xff]  ;;  %v6248_v13 = vld [vmem:[#allocation4 + $0x78] sm:$0xff]  ;;  %v6247_v34 = vld [vmem:[#allocation4 + $0x70] sm:$0xff] }
 0xeea   : > { %9761 = vrcp.f32 %v6395_v7  ;;  %v6813_v57 = vld [vmem:[#allocation4 + $0x108] sm:$0xff]  ;;  %v6812_v15 = vld [vmem:[#allocation4 + $0x100] sm:$0xff]  ;;  %v6815_v37 = vld [vmem:[#allocation4 + $0x118] sm:$0xff] }
 0xeeb   : > { %9763 = vrcp.f32 %v6238_v52  ;;  %v6814_v38 = vld [vmem:[#allocation4 + $0x110] sm:$0xff]  ;;  %v7119_v22 = vld [vmem:[#allocation4 + $0x188] sm:$0xff]  ;;  %v7118_v10 = vld [vmem:[#allocation4 + $0x180] sm:$0xff] }
 0xeec   : > { %v9740_v29 = vpop.eup %9739  ;;  %9765 = vrcp.f32 %v6237_v49  ;;  %v7121_v33 = vld [vmem:[#allocation4 + $0x198] sm:$0xff]  ;;  %v6818_v48 = vld [vmem:[#allocation4 + $0x130] sm:$0xff]  ;;  %v7123_v8 = vld [vmem:[#allocation4 + $0x1a8] sm:$0xff] }
 0xeed   : > { %v9742_v63 = vpop.eup %9741  ;;  %6449 = vperm.xlu1 %9730, %v9740_v29   ;;  %9767 = vrcp.f32 %v6240_v45  ;;  %v7125_v6 = vld [vmem:[#allocation4 + $0x1b8] sm:$0xff] }
 0xeee   : > { %v9744_v21 = vpop.eup %9743  ;;  %6439 = vperm.xlu0 %9729, %v9742_v63   ;;  %9769 = vrcp.f32 %v6239_v60  ;;  %v7120_v63 = vld [vmem:[#allocation4 + $0x190] sm:$0xff]  ;;  %v7122_v60 = vld [vmem:[#allocation4 + $0x1a0] sm:$0xff] }
 0xeef   : > { %v9746_v9 = vpop.eup %9745  ;;  %9771 = vrcp.f32 %v6398_v36  ;;  %v7124_v36 = vld [vmem:[#allocation4 + $0x1b0] sm:$0xff] }
 0xef0   : > { %v9748_v30 = vpop.eup %9747  ;;  %9773 = vrcp.f32 %v6397_v50 }
 0xef1   : > { %6454 = vperm.xlu1 %9730, %v9744_v21   ;;  %v9750_v3 = vpop.eup %9749  ;;  %9775 = vrcp.f32 %v6400_v5  ;;  %v13002_v21 = vld [vmem:[%s13210_s5 + $0x28] sm:$0xff]   ;;  %v6820_v5 = vld [vmem:[#allocation4 + $0x140] sm:$0xff] }
 0xef2   : > { %6444 = vperm.xlu0 %9729, %v9746_v9   ;;  %v9752_v25 = vpop.eup %9751  ;;  %9777 = vrcp.f32 %v6399_v51  ;;  %v6817_v9 = vld [vmem:[#allocation4 + $0x128] sm:$0xff]  ;;  %9146 = vmatprep.subr.bf16.mxu0 %v13002_v21  ;;  %v6823_v51 = vld [vmem:[#allocation4 + $0x158] sm:$0xff] }
 0xef3   : > { %v9754_v43 = vpop.eup %9753  ;;  %9779 = vrcp.f32 %v6242_v47  ;;  %v6822_v47 = vld [vmem:[#allocation4 + $0x150] sm:$0xff] }
 0xef4   : > { %v9756_v53 = vpop.eup %9755  ;;  %9781 = vrcp.f32 %v6241_v4  ;;  %v7127_v4 = vld [vmem:[#allocation4 + $0x1c8] sm:$0xff] }
 0xef5   : > { %6288 = vperm.xlu1 %9730, %v9748_v30   ;;  %v9758_v62 = vpop.eup %9757  ;;  %9783 = vrcp.f32 %v6244_v39  ;;  %v6816_v30 = vld [vmem:[#allocation4 + $0x120] sm:$0xff] }
 0xef6   : > { %6283 = vperm.xlu0 %9729, %v9750_v3   ;;  %v9760_v17 = vpop.eup %9759  ;;  %9785 = vrcp.f32 %v6243_v59  ;;  %v6819_v3 = vld [vmem:[#allocation4 + $0x138] sm:$0xff]  ;;  %v7126_v39 = vld [vmem:[#allocation4 + $0x1c0] sm:$0xff] }
 0xef7   : > { %v9762_v42 = vpop.eup %9761  ;;  %9787 = vrcp.f32 %v6402_v44  ;;  %v7129_v59 = vld [vmem:[#allocation4 + $0x1d8] sm:$0xff]  ;;  %v7128_v44 = vld [vmem:[#allocation4 + $0x1d0] sm:$0xff] }
 0xef8   : > { %v9764_v35 = vpop.eup %9763  ;;  %9789 = vrcp.f32 %v6401_v40  ;;  %v6825_v40 = vld [vmem:[#allocation4 + $0x168] sm:$0xff] }
 0xef9   : > { %6298 = vperm.xlu1 %9730, %v9752_v25   ;;  %v9766_v32 = vpop.eup %9765  ;;  %9791 = vrcp.f32 %v6404_v31  ;;  %v13008_v25 = vld [vmem:[%s13210_s5 + $0x38] sm:$0xff]   ;;  %v6824_v31 = vld [vmem:[#allocation4 + $0x160] sm:$0xff] }
 0xefa   : > { %6293 = vperm.xlu0 %9729, %v9754_v43   ;;  %v9768_v1 = vpop.eup %9767  ;;  %9793 = vrcp.f32 %v6403_v41  ;;  %9166 = vmatprep.subr.bf16.mxu1 %v13008_v25  ;;  %v6827_v41 = vld [vmem:[#allocation4 + $0x178] sm:$0xff] }
 0xefb   : > { %v9770_v58 = vpop.eup %9769  ;;  %9795 = vrcp.f32 %v6246_v61  ;;  %v6826_v61 = vld [vmem:[#allocation4 + $0x170] sm:$0xff] }
 0xefc   : > { %v9772_v16 = vpop.eup %9771  ;;  %9797 = vrcp.f32 %v6245_v26  ;;  %v7131_v26 = vld [vmem:[#allocation4 + $0x1e8] sm:$0xff] }
 0xefd   : > { %6464 = vperm.xlu1 %9730, %v9756_v53   ;;  %v9774_v20 = vpop.eup %9773  ;;  %9799 = vrcp.f32 %v6248_v13  ;;  %v7130_v13 = vld [vmem:[#allocation4 + $0x1e0] sm:$0xff] }
 0xefe   : > { %6459 = vperm.xlu0 %9729, %v9758_v62   ;;  %v9776_v11 = vpop.eup %9775  ;;  %9801 = vrcp.f32 %v6247_v34  ;;  %v6821_v62 = vld [vmem:[#allocation4 + $0x148] sm:$0xff]  ;;  %v7133_v34 = vld [vmem:[#allocation4 + $0x1f8] sm:$0xff] }
 0xeff   : > { %v9778_v19 = vpop.eup %9777  ;;  %9803 = vrcp.f32 %v6813_v57  ;;  %v7132_v57 = vld [vmem:[#allocation4 + $0x1f0] sm:$0xff] }
 0xf00   : > { %v9780_v23 = vpop.eup %9779  ;;  %9805 = vrcp.f32 %v6812_v15 }
 0xf01   : > { %6474 = vperm.xlu1 %9730, %v9760_v17   ;;  %v9782_v56 = vpop.eup %9781  ;;  %9807 = vrcp.f32 %v6815_v37 }
 0xf02   : > { %6469 = vperm.xlu0 %9729, %v9762_v42   ;;  %v9784_v24 = vpop.eup %9783  ;;  %9809 = vrcp.f32 %v6814_v38 }
 0xf03   : > { %v9786_v2 = vpop.eup %9785  ;;  %9811 = vrcp.f32 %v7119_v22 }
 0xf04   : > { %v9788_v54 = vpop.eup %9787  ;;  %9813 = vrcp.f32 %v7118_v10 }
 0xf05   : > { %6308 = vperm.xlu1 %9730, %v9764_v35   ;;  %v9790_v55 = vpop.eup %9789  ;;  %9815 = vrcp.f32 %v7121_v33  ;;  %v6424_v33 = vld [vmem:[#allocation5 + $0x98] sm:$0xff] }
 0xf06   : > { %6303 = vperm.xlu0 %9729, %v9766_v32   ;;  %v9792_v14 = vpop.eup %9791  ;;  %9817 = vrcp.f32 %v7120_v63  ;;  %v6422_v63 = vld [vmem:[#allocation5 + $0x88] sm:$0xff] }
 0xf07   : > { %v9794_v46 = vpop.eup %9793  ;;  %9819 = vrcp.f32 %v6817_v9 }
 0xf08   : > { %v9796_v0 = vpop.eup %9795  ;;  %9821 = vrcp.f32 %v6816_v30 }
 0xf09   : > { %6318 = vperm.xlu1 %9730, %v9768_v1   ;;  %v9798_v18 = vpop.eup %9797  ;;  %9823 = vrcp.f32 %v6819_v3 }
 0xf0a   : > { %6313 = vperm.xlu0 %9729, %v9770_v58   ;;  %v9800_v28 = vpop.eup %9799  ;;  %9825 = vrcp.f32 %v6818_v48 }
 0xf0b   : > { %v9802_v29 = vpop.eup %9801  ;;  %9827 = vrcp.f32 %v7123_v8 }
 0xf0c   : > { %v9804_v27 = vpop.eup %9803  ;;  %9829 = vrcp.f32 %v7122_v60 }
 0xf0d   : > { %6484 = vperm.xlu1 %9730, %v9772_v16   ;;  %v9806_v7 = vpop.eup %9805  ;;  %9831 = vrcp.f32 %v7125_v6  ;;  %v9736_v6 = vld [vmem:[%s13210_s5 + $0x20] sm:$0xff]  }
 0xf0e   : > { %6479 = vperm.xlu0 %9729, %v9774_v20   ;;  %v9808_v52 = vpop.eup %9807  ;;  %9833 = vrcp.f32 %v7124_v36  ;;  %v6268_v36 = vld [vmem:[#allocation5 + $0x18] sm:$0xff] }
 0xf0f   : > { %v9810_v49 = vpop.eup %9809  ;;  %9835 = vrcp.f32 %v6821_v62 }
 0xf10   : > { %v9812_v45 = vpop.eup %9811  ;;  %9837 = vrcp.f32 %v6820_v5 }
 0xf11   : > { %6494 = vperm.xlu1 %9730, %v9776_v11   ;;  %v9814_v43 = vpop.eup %9813  ;;  %9839 = vrcp.f32 %v6823_v51 }
 0xf12   : > { %6489 = vperm.xlu0 %9729, %v9778_v19   ;;  %v9816_v12 = vpop.eup %9815  ;;  %9841 = vrcp.f32 %v6822_v47  ;;  %v6425_v47 = vld [vmem:[#allocation5 + $0xa0] sm:$0xff] }
 0xf13   : > { %v9818_v53 = vpop.eup %9817  ;;  %9843 = vrcp.f32 %v7127_v4 }
 0xf14   : > { %v9820_v50 = vpop.eup %9819  ;;  %9845 = vrcp.f32 %v7126_v39 }
 0xf15   : > { %6328 = vperm.xlu1 %9730, %v9780_v23   ;;  %v9822_v17 = vpop.eup %9821  ;;  %9847 = vrcp.f32 %v7129_v59 }
 0xf16   : > { %6323 = vperm.xlu0 %9729, %v9782_v56   ;;  %v9824_v42 = vpop.eup %9823  ;;  %9849 = vrcp.f32 %v7128_v44 }
 0xf17   : > { %v9826_v35 = vpop.eup %9825  ;;  %9851 = vrcp.f32 %v6825_v40 }
 0xf18   : > { %v9828_v32 = vpop.eup %9827  ;;  %9853 = vrcp.f32 %v6824_v31 }
 0xf19   : > { %6338 = vperm.xlu1 %9730, %v9784_v24   ;;  %v9830_v1 = vpop.eup %9829  ;;  %9855 = vrcp.f32 %v6827_v41  ;;  %v6269_v41 = vld [vmem:[#allocation5 + $0x20] sm:$0xff] }
 0xf1a   : > { %6333 = vperm.xlu0 %9729, %v9786_v2   ;;  %v9832_v58 = vpop.eup %9831  ;;  %9857 = vrcp.f32 %v6826_v61 }
 0xf1b   : > { %v9834_v16 = vpop.eup %9833  ;;  %9859 = vrcp.f32 %v7131_v26 }
 0xf1c   : > { %v9836_v20 = vpop.eup %9835  ;;  %9861 = vrcp.f32 %v7130_v13  ;;  %v6272_v13 = vld [vmem:[#allocation5 + $0x38] sm:$0xff] }
 0xf1d   : > { %6504 = vperm.xlu1 %9730, %v9788_v54   ;;  %v9838_v11 = vpop.eup %9837  ;;  %9863 = vrcp.f32 %v7133_v34 }
 0xf1e   : > { %6499 = vperm.xlu0 %9729, %v9790_v55   ;;  %v9840_v19 = vpop.eup %9839  ;;  %9865 = vrcp.f32 %v7132_v57 }
 0xf1f   : > { %v9842_v23 = vpop.eup %9841 }
 0xf20   : > { %v9844_v56 = vpop.eup %9843 }
 0xf21   : > { %6514 = vperm.xlu1 %9730, %v9792_v14   ;;  %v9846_v24 = vpop.eup %9845 }
 0xf22   : > { %6509 = vperm.xlu0 %9729, %v9794_v46   ;;  %v9848_v2 = vpop.eup %9847 }
 0xf23   : > { %v9850_v54 = vpop.eup %9849 }
 0xf24   : > { %v9852_v55 = vpop.eup %9851 }
 0xf25   : > { %6348 = vperm.xlu1 %9730, %v9796_v0   ;;  %v9854_v15 = vpop.eup %9853 }
 0xf26   : > { %6343 = vperm.xlu0 %9729, %v9798_v18   ;;  %v9856_v14 = vpop.eup %9855 }
 0xf27   : > { %v9858_v37 = vpop.eup %9857 }
 0xf28   : > { %v9860_v46 = vpop.eup %9859 }
 0xf29   : > { %6358 = vperm.xlu1 %9730, %v9800_v28   ;;  %v9862_v38 = vpop.eup %9861  ;;  %v6423_v28 = vld [vmem:[#allocation5 + $0x90] sm:$0xff] }
 0xf2a   : > { %6353 = vperm.xlu0 %9729, %v9802_v29   ;;  %v9864_v0 = vpop.eup %9863  ;;  %v6421_v29 = vld [vmem:[#allocation5 + $0x80] sm:$0xff] }
 0xf2b   : > { %v9866_v22 = vpop.eup %9865 }
 0xf2d   : > { %6867 = vperm.xlu1 %9730, %v9804_v27  }
 0xf2e   : > { %6862 = vperm.xlu0 %9729, %v9806_v7  }
 0xf31   : > { %6877 = vperm.xlu1 %9730, %v9808_v52  }
 0xf32   : > { %6872 = vperm.xlu0 %9729, %v9810_v49   ;;  %v6266_v49 = vld [vmem:[#allocation5 + $0x8] sm:$0xff] }
 0xf35   : > { %7173 = vperm.xlu1 %9730, %v9812_v45   ;;  %v6265_v45 = vld [vmem:[#allocation5] sm:$0xff] }
 0xf36   : > { %7168 = vperm.xlu0 %9729, %v9814_v43  }
 0xf39   : > { %7183 = vperm.xlu1 %9730, %v9816_v12  }
 0xf3a   : > { %7178 = vperm.xlu0 %9729, %v9818_v53  }
 0xf3d   : > { %6887 = vperm.xlu1 %9730, %v9820_v50   ;;  %v6267_v50 = vld [vmem:[#allocation5 + $0x10] sm:$0xff] }
 0xf3e   : > { %6882 = vperm.xlu0 %9729, %v9822_v17  }
 0xf41   : > { %6897 = vperm.xlu1 %9730, %v9824_v42  }
 0xf42   : > { %6892 = vperm.xlu0 %9729, %v9826_v35   ;;  %v6426_v35 = vld [vmem:[#allocation5 + $0xa8] sm:$0xff] }
 0xf45   : > { %7193 = vperm.xlu1 %9730, %v9828_v32  }
 0xf46   : > { %7188 = vperm.xlu0 %9729, %v9830_v1   ;;  %v9738_v1 = vld [vmem:[%s13210_s5 + $0x30] sm:$0xff]  }
 0xf49   : > { %7203 = vperm.xlu1 %9730, %v9832_v58  }
 0xf4a   : > { %7198 = vperm.xlu0 %9729, %v9834_v16   ;;  %v6427_v16 = vld [vmem:[#allocation5 + $0xb0] sm:$0xff] }
 0xf4d   : > { %6907 = vperm.xlu1 %9730, %v9836_v20  }
 0xf4e   : > { %6902 = vperm.xlu0 %9729, %v9838_v11  }
 0xf51   : > { %6917 = vperm.xlu1 %9730, %v9840_v19   ;;  %v6270_v19 = vld [vmem:[#allocation5 + $0x28] sm:$0xff] }
 0xf52   : > { %6912 = vperm.xlu0 %9729, %v9842_v23  }
 0xf55   : > { %7213 = vperm.xlu1 %9730, %v9844_v56  }
 0xf56   : > { %7208 = vperm.xlu0 %9729, %v9846_v24  }
 0xf59   : > { %7223 = vperm.xlu1 %9730, %v9848_v2  }
 0xf5a   : > { %7218 = vperm.xlu0 %9729, %v9850_v54  }
 0xf5d   : > { %6927 = vperm.xlu1 %9730, %v9852_v55  }
 0xf5e   : > { %6922 = vperm.xlu0 %9729, %v9854_v15   ;;  %v6430_v15 = vld [vmem:[#allocation5 + $0xc8] sm:$0xff] }
 0xf61   : > { %6937 = vperm.xlu1 %9730, %v9856_v14   ;;  %v6429_v14 = vld [vmem:[#allocation5 + $0xc0] sm:$0xff] }
 0xf62   : > { %6932 = vperm.xlu0 %9729, %v9858_v37  }
 0xf65   : > { %7233 = vperm.xlu1 %9730, %v9860_v46  }
 0xf66   : > { %7228 = vperm.xlu0 %9729, %v9862_v38  }
 0xf68   : > { %v6450_v18 = vpop.permute.xlu1 %6449 }
 0xf69   : > { %v6440_v10 = vpop.permute.xlu0 %6439  ;;  %7243 = vperm.xlu1 %9730, %v9864_v0   ;;  %v6519_v9 = vmul.f32 %v6450_v18, %v6423_v28  ;;  %v6432_v18 = vld [vmem:[#allocation5 + $0xd8] sm:$0xff] }
 0xf6a   : > { %7238 = vperm.xlu0 %9729, %v9866_v22   ;;  %v6517_v52 = vmul.f32 %v6440_v10, %v6421_v29  ;;  %v6431_v10 = vld [vmem:[#allocation5 + $0xd0] sm:$0xff] }
 0xf6c   : > { %v6455_v27 = vpop.permute.xlu1 %6454 }
 0xf6d   : > { %v6520_v7 = vmul.f32 %v6455_v27, %v6424_v33  ;;  %v6445_v30 = vpop.permute.xlu0 %6444 }
 0xf6e   : > { %v6518_v3 = vmul.f32 %v6445_v30, %v6422_v63 }
 0xf6f   : > { %v6534_v48 = vpack.c.bf16 %v6520_v7, %v6519_v9  ;;  %v6274_v9 = vld [vmem:[#allocation5 + $0x48] sm:$0xff]  ;;  %v6273_v7 = vld [vmem:[#allocation5 + $0x40] sm:$0xff] }
 0xf70   : > { %v6289_v8 = vpop.permute.xlu1 %6288  ;;  %v6533_v43 = vpack.c.bf16 %v6518_v3, %v6517_v52 }
 0xf71   : > { %v6362_v60 = vmul.f32 %v6289_v8, %v6266_v49  ;;  %v6284_v12 = vpop.permute.xlu0 %6283  ;;  %v6275_v8 = vld [vmem:[#allocation5 + $0x50] sm:$0xff] }
 0xf72   : > { %v6361_v53 = vmul.f32 %v6284_v12, %v6265_v45  ;;  %9110 = vmatprep.mubr.msk.bf16.mxu0 %vm2043_vm3, %v6533_v43  ;;  %v6276_v45 = vld [vmem:[#allocation5 + $0x58] sm:$0xff] }
 0xf73   : > { %9111 = vmatmul.mubr.msk.bf16.vlgmr.msra.gmra.mxu0 %vm2043_vm3, %v6534_v48 }
 0xf74   : > { %v6299_v62 = vpop.permute.xlu1 %6298  ;;  %v6377_v17 = vpack.c.bf16 %v6362_v60, %v6361_v53  ;;  %9147 = vmatpush3.bf16.msra.mxu0 %v13002_v21  ;;  %v6428_v21 = vld [vmem:[#allocation5 + $0xb8] sm:$0xff] }
 0xf75   : > { %v6364_v5 = vmul.f32 %v6299_v62, %v6268_v36  ;;  %v6294_v42 = vpop.permute.xlu0 %6293  ;;  %9148 = vmatprep.subr.bf16.mxu0 %v9736_v6  ;;  %v6434_v36 = vld [vmem:[#allocation5 + $0xe8] sm:$0xff] }
 0xf76   : > { %v6363_v51 = vmul.f32 %v6294_v42, %v6267_v50  ;;  %9130 = vmatprep.mubr.msk.bf16.mxu1 %vm2043_vm3, %v6377_v17  ;;  %v6433_v50 = vld [vmem:[#allocation5 + $0xe0] sm:$0xff] }
 0xf78   : > { %v6378_v32 = vpack.c.bf16 %v6364_v5, %v6363_v51  ;;  %v6465_v4 = vpop.permute.xlu1 %6464  ;;  %9149 = vmatpush3.bf16.msra.mxu0 %v9736_v6 }
 0xf79   : > { %v6522_v39 = vmul.f32 %v6465_v4, %v6426_v35  ;;  %v6460_v58 = vpop.permute.xlu0 %6459  ;;  %v6436_v35 = vld [vmem:[#allocation5 + $0xf8] sm:$0xff] }
 0xf7a   : > { %v6521_v59 = vmul.f32 %v6460_v58, %v6425_v47  ;;  %9131 = vmatmul.mubr.msk.bf16.vlgmr.msra.gmra.mxu1 %vm2043_vm3, %v6378_v32  ;;  %v6435_v47 = vld [vmem:[#allocation5 + $0xf0] sm:$0xff] }
 0xf7b   : > { %9167 = vmatpush3.bf16.msra.mxu1 %v13008_v25  ;;  %v6271_v25 = vld [vmem:[#allocation5 + $0x30] sm:$0xff] }
 0xf7c   : > { %v6535_v44 = vpack.c.bf16 %v6522_v39, %v6521_v59  ;;  %v6475_v20 = vpop.permute.xlu1 %6474  ;;  %9168 = vmatprep.subr.bf16.mxu1 %v9738_v1  ;;  %v6278_v59 = vld [vmem:[#allocation5 + $0x68] sm:$0xff] }
 0xf7d   : > { %v6524_v40 = vmul.f32 %v6475_v20, %v6428_v21  ;;  %v6470_v11 = vpop.permute.xlu0 %6469  ;;  %v6277_v21 = vld [vmem:[#allocation5 + $0x60] sm:$0xff] }
 0xf7e   : > { %v6523_v31 = vmul.f32 %v6470_v11, %v6427_v16  ;;  %9114 = vmatprep.mubr.msk.bf16.mxu0 %vm2043_vm3, %v6535_v44 }
 0xf7f   : > { %9169 = vmatpush3.bf16.msra.mxu1 %v9738_v1 }
 0xf80   : > { %v6536_v23 = vpack.c.bf16 %v6524_v40, %v6523_v31  ;;  %v6309_v61 = vpop.permute.xlu1 %6308  ;;  %v6280_v31 = vld [vmem:[#allocation5 + $0x78] sm:$0xff] }
 0xf81   : > { %v6366_v56 = vmul.f32 %v6309_v61, %v6270_v19  ;;  %v6304_v26 = vpop.permute.xlu0 %6303  ;;  %v6279_v19 = vld [vmem:[#allocation5 + $0x70] sm:$0xff] }
 0xf82   : > { %v6365_v24 = vmul.f32 %v6304_v26, %v6269_v41  ;;  %9115 = vmatmul.mubr.msk.bf16.gmra.mxu0 %vm2043_vm3, %v6536_v23 }
 0xf84   : > { %v6379_v2 = vpack.c.bf16 %v6366_v56, %v6365_v24  ;;  %v6319_v34 = vpop.permute.xlu1 %6318  ;;  %v6845_v24 = vld [vmem:[#allocation5 + $0x108] sm:$0xff] }
 0xf85   : > { %v6368_v54 = vmul.f32 %v6319_v34, %v6272_v13  ;;  %v6314_v57 = vpop.permute.xlu0 %6313  ;;  %v6844_v13 = vld [vmem:[#allocation5 + $0x100] sm:$0xff] }
 0xf86   : > { %v6367_v55 = vmul.f32 %v6314_v57, %v6271_v25  ;;  %9134 = vmatprep.mubr.msk.bf16.mxu1 %vm2043_vm3, %v6379_v2 }
 0xf88   : > { %v6380_v37 = vpack.c.bf16 %v6368_v54, %v6367_v55  ;;  %v6485_v46 = vpop.permute.xlu1 %6484  ;;  %v6847_v55 = vld [vmem:[#allocation5 + $0x118] sm:$0xff] }
 0xf89   : > { %v6526_v38 = vmul.f32 %v6485_v46, %v6430_v15  ;;  %v6480_v0 = vpop.permute.xlu0 %6479  ;;  %v6846_v15 = vld [vmem:[#allocation5 + $0x110] sm:$0xff] }
 0xf8a   : > { %v6525_v22 = vmul.f32 %v6480_v0, %v6429_v14  ;;  %9135 = vmatmul.mubr.msk.bf16.gmra.mxu1 %vm2043_vm3, %v6380_v37 }
 0xf8c   : > { %v6537_v28 = vpack.c.bf16 %v6526_v38, %v6525_v22  ;;  %v6495_v33 = vpop.permute.xlu1 %6494  ;;  %v7151_v22 = vld [vmem:[#allocation5 + $0x188] sm:$0xff] }
 0xf8d   : > { %v6528_v29 = vmul.f32 %v6495_v33, %v6432_v18  ;;  %v6490_v63 = vpop.permute.xlu0 %6489  ;;  %v7150_v18 = vld [vmem:[#allocation5 + $0x180] sm:$0xff] }
 0xf8e   : > { %v6527_v27 = vmul.f32 %v6490_v63, %v6431_v10  ;;  %9118 = vmatprep.mubr.msk.bf16.mxu0 %vm2043_vm3, %v6537_v28 }
 0xf90   : > { %v6538_v30 = vpack.c.bf16 %v6528_v29, %v6527_v27  ;;  %v6329_v52 = vpop.permute.xlu1 %6328  ;;  %v7153_v27 = vld [vmem:[#allocation5 + $0x198] sm:$0xff] }
 0xf91   : > { %v6370_v3 = vmul.f32 %v6329_v52, %v6274_v9  ;;  %v6324_v49 = vpop.permute.xlu0 %6323  ;;  %v7152_v9 = vld [vmem:[#allocation5 + $0x190] sm:$0xff] }
 0xf92   : > { %v6369_v48 = vmul.f32 %v6324_v49, %v6273_v7  ;;  %9119 = vmatmul.mubr.msk.bf16.gmra.mxu0 %vm2043_vm3, %v6538_v30 }
 0xf94   : > { %v6381_v43 = vpack.c.bf16 %v6370_v3, %v6369_v48  ;;  %v6339_v60 = vpop.permute.xlu1 %6338  ;;  %v6849_v48 = vld [vmem:[#allocation5 + $0x128] sm:$0xff] }
 0xf95   : > { %v6372_v12 = vmul.f32 %v6339_v60, %v6276_v45  ;;  %v6334_v6 = vpop.permute.xlu0 %6333  ;;  %v6848_v45 = vld [vmem:[#allocation5 + $0x120] sm:$0xff] }
 0xf96   : > { %v6371_v53 = vmul.f32 %v6334_v6, %v6275_v8  ;;  %9138 = vmatprep.mubr.msk.bf16.mxu1 %vm2043_vm3, %v6381_v43 }
 0xf98   : > { %v6382_v62 = vpack.c.bf16 %v6372_v12, %v6371_v53  ;;  %v6505_v17 = vpop.permute.xlu1 %6504  ;;  %v6851_v53 = vld [vmem:[#allocation5 + $0x138] sm:$0xff] }
 0xf99   : > { %v6530_v5 = vmul.f32 %v6505_v17, %v6434_v36  ;;  %v6500_v42 = vpop.permute.xlu0 %6499  ;;  %v6850_v36 = vld [vmem:[#allocation5 + $0x130] sm:$0xff] }
 0xf9a   : > { %v6529_v51 = vmul.f32 %v6500_v42, %v6433_v50  ;;  %9139 = vmatmul.mubr.msk.bf16.gmra.mxu1 %vm2043_vm3, %v6382_v62 }
 0xf9c   : > { %v6539_v32 = vpack.c.bf16 %v6530_v5, %v6529_v51  ;;  %v6515_v4 = vpop.permute.xlu1 %6514  ;;  %v7155_v51 = vld [vmem:[#allocation5 + $0x1a8] sm:$0xff] }
 0xf9d   : > { %v6532_v1 = vmul.f32 %v6515_v4, %v6436_v35  ;;  %v6510_v39 = vpop.permute.xlu0 %6509  ;;  %v7154_v35 = vld [vmem:[#allocation5 + $0x1a0] sm:$0xff] }
 0xf9e   : > { %v6531_v58 = vmul.f32 %v6510_v39, %v6435_v47  ;;  %9122 = vmatprep.mubr.msk.bf16.mxu0 %vm2043_vm3, %v6539_v32 }
 0xfa0   : > { %v6540_v16 = vpack.c.bf16 %v6532_v1, %v6531_v58  ;;  %v6349_v44 = vpop.permute.xlu1 %6348  ;;  %v7157_v58 = vld [vmem:[#allocation5 + $0x1b8] sm:$0xff] }
 0xfa1   : > { %v6374_v20 = vmul.f32 %v6349_v44, %v6278_v59  ;;  %v6344_v40 = vpop.permute.xlu0 %6343  ;;  %v7156_v59 = vld [vmem:[#allocation5 + $0x1b0] sm:$0xff] }
 0xfa2   : > { %v6373_v11 = vmul.f32 %v6344_v40, %v6277_v21  ;;  %9123 = vmatmul.mubr.msk.bf16.gmra.mxu0 %vm2043_vm3, %v6540_v16 }
 0xfa4   : > { %v6383_v41 = vpack.c.bf16 %v6374_v20, %v6373_v11  ;;  %v6359_v23 = vpop.permute.xlu1 %6358  ;;  %v6853_v11 = vld [vmem:[#allocation5 + $0x148] sm:$0xff] }
 0xfa5   : > { %v6376_v61 = vmul.f32 %v6359_v23, %v6280_v31  ;;  %v6354_v56 = vpop.permute.xlu0 %6353  ;;  %v6852_v31 = vld [vmem:[#allocation5 + $0x140] sm:$0xff] }
 0xfa6   : > { %v6375_v26 = vmul.f32 %v6354_v56, %v6279_v19  ;;  %9142 = vmatprep.mubr.msk.bf16.mxu1 %vm2043_vm3, %v6383_v41 }
 0xfa8   : > { %v6384_v25 = vpack.c.bf16 %v6376_v61, %v6375_v26  ;;  %v6868_v2 = vpop.permute.xlu1 %6867  ;;  %v6855_v26 = vld [vmem:[#allocation5 + $0x158] sm:$0xff] }
 0xfa9   : > { %v6941_v34 = vmul.f32 %v6868_v2, %v6845_v24  ;;  %v6863_v54 = vpop.permute.xlu0 %6862  ;;  %v6854_v24 = vld [vmem:[#allocation5 + $0x150] sm:$0xff] }
 0xfaa   : > { %v6940_v57 = vmul.f32 %v6863_v54, %v6844_v13  ;;  %9143 = vmatmul.mubr.msk.bf16.gmra.mxu1 %vm2043_vm3, %v6384_v25 }
 0xfac   : > { %v6956_v14 = vpack.c.bf16 %v6941_v34, %v6940_v57  ;;  %v6878_v37 = vpop.permute.xlu1 %6877  ;;  %v7159_v57 = vld [vmem:[#allocation5 + $0x1c8] sm:$0xff] }
 0xfad   : > { %v6943_v46 = vmul.f32 %v6878_v37, %v6847_v55  ;;  %v6873_v38 = vpop.permute.xlu0 %6872  ;;  %v7158_v55 = vld [vmem:[#allocation5 + $0x1c0] sm:$0xff] }
 0xfae   : > { %v6942_v0 = vmul.f32 %v6873_v38, %v6846_v15  ;;  %9150 = vmatprep.mubr.msk.bf16.mxu0 %vm2043_vm3, %v6956_v14 }
 0xfb0   : > { %v6957_v10 = vpack.c.bf16 %v6943_v46, %v6942_v0  ;;  %v7174_v28 = vpop.permute.xlu1 %7173  ;;  %v7161_v0 = vld [vmem:[#allocation5 + $0x1d8] sm:$0xff] }
 0xfb1   : > { %v7247_v33 = vmul.f32 %v7174_v28, %v7151_v22  ;;  %v7169_v29 = vpop.permute.xlu0 %7168  ;;  %v7160_v22 = vld [vmem:[#allocation5 + $0x1d0] sm:$0xff] }
 0xfb2   : > { %v7246_v63 = vmul.f32 %v7169_v29, %v7150_v18  ;;  %9151 = vmatmul.mubr.msk.bf16.vlgmr.msra.gmra.mxu0 %vm2043_vm3, %v6957_v10 }
 0xfb4   : > { %v7262_v7 = vpack.c.bf16 %v7247_v33, %v7246_v63  ;;  %v7184_v30 = vpop.permute.xlu1 %7183  ;;  %v6857_v63 = vld [vmem:[#allocation5 + $0x168] sm:$0xff] }
 0xfb5   : > { %v7249_v52 = vmul.f32 %v7184_v30, %v7153_v27  ;;  %v7179_v3 = vpop.permute.xlu0 %7178  ;;  %v6856_v27 = vld [vmem:[#allocation5 + $0x160] sm:$0xff] }
 0xfb6   : > { %v7248_v49 = vmul.f32 %v7179_v3, %v7152_v9  ;;  %9170 = vmatprep.mubr.msk.bf16.mxu1 %vm2043_vm3, %v7262_v7 }
 0xfb8   : > { %v7263_v8 = vpack.c.bf16 %v7249_v52, %v7248_v49  ;;  %v6888_v43 = vpop.permute.xlu1 %6887  ;;  %v6859_v49 = vld [vmem:[#allocation5 + $0x178] sm:$0xff] }
 0xfb9   : > { %v6945_v60 = vmul.f32 %v6888_v43, %v6849_v48  ;;  %v6883_v12 = vpop.permute.xlu0 %6882  ;;  %v6858_v48 = vld [vmem:[#allocation5 + $0x170] sm:$0xff] }
 0xfba   : > { %v6944_v6 = vmul.f32 %v6883_v12, %v6848_v45  ;;  %9171 = vmatmul.mubr.msk.bf16.vlgmr.msra.gmra.mxu1 %vm2043_vm3, %v7263_v8 }
 0xfbc   : > { %v6958_v50 = vpack.c.bf16 %v6945_v60, %v6944_v6  ;;  %v6898_v62 = vpop.permute.xlu1 %6897  ;;  %v7163_v6 = vld [vmem:[#allocation5 + $0x1e8] sm:$0xff] }
 0xfbd   : > { %v6947_v17 = vmul.f32 %v6898_v62, %v6851_v53  ;;  %v6893_v5 = vpop.permute.xlu0 %6892  ;;  %v7162_v53 = vld [vmem:[#allocation5 + $0x1e0] sm:$0xff] }
 0xfbe   : > { %v6946_v42 = vmul.f32 %v6893_v5, %v6850_v36  ;;  %9154 = vmatprep.mubr.msk.bf16.mxu0 %vm2043_vm3, %v6958_v50 }
 0xfc0   : > { %v6959_v47 = vpack.c.bf16 %v6947_v17, %v6946_v42  ;;  %v7194_v32 = vpop.permute.xlu1 %7193  ;;  %v7165_v42 = vld [vmem:[#allocation5 + $0x1f8] sm:$0xff] }
 0xfc1   : > { %v7251_v4 = vmul.f32 %v7194_v32, %v7155_v51  ;;  %v7189_v1 = vpop.permute.xlu0 %7188  ;;  %v7164_v51 = vld [vmem:[#allocation5 + $0x1f0] sm:$0xff] }
 0xfc2   : > { %v7250_v39 = vmul.f32 %v7189_v1, %v7154_v35  ;;  %9155 = vmatmul.mubr.msk.bf16.gmra.mxu0 %vm2043_vm3, %v6959_v47 }
 0xfc4   : > { %v7264_v21 = vpack.c.bf16 %v7251_v4, %v7250_v39  ;;  %v7204_v16 = vpop.permute.xlu1 %7203 }
 0xfc5   : > { %v7253_v44 = vmul.f32 %v7204_v16, %v7157_v58  ;;  %v7199_v20 = vpop.permute.xlu0 %7198 }
 0xfc6   : > { %v7252_v40 = vmul.f32 %v7199_v20, %v7156_v59  ;;  %9174 = vmatprep.mubr.msk.bf16.mxu1 %vm2043_vm3, %v7264_v21 }
 0xfc8   : > { %v7265_v19 = vpack.c.bf16 %v7253_v44, %v7252_v40  ;;  %v6908_v41 = vpop.permute.xlu1 %6907 }
 0xfc9   : > { %v6949_v23 = vmul.f32 %v6908_v41, %v6853_v11  ;;  %v6903_v61 = vpop.permute.xlu0 %6902 }
 0xfca   : > { %v6948_v56 = vmul.f32 %v6903_v61, %v6852_v31  ;;  %9175 = vmatmul.mubr.msk.bf16.gmra.mxu1 %vm2043_vm3, %v7265_v19 }
 0xfcc   : > { %v6960_v13 = vpack.c.bf16 %v6949_v23, %v6948_v56  ;;  %v6918_v25 = vpop.permute.xlu1 %6917 }
 0xfcd   : > { %v6951_v2 = vmul.f32 %v6918_v25, %v6855_v26  ;;  %v6913_v34 = vpop.permute.xlu0 %6912 }
 0xfce   : > { %v6950_v54 = vmul.f32 %v6913_v34, %v6854_v24  ;;  %9158 = vmatprep.mubr.msk.bf16.mxu0 %vm2043_vm3, %v6960_v13 }
 0xfd0   : > { %v6961_v15 = vpack.c.bf16 %v6951_v2, %v6950_v54  ;;  %v7214_v14 = vpop.permute.xlu1 %7213 }
 0xfd1   : > { %v7255_v37 = vmul.f32 %v7214_v14, %v7159_v57  ;;  %v7209_v46 = vpop.permute.xlu0 %7208 }
 0xfd2   : > { %v7254_v38 = vmul.f32 %v7209_v46, %v7158_v55  ;;  %9159 = vmatmul.mubr.msk.bf16.gmra.mxu0 %vm2043_vm3, %v6961_v15 }
 0xfd4   : > { %v7266_v18 = vpack.c.bf16 %v7255_v37, %v7254_v38  ;;  %v7224_v10 = vpop.permute.xlu1 %7223 }
 0xfd5   : > { %v7257_v28 = vmul.f32 %v7224_v10, %v7161_v0  ;;  %v7219_v33 = vpop.permute.xlu0 %7218 }
 0xfd6   : > { %v7256_v29 = vmul.f32 %v7219_v33, %v7160_v22  ;;  %9178 = vmatprep.mubr.msk.bf16.mxu1 %vm2043_vm3, %v7266_v18 }
 0xfd8   : > { %v7267_v9 = vpack.c.bf16 %v7257_v28, %v7256_v29  ;;  %v6928_v7 = vpop.permute.xlu1 %6927 }
 0xfd9   : > { %v6953_v30 = vmul.f32 %v6928_v7, %v6857_v63  ;;  %v6923_v52 = vpop.permute.xlu0 %6922 }
 0xfda   : > { %v6952_v3 = vmul.f32 %v6923_v52, %v6856_v27  ;;  %9179 = vmatmul.mubr.msk.bf16.gmra.mxu1 %vm2043_vm3, %v7267_v9 }
 0xfdc   : > { %v6962_v45 = vpack.c.bf16 %v6953_v30, %v6952_v3  ;;  %v6938_v8 = vpop.permute.xlu1 %6937  ;;  %v13086_v30 = vld [vmem:[%s13211_s6] ss:$0 sm:$0xff] }
 0xfdd   : > { %v6955_v43 = vmul.f32 %v6938_v8, %v6859_v49  ;;  %v6933_v60 = vpop.permute.xlu0 %6932 }
 0xfde   : > { %v6954_v12 = vmul.f32 %v6933_v60, %v6858_v48  ;;  %9162 = vmatprep.mubr.msk.bf16.mxu0 %vm2043_vm3, %v6962_v45 }
 0xfe0   : > { %v6963_v36 = vpack.c.bf16 %v6955_v43, %v6954_v12  ;;  %v7234_v50 = vpop.permute.xlu1 %7233 }
 0xfe1   : > { %v7259_v62 = vmul.f32 %v7234_v50, %v7163_v6  ;;  %v7229_v17 = vpop.permute.xlu0 %7228 }
 0xfe2   : > { %v7258_v5 = vmul.f32 %v7229_v17, %v7162_v53  ;;  %9163 = vmatmul.mubr.msk.bf16.gmra.mxu0 %vm2043_vm3, %v6963_v36 }
 0xfe4   : > { %v7268_v35 = vpack.c.bf16 %v7259_v62, %v7258_v5  ;;  %v7244_v47 = vpop.permute.xlu1 %7243 }
 0xfe5   : > { %v7261_v32 = vmul.f32 %v7244_v47, %v7165_v42  ;;  %v7239_v4 = vpop.permute.xlu0 %7238 }
 0xfe6   : > { %v7260_v1 = vmul.f32 %v7239_v4, %v7164_v51  ;;  %9182 = vmatprep.mubr.msk.bf16.mxu1 %vm2043_vm3, %v7268_v35 }
 0xfe8   : > { %v7269_v39 = vpack.c.bf16 %v7261_v32, %v7260_v1 }
 0xfea   : > { %9183 = vmatmul.mubr.msk.bf16.gmra.mxu1 %vm2043_vm3, %v7269_v39 }
0x1033   : > { %v9112_v58 = vpop.f32.mrf.mxu0 }
0x1035   : > { %v6616_v59 = vpop.f32.mrf.mxu0 }
0x1037   : > { %v9113_v21 = vpop.f32.mrf.mxu0 }
0x1039   : > { %v6619_v44 = vpop.f32.mrf.mxu0 }
0x103a   : > { %v9132_v16 = vpop.f32.mrf.mxu1 }
0x103b   : > { %v6758_v33 = vadd.f32 %v9132_v16, %v9112_v58 }
0x103c   : > { %v6749_v20 = vpop.f32.mrf.mxu1 }
0x103d   : > { %v6750_v27 = vadd.f32 %v6749_v20, %v6616_v59 }
0x103e   : > { %v9133_v11 = vpop.f32.mrf.mxu1 }
0x103f   : > { %v6761_v52 = vadd.f32 %v9133_v11, %v9113_v21 }
0x1040   : > { %v6752_v19 = vpop.f32.mrf.mxu1 }
0x1041   : > { %v6753_v8 = vadd.f32 %v6752_v19, %v6619_v44 }
0x1042   : > { %v9116_v40 = vpop.f32.mrf.mxu0 }
0x1044   : > { %v6632_v31 = vpop.f32.mrf.mxu0 }
0x1046   : > { %v9117_v41 = vpop.f32.mrf.mxu0 }
0x1048   : > { %v6635_v61 = vpop.f32.mrf.mxu0 }
0x104a   : > { %v9136_v23 = vpop.f32.mrf.mxu1 }
0x104b   : > { %v6774_v47 = vadd.f32 %v9136_v23, %v9116_v40 }
0x104c   : > { %v6765_v56 = vpop.f32.mrf.mxu1 }
0x104d   : > { %v6766_v4 = vadd.f32 %v6765_v56, %v6632_v31 }
0x104e   : > { %v9137_v24 = vpop.f32.mrf.mxu1 }
0x104f   : > { %v6777_v58 = vadd.f32 %v9137_v24, %v9117_v41 }
0x1050   : > { %v6768_v25 = vpop.f32.mrf.mxu1 }
0x1051   : > { %v6769_v20 = vadd.f32 %v6768_v25, %v6635_v61 }
0x1052   : > { %v13051_v26 = vpop.f32.mrf.mxu0 }
0x1054   : > { %v13053_v13 = vpop.f32.mrf.mxu0 }
0x1056   : > { %v13055_v2 = vpop.f32.mrf.mxu0 }
0x1058   : > { %v13059_v54 = vpop.f32.mrf.mxu0 }
0x105a   : > { %v13057_v34 = vpop.f32.mrf.mxu1 }
0x105c   : > { %v13061_v57 = vpop.f32.mrf.mxu1 }
0x105e   : > { %v13065_v15 = vpop.f32.mrf.mxu1 }
0x1060   : > { %v13069_v37 = vpop.f32.mrf.mxu1 }
0x1062   : > { %v13063_v55 = vpop.f32.mrf.mxu0 }
0x1064   : > { %v13067_v14 = vpop.f32.mrf.mxu0 }
0x1066   : > { %v13071_v46 = vpop.f32.mrf.mxu0 }
0x1068   : > { %v13075_v0 = vpop.f32.mrf.mxu0 }
0x106a   : > { %v13073_v38 = vpop.f32.mrf.mxu1 }
0x106c   : > { %v13077_v22 = vpop.f32.mrf.mxu1 }
0x106e   : > { %v13079_v10 = vpop.f32.mrf.mxu1 }
0x1070   : > { %v13081_v29 = vpop.f32.mrf.mxu1 }
0x1072   : > { %v9152_v18 = vpop.f32.mrf.mxu0 }
0x1073   : > { %v7104_v9 = vadd.f32 %v9152_v18, %v6758_v33 }
0x1074   : > { %v7039_v28 = vpop.f32.mrf.mxu0 }
0x1075   : > { %v7102_v3 = vadd.f32 %v7039_v28, %v6750_v27 }
0x1076   : > { %v9153_v63 = vpop.f32.mrf.mxu0 }
0x1077   : > { %v7105_v43 = vadd.f32 %v9153_v63, %v6761_v52  ;;  %v6790_v63 = vadd.f32 %v13057_v34, %v13051_v26 }
0x1078   : > { %v7042_v48 = vpop.f32.mrf.mxu0 }
0x1079   : > { %v7103_v53 = vadd.f32 %v7042_v48, %v6753_v8 }
0x107a   : > { %v9172_v7 = vpop.f32.mrf.mxu1 }
0x107b   : > { %v7410_v49 = vadd.f32 %v9172_v7, %v7104_v9  ;;  %v6782_v9 = vadd.f32 %v13061_v57, %v13053_v13 }
0x107c   : > { %v7345_v45 = vpop.f32.mrf.mxu1 }
0x107d   : > { %v7433_v60 = vadd.f32 %v13086_v30, %v7410_v49  ;;  %v7408_v12 = vadd.f32 %v7345_v45, %v7102_v3  ;;  %v6793_v3 = vadd.f32 %v13065_v15, %v13055_v2 }
0x107e   : > { %v9173_v6 = vpop.f32.mrf.mxu1 }
0x107f   : > { %7449 = vst [vmem:[%s10130_s17 + $0x10] sm:$0xff] %v7433_v60  ;;  %v7431_v36 = vadd.f32 %v13086_v30, %v7408_v12  ;;  %v7411_v50 = vadd.f32 %v9173_v6, %v7105_v43  ;;  %v6785_v43 = vadd.f32 %v13069_v37, %v13059_v54 }
0x1080   : > { %v7348_v62 = vpop.f32.mrf.mxu1 }
0x1081   : > { %7447 = vst [vmem:[%s10130_s17] sm:$0xff] %v7431_v36  ;;  %v7434_v17 = vadd.f32 %v13086_v30, %v7411_v50  ;;  %v7409_v5 = vadd.f32 %v7348_v62, %v7103_v53  ;;  %v6806_v50 = vadd.f32 %v13073_v38, %v13063_v55  ;;  %v6801_v55 = vadd.f32 %v13081_v29, %v13075_v0 }
0x1082   : > { %v9156_v42 = vpop.f32.mrf.mxu0 }
0x1083   : > { %7450 = vst [vmem:[%s10130_s17 + $0x18] sm:$0xff] %v7434_v17  ;;  %v7432_v51 = vadd.f32 %v13086_v30, %v7409_v5  ;;  %v7108_v1 = vadd.f32 %v9156_v42, %v6774_v47  ;;  %v6798_v17 = vadd.f32 %v13077_v22, %v13067_v14 }
0x1084   : > { %v7055_v35 = vpop.f32.mrf.mxu0 }
0x1085   : > { %7448 = vst [vmem:[%s10130_s17 + $0x8] sm:$0xff] %v7432_v51  ;;  %v7106_v59 = vadd.f32 %v7055_v35, %v6766_v4  ;;  %v6809_v51 = vadd.f32 %v13079_v10, %v13071_v46 }
0x1086   : > { %v9157_v32 = vpop.f32.mrf.mxu0 }
0x1087   : > { %v7109_v11 = vadd.f32 %v9157_v32, %v6777_v58 }
0x1088   : > { %v7058_v16 = vpop.f32.mrf.mxu0 }
0x1089   : > { %v7107_v40 = vadd.f32 %v7058_v16, %v6769_v20 }
0x108a   : > { %v9176_v39 = vpop.f32.mrf.mxu1 }
0x108b   : > { %v7414_v21 = vadd.f32 %v9176_v39, %v7108_v1 }
0x108c   : > { %v7361_v44 = vpop.f32.mrf.mxu1 }
0x108d   : > { %v7437_v19 = vadd.f32 %v13086_v30, %v7414_v21  ;;  %v7412_v18 = vadd.f32 %v7361_v44, %v7106_v59 }
0x108e   : > { %v9177_v28 = vpop.f32.mrf.mxu1 }
0x108f   : > { %7453 = vst [vmem:[%s10130_s17 + $0x30] sm:$0xff] %v7437_v19  ;;  %v7435_v31 = vadd.f32 %v13086_v30, %v7412_v18  ;;  %v7415_v23 = vadd.f32 %v9177_v28, %v7109_v11 }
0x1090   : > { %v7364_v56 = vpop.f32.mrf.mxu1 }
0x1091   : > { %7451 = vst [vmem:[%s10130_s17 + $0x20] sm:$0xff] %v7435_v31  ;;  %v7438_v41 = vadd.f32 %v13086_v30, %v7415_v23  ;;  %v7413_v24 = vadd.f32 %v7364_v56, %v7107_v40 }
0x1092   : > { %v9160_v33 = vpop.f32.mrf.mxu0 }
0x1093   : > { %7454 = vst [vmem:[%s10130_s17 + $0x38] sm:$0xff] %v7438_v41  ;;  %v7436_v61 = vadd.f32 %v13086_v30, %v7413_v24  ;;  %v7112_v7 = vadd.f32 %v9160_v33, %v6790_v63 }
0x1094   : > { %v7071_v25 = vpop.f32.mrf.mxu0 }
0x1095   : > { %7452 = vst [vmem:[%s10130_s17 + $0x28] sm:$0xff] %v7436_v61  ;;  %v7110_v49 = vadd.f32 %v7071_v25, %v6782_v9 }
0x1096   : > { %v9161_v27 = vpop.f32.mrf.mxu0 }
0x1097   : > { %v7113_v26 = vadd.f32 %v9161_v27, %v6793_v3 }
0x1098   : > { %v7074_v45 = vpop.f32.mrf.mxu0 }
0x1099   : > { %v7111_v57 = vadd.f32 %v7074_v45, %v6785_v43 }
0x109a   : > { %v9180_v52 = vpop.f32.mrf.mxu1 }
0x109b   : > { %v7418_v48 = vadd.f32 %v9180_v52, %v7112_v7 }
0x109c   : > { %v7377_v8 = vpop.f32.mrf.mxu1 }
0x109d   : > { %v7441_v34 = vadd.f32 %v13086_v30, %v7418_v48  ;;  %v7416_v60 = vadd.f32 %v7377_v8, %v7110_v49 }
0x109e   : > { %v9181_v13 = vpop.f32.mrf.mxu1 }
0x109f   : > { %7457 = vst [vmem:[%s10130_s17 + $0x50] sm:$0xff] %v7441_v34  ;;  %v7439_v12 = vadd.f32 %v13086_v30, %v7416_v60  ;;  %v7419_v6 = vadd.f32 %v9181_v13, %v7113_v26 }
0x10a0   : > { %v7380_v2 = vpop.f32.mrf.mxu1 }
0x10a1   : > { %7455 = vst [vmem:[%s10130_s17 + $0x40] sm:$0xff] %v7439_v12  ;;  %v7442_v15 = vadd.f32 %v13086_v30, %v7419_v6  ;;  %v7417_v53 = vadd.f32 %v7380_v2, %v7111_v57 }
0x10a2   : > { %v9164_v36 = vpop.f32.mrf.mxu0 }
0x10a3   : > { %7458 = vst [vmem:[%s10130_s17 + $0x58] sm:$0xff] %v7442_v15  ;;  %v7440_v54 = vadd.f32 %v13086_v30, %v7417_v53  ;;  %v7116_v5 = vadd.f32 %v9164_v36, %v6806_v50 }
0x10a4   : > { %v7087_v37 = vpop.f32.mrf.mxu0 }
0x10a5   : > { %7456 = vst [vmem:[%s10130_s17 + $0x48] sm:$0xff] %v7440_v54  ;;  %v7114_v35 = vadd.f32 %v7087_v37, %v6798_v17 }
0x10a6   : > { %v9165_v62 = vpop.f32.mrf.mxu0 }
0x10a7   : > { %v7117_v38 = vadd.f32 %v9165_v62, %v6809_v51 }
0x10a8   : > { %v7090_v32 = vpop.f32.mrf.mxu0 }
0x10a9   : > { %v7115_v22 = vadd.f32 %v7090_v32, %v6801_v55 }
0x10aa   : > { %v9184_v42 = vpop.f32.mrf.mxu1 }
0x10ab   : > { %v7422_v47 = vadd.f32 %v9184_v42, %v7116_v5 }
0x10ac   : > { %v7393_v4 = vpop.f32.mrf.mxu1 }
0x10ad   : > { %v7445_v1 = vadd.f32 %v13086_v30, %v7422_v47  ;;  %v7420_v39 = vadd.f32 %v7393_v4, %v7114_v35 }
0x10ae   : > { %v9185_v14 = vpop.f32.mrf.mxu1 }
0x10af   : > { %7461 = vst [vmem:[%s10130_s17 + $0x70] sm:$0xff] %v7445_v1  ;;  %v7443_v58 = vadd.f32 %v13086_v30, %v7420_v39  ;;  %v7423_v59 = vadd.f32 %v9185_v14, %v7117_v38 }
0x10b0   : > { %v7396_v46 = vpop.f32.mrf.mxu1 }
0x10b1   : > { %7459 = vst [vmem:[%s10130_s17 + $0x60] sm:$0xff] %v7443_v58  ;;  %v7446_v10 = vadd.f32 %v13086_v30, %v7423_v59  ;;  %v7421_v21 = vadd.f32 %v7396_v46, %v7115_v22 }
0x10b3   : > { %7462 = vst [vmem:[%s10130_s17 + $0x78] sm:$0xff] %v7446_v10  ;;  %v7444_v16 = vadd.f32 %v13086_v30, %v7421_v21 }
0x10b5   : > { %7460 = vst [vmem:[%s10130_s17 + $0x68] sm:$0xff] %v7444_v16 }
0x10b6 PF: > { %s8038_s28 = sshll.u32 %s9959_s29, 5  ;;  %s7479_s30 = sshll.u32 %s10130_s17, 4  ;;  %s13139_s30 = int_to_ptr.vmem [resolvable:$true] %s7479_s30 }
0x10b7   : > { %s7476_s26 = sadd.s32 %s8038_s28, %s10111_s11  ;;  %s13734_s22 = sand.u32 1, %s9943_s25  }
0x10b8   : > { %s8039_s9 = sshll.u32 %s7476_s26, 7  ;;  %s13148_s12 = scalar_lea.sflag [#allocation7], %s13734_s22 }
0x10b9   : > { %s13144_s15 = scalar_lea.hbm %s13212_s7, %s8039_s9  ;;  %s9867_s18 = scalar_lea.vmem %s13139_s30, 2048 }
0x10ba   : > { %p9868_p4 = scmp.ne.s32.totalorder %s13139_s30, %s9867_s18  ;;  %s9981_s29 = smov [#allocation6]  }
0x10bb   : > { %s9871_s17 = sshll.u32 %s9981_s29, 4  ;;  %s9872_s17 = int_to_ptr.vmem [resolvable:$false] %s9871_s17 }
0x10bc   : > { %p9869_p5 = pnand %p9868_p4, %p10086_p6  ;;  %s9873_s11 = scalar_lea.vmem %s9872_s17, 4096 }
0x10bd   : > { %p9874_p9 = scmp.lt.s32.totalorder %s13139_s30, %s9872_s17  ;;  %p9875_p10 = scmp.lt.s32.totalorder %s9873_s11, %s9867_s18 }
0x10be   : > { %p9870_p8 = pneg %p9869_p5 }
0x10bf   : > { %p9876_p11 = por %p9875_p10, %p9874_p9 }
0x10c1   : > { %p9877_p12 = pnand %p9876_p11, %p9870_p8 }
0x10c3   : > { %9880 = shalt.err (!%p9877_p12)
}
0x10c4   : > { %s9881_s19 = scalar_lea.hbm %s13144_s15, 2048  ;;  %s9885_s23 = scalar_lea.hbm %s13212_s7, 8192 }
0x10c5   : > { %p9882_p13 = scmp.ne.s32.totalorder %s13144_s15, %s9881_s19  ;;  %p9886_p2 = scmp.lt.s32.totalorder %s13144_s15, %s13212_s7 }
0x10c6   : > { %p9887_p3 = scmp.lt.s32.totalorder %s9885_s23, %s9881_s19 }
0x10c7   : > { %p9883_p0 = pnand %p9882_p13, %p10086_p6 }
0x10c8   : > { %p9888_p4 = por %p9887_p3, %p9886_p2 }
0x10c9   : > { %p9884_p1 = pneg %p9883_p0 }
0x10cb   : > { %p9889_p5 = pnand %p9888_p4, %p9884_p1 }
0x10cd   : > { %9892 = shalt.err (!%p9889_p5)
}
0x10ce   : > { %s9982_s28 = smov 128   ;;  %s9983_s26 = smov 8  }
0x10cf   : > { %9218 = dma.vmem_to_hbm [thread:$0]  (%p10086_p6), %s13139_s30, 2048, %s13144_s15, %s13148_s12, %s9982_s28, %s9982_s28, %s9983_s26  }
0x10d0 PF: > { %p9224_p8 = scmp.ge.s32.totalorder %s9975_s10, 2  ;;  %s7494_s13 = sand.u32 1, %s9939_s24  }
0x10d1   : > { %s7495_s14 = scalar_lea.sflag [#allocation7], %s7494_s13 }
0x10d2   : > { %p9221_p9 = pnand %p9224_p8, %p10093_p7 }
0x10d4   : > { %p9222_p10 = pneg %p9221_p9 }
0x10d6   : > { %9934 = dma.done.wait (%p9222_p10), %s7495_s14, 2048  }
0x10d7   : > { %9936 = vsyncadd (%p9222_p10), %s7495_s14, 4294965248  ;;  %s20_s10 = sadd.s32 1, %s9975_s10   ;;  %s13736_s22 = sld [smem:[#allocation9_spill]] }
0x10d8   : > { %p17_p11 = scmp.ge.s32.totalorder %s20_s10, 10   ;;  %s13737_s26 = sld [smem:[#allocation17_spill]] }
0x10d9   : > { %s13738_s27 = sld [smem:[#allocation10_spill]]  ;;  %s13744_s24 = smov %s9943_s25 }
0x10da   : > { %s13739_s28 = sld [smem:[#allocation11_spill]]  ;;  %19 = sbr.rel (!%p17_p11) target bundleno = 6 (0x6), region = 121 }
0x10db   : > { %s13740_s29 = sld [smem:[#allocation12_spill]] }
0x10dc   : > { %s13741_s30 = sld [smem:[#allocation13_spill]] }
0x10dd   : > { %s13742_s8 = sld [smem:[#allocation14_spill]]  ;;  %s13745_s25 = smov %s13736_s22 }
0x10de   : > { %s13743_s9 = sld [smem:[#allocation16_spill]] }
0x10df   :  { %7500 = vsyncpa [#allocation7], 1 }
0x10e0   :  { %7502 = vsyncpa [#allocation7 + $0x1], 1 }

</bundles_post_ra>
